<compile_context>
chip_gen: v7x
topology: tpu7x:2x2x1
jax: 0.10.0
libtpu: 0.0.40
codegen_flags: <defaults>
</compile_context>

<pallas_src>
import functools

import jax
import jax.numpy as jnp
from jax import lax
from jax.experimental import pallas as pl
from jax.experimental.pallas import tpu as pltpu

LRELU_SLOPE = 0.2
BN_EPS = 1e-5
VMEM_LIMIT = 32 * 1024 * 1024          # <= v7x 64 MiB physical VMEM
COUT_TILE = 128


def _pick_tile_m(m):
    # keep >= 2 blocks (so megacore gets work on both TensorCores) while
    # blocks stay large; extra grid steps cost ~0.35us each, which is noise.
    for t in (512, 256, 128):
        if m % t == 0 and m // t >= 2:
            return t
    return m


# ------------------------------ Pallas kernels ------------------------------

def _conv_lrelu_kernel(p_ref, w_ref, o_ref):
    y = jnp.dot(p_ref[...], w_ref[...], preferred_element_type=jnp.float32)
    o_ref[...] = jnp.where(y > 0, y, LRELU_SLOPE * y).astype(o_ref.dtype)


def conv_lrelu(p, w):
    """Layer 1: conv-as-GEMM (bf16 operands) + LeakyReLU(0.2)."""
    m, k = p.shape
    _, c = w.shape
    tm = _pick_tile_m(m)
    return pl.pallas_call(
        _conv_lrelu_kernel,
        out_shape=jax.ShapeDtypeStruct((m, c), jnp.bfloat16),
        grid_spec=pltpu.PrefetchScalarGridSpec(
            num_scalar_prefetch=0,
            grid=(m // tm,),
            in_specs=[pl.BlockSpec((tm, k), lambda i: (i, 0)),
                      pl.BlockSpec((k, c), lambda i: (0, 0))],
            out_specs=pl.BlockSpec((tm, c), lambda i: (i, 0)),
        ),
        compiler_params=pltpu.CompilerParams(
            dimension_semantics=("parallel",),
            vmem_limit_bytes=VMEM_LIMIT,
        ),
    )(p, w)


def _batch_stats(y):
    """Per-channel mean and biased variance of y (M, Ctile), two-pass.
    Column reductions are pushed onto the MXU (ones-row matmul), which has
    slack here, instead of cross-sublane XLU chains.  Returns (y - mean, var)."""
    m = y.shape[0]
    inv_m = 1.0 / m
    ones = jnp.ones((8, m), jnp.float32)                 # full sublane tile; row 0 used
    mean = jnp.dot(ones, y, preferred_element_type=jnp.float32)[0:1] * inv_m
    cent = y - mean
    var = jnp.dot(ones, cent * cent,
                  preferred_element_type=jnp.float32)[0:1] * inv_m
    return cent, var


def _conv_bn_lrelu_kernel(p_ref, w_ref, g_ref, b_ref, o_ref):
    y = jnp.dot(p_ref[...], w_ref[...], preferred_element_type=jnp.float32)
    cent, var = _batch_stats(y)
    z = cent * (g_ref[...] * lax.rsqrt(var + BN_EPS)) + b_ref[...]
    o_ref[...] = jnp.where(z > 0, z, LRELU_SLOPE * z).astype(o_ref.dtype)


def conv_bn_lrelu(p, w, gamma, beta):
    """Layers 2-3: conv-as-GEMM + training-mode BatchNorm + LeakyReLU, fully
    fused.  Grid is over Cout tiles (parallel); each step sees the full M, so
    the batch statistics of its channel slab are complete locally."""
    m, k = p.shape
    _, c = w.shape
    tc = COUT_TILE
    return pl.pallas_call(
        _conv_bn_lrelu_kernel,
        out_shape=jax.ShapeDtypeStruct((m, c), jnp.bfloat16),
        grid_spec=pltpu.PrefetchScalarGridSpec(
            num_scalar_prefetch=0,
            grid=(c // tc,),
            in_specs=[pl.BlockSpec((m, k), lambda j: (0, 0)),
                      pl.BlockSpec((k, tc), lambda j: (0, j)),
                      pl.BlockSpec((1, tc), lambda j: (0, j)),
                      pl.BlockSpec((1, tc), lambda j: (0, j))],
            out_specs=pl.BlockSpec((m, tc), lambda j: (0, j)),
        ),
        compiler_params=pltpu.CompilerParams(
            dimension_semantics=("parallel",),
            vmem_limit_bytes=VMEM_LIMIT,
        ),
    )(p, w, gamma, beta)


def _conv_bn_lrelu_sigmoid_head_kernel(p_ref, w4_ref, g_ref, b_ref, w5_ref,
                                       o_ref, acc_ref, *, n_batch, hw):
    j = pl.program_id(0)

    @pl.when(j == 0)
    def _():
        acc_ref[...] = jnp.zeros_like(acc_ref)

    # layer 4 conv + BN(batch stats) + LeakyReLU for this 128-channel slab
    y = jnp.dot(p_ref[...], w4_ref[...], preferred_element_type=jnp.float32)
    cent, var = _batch_stats(y)
    z = cent * (g_ref[...] * lax.rsqrt(var + BN_EPS)) + b_ref[...]
    act = jnp.where(z > 0, z, LRELU_SLOPE * z)            # (n_batch*hw, 128) f32

    # layer 5 partial contraction for this channel slab (VPU mul + reduce):
    # logit[b] += sum_{r,c} act[b*hw + r, c] * w5[c_slab, r]
    w5t = w5_ref[...]                                      # (hw, 128) f32
    parts = [jnp.sum(act[b * hw:(b + 1) * hw, :] * w5t, axis=0, keepdims=True)
             for b in range(n_batch)]                      # n_batch x (1, 128)
    if n_batch < 8:
        parts.append(jnp.zeros((8 - n_batch, COUT_TILE), jnp.float32))
    acc_ref[...] += jnp.concatenate(parts, axis=0)

    @pl.when(j == pl.num_programs(0) - 1)
    def _():
        logits = jnp.sum(acc_ref[0:n_batch, :], axis=1, keepdims=True)  # (n, 1)
        probs = jax.nn.sigmoid(logits)
        o_ref[...] = jnp.broadcast_to(probs, (n_batch, COUT_TILE))


def conv_bn_lrelu_sigmoid_head(p, w4, gamma, beta, w5, *, n_batch, hw):
    """Layer 4 conv + BN + LReLU fused with layer 5 Conv(512->1,4,1,0) + Sigmoid.
    Grid over Cout tiles is 'arbitrary' (logit accumulator across tiles)."""
    assert n_batch <= 8, "head kernel assumes batch <= 8"
    m, k = p.shape
    _, c = w4.shape
    tc = COUT_TILE
    kernel = functools.partial(_conv_bn_lrelu_sigmoid_head_kernel,
                               n_batch=n_batch, hw=hw)
    return pl.pallas_call(
        kernel,
        out_shape=jax.ShapeDtypeStruct((n_batch, tc), jnp.float32),
        grid_spec=pltpu.PrefetchScalarGridSpec(
            num_scalar_prefetch=0,
            grid=(c // tc,),
            in_specs=[pl.BlockSpec((m, k), lambda j: (0, 0)),
                      pl.BlockSpec((k, tc), lambda j: (0, j)),
                      pl.BlockSpec((1, tc), lambda j: (0, j)),
                      pl.BlockSpec((1, tc), lambda j: (0, j)),
                      pl.BlockSpec((hw, tc), lambda j: (0, j))],
            out_specs=pl.BlockSpec((n_batch, tc), lambda j: (0, 0)),
            scratch_shapes=[pltpu.VMEM((8, tc), jnp.float32)],
        ),
        compiler_params=pltpu.CompilerParams(
            dimension_semantics=("arbitrary",),   # logit accumulates across tiles
            vmem_limit_bytes=VMEM_LIMIT,
        ),
    )(p, w4, gamma, beta, w5)


# -------------------------------- glue (JAX) --------------------------------

def extract_patches_nhwc(x, k, stride, pad):
    """im2col: NHWC -> (N*Ho*Wo, C*k*k), feature index = c*k*k + kh*k + kw."""
    n, h, w, c = x.shape
    xp = jnp.pad(x, ((0, 0), (pad, pad), (pad, pad), (0, 0)))
    ho = (h + 2 * pad - k) // stride + 1
    wo = (w + 2 * pad - k) // stride + 1
    cols = []
    for i in range(k):
        for j in range(k):
            cols.append(xp[:, i:i + stride * ho:stride,
                           j:j + stride * wo:stride, :])
    p = jnp.stack(cols, axis=-1)                 # (n, ho, wo, c, k*k)
    return p.reshape(n * ho * wo, c * k * k), ho, wo


def init_params(key):
    """Returns (kernel-format params, raw f32 OIHW params for the reference)."""
    conv_shapes = {"w1": (64, 3, 4, 4), "w2": (128, 64, 4, 4),
                   "w3": (256, 128, 4, 4), "w4": (512, 256, 4, 4),
                   "w5": (1, 512, 4, 4)}
    params, raw = {}, {}
    for (name, shp), k in zip(conv_shapes.items(),
                              jax.random.split(key, len(conv_shapes))):
        w = 0.02 * jax.random.normal(k, shp, dtype=jnp.float32)   # DCGAN-style
        raw[name] = w
        if name == "w5":
            # (1, 512, 4, 4) -> (kh*4+kw, c) = (16, 512), kept f32 for the epilogue
            params[name] = w.reshape(512, 16).T
        else:
            wm = w.reshape(shp[0], -1).T                           # (K, Cout)
            if name == "w1":                                       # pad K 48 -> 128
                wm = jnp.pad(wm, ((0, 128 - wm.shape[0]), (0, 0)))
            params[name] = wm.astype(jnp.bfloat16)
    for idx, c in ((2, 128), (3, 256), (4, 512)):                  # BN defaults
        g = jnp.ones((1, c), jnp.float32)
        b = jnp.zeros((1, c), jnp.float32)
        params[f"gamma{idx}"] = g
        params[f"beta{idx}"] = b
        raw[f"gamma{idx}"] = g
        raw[f"beta{idx}"] = b
    return params, raw


def discriminator_forward(x_nchw, params):
    n = x_nchw.shape[0]
    x = jnp.transpose(x_nchw, (0, 2, 3, 1)).astype(jnp.bfloat16)   # NHWC, bf16

    # layer 1: Conv(3->64, 4, 2, 1) + LeakyReLU(0.2)
    p, ho, wo = extract_patches_nhwc(x, 4, 2, 1)                   # (N*32*32, 48)
    p = jnp.pad(p, ((0, 0), (0, params["w1"].shape[0] - p.shape[1])))
    y = conv_lrelu(p, params["w1"])
    x = y.reshape(n, ho, wo, -1)

    # layers 2-3: Conv + BatchNorm2d (batch stats) + LeakyReLU, fully fused
    for idx in (2, 3):
        p, ho, wo = extract_patches_nhwc(x, 4, 2, 1)
        y = conv_bn_lrelu(p, params[f"w{idx}"],
                          params[f"gamma{idx}"], params[f"beta{idx}"])
        x = y.reshape(n, ho, wo, -1)

    # layer 4 (Conv+BN+LReLU) fused with layer 5 (Conv 512->1, 4,1,0) + Sigmoid
    p, ho, wo = extract_patches_nhwc(x, 4, 2, 1)                   # (N*16, 4096)
    probs = conv_bn_lrelu_sigmoid_head(
        p, params["w4"], params["gamma4"], params["beta4"], params["w5"],
        n_batch=n, hw=ho * wo)
    return probs[:, 0]                                             # .view(-1)


# ---------------------------- pure-JAX reference -----------------------------

def reference_forward(x_nchw, raw):
    """Mirrors the kernel numerics: convs 1-4 take bf16 operands (f32 accumulate),
    BN/LReLU and the final 1-output conv + sigmoid run in f32."""
    def conv(x, w, stride, pad, bf16=True):
        if bf16:
            x = x.astype(jnp.bfloat16)
            w = w.astype(jnp.bfloat16)
        return lax.conv_general_dilated(
            x, w, (stride, stride), [(pad, pad), (pad, pad)],
            dimension_numbers=("NCHW", "OIHW", "NCHW"),
            preferred_element_type=jnp.float32)

    x = conv(x_nchw.astype(jnp.float32), raw["w1"], 2, 1)
    x = jnp.where(x > 0, x, LRELU_SLOPE * x)
    for idx, c in ((2, 128), (3, 256), (4, 512)):
        x = conv(x, raw[f"w{idx}"], 2, 1)
        mean = x.mean(axis=(0, 2, 3), keepdims=True)
        var = ((x - mean) ** 2).mean(axis=(0, 2, 3), keepdims=True)   # biased
        x = (x - mean) * lax.rsqrt(var + BN_EPS)
        x = x * raw[f"gamma{idx}"].reshape(1, c, 1, 1) \
              + raw[f"beta{idx}"].reshape(1, c, 1, 1)
        x = jnp.where(x > 0, x, LRELU_SLOPE * x)
    x = conv(x, raw["w5"], 1, 0, bf16=False)
    return jax.nn.sigmoid(x).reshape(-1)


if __name__ == "__main__":
    key = jax.random.PRNGKey(0)
    pkey, xkey = jax.random.split(key)
    params, raw = init_params(pkey)
    # DCGAN discriminator requires 64x64 RGB input to reach the final 4x4 conv.
    x = jax.random.normal(xkey, (2, 3, 64, 64), dtype=jnp.float32)   # NCHW

    fwd = jax.jit(discriminator_forward)
    out = jax.block_until_ready(fwd(x, params))
    ref = jax.block_until_ready(reference_forward(x, raw))

    assert out.shape == (2,), out.shape
    # tolerance accounts for bf16 MXU operands (mirrored in the reference)
    assert jnp.allclose(out, ref, atol=2e-3, rtol=2e-3), (out, ref)
    print("KERNEL_OK")
</pallas_src>

<mosaic_0001>
module attributes {stable_mosaic.version = 11 : i64} {
  func.func @_conv_lrelu_kernel(%arg0: i32, %arg1: memref<512x128xbf16, #tpu.memory_space<vmem>>, %arg2: memref<128x64xbf16, #tpu.memory_space<vmem>>, %arg3: memref<512x64xbf16, #tpu.memory_space<vmem>>) attributes {dimension_semantics = [#tpu.dimension_semantics<parallel>], iteration_bounds = array<i64: 4>, scalar_prefetch = 0 : i64, scratch_operands = 0 : i64, tpu.core_type = #tpu.core_type<tc>, window_params = [{transform_indices = @transform_0, window_bounds = array<i64: 512, 128>}, {pipeline_mode = #tpu.pipeline_mode<synchronous>, transform_indices = @transform_1, window_bounds = array<i64: 128, 64>}, {transform_indices = @transform_2, window_bounds = array<i64: 512, 64>}]} {
    %c0 = arith.constant 0 : index
    %c0_0 = arith.constant 0 : index
    %0 = vector.load %arg1[%c0, %c0_0] : memref<512x128xbf16, #tpu.memory_space<vmem>>, vector<512x128xbf16>
    %c0_1 = arith.constant 0 : index
    %c0_2 = arith.constant 0 : index
    %1 = vector.load %arg2[%c0_1, %c0_2] : memref<128x64xbf16, #tpu.memory_space<vmem>>, vector<128x64xbf16>
    %cst = arith.constant dense<0.000000e+00> : vector<512x64xf32>
    %2 = tpu.matmul %0, %1, %cst {dimension_numbers = #tpu.dot_dimension_numbers<[1], [0], [0], [1], [0, 0, 1, 1], [], []>} : vector<512x128xbf16>, vector<128x64xbf16>, vector<512x64xf32> -> vector<512x64xf32>
    %cst_3 = arith.constant 0.000000e+00 : f32
    %3 = vector.broadcast %cst_3 : f32 to vector<512x64xf32>
    %4 = arith.cmpf ogt, %2, %3 : vector<512x64xf32>
    %cst_4 = arith.constant 2.000000e-01 : f32
    %5 = vector.broadcast %cst_4 : f32 to vector<512x64xf32>
    %6 = arith.mulf %5, %2 : vector<512x64xf32>
    %7 = arith.select %4, %2, %6 : vector<512x64xi1>, vector<512x64xf32>
    %8 = arith.truncf %7 : vector<512x64xf32> to vector<512x64xbf16>
    %c0_5 = arith.constant 0 : index
    %c0_6 = arith.constant 0 : index
    %9 = vector.load %arg3[%c0_5, %c0_6] : memref<512x64xbf16, #tpu.memory_space<vmem>>, vector<512x64xbf16>
    tpu.vector_store %arg3[%c0_5, %c0_6], %8 {strides = array<i32>} : memref<512x64xbf16, #tpu.memory_space<vmem>>, vector<512x64xbf16>,
    return
  }
  func.func @transform_0(%arg0: i32) -> (i32, i32) {
    %c0_i32 = arith.constant 0 : i32
    %c0_i32_0 = arith.constant 0 : i32
    return %arg0, %c0_i32 : i32, i32
  }
  func.func @transform_1(%arg0: i32) -> (i32, i32) {
    %c0_i32 = arith.constant 0 : i32
    %c0_i32_0 = arith.constant 0 : i32
    %c0_i32_1 = arith.constant 0 : i32
    return %c0_i32, %c0_i32_0 : i32, i32
  }
  func.func @transform_2(%arg0: i32) -> (i32, i32) {
    %c0_i32 = arith.constant 0 : i32
    %c0_i32_0 = arith.constant 0 : i32
    return %arg0, %c0_i32 : i32, i32
  }
}

module attributes {stable_mosaic.version = 11 : i64} {
  func.func @_conv_bn_lrelu_kernel(%arg0: i32, %arg1: memref<512x1024xbf16, #tpu.memory_space<vmem>>, %arg2: memref<1024x128xbf16, #tpu.memory_space<vmem>>, %arg3: memref<1x128xf32, #tpu.memory_space<vmem>>, %arg4: memref<1x128xf32, #tpu.memory_space<vmem>>, %arg5: memref<512x128xbf16, #tpu.memory_space<vmem>>) attributes {dimension_semantics = [#tpu.dimension_semantics<parallel>], iteration_bounds = array<i64: 1>, scalar_prefetch = 0 : i64, scratch_operands = 0 : i64, tpu.core_type = #tpu.core_type<tc>, window_params = [{pipeline_mode = #tpu.pipeline_mode<synchronous>, transform_indices = @transform_0, window_bounds = array<i64: 512, 1024>}, {transform_indices = @transform_1, window_bounds = array<i64: 1024, 128>}, {transform_indices = @transform_2, window_bounds = array<i64: 1, 128>}, {transform_indices = @transform_3, window_bounds = array<i64: 1, 128>}, {transform_indices = @transform_4, window_bounds = array<i64: 512, 128>}]} {
    %c0 = arith.constant 0 : index
    %c0_0 = arith.constant 0 : index
    %0 = vector.load %arg1[%c0, %c0_0] : memref<512x1024xbf16, #tpu.memory_space<vmem>>, vector<512x1024xbf16>
    %c0_1 = arith.constant 0 : index
    %c0_2 = arith.constant 0 : index
    %1 = vector.load %arg2[%c0_1, %c0_2] : memref<1024x128xbf16, #tpu.memory_space<vmem>>, vector<1024x128xbf16>
    %cst = arith.constant dense<0.000000e+00> : vector<512x128xf32>
    %2 = tpu.matmul %0, %1, %cst {dimension_numbers = #tpu.dot_dimension_numbers<[1], [0], [0], [1], [0, 0, 1, 1], [], []>} : vector<512x1024xbf16>, vector<1024x128xbf16>, vector<512x128xf32> -> vector<512x128xf32>
    %cst_3 = arith.constant 1.000000e+00 : f32
    %3 = vector.broadcast %cst_3 : f32 to vector<8x512xf32>
    %cst_4 = arith.constant dense<0.000000e+00> : vector<8x128xf32>
    %4 = tpu.matmul %3, %2, %cst_4 {dimension_numbers = #tpu.dot_dimension_numbers<[1], [0], [0], [1], [0, 0, 1, 1], [], []>} : vector<8x512xf32>, vector<512x128xf32>, vector<8x128xf32> -> vector<8x128xf32>
    %5 = vector.extract_strided_slice %4 {offsets = [0, 0], sizes = [1, 128], strides = [1, 1]} : vector<8x128xf32> to vector<1x128xf32>
    %cst_5 = arith.constant 0.001953125 : f32
    %6 = vector.broadcast %cst_5 : f32 to vector<1x128xf32>
    %7 = arith.mulf %5, %6 : vector<1x128xf32>
    %8 = vector.broadcast %7 : vector<1x128xf32> to vector<512x128xf32>
    %9 = arith.subf %2, %8 : vector<512x128xf32>
    %10 = arith.mulf %9, %9 : vector<512x128xf32>
    %cst_6 = arith.constant dense<0.000000e+00> : vector<8x128xf32>
    %11 = tpu.matmul %3, %10, %cst_6 {dimension_numbers = #tpu.dot_dimension_numbers<[1], [0], [0], [1], [0, 0, 1, 1], [], []>} : vector<8x512xf32>, vector<512x128xf32>, vector<8x128xf32> -> vector<8x128xf32>
    %12 = vector.extract_strided_slice %11 {offsets = [0, 0], sizes = [1, 128], strides = [1, 1]} : vector<8x128xf32> to vector<1x128xf32>
    %cst_7 = arith.constant 0.001953125 : f32
    %13 = vector.broadcast %cst_7 : f32 to vector<1x128xf32>
    %14 = arith.mulf %12, %13 : vector<1x128xf32>
    %c0_8 = arith.constant 0 : index
    %c0_9 = arith.constant 0 : index
    %15 = vector.load %arg3[%c0_8, %c0_9] : memref<1x128xf32, #tpu.memory_space<vmem>>, vector<1x128xf32>
    %cst_10 = arith.constant 9.99999974E-6 : f32
    %16 = vector.broadcast %cst_10 : f32 to vector<1x128xf32>
    %17 = arith.addf %14, %16 : vector<1x128xf32>
    %18 = math.rsqrt %17 : vector<1x128xf32>
    %19 = arith.mulf %15, %18 : vector<1x128xf32>
    %20 = vector.broadcast %19 : vector<1x128xf32> to vector<512x128xf32>
    %21 = arith.mulf %9, %20 : vector<512x128xf32>
    %c0_11 = arith.constant 0 : index
    %c0_12 = arith.constant 0 : index
    %22 = vector.load %arg4[%c0_11, %c0_12] : memref<1x128xf32, #tpu.memory_space<vmem>>, vector<1x128xf32>
    %23 = vector.broadcast %22 : vector<1x128xf32> to vector<512x128xf32>
    %24 = arith.addf %21, %23 : vector<512x128xf32>
    %cst_13 = arith.constant 0.000000e+00 : f32
    %25 = vector.broadcast %cst_13 : f32 to vector<512x128xf32>
    %26 = arith.cmpf ogt, %24, %25 : vector<512x128xf32>
    %cst_14 = arith.constant 2.000000e-01 : f32
    %27 = vector.broadcast %cst_14 : f32 to vector<512x128xf32>
    %28 = arith.mulf %27, %24 : vector<512x128xf32>
    %29 = arith.select %26, %24, %28 : vector<512x128xi1>, vector<512x128xf32>
    %30 = arith.truncf %29 : vector<512x128xf32> to vector<512x128xbf16>
    %c0_15 = arith.constant 0 : index
    %c0_16 = arith.constant 0 : index
    %31 = vector.load %arg5[%c0_15, %c0_16] : memref<512x128xbf16, #tpu.memory_space<vmem>>, vector<512x128xbf16>
    tpu.vector_store %arg5[%c0_15, %c0_16], %30 {strides = array<i32>} : memref<512x128xbf16, #tpu.memory_space<vmem>>, vector<512x128xbf16>,
    return
  }
  func.func @transform_0(%arg0: i32) -> (i32, i32) {
    %c0_i32 = arith.constant 0 : i32
    %c0_i32_0 = arith.constant 0 : i32
    %c0_i32_1 = arith.constant 0 : i32
    return %c0_i32, %c0_i32_0 : i32, i32
  }
  func.func @transform_1(%arg0: i32) -> (i32, i32) {
    %c0_i32 = arith.constant 0 : i32
    %c0_i32_0 = arith.constant 0 : i32
    return %c0_i32, %arg0 : i32, i32
  }
  func.func @transform_2(%arg0: i32) -> (i32, i32) {
    %c0_i32 = arith.constant 0 : i32
    %c0_i32_0 = arith.constant 0 : i32
    return %c0_i32, %arg0 : i32, i32
  }
  func.func @transform_3(%arg0: i32) -> (i32, i32) {
    %c0_i32 = arith.constant 0 : i32
    %c0_i32_0 = arith.constant 0 : i32
    return %c0_i32, %arg0 : i32, i32
  }
  func.func @transform_4(%arg0: i32) -> (i32, i32) {
    %c0_i32 = arith.constant 0 : i32
    %c0_i32_0 = arith.constant 0 : i32
    return %c0_i32, %arg0 : i32, i32
  }
}

module attributes {stable_mosaic.version = 11 : i64} {
  func.func @_conv_bn_lrelu_kernel(%arg0: i32, %arg1: memref<128x2048xbf16, #tpu.memory_space<vmem>>, %arg2: memref<2048x128xbf16, #tpu.memory_space<vmem>>, %arg3: memref<1x128xf32, #tpu.memory_space<vmem>>, %arg4: memref<1x128xf32, #tpu.memory_space<vmem>>, %arg5: memref<128x128xbf16, #tpu.memory_space<vmem>>) attributes {dimension_semantics = [#tpu.dimension_semantics<parallel>], iteration_bounds = array<i64: 2>, scalar_prefetch = 0 : i64, scratch_operands = 0 : i64, tpu.core_type = #tpu.core_type<tc>, window_params = [{pipeline_mode = #tpu.pipeline_mode<synchronous>, transform_indices = @transform_0, window_bounds = array<i64: 128, 2048>}, {transform_indices = @transform_1, window_bounds = array<i64: 2048, 128>}, {transform_indices = @transform_2, window_bounds = array<i64: 1, 128>}, {transform_indices = @transform_3, window_bounds = array<i64: 1, 128>}, {transform_indices = @transform_4, window_bounds = array<i64: 128, 128>}]} {
    %c0 = arith.constant 0 : index
    %c0_0 = arith.constant 0 : index
    %0 = vector.load %arg1[%c0, %c0_0] : memref<128x2048xbf16, #tpu.memory_space<vmem>>, vector<128x2048xbf16>
    %c0_1 = arith.constant 0 : index
    %c0_2 = arith.constant 0 : index
    %1 = vector.load %arg2[%c0_1, %c0_2] : memref<2048x128xbf16, #tpu.memory_space<vmem>>, vector<2048x128xbf16>
    %cst = arith.constant dense<0.000000e+00> : vector<128x128xf32>
    %2 = tpu.matmul %0, %1, %cst {dimension_numbers = #tpu.dot_dimension_numbers<[1], [0], [0], [1], [0, 0, 1, 1], [], []>} : vector<128x2048xbf16>, vector<2048x128xbf16>, vector<128x128xf32> -> vector<128x128xf32>
    %cst_3 = arith.constant 1.000000e+00 : f32
    %3 = vector.broadcast %cst_3 : f32 to vector<8x128xf32>
    %cst_4 = arith.constant dense<0.000000e+00> : vector<8x128xf32>
    %4 = tpu.matmul %3, %2, %cst_4 {dimension_numbers = #tpu.dot_dimension_numbers<[1], [0], [0], [1], [0, 0, 1, 1], [], []>} : vector<8x128xf32>, vector<128x128xf32>, vector<8x128xf32> -> vector<8x128xf32>
    %5 = vector.extract_strided_slice %4 {offsets = [0, 0], sizes = [1, 128], strides = [1, 1]} : vector<8x128xf32> to vector<1x128xf32>
    %cst_5 = arith.constant 7.812500e-03 : f32
    %6 = vector.broadcast %cst_5 : f32 to vector<1x128xf32>
    %7 = arith.mulf %5, %6 : vector<1x128xf32>
    %8 = vector.broadcast %7 : vector<1x128xf32> to vector<128x128xf32>
    %9 = arith.subf %2, %8 : vector<128x128xf32>
    %10 = arith.mulf %9, %9 : vector<128x128xf32>
    %cst_6 = arith.constant dense<0.000000e+00> : vector<8x128xf32>
    %11 = tpu.matmul %3, %10, %cst_6 {dimension_numbers = #tpu.dot_dimension_numbers<[1], [0], [0], [1], [0, 0, 1, 1], [], []>} : vector<8x128xf32>, vector<128x128xf32>, vector<8x128xf32> -> vector<8x128xf32>
    %12 = vector.extract_strided_slice %11 {offsets = [0, 0], sizes = [1, 128], strides = [1, 1]} : vector<8x128xf32> to vector<1x128xf32>
    %cst_7 = arith.constant 7.812500e-03 : f32
    %13 = vector.broadcast %cst_7 : f32 to vector<1x128xf32>
    %14 = arith.mulf %12, %13 : vector<1x128xf32>
    %c0_8 = arith.constant 0 : index
    %c0_9 = arith.constant 0 : index
    %15 = vector.load %arg3[%c0_8, %c0_9] : memref<1x128xf32, #tpu.memory_space<vmem>>, vector<1x128xf32>
    %cst_10 = arith.constant 9.99999974E-6 : f32
    %16 = vector.broadcast %cst_10 : f32 to vector<1x128xf32>
    %17 = arith.addf %14, %16 : vector<1x128xf32>
    %18 = math.rsqrt %17 : vector<1x128xf32>
    %19 = arith.mulf %15, %18 : vector<1x128xf32>
    %20 = vector.broadcast %19 : vector<1x128xf32> to vector<128x128xf32>
    %21 = arith.mulf %9, %20 : vector<128x128xf32>
    %c0_11 = arith.constant 0 : index
    %c0_12 = arith.constant 0 : index
    %22 = vector.load %arg4[%c0_11, %c0_12] : memref<1x128xf32, #tpu.memory_space<vmem>>, vector<1x128xf32>
    %23 = vector.broadcast %22 : vector<1x128xf32> to vector<128x128xf32>
    %24 = arith.addf %21, %23 : vector<128x128xf32>
    %cst_13 = arith.constant 0.000000e+00 : f32
    %25 = vector.broadcast %cst_13 : f32 to vector<128x128xf32>
    %26 = arith.cmpf ogt, %24, %25 : vector<128x128xf32>
    %cst_14 = arith.constant 2.000000e-01 : f32
    %27 = vector.broadcast %cst_14 : f32 to vector<128x128xf32>
    %28 = arith.mulf %27, %24 : vector<128x128xf32>
    %29 = arith.select %26, %24, %28 : vector<128x128xi1>, vector<128x128xf32>
    %30 = arith.truncf %29 : vector<128x128xf32> to vector<128x128xbf16>
    %c0_15 = arith.constant 0 : index
    %c0_16 = arith.constant 0 : index
    %31 = vector.load %arg5[%c0_15, %c0_16] : memref<128x128xbf16, #tpu.memory_space<vmem>>, vector<128x128xbf16>
    tpu.vector_store %arg5[%c0_15, %c0_16], %30 {strides = array<i32>} : memref<128x128xbf16, #tpu.memory_space<vmem>>, vector<128x128xbf16>,
    return
  }
  func.func @transform_0(%arg0: i32) -> (i32, i32) {
    %c0_i32 = arith.constant 0 : i32
    %c0_i32_0 = arith.constant 0 : i32
    %c0_i32_1 = arith.constant 0 : i32
    return %c0_i32, %c0_i32_0 : i32, i32
  }
  func.func @transform_1(%arg0: i32) -> (i32, i32) {
    %c0_i32 = arith.constant 0 : i32
    %c0_i32_0 = arith.constant 0 : i32
    return %c0_i32, %arg0 : i32, i32
  }
  func.func @transform_2(%arg0: i32) -> (i32, i32) {
    %c0_i32 = arith.constant 0 : i32
    %c0_i32_0 = arith.constant 0 : i32
    return %c0_i32, %arg0 : i32, i32
  }
  func.func @transform_3(%arg0: i32) -> (i32, i32) {
    %c0_i32 = arith.constant 0 : i32
    %c0_i32_0 = arith.constant 0 : i32
    return %c0_i32, %arg0 : i32, i32
  }
  func.func @transform_4(%arg0: i32) -> (i32, i32) {
    %c0_i32 = arith.constant 0 : i32
    %c0_i32_0 = arith.constant 0 : i32
    return %c0_i32, %arg0 : i32, i32
  }
}

module attributes {stable_mosaic.version = 11 : i64} {
  func.func @_conv_bn_lrelu_sigmoid_head_kernel(%arg0: i32, %arg1: memref<32x4096xbf16, #tpu.memory_space<vmem>>, %arg2: memref<4096x128xbf16, #tpu.memory_space<vmem>>, %arg3: memref<1x128xf32, #tpu.memory_space<vmem>>, %arg4: memref<1x128xf32, #tpu.memory_space<vmem>>, %arg5: memref<16x128xf32, #tpu.memory_space<vmem>>, %arg6: memref<2x128xf32, #tpu.memory_space<vmem>>, %arg7: memref<8x128xf32, #tpu.memory_space<vmem>>) attributes {dimension_semantics = [#tpu.dimension_semantics<arbitrary>], iteration_bounds = array<i64: 4>, scalar_prefetch = 0 : i64, scratch_operands = 1 : i64, tpu.core_type = #tpu.core_type<tc>, window_params = [{pipeline_mode = #tpu.pipeline_mode<synchronous>, transform_indices = @transform_0, window_bounds = array<i64: 32, 4096>}, {transform_indices = @transform_1, window_bounds = array<i64: 4096, 128>}, {transform_indices = @transform_2, window_bounds = array<i64: 1, 128>}, {transform_indices = @transform_3, window_bounds = array<i64: 1, 128>}, {transform_indices = @transform_4, window_bounds = array<i64: 16, 128>}, {pipeline_mode = #tpu.pipeline_mode<synchronous>, transform_indices = @transform_5, window_bounds = array<i64: 2, 128>}]} {
    %c0_i32 = arith.constant 0 : i32
    %0 = arith.cmpi eq, %arg0, %c0_i32 : i32
    %1 = arith.extui %0 : i1 to i32
    %c0_i32_0 = arith.constant 0 : i32
    %2 = arith.cmpi ne, %1, %c0_i32_0 : i32
    scf.if %2 {
      %cst_26 = arith.constant 0.000000e+00 : f32
      %50 = vector.broadcast %cst_26 : f32 to vector<8x128xf32>
      %c0_27 = arith.constant 0 : index
      %c0_28 = arith.constant 0 : index
      %51 = vector.load %arg7[%c0_27, %c0_28] : memref<8x128xf32, #tpu.memory_space<vmem>>, vector<8x128xf32>
      tpu.vector_store %arg7[%c0_27, %c0_28], %50 {strides = array<i32>} : memref<8x128xf32, #tpu.memory_space<vmem>>, vector<8x128xf32>,
    } else {
    }
    %c0 = arith.constant 0 : index
    %c0_1 = arith.constant 0 : index
    %3 = vector.load %arg1[%c0, %c0_1] : memref<32x4096xbf16, #tpu.memory_space<vmem>>, vector<32x4096xbf16>
    %c0_2 = arith.constant 0 : index
    %c0_3 = arith.constant 0 : index
    %4 = vector.load %arg2[%c0_2, %c0_3] : memref<4096x128xbf16, #tpu.memory_space<vmem>>, vector<4096x128xbf16>
    %cst = arith.constant dense<0.000000e+00> : vector<32x128xf32>
    %5 = tpu.matmul %3, %4, %cst {dimension_numbers = #tpu.dot_dimension_numbers<[1], [0], [0], [1], [0, 0, 1, 1], [], []>} : vector<32x4096xbf16>, vector<4096x128xbf16>, vector<32x128xf32> -> vector<32x128xf32>
    %cst_4 = arith.constant 1.000000e+00 : f32
    %6 = vector.broadcast %cst_4 : f32 to vector<8x32xf32>
    %cst_5 = arith.constant dense<0.000000e+00> : vector<8x128xf32>
    %7 = tpu.matmul %6, %5, %cst_5 {dimension_numbers = #tpu.dot_dimension_numbers<[1], [0], [0], [1], [0, 0, 1, 1], [], []>} : vector<8x32xf32>, vector<32x128xf32>, vector<8x128xf32> -> vector<8x128xf32>
    %8 = vector.extract_strided_slice %7 {offsets = [0, 0], sizes = [1, 128], strides = [1, 1]} : vector<8x128xf32> to vector<1x128xf32>
    %cst_6 = arith.constant 3.125000e-02 : f32
    %9 = vector.broadcast %cst_6 : f32 to vector<1x128xf32>
    %10 = arith.mulf %8, %9 : vector<1x128xf32>
    %11 = vector.broadcast %10 : vector<1x128xf32> to vector<32x128xf32>
    %12 = arith.subf %5, %11 : vector<32x128xf32>
    %13 = arith.mulf %12, %12 : vector<32x128xf32>
    %cst_7 = arith.constant dense<0.000000e+00> : vector<8x128xf32>
    %14 = tpu.matmul %6, %13, %cst_7 {dimension_numbers = #tpu.dot_dimension_numbers<[1], [0], [0], [1], [0, 0, 1, 1], [], []>} : vector<8x32xf32>, vector<32x128xf32>, vector<8x128xf32> -> vector<8x128xf32>
    %15 = vector.extract_strided_slice %14 {offsets = [0, 0], sizes = [1, 128], strides = [1, 1]} : vector<8x128xf32> to vector<1x128xf32>
    %cst_8 = arith.constant 3.125000e-02 : f32
    %16 = vector.broadcast %cst_8 : f32 to vector<1x128xf32>
    %17 = arith.mulf %15, %16 : vector<1x128xf32>
    %c0_9 = arith.constant 0 : index
    %c0_10 = arith.constant 0 : index
    %18 = vector.load %arg3[%c0_9, %c0_10] : memref<1x128xf32, #tpu.memory_space<vmem>>, vector<1x128xf32>
    %cst_11 = arith.constant 9.99999974E-6 : f32
    %19 = vector.broadcast %cst_11 : f32 to vector<1x128xf32>
    %20 = arith.addf %17, %19 : vector<1x128xf32>
    %21 = math.rsqrt %20 : vector<1x128xf32>
    %22 = arith.mulf %18, %21 : vector<1x128xf32>
    %23 = vector.broadcast %22 : vector<1x128xf32> to vector<32x128xf32>
    %24 = arith.mulf %12, %23 : vector<32x128xf32>
    %c0_12 = arith.constant 0 : index
    %c0_13 = arith.constant 0 : index
    %25 = vector.load %arg4[%c0_12, %c0_13] : memref<1x128xf32, #tpu.memory_space<vmem>>, vector<1x128xf32>
    %26 = vector.broadcast %25 : vector<1x128xf32> to vector<32x128xf32>
    %27 = arith.addf %24, %26 : vector<32x128xf32>
    %cst_14 = arith.constant 0.000000e+00 : f32
    %28 = vector.broadcast %cst_14 : f32 to vector<32x128xf32>
    %29 = arith.cmpf ogt, %27, %28 : vector<32x128xf32>
    %cst_15 = arith.constant 2.000000e-01 : f32
    %30 = vector.broadcast %cst_15 : f32 to vector<32x128xf32>
    %31 = arith.mulf %30, %27 : vector<32x128xf32>
    %32 = arith.select %29, %27, %31 : vector<32x128xi1>, vector<32x128xf32>
    %c0_16 = arith.constant 0 : index
    %c0_17 = arith.constant 0 : index
    %33 = vector.load %arg5[%c0_16, %c0_17] : memref<16x128xf32, #tpu.memory_space<vmem>>, vector<16x128xf32>
    %34 = vector.extract_strided_slice %32 {offsets = [0, 0], sizes = [16, 128], strides = [1, 1]} : vector<32x128xf32> to vector<16x128xf32>
    %35 = arith.mulf %34, %33 : vector<16x128xf32>
    %cst_18 = arith.constant dense<0.000000e+00> : vector<128xf32>
    %36 = vector.multi_reduction <add>, %35, %cst_18 [0] : vector<16x128xf32> to vector<128xf32>
    %37 = vector.shape_cast %36 : vector<128xf32> to vector<1x128xf32>
    %38 = vector.extract_strided_slice %32 {offsets = [16, 0], sizes = [16, 128], strides = [1, 1]} : vector<32x128xf32> to vector<16x128xf32>
    %39 = arith.mulf %38, %33 : vector<16x128xf32>
    %cst_19 = arith.constant dense<0.000000e+00> : vector<128xf32>
    %40 = vector.multi_reduction <add>, %39, %cst_19 [0] : vector<16x128xf32> to vector<128xf32>
    %41 = vector.shape_cast %40 : vector<128xf32> to vector<1x128xf32>
    %cst_20 = arith.constant 0.000000e+00 : f32
    %42 = vector.broadcast %cst_20 : f32 to vector<6x128xf32>
    %c0_21 = arith.constant 0 : index
    %c0_22 = arith.constant 0 : index
    %43 = vector.load %arg7[%c0_21, %c0_22] : memref<8x128xf32, #tpu.memory_space<vmem>>, vector<8x128xf32>
    %44 = tpu.concatenate %37, %41, %42 in 0 : vector<1x128xf32>, vector<1x128xf32>, vector<6x128xf32> -> vector<8x128xf32>
    %45 = arith.addf %43, %44 : vector<8x128xf32>
    %c0_23 = arith.constant 0 : index
    %c0_24 = arith.constant 0 : index
    %46 = vector.load %arg7[%c0_23, %c0_24] : memref<8x128xf32, #tpu.memory_space<vmem>>, vector<8x128xf32>
    tpu.vector_store %arg7[%c0_23, %c0_24], %45 {strides = array<i32>} : memref<8x128xf32, #tpu.memory_space<vmem>>, vector<8x128xf32>,
    %c3_i32 = arith.constant 3 : i32
    %47 = arith.cmpi eq, %arg0, %c3_i32 : i32
    %48 = arith.extui %47 : i1 to i32
    %c0_i32_25 = arith.constant 0 : i32
    %49 = arith.cmpi ne, %48, %c0_i32_25 : i32
    scf.if %49 {
      %c0_26 = arith.constant 0 : index
      %c0_27 = arith.constant 0 : index
      %50 = vector.load %arg7[%c0_26, %c0_27] : memref<8x128xf32, #tpu.memory_space<vmem>>, vector<2x128xf32>
      %cst_28 = arith.constant dense<0.000000e+00> : vector<2xf32>
      %51 = vector.multi_reduction <add>, %50, %cst_28 [1] : vector<2x128xf32> to vector<2xf32>
      %52 = vector.shape_cast %51 : vector<2xf32> to vector<2x1xf32>
      %53 = arith.negf %52 : vector<2x1xf32>
      %54 = math.exp %53 : vector<2x1xf32>
      %cst_29 = arith.constant 1.000000e+00 : f32
      %55 = vector.broadcast %cst_29 : f32 to vector<2x1xf32>
      %56 = arith.addf %55, %54 : vector<2x1xf32>
      %57 = arith.divf %55, %56 : vector<2x1xf32>
      %58 = vector.shape_cast %57 : vector<2x1xf32> to vector<2x1xf32>
      %59 = vector.broadcast %58 : vector<2x1xf32> to vector<2x128xf32>
      %c0_30 = arith.constant 0 : index
      %c0_31 = arith.constant 0 : index
      %60 = vector.load %arg6[%c0_30, %c0_31] : memref<2x128xf32, #tpu.memory_space<vmem>>, vector<2x128xf32>
      tpu.vector_store %arg6[%c0_30, %c0_31], %59 {strides = array<i32>} : memref<2x128xf32, #tpu.memory_space<vmem>>, vector<2x128xf32>,
    } else {
    }
    return
  }
  func.func @transform_0(%arg0: i32) -> (i32, i32) {
    %c0_i32 = arith.constant 0 : i32
    %c0_i32_0 = arith.constant 0 : i32
    %c0_i32_1 = arith.constant 0 : i32
    return %c0_i32, %c0_i32_0 : i32, i32
  }
  func.func @transform_1(%arg0: i32) -> (i32, i32) {
    %c0_i32 = arith.constant 0 : i32
    %c0_i32_0 = arith.constant 0 : i32
    return %c0_i32, %arg0 : i32, i32
  }
  func.func @transform_2(%arg0: i32) -> (i32, i32) {
    %c0_i32 = arith.constant 0 : i32
    %c0_i32_0 = arith.constant 0 : i32
    return %c0_i32, %arg0 : i32, i32
  }
  func.func @transform_3(%arg0: i32) -> (i32, i32) {
    %c0_i32 = arith.constant 0 : i32
    %c0_i32_0 = arith.constant 0 : i32
    return %c0_i32, %arg0 : i32, i32
  }
  func.func @transform_4(%arg0: i32) -> (i32, i32) {
    %c0_i32 = arith.constant 0 : i32
    %c0_i32_0 = arith.constant 0 : i32
    return %c0_i32, %arg0 : i32, i32
  }
  func.func @transform_5(%arg0: i32) -> (i32, i32) {
    %c0_i32 = arith.constant 0 : i32
    %c0_i32_0 = arith.constant 0 : i32
    %c0_i32_1 = arith.constant 0 : i32
    return %c0_i32, %c0_i32_0 : i32, i32
  }
}

</mosaic_0001>

<bundles_post_ra>
// kernel: discriminator_forward.4
= control target key start
LH: loop header
LB: loop body
LE: loop exit
PB: predicated region body
PF: predicated region fallthrough
CT: control target
= control target key end

     0   :  { %s1712_s9 = smov 0   ;;  %s1925_s0 = inlined_call_operand.vmem [shape: bf16[2048,128], index: 0, kind: input, shape index: {}]   ;;  %s1926_s1 = inlined_call_operand.vmem [shape: bf16[128,64], index: 1, kind: input, shape index: {}]   ;;  %s1927_s2 = inlined_call_operand.vmem [shape: bf16[2048,64], index: 2, kind: output, shape index: {}]  }
   0x1 LB: > { %s1326_s10 = sadd.s32 4294967295, %s1695_s9   ;;  %p1330_p0 = scmp.ge.s32.totalorder %s1695_s9, 1  ;;  %s1695_s9 = sphi %s1712_s9, %s12_s9  }
   0x2   : > { %p113_p1 = scmp.lt.s32.totalorder %s1695_s9, 5 }
   0x4   : > { %p114_p2 = pnand %p1330_p0, %p113_p1 }
   0x5   : > { %v1649_v0 = vld [vmem:[%s1926_s1] sm:$0xff] (!%p114_p2)   ;;  %s1331_s13 = sshll.u32 (!%p114_p2), %s1326_s10, 6  ;;  %v1650_v1 = vld [vmem:[%s1926_s1 + $0x8] sm:$0xff] (!%p114_p2)   ;;  %v1651_v2 = vld [vmem:[%s1926_s1 + $0x10] sm:$0xff] (!%p114_p2)   ;;  %vm1205_vm2 = vcmask (!%p114_p2), 519168  }
   0x6   : > { %117 = sbr.rel (%p114_p2) target bundleno = 322 (0x142), region = 28  ;;  %p136_p3 = scmp.lt.s32.totalorder (!%p114_p2), %s1331_s13, 255  ;;  %1545 = vmatprep.subr.bf16.mxu0 (!%p114_p2), %v1649_v0  ;;  %1625 = vmatprep.subr.bf16.mxu1 (!%p114_p2), %v1649_v0  ;;  %v1652_v3 = vld [vmem:[%s1926_s1 + $0x18] sm:$0xff] (!%p114_p2)   ;;  %v1653_v6 = vld [vmem:[%s1926_s1 + $0x20] sm:$0xff] (!%p114_p2)   ;;  %v1654_v7 = vld [vmem:[%s1926_s1 + $0x28] sm:$0xff] (!%p114_p2)  }
   0x7   : > { %1546 = vmatpush3.bf16.msra.mxu0 (!%p114_p2), %v1649_v0  ;;  %1633 = vmatpush3.bf16.msra.mxu1 (!%p114_p2), %v1649_v0  ;;  %v1655_v8 = vld [vmem:[%s1926_s1 + $0x30] sm:$0xff] (!%p114_p2)   ;;  %v1656_v9 = vld [vmem:[%s1926_s1 + $0x38] sm:$0xff] (!%p114_p2)  }
   0x8   : > { %1547 = vmatprep.subr.bf16.mxu0 (!%p114_p2), %v1650_v1  ;;  %1626 = vmatprep.subr.bf16.mxu1 (!%p114_p2), %v1650_v1 }
   0xb   : > { %1548 = vmatpush3.bf16.msra.mxu0 (!%p114_p2), %v1650_v1  ;;  %1634 = vmatpush3.bf16.msra.mxu1 (!%p114_p2), %v1650_v1 }
   0xc   : > { %1549 = vmatprep.subr.bf16.mxu0 (!%p114_p2), %v1651_v2  ;;  %1627 = vmatprep.subr.bf16.mxu1 (!%p114_p2), %v1651_v2 }
   0xd   : > { %s1929_s13 = smov (!%p136_p3, %s1331_s13), 255 }
   0xe   : > { %s1332_s18 = sshll.u32 %s1929_s13, 2 }
   0xf   : > { %s1737_s21 = scalar_lea.vmem %s1925_s0, %s1332_s18  ;;  %1550 = vmatpush3.bf16.msra.mxu0 %v1651_v2  ;;  %1635 = vmatpush3.bf16.msra.mxu1 %v1651_v2  ;;  %s1791_s6 = scalar_lea.vmem %s1927_s2, %s1332_s18 }
  0x10   : > { %v1657_v4 = vld [vmem:[%s1737_s21] sm:$0xff]   ;;  %1551 = vmatprep.subr.bf16.mxu0 %v1652_v3  ;;  %1628 = vmatprep.subr.bf16.mxu1 %v1652_v3  ;;  %v1659_v10 = vld [vmem:[%s1737_s21 + $0x8] sm:$0xff]   ;;  %v1661_v12 = vld [vmem:[%s1737_s21 + $0x10] sm:$0xff]  }
  0x11   : > { %v1658_v5 = vld [vmem:[%s1737_s21 + $0x80] sm:$0xff]   ;;  %1561 = vmatprep.mubr.bf16.mxu0 %v1657_v4  ;;  %v1660_v11 = vld [vmem:[%s1737_s21 + $0x88] sm:$0xff]   ;;  %v1662_v13 = vld [vmem:[%s1737_s21 + $0x90] sm:$0xff]  }
  0x12   : > { %1593 = vmatprep.mubr.bf16.mxu1 %v1658_v5  ;;  %v1663_v14 = vld [vmem:[%s1737_s21 + $0x18] sm:$0xff]   ;;  %v1665_v16 = vld [vmem:[%s1737_s21 + $0x20] sm:$0xff]   ;;  %v1667_v18 = vld [vmem:[%s1737_s21 + $0x28] sm:$0xff]  }
  0x13   : > { %1552 = vmatpush3.bf16.msra.mxu0 %v1652_v3  ;;  %1636 = vmatpush3.bf16.msra.mxu1 %v1652_v3  ;;  %v1664_v15 = vld [vmem:[%s1737_s21 + $0x98] sm:$0xff]   ;;  %v1666_v17 = vld [vmem:[%s1737_s21 + $0xa0] sm:$0xff]   ;;  %v1668_v19 = vld [vmem:[%s1737_s21 + $0xa8] sm:$0xff]  }
  0x14   : > { %1553 = vmatprep.subr.bf16.mxu0 %v1653_v6  ;;  %1629 = vmatprep.subr.bf16.mxu1 %v1653_v6  ;;  %v1669_v20 = vld [vmem:[%s1737_s21 + $0x30] sm:$0xff]   ;;  %v1671_v22 = vld [vmem:[%s1737_s21 + $0x38] sm:$0xff]   ;;  %v1673_v24 = vld [vmem:[%s1737_s21 + $0x40] sm:$0xff]  }
  0x15   : > { %v1670_v21 = vld [vmem:[%s1737_s21 + $0xb0] sm:$0xff]   ;;  %v1672_v23 = vld [vmem:[%s1737_s21 + $0xb8] sm:$0xff]   ;;  %v1674_v25 = vld [vmem:[%s1737_s21 + $0xc0] sm:$0xff]  }
  0x16   : > { %v1675_v26 = vld [vmem:[%s1737_s21 + $0x48] sm:$0xff]   ;;  %v1677_v28 = vld [vmem:[%s1737_s21 + $0x50] sm:$0xff]   ;;  %v1679_v30 = vld [vmem:[%s1737_s21 + $0x58] sm:$0xff]  }
  0x17   : > { %1554 = vmatpush3.bf16.msra.mxu0 %v1653_v6  ;;  %1637 = vmatpush3.bf16.msra.mxu1 %v1653_v6  ;;  %v1676_v27 = vld [vmem:[%s1737_s21 + $0xc8] sm:$0xff]   ;;  %v1678_v29 = vld [vmem:[%s1737_s21 + $0xd0] sm:$0xff]   ;;  %v1680_v31 = vld [vmem:[%s1737_s21 + $0xd8] sm:$0xff]  }
  0x18   : > { %1555 = vmatprep.subr.bf16.mxu0 %v1654_v7  ;;  %1630 = vmatprep.subr.bf16.mxu1 %v1654_v7  ;;  %v1681_v32 = vld [vmem:[%s1737_s21 + $0x60] sm:$0xff]   ;;  %v1683_v34 = vld [vmem:[%s1737_s21 + $0x68] sm:$0xff]   ;;  %v1685_v36 = vld [vmem:[%s1737_s21 + $0x70] sm:$0xff]  }
  0x19   : > { %v1682_v33 = vld [vmem:[%s1737_s21 + $0xe0] sm:$0xff]   ;;  %v1684_v35 = vld [vmem:[%s1737_s21 + $0xe8] sm:$0xff]   ;;  %v1686_v37 = vld [vmem:[%s1737_s21 + $0xf0] sm:$0xff]  }
  0x1a   : > { %v1687_v38 = vld [vmem:[%s1737_s21 + $0x78] sm:$0xff]  }
  0x1b   : > { %1556 = vmatpush3.bf16.msra.mxu0 %v1654_v7  ;;  %1638 = vmatpush3.bf16.msra.mxu1 %v1654_v7  ;;  %v1688_v39 = vld [vmem:[%s1737_s21 + $0xf8] sm:$0xff]  }
  0x1c   : > { %1557 = vmatprep.subr.bf16.mxu0 %v1655_v8  ;;  %1631 = vmatprep.subr.bf16.mxu1 %v1655_v8 }
  0x1f   : > { %1558 = vmatpush3.bf16.msra.mxu0 %v1655_v8  ;;  %1639 = vmatpush3.bf16.msra.mxu1 %v1655_v8 }
  0x20   : > { %1559 = vmatprep.subr.bf16.mxu0 %v1656_v9  ;;  %1632 = vmatprep.subr.bf16.mxu1 %v1656_v9 }
  0x23   : > { %1560 = vmatpush3.bf16.msra.mxu0 %v1656_v9  ;;  %1640 = vmatpush3.bf16.msra.mxu1 %v1656_v9 }
  0x26   : > { %1562 = vmatmul.mubr.bf16.vlgmr.msra.gmra.mrb[0].mxu0 %v1659_v10  ;;  %1594 = vmatmul.mubr.bf16.vlgmr.msra.gmra.mrb[0].mxu1 %v1660_v11 }
  0x27   : > { %1565 = vmatprep.mubr.bf16.mxu0 %v1661_v12  ;;  %1597 = vmatprep.mubr.bf16.mxu1 %v1662_v13 }
  0x2e   : > { %1566 = vmatmul.mubr.bf16.gmra.mrb[4].mxu0 %v1663_v14  ;;  %1598 = vmatmul.mubr.bf16.gmra.mrb[4].mxu1 %v1664_v15 }
  0x2f   : > { %1569 = vmatprep.mubr.bf16.mxu0 %v1665_v16  ;;  %1601 = vmatprep.mubr.bf16.mxu1 %v1666_v17 }
  0x36   : > { %1570 = vmatmul.mubr.bf16.gmra.mrb[8].mxu0 %v1667_v18  ;;  %1602 = vmatmul.mubr.bf16.gmra.mrb[8].mxu1 %v1668_v19 }
  0x37   : > { %1573 = vmatprep.mubr.bf16.mxu0 %v1669_v20  ;;  %1605 = vmatprep.mubr.bf16.mxu1 %v1670_v21 }
  0x3e   : > { %1574 = vmatmul.mubr.bf16.gmra.mrb[12].mxu0 %v1671_v22  ;;  %1606 = vmatmul.mubr.bf16.gmra.mrb[12].mxu1 %v1672_v23 }
  0x3f   : > { %1577 = vmatprep.mubr.bf16.mxu0 %v1673_v24  ;;  %1609 = vmatprep.mubr.bf16.mxu1 %v1674_v25 }
  0x46   : > { %1578 = vmatmul.mubr.bf16.gmra.mrb[16].mxu0 %v1675_v26  ;;  %1610 = vmatmul.mubr.bf16.gmra.mrb[16].mxu1 %v1676_v27 }
  0x47   : > { %1581 = vmatprep.mubr.bf16.mxu0 %v1677_v28  ;;  %1613 = vmatprep.mubr.bf16.mxu1 %v1678_v29 }
  0x4e   : > { %1582 = vmatmul.mubr.bf16.gmra.mrb[20].mxu0 %v1679_v30  ;;  %1614 = vmatmul.mubr.bf16.gmra.mrb[20].mxu1 %v1680_v31 }
  0x4f   : > { %1585 = vmatprep.mubr.bf16.mxu0 %v1681_v32  ;;  %1617 = vmatprep.mubr.bf16.mxu1 %v1682_v33 }
  0x56   : > { %1586 = vmatmul.mubr.bf16.gmra.mrb[24].mxu0 %v1683_v34  ;;  %1618 = vmatmul.mubr.bf16.gmra.mrb[24].mxu1 %v1684_v35 }
  0x57   : > { %1589 = vmatprep.mubr.bf16.mxu0 %v1685_v36  ;;  %1621 = vmatprep.mubr.bf16.mxu1 %v1686_v37 }
  0x5e   : > { %1590 = vmatmul.mubr.bf16.gmra.mrb[28].mxu0 %v1687_v38  ;;  %1622 = vmatmul.mubr.bf16.gmra.mrb[28].mxu1 %v1688_v39 }
  0xf9   : > { %v1563_v40 = vpop.f32.mrb[0].mxu0  ;;  %v1595_v41 = vpop.f32.mrb[0].mxu1 }
  0xfa   : > { %vm759_vm0 = vcmp.gt.f32.partialorder %v1563_v40, 0.0  ;;  %v823_v42 = vmul.f32 0.2, %v1563_v40  ;;  %vm791_vm1 = vcmp.gt.f32.partialorder %v1595_v41, 0.0  ;;  %v855_v43 = vmul.f32 0.2, %v1595_v41 }
  0xfb   : > { %v502_v44 = vpop.f32.mrb[1].mxu0  ;;  %v630_v45 = vpop.f32.mrb[1].mxu1 }
  0xfc   : > { %v887_v46 = vsel %vm759_vm0, %v1563_v40, %v823_v42  ;;  %v919_v47 = vsel %vm791_vm1, %v1595_v41, %v855_v43  ;;  %vm757_vm3 = vcmp.gt.f32.partialorder %v502_v44, 0.0  ;;  %v821_v48 = vmul.f32 0.2, %v502_v44  ;;  %v1564_v49 = vpop.f32.mrb[2].mxu0  ;;  %v1596_v50 = vpop.f32.mrb[2].mxu1 }
  0xfd   : > { %v1443_v51 = vpack.c.bf16 %v887_v46, %v887_v46  ;;  %v1475_v52 = vpack.c.bf16 %v919_v47, %v919_v47  ;;  %vm789_vm4 = vcmp.gt.f32.partialorder %v630_v45, 0.0  ;;  %v853_v53 = vmul.f32 0.2, %v630_v45  ;;  %v505_v54 = vpop.f32.mrb[3].mxu0  ;;  %v633_v55 = vpop.f32.mrb[3].mxu1 }
  0xfe   : > { %v885_v56 = vsel %vm757_vm3, %v502_v44, %v821_v48  ;;  %vm760_vm5 = vcmp.gt.f32.partialorder %v1564_v49, 0.0  ;;  %v824_v57 = vmul.f32 0.2, %v1564_v49  ;;  %vm792_vm6 = vcmp.gt.f32.partialorder %v1596_v50, 0.0 }
  0xff   : > { %1208 = vst.msk [vmem:[%s1791_s6 + $0x8] sm:$0xf] %vm1205_vm2, %v1443_v51  ;;  %1240 = vst.msk [vmem:[%s1791_s6 + $0x88] sm:$0xf] %vm1205_vm2, %v1475_v52  ;;  %v1441_v58 = vpack.c.bf16 %v885_v56, %v885_v56  ;;  %v917_v59 = vsel %vm789_vm4, %v630_v45, %v853_v53  ;;  %v856_v60 = vmul.f32 0.2, %v1596_v50 }
 0x100   : > { %vm758_vm7 = vcmp.gt.f32.partialorder %v505_v54, 0.0  ;;  %v1473_v61 = vpack.c.bf16 %v917_v59, %v917_v59  ;;  %v888_v62 = vsel %vm760_vm5, %v1564_v49, %v824_v57  ;;  %v822_v63 = vmul.f32 0.2, %v505_v54 }
 0x101   : > { %vm790_vm8 = vcmp.gt.f32.partialorder %v633_v55, 0.0  ;;  %1206 = vst.msk [vmem:[%s1791_s6] sm:$0xf] %vm1205_vm2, %v1441_v58  ;;  %v1444_v0 = vpack.c.bf16 %v888_v62, %v888_v62  ;;  %v920_v1 = vsel %vm792_vm6, %v1596_v50, %v856_v60  ;;  %v854_v2 = vmul.f32 0.2, %v633_v55  ;;  %v1567_v3 = vpop.f32.mrb[4].mxu0 }
 0x102   : > { %v1599_v4 = vpop.f32.mrb[4].mxu1  ;;  %1238 = vst.msk [vmem:[%s1791_s6 + $0x80] sm:$0xf] %vm1205_vm2, %v1473_v61  ;;  %v1476_v5 = vpack.c.bf16 %v920_v1, %v920_v1  ;;  %v886_v6 = vsel %vm758_vm7, %v505_v54, %v822_v63  ;;  %vm763_vm9 = vcmp.gt.f32.partialorder %v1567_v3, 0.0  ;;  %v827_v7 = vmul.f32 0.2, %v1567_v3 }
 0x103   : > { %v518_v8 = vpop.f32.mrb[5].mxu0  ;;  %v646_v9 = vpop.f32.mrb[5].mxu1  ;;  %1209 = vst.msk [vmem:[%s1791_s6 + $0xc] sm:$0xf] %vm1205_vm2, %v1444_v0  ;;  %v1442_v10 = vpack.c.bf16 %v886_v6, %v886_v6  ;;  %v918_v11 = vsel %vm790_vm8, %v633_v55, %v854_v2  ;;  %vm795_vm10 = vcmp.gt.f32.partialorder %v1599_v4, 0.0 }
 0x104   : > { %v859_v12 = vmul.f32 0.2, %v1599_v4  ;;  %v1568_v13 = vpop.f32.mrb[6].mxu0  ;;  %v1600_v14 = vpop.f32.mrb[6].mxu1  ;;  %1241 = vst.msk [vmem:[%s1791_s6 + $0x8c] sm:$0xf] %vm1205_vm2, %v1476_v5  ;;  %v1474_v15 = vpack.c.bf16 %v918_v11, %v918_v11  ;;  %v891_v16 = vsel %vm763_vm9, %v1567_v3, %v827_v7 }
 0x105   : > { %vm761_vm11 = vcmp.gt.f32.partialorder %v518_v8, 0.0  ;;  %v825_v17 = vmul.f32 0.2, %v518_v8  ;;  %v521_v18 = vpop.f32.mrb[7].mxu0  ;;  %v649_v19 = vpop.f32.mrb[7].mxu1  ;;  %v1447_v20 = vpack.c.bf16 %v891_v16, %v891_v16  ;;  %vm793_vm12 = vcmp.gt.f32.partialorder %v646_v9, 0.0 }
 0x106   : > { %1207 = vst.msk [vmem:[%s1791_s6 + $0x4] sm:$0xf] %vm1205_vm2, %v1442_v10  ;;  %v923_v21 = vsel %vm795_vm10, %v1599_v4, %v859_v12  ;;  %v857_v22 = vmul.f32 0.2, %v646_v9  ;;  %1239 = vst.msk [vmem:[%s1791_s6 + $0x84] sm:$0xf] %vm1205_vm2, %v1474_v15 }
 0x107   : > { %v1479_v23 = vpack.c.bf16 %v923_v21, %v923_v21  ;;  %v889_v24 = vsel %vm761_vm11, %v518_v8, %v825_v17  ;;  %vm764_vm13 = vcmp.gt.f32.partialorder %v1568_v13, 0.0  ;;  %v828_v25 = vmul.f32 0.2, %v1568_v13  ;;  %1212 = vst.msk [vmem:[%s1791_s6 + $0x18] sm:$0xf] %vm1205_vm2, %v1447_v20 }
 0x108   : > { %v1445_v26 = vpack.c.bf16 %v889_v24, %v889_v24  ;;  %v921_v27 = vsel %vm793_vm12, %v646_v9, %v857_v22  ;;  %vm796_vm14 = vcmp.gt.f32.partialorder %v1600_v14, 0.0  ;;  %v860_v28 = vmul.f32 0.2, %v1600_v14 }
 0x109   : > { %1244 = vst.msk [vmem:[%s1791_s6 + $0x98] sm:$0xf] %vm1205_vm2, %v1479_v23  ;;  %v1477_v29 = vpack.c.bf16 %v921_v27, %v921_v27  ;;  %v892_v30 = vsel %vm764_vm13, %v1568_v13, %v828_v25  ;;  %vm762_vm15 = vcmp.gt.f32.partialorder %v521_v18, 0.0  ;;  %v826_v31 = vmul.f32 0.2, %v521_v18  ;;  %v1571_v35 = vpop.f32.mrb[8].mxu0 }
 0x10a   : > { %1210 = vst.msk [vmem:[%s1791_s6 + $0x10] sm:$0xf] %vm1205_vm2, %v1445_v26  ;;  %v1448_v32 = vpack.c.bf16 %v892_v30, %v892_v30  ;;  %v924_v33 = vsel %vm796_vm14, %v1600_v14, %v860_v28  ;;  %vm794_vm0 = vcmp.gt.f32.partialorder %v649_v19, 0.0  ;;  %v858_v34 = vmul.f32 0.2, %v649_v19  ;;  %v1603_v36 = vpop.f32.mrb[8].mxu1 }
 0x10b   : > { %1242 = vst.msk [vmem:[%s1791_s6 + $0x90] sm:$0xf] %vm1205_vm2, %v1477_v29  ;;  %v1480_v37 = vpack.c.bf16 %v924_v33, %v924_v33  ;;  %v890_v38 = vsel %vm762_vm15, %v521_v18, %v826_v31  ;;  %vm767_vm1 = vcmp.gt.f32.partialorder %v1571_v35, 0.0  ;;  %v831_v39 = vmul.f32 0.2, %v1571_v35  ;;  %v534_v40 = vpop.f32.mrb[9].mxu0 }
 0x10c   : > { %v662_v41 = vpop.f32.mrb[9].mxu1  ;;  %1213 = vst.msk [vmem:[%s1791_s6 + $0x1c] sm:$0xf] %vm1205_vm2, %v1448_v32  ;;  %v1446_v42 = vpack.c.bf16 %v890_v38, %v890_v38  ;;  %v922_v43 = vsel %vm794_vm0, %v649_v19, %v858_v34  ;;  %vm799_vm3 = vcmp.gt.f32.partialorder %v1603_v36, 0.0  ;;  %v863_v44 = vmul.f32 0.2, %v1603_v36 }
 0x10d   : > { %v1572_v45 = vpop.f32.mrb[10].mxu0  ;;  %v1604_v46 = vpop.f32.mrb[10].mxu1  ;;  %1245 = vst.msk [vmem:[%s1791_s6 + $0x9c] sm:$0xf] %vm1205_vm2, %v1480_v37  ;;  %v1478_v47 = vpack.c.bf16 %v922_v43, %v922_v43  ;;  %v895_v48 = vsel %vm767_vm1, %v1571_v35, %v831_v39  ;;  %vm765_vm4 = vcmp.gt.f32.partialorder %v534_v40, 0.0  ;;  %vm797_vm5 = vcmp.gt.f32.partialorder %v662_v41, 0.0 }
 0x10e   : > { %v829_v49 = vmul.f32 0.2, %v534_v40  ;;  %v537_v50 = vpop.f32.mrb[11].mxu0  ;;  %v665_v51 = vpop.f32.mrb[11].mxu1  ;;  %1211 = vst.msk [vmem:[%s1791_s6 + $0x14] sm:$0xf] %vm1205_vm2, %v1446_v42  ;;  %v1451_v52 = vpack.c.bf16 %v895_v48, %v895_v48  ;;  %v927_v53 = vsel %vm799_vm3, %v1603_v36, %v863_v44 }
 0x10f   : > { %v861_v54 = vmul.f32 0.2, %v662_v41  ;;  %1243 = vst.msk [vmem:[%s1791_s6 + $0x94] sm:$0xf] %vm1205_vm2, %v1478_v47  ;;  %v1483_v55 = vpack.c.bf16 %v927_v53, %v927_v53  ;;  %vm768_vm6 = vcmp.gt.f32.partialorder %v1572_v45, 0.0  ;;  %vm800_vm7 = vcmp.gt.f32.partialorder %v1604_v46, 0.0 }
 0x110   : > { %v893_v56 = vsel %vm765_vm4, %v534_v40, %v829_v49  ;;  %v832_v57 = vmul.f32 0.2, %v1572_v45  ;;  %1216 = vst.msk [vmem:[%s1791_s6 + $0x28] sm:$0xf] %vm1205_vm2, %v1451_v52  ;;  %v864_v60 = vmul.f32 0.2, %v1604_v46 }
 0x111   : > { %v1449_v58 = vpack.c.bf16 %v893_v56, %v893_v56  ;;  %v925_v59 = vsel %vm797_vm5, %v662_v41, %v861_v54  ;;  %1248 = vst.msk [vmem:[%s1791_s6 + $0xa8] sm:$0xf] %vm1205_vm2, %v1483_v55  ;;  %vm766_vm8 = vcmp.gt.f32.partialorder %v537_v50, 0.0  ;;  %v830_v63 = vmul.f32 0.2, %v537_v50  ;;  %v1575_v3 = vpop.f32.mrb[12].mxu0 }
 0x112   : > { %v1481_v61 = vpack.c.bf16 %v925_v59, %v925_v59  ;;  %v896_v62 = vsel %vm768_vm6, %v1572_v45, %v832_v57  ;;  %v928_v1 = vsel %vm800_vm7, %v1604_v46, %v864_v60  ;;  %vm798_vm9 = vcmp.gt.f32.partialorder %v665_v51, 0.0  ;;  %v1607_v4 = vpop.f32.mrb[12].mxu1  ;;  %v550_v8 = vpop.f32.mrb[13].mxu0 }
 0x113   : > { %1214 = vst.msk [vmem:[%s1791_s6 + $0x20] sm:$0xf] %vm1205_vm2, %v1449_v58  ;;  %v1452_v0 = vpack.c.bf16 %v896_v62, %v896_v62  ;;  %v862_v2 = vmul.f32 0.2, %v665_v51  ;;  %v1484_v5 = vpack.c.bf16 %v928_v1, %v928_v1  ;;  %v894_v6 = vsel %vm766_vm8, %v537_v50, %v830_v63  ;;  %v678_v9 = vpop.f32.mrb[13].mxu1  ;;  %v1576_v13 = vpop.f32.mrb[14].mxu0 }
 0x114   : > { %1246 = vst.msk [vmem:[%s1791_s6 + $0xa0] sm:$0xf] %vm1205_vm2, %v1481_v61  ;;  %vm771_vm10 = vcmp.gt.f32.partialorder %v1575_v3, 0.0  ;;  %v835_v7 = vmul.f32 0.2, %v1575_v3  ;;  %v1450_v10 = vpack.c.bf16 %v894_v6, %v894_v6  ;;  %vm803_vm11 = vcmp.gt.f32.partialorder %v1607_v4, 0.0 }
 0x115   : > { %1217 = vst.msk [vmem:[%s1791_s6 + $0x2c] sm:$0xf] %vm1205_vm2, %v1452_v0  ;;  %v926_v11 = vsel %vm798_vm9, %v665_v51, %v862_v2  ;;  %v867_v12 = vmul.f32 0.2, %v1607_v4  ;;  %v1608_v14 = vpop.f32.mrb[14].mxu1  ;;  %vm769_vm12 = vcmp.gt.f32.partialorder %v550_v8, 0.0 }
 0x116   : > { %1249 = vst.msk [vmem:[%s1791_s6 + $0xac] sm:$0xf] %vm1205_vm2, %v1484_v5  ;;  %v1482_v15 = vpack.c.bf16 %v926_v11, %v926_v11  ;;  %v899_v16 = vsel %vm771_vm10, %v1575_v3, %v835_v7  ;;  %v833_v17 = vmul.f32 0.2, %v550_v8  ;;  %v553_v18 = vpop.f32.mrb[15].mxu0  ;;  %v681_v19 = vpop.f32.mrb[15].mxu1 }
 0x117   : > { %1215 = vst.msk [vmem:[%s1791_s6 + $0x24] sm:$0xf] %vm1205_vm2, %v1450_v10  ;;  %v1455_v20 = vpack.c.bf16 %v899_v16, %v899_v16  ;;  %v931_v21 = vsel %vm803_vm11, %v1607_v4, %v867_v12  ;;  %vm801_vm13 = vcmp.gt.f32.partialorder %v678_v9, 0.0  ;;  %v865_v22 = vmul.f32 0.2, %v678_v9 }
 0x118   : > { %1247 = vst.msk [vmem:[%s1791_s6 + $0xa4] sm:$0xf] %vm1205_vm2, %v1482_v15  ;;  %v1487_v23 = vpack.c.bf16 %v931_v21, %v931_v21  ;;  %v897_v24 = vsel %vm769_vm12, %v550_v8, %v833_v17  ;;  %vm772_vm14 = vcmp.gt.f32.partialorder %v1576_v13, 0.0  ;;  %v836_v25 = vmul.f32 0.2, %v1576_v13 }
 0x119   : > { %1220 = vst.msk [vmem:[%s1791_s6 + $0x38] sm:$0xf] %vm1205_vm2, %v1455_v20  ;;  %v1453_v26 = vpack.c.bf16 %v897_v24, %v897_v24  ;;  %v929_v27 = vsel %vm801_vm13, %v678_v9, %v865_v22  ;;  %vm804_vm15 = vcmp.gt.f32.partialorder %v1608_v14, 0.0  ;;  %v868_v28 = vmul.f32 0.2, %v1608_v14  ;;  %v1579_v35 = vpop.f32.mrb[16].mxu0 }
 0x11a   : > { %1252 = vst.msk [vmem:[%s1791_s6 + $0xb8] sm:$0xf] %vm1205_vm2, %v1487_v23  ;;  %v1485_v29 = vpack.c.bf16 %v929_v27, %v929_v27  ;;  %v900_v30 = vsel %vm772_vm14, %v1576_v13, %v836_v25  ;;  %vm770_vm0 = vcmp.gt.f32.partialorder %v553_v18, 0.0  ;;  %v834_v31 = vmul.f32 0.2, %v553_v18  ;;  %v1611_v36 = vpop.f32.mrb[16].mxu1 }
 0x11b   : > { %1218 = vst.msk [vmem:[%s1791_s6 + $0x30] sm:$0xf] %vm1205_vm2, %v1453_v26  ;;  %v1456_v32 = vpack.c.bf16 %v900_v30, %v900_v30  ;;  %v932_v33 = vsel %vm804_vm15, %v1608_v14, %v868_v28  ;;  %vm802_vm1 = vcmp.gt.f32.partialorder %v681_v19, 0.0  ;;  %v866_v34 = vmul.f32 0.2, %v681_v19  ;;  %v566_v40 = vpop.f32.mrb[17].mxu0 }
 0x11c   : > { %1250 = vst.msk [vmem:[%s1791_s6 + $0xb0] sm:$0xf] %vm1205_vm2, %v1485_v29  ;;  %v1488_v37 = vpack.c.bf16 %v932_v33, %v932_v33  ;;  %v898_v38 = vsel %vm770_vm0, %v553_v18, %v834_v31  ;;  %vm775_vm3 = vcmp.gt.f32.partialorder %v1579_v35, 0.0  ;;  %v839_v39 = vmul.f32 0.2, %v1579_v35  ;;  %v694_v41 = vpop.f32.mrb[17].mxu1 }
 0x11d   : > { %1221 = vst.msk [vmem:[%s1791_s6 + $0x3c] sm:$0xf] %vm1205_vm2, %v1456_v32  ;;  %v1454_v42 = vpack.c.bf16 %v898_v38, %v898_v38  ;;  %v930_v43 = vsel %vm802_vm1, %v681_v19, %v866_v34  ;;  %vm807_vm4 = vcmp.gt.f32.partialorder %v1611_v36, 0.0  ;;  %v871_v44 = vmul.f32 0.2, %v1611_v36  ;;  %v1580_v45 = vpop.f32.mrb[18].mxu0 }
 0x11e   : > { %v1612_v46 = vpop.f32.mrb[18].mxu1  ;;  %1253 = vst.msk [vmem:[%s1791_s6 + $0xbc] sm:$0xf] %vm1205_vm2, %v1488_v37  ;;  %v1486_v47 = vpack.c.bf16 %v930_v43, %v930_v43  ;;  %v903_v48 = vsel %vm775_vm3, %v1579_v35, %v839_v39  ;;  %vm773_vm5 = vcmp.gt.f32.partialorder %v566_v40, 0.0  ;;  %v837_v49 = vmul.f32 0.2, %v566_v40 }
 0x11f   : > { %v569_v50 = vpop.f32.mrb[19].mxu0  ;;  %v697_v51 = vpop.f32.mrb[19].mxu1  ;;  %1219 = vst.msk [vmem:[%s1791_s6 + $0x34] sm:$0xf] %vm1205_vm2, %v1454_v42  ;;  %v1459_v52 = vpack.c.bf16 %v903_v48, %v903_v48  ;;  %v935_v53 = vsel %vm807_vm4, %v1611_v36, %v871_v44  ;;  %vm805_vm6 = vcmp.gt.f32.partialorder %v694_v41, 0.0  ;;  %vm776_vm7 = vcmp.gt.f32.partialorder %v1580_v45, 0.0 }
 0x120   : > { %v869_v54 = vmul.f32 0.2, %v694_v41  ;;  %1251 = vst.msk [vmem:[%s1791_s6 + $0xb4] sm:$0xf] %vm1205_vm2, %v1486_v47  ;;  %v1491_v55 = vpack.c.bf16 %v935_v53, %v935_v53  ;;  %v901_v56 = vsel %vm773_vm5, %v566_v40, %v837_v49  ;;  %v840_v57 = vmul.f32 0.2, %v1580_v45 }
 0x121   : > { %1224 = vst.msk [vmem:[%s1791_s6 + $0x48] sm:$0xf] %vm1205_vm2, %v1459_v52  ;;  %v1457_v58 = vpack.c.bf16 %v901_v56, %v901_v56  ;;  %vm808_vm8 = vcmp.gt.f32.partialorder %v1612_v46, 0.0  ;;  %v872_v60 = vmul.f32 0.2, %v1612_v46  ;;  %vm774_vm9 = vcmp.gt.f32.partialorder %v569_v50, 0.0 }
 0x122   : > { %v933_v59 = vsel %vm805_vm6, %v694_v41, %v869_v54  ;;  %1256 = vst.msk [vmem:[%s1791_s6 + $0xc8] sm:$0xf] %vm1205_vm2, %v1491_v55  ;;  %v904_v62 = vsel %vm776_vm7, %v1580_v45, %v840_v57  ;;  %v838_v63 = vmul.f32 0.2, %v569_v50  ;;  %vm806_vm10 = vcmp.gt.f32.partialorder %v697_v51, 0.0  ;;  %v1583_v3 = vpop.f32.mrb[20].mxu0 }
 0x123   : > { %v1489_v61 = vpack.c.bf16 %v933_v59, %v933_v59  ;;  %1222 = vst.msk [vmem:[%s1791_s6 + $0x40] sm:$0xf] %vm1205_vm2, %v1457_v58  ;;  %v1460_v0 = vpack.c.bf16 %v904_v62, %v904_v62  ;;  %v936_v1 = vsel %vm808_vm8, %v1612_v46, %v872_v60  ;;  %v870_v2 = vmul.f32 0.2, %v697_v51  ;;  %v1615_v4 = vpop.f32.mrb[20].mxu1  ;;  %v582_v8 = vpop.f32.mrb[21].mxu0 }
 0x124   : > { %v1492_v5 = vpack.c.bf16 %v936_v1, %v936_v1  ;;  %v902_v6 = vsel %vm774_vm9, %v569_v50, %v838_v63  ;;  %vm779_vm11 = vcmp.gt.f32.partialorder %v1583_v3, 0.0  ;;  %v843_v7 = vmul.f32 0.2, %v1583_v3  ;;  %v710_v9 = vpop.f32.mrb[21].mxu1  ;;  %v1584_v13 = vpop.f32.mrb[22].mxu0 }
 0x125   : > { %1254 = vst.msk [vmem:[%s1791_s6 + $0xc0] sm:$0xf] %vm1205_vm2, %v1489_v61  ;;  %1225 = vst.msk [vmem:[%s1791_s6 + $0x4c] sm:$0xf] %vm1205_vm2, %v1460_v0  ;;  %v1458_v10 = vpack.c.bf16 %v902_v6, %v902_v6  ;;  %v934_v11 = vsel %vm806_vm10, %v697_v51, %v870_v2  ;;  %vm811_vm12 = vcmp.gt.f32.partialorder %v1615_v4, 0.0  ;;  %v1616_v14 = vpop.f32.mrb[22].mxu1 }
 0x126   : > { %v875_v12 = vmul.f32 0.2, %v1615_v4  ;;  %1257 = vst.msk [vmem:[%s1791_s6 + $0xcc] sm:$0xf] %vm1205_vm2, %v1492_v5  ;;  %v1490_v15 = vpack.c.bf16 %v934_v11, %v934_v11  ;;  %v907_v16 = vsel %vm779_vm11, %v1583_v3, %v843_v7  ;;  %vm777_vm13 = vcmp.gt.f32.partialorder %v582_v8, 0.0  ;;  %v585_v18 = vpop.f32.mrb[23].mxu0 }
 0x127   : > { %v841_v17 = vmul.f32 0.2, %v582_v8  ;;  %v713_v19 = vpop.f32.mrb[23].mxu1  ;;  %1223 = vst.msk [vmem:[%s1791_s6 + $0x44] sm:$0xf] %vm1205_vm2, %v1458_v10  ;;  %v1463_v20 = vpack.c.bf16 %v907_v16, %v907_v16  ;;  %vm809_vm14 = vcmp.gt.f32.partialorder %v710_v9, 0.0 }
 0x128   : > { %v939_v21 = vsel %vm811_vm12, %v1615_v4, %v875_v12  ;;  %v873_v22 = vmul.f32 0.2, %v710_v9  ;;  %1255 = vst.msk [vmem:[%s1791_s6 + $0xc4] sm:$0xf] %vm1205_vm2, %v1490_v15  ;;  %vm780_vm15 = vcmp.gt.f32.partialorder %v1584_v13, 0.0  ;;  %vm812_vm0 = vcmp.gt.f32.partialorder %v1616_v14, 0.0 }
 0x129   : > { %v1495_v23 = vpack.c.bf16 %v939_v21, %v939_v21  ;;  %v905_v24 = vsel %vm777_vm13, %v582_v8, %v841_v17  ;;  %v844_v25 = vmul.f32 0.2, %v1584_v13  ;;  %1228 = vst.msk [vmem:[%s1791_s6 + $0x58] sm:$0xf] %vm1205_vm2, %v1463_v20  ;;  %v876_v28 = vmul.f32 0.2, %v1616_v14 }
 0x12a   : > { %v1461_v26 = vpack.c.bf16 %v905_v24, %v905_v24  ;;  %v937_v27 = vsel %vm809_vm14, %v710_v9, %v873_v22  ;;  %vm778_vm1 = vcmp.gt.f32.partialorder %v585_v18, 0.0  ;;  %v842_v31 = vmul.f32 0.2, %v585_v18  ;;  %v1587_v35 = vpop.f32.mrb[24].mxu0  ;;  %v1619_v36 = vpop.f32.mrb[24].mxu1 }
 0x12b   : > { %1260 = vst.msk [vmem:[%s1791_s6 + $0xd8] sm:$0xf] %vm1205_vm2, %v1495_v23  ;;  %v1493_v29 = vpack.c.bf16 %v937_v27, %v937_v27  ;;  %v908_v30 = vsel %vm780_vm15, %v1584_v13, %v844_v25  ;;  %v940_v33 = vsel %vm812_vm0, %v1616_v14, %v876_v28  ;;  %vm810_vm3 = vcmp.gt.f32.partialorder %v713_v19, 0.0  ;;  %v598_v40 = vpop.f32.mrb[25].mxu0  ;;  %v726_v41 = vpop.f32.mrb[25].mxu1 }
 0x12c   : > { %1226 = vst.msk [vmem:[%s1791_s6 + $0x50] sm:$0xf] %vm1205_vm2, %v1461_v26  ;;  %v1464_v32 = vpack.c.bf16 %v908_v30, %v908_v30  ;;  %v874_v34 = vmul.f32 0.2, %v713_v19  ;;  %v1496_v37 = vpack.c.bf16 %v940_v33, %v940_v33  ;;  %v906_v38 = vsel %vm778_vm1, %v585_v18, %v842_v31  ;;  %v1588_v45 = vpop.f32.mrb[26].mxu0  ;;  %v1620_v46 = vpop.f32.mrb[26].mxu1 }
 0x12d   : > { %1258 = vst.msk [vmem:[%s1791_s6 + $0xd0] sm:$0xf] %vm1205_vm2, %v1493_v29  ;;  %vm783_vm4 = vcmp.gt.f32.partialorder %v1587_v35, 0.0  ;;  %v847_v39 = vmul.f32 0.2, %v1587_v35  ;;  %v1462_v42 = vpack.c.bf16 %v906_v38, %v906_v38  ;;  %vm815_vm5 = vcmp.gt.f32.partialorder %v1619_v36, 0.0 }
 0x12e   : > { %1229 = vst.msk [vmem:[%s1791_s6 + $0x5c] sm:$0xf] %vm1205_vm2, %v1464_v32  ;;  %v938_v43 = vsel %vm810_vm3, %v713_v19, %v874_v34  ;;  %v879_v44 = vmul.f32 0.2, %v1619_v36  ;;  %1261 = vst.msk [vmem:[%s1791_s6 + $0xdc] sm:$0xf] %vm1205_vm2, %v1496_v37 }
 0x12f   : > { %v1494_v47 = vpack.c.bf16 %v938_v43, %v938_v43  ;;  %v911_v48 = vsel %vm783_vm4, %v1587_v35, %v847_v39  ;;  %vm781_vm6 = vcmp.gt.f32.partialorder %v598_v40, 0.0  ;;  %v845_v49 = vmul.f32 0.2, %v598_v40  ;;  %v601_v50 = vpop.f32.mrb[27].mxu0  ;;  %v729_v51 = vpop.f32.mrb[27].mxu1 }
 0x130   : > { %1227 = vst.msk [vmem:[%s1791_s6 + $0x54] sm:$0xf] %vm1205_vm2, %v1462_v42  ;;  %v1467_v52 = vpack.c.bf16 %v911_v48, %v911_v48  ;;  %v943_v53 = vsel %vm815_vm5, %v1619_v36, %v879_v44  ;;  %vm813_vm7 = vcmp.gt.f32.partialorder %v726_v41, 0.0  ;;  %v877_v54 = vmul.f32 0.2, %v726_v41 }
 0x131   : > { %1259 = vst.msk [vmem:[%s1791_s6 + $0xd4] sm:$0xf] %vm1205_vm2, %v1494_v47  ;;  %v1499_v55 = vpack.c.bf16 %v943_v53, %v943_v53  ;;  %v909_v56 = vsel %vm781_vm6, %v598_v40, %v845_v49  ;;  %vm784_vm8 = vcmp.gt.f32.partialorder %v1588_v45, 0.0  ;;  %v848_v57 = vmul.f32 0.2, %v1588_v45  ;;  %v1591_v3 = vpop.f32.mrb[28].mxu0 }
 0x132   : > { %1232 = vst.msk [vmem:[%s1791_s6 + $0x68] sm:$0xf] %vm1205_vm2, %v1467_v52  ;;  %v1465_v58 = vpack.c.bf16 %v909_v56, %v909_v56  ;;  %v941_v59 = vsel %vm813_vm7, %v726_v41, %v877_v54  ;;  %vm816_vm9 = vcmp.gt.f32.partialorder %v1620_v46, 0.0  ;;  %v880_v60 = vmul.f32 0.2, %v1620_v46  ;;  %v1623_v4 = vpop.f32.mrb[28].mxu1 }
 0x133   : > { %1264 = vst.msk [vmem:[%s1791_s6 + $0xe8] sm:$0xf] %vm1205_vm2, %v1499_v55  ;;  %v1497_v61 = vpack.c.bf16 %v941_v59, %v941_v59  ;;  %v912_v62 = vsel %vm784_vm8, %v1588_v45, %v848_v57  ;;  %vm782_vm10 = vcmp.gt.f32.partialorder %v601_v50, 0.0  ;;  %v846_v63 = vmul.f32 0.2, %v601_v50  ;;  %v614_v8 = vpop.f32.mrb[29].mxu0 }
 0x134   : > { %1230 = vst.msk [vmem:[%s1791_s6 + $0x60] sm:$0xf] %vm1205_vm2, %v1465_v58  ;;  %v1468_v0 = vpack.c.bf16 %v912_v62, %v912_v62  ;;  %v944_v1 = vsel %vm816_vm9, %v1620_v46, %v880_v60  ;;  %vm814_vm11 = vcmp.gt.f32.partialorder %v729_v51, 0.0  ;;  %v878_v2 = vmul.f32 0.2, %v729_v51  ;;  %v742_v9 = vpop.f32.mrb[29].mxu1 }
 0x135   : > { %1262 = vst.msk [vmem:[%s1791_s6 + $0xe0] sm:$0xf] %vm1205_vm2, %v1497_v61  ;;  %v1500_v5 = vpack.c.bf16 %v944_v1, %v944_v1  ;;  %v910_v6 = vsel %vm782_vm10, %v601_v50, %v846_v63  ;;  %vm787_vm12 = vcmp.gt.f32.partialorder %v1591_v3, 0.0  ;;  %v851_v7 = vmul.f32 0.2, %v1591_v3  ;;  %v1592_v13 = vpop.f32.mrb[30].mxu0 }
 0x136   : > { %1233 = vst.msk [vmem:[%s1791_s6 + $0x6c] sm:$0xf] %vm1205_vm2, %v1468_v0  ;;  %v1466_v10 = vpack.c.bf16 %v910_v6, %v910_v6  ;;  %v942_v11 = vsel %vm814_vm11, %v729_v51, %v878_v2  ;;  %vm819_vm13 = vcmp.gt.f32.partialorder %v1623_v4, 0.0  ;;  %v883_v12 = vmul.f32 0.2, %v1623_v4  ;;  %v1624_v14 = vpop.f32.mrb[30].mxu1 }
 0x137   : > { %1265 = vst.msk [vmem:[%s1791_s6 + $0xec] sm:$0xf] %vm1205_vm2, %v1500_v5  ;;  %v1498_v15 = vpack.c.bf16 %v942_v11, %v942_v11  ;;  %v915_v16 = vsel %vm787_vm12, %v1591_v3, %v851_v7  ;;  %vm785_vm14 = vcmp.gt.f32.partialorder %v614_v8, 0.0  ;;  %v849_v17 = vmul.f32 0.2, %v614_v8  ;;  %v617_v18 = vpop.f32.mrb[31].mxu0 }
 0x138   : > { %v745_v19 = vpop.f32.mrb[31].mxu1  ;;  %1231 = vst.msk [vmem:[%s1791_s6 + $0x64] sm:$0xf] %vm1205_vm2, %v1466_v10  ;;  %v1471_v20 = vpack.c.bf16 %v915_v16, %v915_v16  ;;  %v947_v21 = vsel %vm819_vm13, %v1623_v4, %v883_v12  ;;  %vm817_vm15 = vcmp.gt.f32.partialorder %v742_v9, 0.0  ;;  %v881_v22 = vmul.f32 0.2, %v742_v9 }
 0x139   : > { %1263 = vst.msk [vmem:[%s1791_s6 + $0xe4] sm:$0xf] %vm1205_vm2, %v1498_v15  ;;  %v1503_v23 = vpack.c.bf16 %v947_v21, %v947_v21  ;;  %v913_v24 = vsel %vm785_vm14, %v614_v8, %v849_v17  ;;  %vm788_vm0 = vcmp.gt.f32.partialorder %v1592_v13, 0.0  ;;  %v852_v25 = vmul.f32 0.2, %v1592_v13 }
 0x13a   : > { %1236 = vst.msk [vmem:[%s1791_s6 + $0x78] sm:$0xf] %vm1205_vm2, %v1471_v20  ;;  %v1469_v26 = vpack.c.bf16 %v913_v24, %v913_v24  ;;  %v945_v27 = vsel %vm817_vm15, %v742_v9, %v881_v22  ;;  %vm820_vm1 = vcmp.gt.f32.partialorder %v1624_v14, 0.0  ;;  %v884_v28 = vmul.f32 0.2, %v1624_v14 }
 0x13b   : > { %1268 = vst.msk [vmem:[%s1791_s6 + $0xf8] sm:$0xf] %vm1205_vm2, %v1503_v23  ;;  %v1501_v29 = vpack.c.bf16 %v945_v27, %v945_v27  ;;  %v916_v30 = vsel %vm788_vm0, %v1592_v13, %v852_v25  ;;  %vm786_vm3 = vcmp.gt.f32.partialorder %v617_v18, 0.0  ;;  %v850_v31 = vmul.f32 0.2, %v617_v18 }
 0x13c   : > { %1234 = vst.msk [vmem:[%s1791_s6 + $0x70] sm:$0xf] %vm1205_vm2, %v1469_v26  ;;  %v1472_v32 = vpack.c.bf16 %v916_v30, %v916_v30  ;;  %v948_v33 = vsel %vm820_vm1, %v1624_v14, %v884_v28  ;;  %vm818_vm4 = vcmp.gt.f32.partialorder %v745_v19, 0.0  ;;  %v882_v34 = vmul.f32 0.2, %v745_v19 }
 0x13d   : > { %1266 = vst.msk [vmem:[%s1791_s6 + $0xf0] sm:$0xf] %vm1205_vm2, %v1501_v29  ;;  %v1504_v35 = vpack.c.bf16 %v948_v33, %v948_v33  ;;  %v914_v36 = vsel %vm786_vm3, %v617_v18, %v850_v31 }
 0x13e   : > { %1237 = vst.msk [vmem:[%s1791_s6 + $0x7c] sm:$0xf] %vm1205_vm2, %v1472_v32  ;;  %v1470_v37 = vpack.c.bf16 %v914_v36, %v914_v36  ;;  %v946_v38 = vsel %vm818_vm4, %v745_v19, %v882_v34 }
 0x13f   : > { %1269 = vst.msk [vmem:[%s1791_s6 + $0xfc] sm:$0xf] %vm1205_vm2, %v1504_v35  ;;  %v1502_v39 = vpack.c.bf16 %v946_v38, %v946_v38 }
 0x140   : > { %1235 = vst.msk [vmem:[%s1791_s6 + $0x74] sm:$0xf] %vm1205_vm2, %v1470_v37 }
 0x141   : > { %1267 = vst.msk [vmem:[%s1791_s6 + $0xf4] sm:$0xf] %vm1205_vm2, %v1502_v39 }
 0x142 PF: > { %s12_s9 = sadd.s32 1, %s1695_s9  }
 0x143   : > { %p9_p4 = scmp.ge.s32.totalorder %s12_s9, 6  }
 0x145   :  { %11 = sbr.rel (!%p9_p4) target bundleno = 1 (0x1), region = 58 }

// kernel: discriminator_forward.5
= control target key start
LH: loop header
LB: loop body
LE: loop exit
PB: predicated region body
PF: predicated region fallthrough
CT: control target
= control target key end

     0   :  { %v5575_v0 = vmov 0   ;;  %s8889_s1 = inlined_call_operand.vmem [shape: bf16[1024,128], index: 1, kind: input, shape index: {}]   ;;  %s8890_s0 = inlined_call_operand.vmem [shape: bf16[512,1024], index: 0, kind: input, shape index: {}]   ;;  %s8891_s2 = inlined_call_operand.vmem [shape: f32[1,128], index: 2, kind: input, shape index: {}]   ;;  %s8892_s3 = inlined_call_operand.vmem [shape: f32[1,128], index: 3, kind: input, shape index: {}]   ;;  %s8893_s4 = inlined_call_operand.vmem [shape: bf16[512,128], index: 4, kind: output, shape index: {}]  }
   0x1   :  { %2355 = vmatprep.subr.bf16.mxu0 %v5575_v0  ;;  %v5509_v1 = vld [vmem:[%s8889_s1 + $0x80] sm:$0xff]   ;;  %2066 = vmatprep.subr.bf16.mxu1 %v5575_v0  ;;  %v5510_v2 = vld [vmem:[%s8889_s1 + $0x88] sm:$0xff]   ;;  %v5511_v3 = vld [vmem:[%s8889_s1 + $0x90] sm:$0xff]  }
   0x2   :  { %2356 = vmatpush1.bf16.msra.mxu0 %v5509_v1  ;;  %v5512_v4 = vld [vmem:[%s8889_s1 + $0x98] sm:$0xff]   ;;  %v5513_v5 = vld [vmem:[%s8889_s1 + $0xa0] sm:$0xff]   ;;  %v5514_v7 = vld [vmem:[%s8889_s1 + $0xa8] sm:$0xff]  }
   0x3   :  { %2357 = vmatprep.subr.bf16.mxu0 %v5575_v0  ;;  %v5524_v6 = vld [vmem:[%s8889_s1] sm:$0xff]   ;;  %v5526_v8 = vld [vmem:[%s8889_s1 + $0x8] sm:$0xff]   ;;  %v5527_v12 = vld [vmem:[%s8889_s1 + $0x10] sm:$0xff]  }
   0x4   :  { %2067 = vmatpush1.bf16.msra.mxu1 %v5524_v6  ;;  %v5636_v9 = vld [vmem:[%s8890_s0 + $0x8] sm:$0xff]  ;;  %v5515_v13 = vld [vmem:[%s8889_s1 + $0xb0] sm:$0xff]   ;;  %v5528_v14 = vld [vmem:[%s8889_s1 + $0x18] sm:$0xff]  }
   0x5   :  { %2068 = vmatprep.subr.bf16.mxu1 %v5575_v0  ;;  %v5641_v10 = vld [vmem:[%s8890_s0 + $0x28] sm:$0xff]  ;;  %v5516_v15 = vld [vmem:[%s8889_s1 + $0xb8] sm:$0xff]   ;;  %v5529_v16 = vld [vmem:[%s8889_s1 + $0x20] sm:$0xff]  }
   0x6   :  { %2358 = vmatpush1.bf16.msra.mxu0 %v5510_v2  ;;  %v4300_v11 = vcombine.high %v5636_v9, %v5641_v10  ;;  %v5517_v17 = vld [vmem:[%s8889_s1 + $0xc0] sm:$0xff]   ;;  %v5530_v18 = vld [vmem:[%s8889_s1 + $0x28] sm:$0xff]   ;;  %v5531_v20 = vld [vmem:[%s8889_s1 + $0x30] sm:$0xff]   ;;  %v4299_v38 = vcombine.low %v5636_v9, %v5641_v10 }
   0x7   :  { %2359 = vmatprep.subr.bf16.mxu0 %v5575_v0  ;;  %v5518_v19 = vld [vmem:[%s8889_s1 + $0xc8] sm:$0xff]   ;;  %v5684_v21 = vld [vmem:[%s8890_s0] sm:$0xff]  ;;  %v5519_v23 = vld [vmem:[%s8889_s1 + $0xd0] sm:$0xff]  }
   0x8   :  { %2069 = vmatpush1.bf16.msra.mxu1 %v5526_v8  ;;  %2387 = vmatprep.mubr.bf16.mxu0 %v4300_v11  ;;  %v5689_v22 = vld [vmem:[%s8890_s0 + $0x20] sm:$0xff]  ;;  %v5532_v25 = vld [vmem:[%s8889_s1 + $0x38] sm:$0xff]   ;;  %v5522_v29 = vld [vmem:[%s8889_s1 + $0xe8] sm:$0xff]  }
   0x9   :  { %2070 = vmatprep.subr.bf16.mxu1 %v5575_v0  ;;  %v4298_v24 = vcombine.high %v5684_v21, %v5689_v22  ;;  %v5520_v26 = vld [vmem:[%s8889_s1 + $0xd8] sm:$0xff]   ;;  %v5533_v27 = vld [vmem:[%s8889_s1 + $0x40] sm:$0xff]   ;;  %v5534_v30 = vld [vmem:[%s8889_s1 + $0x48] sm:$0xff]   ;;  %v4297_v51 = vcombine.low %v5684_v21, %v5689_v22 }
   0xa   :  { %2360 = vmatpush1.bf16.msra.mxu0 %v5511_v3  ;;  %v5521_v28 = vld [vmem:[%s8889_s1 + $0xe0] sm:$0xff]   ;;  %v5535_v31 = vld [vmem:[%s8889_s1 + $0x50] sm:$0xff]   ;;  %v5525_v33 = vld [vmem:[%s8889_s1 + $0xf8] sm:$0xff]  }
   0xb   :  { %2361 = vmatprep.subr.bf16.mxu0 %v5575_v0  ;;  %2098 = vmatprep.mubr.bf16.mxu1 %v4298_v24  ;;  %v5523_v32 = vld [vmem:[%s8889_s1 + $0xf0] sm:$0xff]   ;;  %v27_v34 = vld [vmem:[%s8890_s0 + $0x48] sm:$0xff]  ;;  %v5536_v36 = vld [vmem:[%s8889_s1 + $0x58] sm:$0xff]  }
   0xc   :  { %2071 = vmatpush1.bf16.msra.mxu1 %v5527_v12  ;;  %v31_v35 = vld [vmem:[%s8890_s0 + $0x68] sm:$0xff]  ;;  %v5537_v37 = vld [vmem:[%s8889_s1 + $0x60] sm:$0xff]   ;;  %v5539_v43 = vld [vmem:[%s8889_s1 + $0x70] sm:$0xff]  }
   0xd   :  { %2072 = vmatprep.subr.bf16.mxu1 %v5575_v0  ;;  %v4308_v39 = vcombine.high %v27_v34, %v31_v35  ;;  %v35_v40 = vld [vmem:[%s8890_s0 + $0x88] sm:$0xff]  ;;  %v4307_v44 = vcombine.low %v27_v34, %v31_v35  ;;  %v5540_v46 = vld [vmem:[%s8889_s1 + $0x78] sm:$0xff]   ;;  %v26_v47 = vld [vmem:[%s8890_s0 + $0x40] sm:$0xff] }
   0xe   :  { %2362 = vmatpush1.bf16.msra.mxu0 %v5512_v4  ;;  %v39_v41 = vld [vmem:[%s8890_s0 + $0xa8] sm:$0xff]  ;;  %v30_v48 = vld [vmem:[%s8890_s0 + $0x60] sm:$0xff] }
   0xf   :  { %2363 = vmatprep.subr.bf16.mxu0 %v5575_v0  ;;  %v5538_v42 = vld [vmem:[%s8889_s1 + $0x68] sm:$0xff]   ;;  %v4316_v45 = vcombine.high %v35_v40, %v39_v41  ;;  %v4315_v52 = vcombine.low %v35_v40, %v39_v41  ;;  %v4306_v53 = vcombine.high %v26_v47, %v30_v48  ;;  %v5541_v55 = vld [vmem:[%s8889_s1 + $0x100] sm:$0xff]   ;;  %v4305_v60 = vcombine.low %v26_v47, %v30_v48 }
  0x10   :  { %2073 = vmatpush1.bf16.msra.mxu1 %v5528_v14  ;;  %v43_v49 = vld [vmem:[%s8890_s0 + $0xc8] sm:$0xff]  ;;  %v34_v56 = vld [vmem:[%s8890_s0 + $0x80] sm:$0xff] }
  0x11   :  { %2074 = vmatprep.subr.bf16.mxu1 %v5575_v0  ;;  %v47_v50 = vld [vmem:[%s8890_s0 + $0xe8] sm:$0xff]  ;;  %v38_v57 = vld [vmem:[%s8890_s0 + $0xa0] sm:$0xff] }
  0x12   :  { %2364 = vmatpush1.bf16.msra.mxu0 %v5513_v5  ;;  %v4324_v54 = vcombine.high %v43_v49, %v47_v50  ;;  %v51_v58 = vld [vmem:[%s8890_s0 + $0x108] sm:$0xff]  ;;  %v4323_v61 = vcombine.low %v43_v49, %v47_v50  ;;  %v4314_v62 = vcombine.high %v34_v56, %v38_v57  ;;  %v42_v1 = vld [vmem:[%s8890_s0 + $0xc0] sm:$0xff]  ;;  %v4313_v5 = vcombine.low %v34_v56, %v38_v57 }
  0x13   :  { %2365 = vmatprep.subr.bf16.mxu0 %v5575_v0  ;;  %v55_v59 = vld [vmem:[%s8890_s0 + $0x128] sm:$0xff]  ;;  %v46_v2 = vld [vmem:[%s8890_s0 + $0xe0] sm:$0xff] }
  0x14   :  { %2075 = vmatpush1.bf16.msra.mxu1 %v5529_v16  ;;  %v4332_v63 = vcombine.high %v51_v58, %v55_v59  ;;  %v59_v3 = vld [vmem:[%s8890_s0 + $0x148] sm:$0xff]  ;;  %v4331_v6 = vcombine.low %v51_v58, %v55_v59  ;;  %v50_v10 = vld [vmem:[%s8890_s0 + $0x100] sm:$0xff]  ;;  %v4321_v14 = vcombine.low %v42_v1, %v46_v2 }
  0x15   :  { %2076 = vmatprep.subr.bf16.mxu1 %v5575_v0  ;;  %v63_v4 = vld [vmem:[%s8890_s0 + $0x168] sm:$0xff]  ;;  %v54_v11 = vld [vmem:[%s8890_s0 + $0x120] sm:$0xff] }
  0x16   :  { %2366 = vmatpush1.bf16.msra.mxu0 %v5514_v7  ;;  %v4322_v7 = vcombine.high %v42_v1, %v46_v2  ;;  %v4340_v8 = vcombine.high %v59_v3, %v63_v4  ;;  %v5542_v9 = vld [vmem:[%s8889_s1 + $0x108] sm:$0xff]   ;;  %v4330_v16 = vcombine.high %v50_v10, %v54_v11  ;;  %v4329_v22 = vcombine.low %v50_v10, %v54_v11  ;;  %v74_v35 = vld [vmem:[%s8890_s0 + $0x1c0] sm:$0xff]  ;;  %v5548_v10 = vld [vmem:[%s8889_s1 + $0x138] sm:$0xff]  }
  0x17   :  { %2367 = vmatprep.subr.bf16.mxu0 %v5575_v0  ;;  %v67_v12 = vld [vmem:[%s8890_s0 + $0x188] sm:$0xff] }
  0x18   :  { %2077 = vmatpush1.bf16.msra.mxu1 %v5530_v18  ;;  %v58_v18 = vld [vmem:[%s8890_s0 + $0x140] sm:$0xff]  ;;  %v79_v21 = vld [vmem:[%s8890_s0 + $0x1e8] sm:$0xff] }
  0x19   :  { %2078 = vmatprep.subr.bf16.mxu1 %v5575_v0  ;;  %v103_v47 = vld [vmem:[%s8890_s0 + $0x2a8] sm:$0xff] }
  0x1a   :  { %2368 = vmatpush1.bf16.msra.mxu0 %v5515_v13  ;;  %v71_v13 = vld [vmem:[%s8890_s0 + $0x1a8] sm:$0xff] }
  0x1b   :  { %2369 = vmatprep.subr.bf16.mxu0 %v5575_v0  ;;  %v115_v1 = vld [vmem:[%s8890_s0 + $0x308] sm:$0xff] }
  0x1c   :  { %2079 = vmatpush1.bf16.msra.mxu1 %v5531_v20  ;;  %v75_v20 = vld [vmem:[%s8890_s0 + $0x1c8] sm:$0xff] }
  0x1d   :  { %2080 = vmatprep.subr.bf16.mxu1 %v5575_v0  ;;  %v119_v2 = vld [vmem:[%s8890_s0 + $0x328] sm:$0xff] }
  0x1e   :  { %2370 = vmatpush1.bf16.msra.mxu0 %v5516_v15  ;;  %v4339_v15 = vcombine.low %v59_v3, %v63_v4  ;;  %v123_v11 = vld [vmem:[%s8890_s0 + $0x348] sm:$0xff] }
  0x1f   :  { %2371 = vmatprep.subr.bf16.mxu0 %v5575_v0 }
  0x20   :  { %2081 = vmatpush1.bf16.msra.mxu1 %v5532_v25  ;;  %v4356_v25 = vcombine.high %v75_v20, %v79_v21 }
  0x21   :  { %2082 = vmatprep.subr.bf16.mxu1 %v5575_v0 }
  0x22   :  { %2372 = vmatpush1.bf16.msra.mxu0 %v5517_v17  ;;  %v4348_v17 = vcombine.high %v67_v12, %v71_v13 }
  0x23   :  { %2373 = vmatprep.subr.bf16.mxu0 %v5575_v0 }
  0x24   :  { %2083 = vmatpush1.bf16.msra.mxu1 %v5533_v27  ;;  %v66_v27 = vld [vmem:[%s8890_s0 + $0x180] sm:$0xff] }
  0x25   :  { %2084 = vmatprep.subr.bf16.mxu1 %v5575_v0 }
  0x26   :  { %2374 = vmatpush1.bf16.msra.mxu0 %v5518_v19  ;;  %v62_v19 = vld [vmem:[%s8890_s0 + $0x160] sm:$0xff] }
  0x27   :  { %2375 = vmatprep.subr.bf16.mxu0 %v5575_v0  ;;  %v4338_v24 = vcombine.high %v58_v18, %v62_v19 }
  0x28   :  { %2085 = vmatpush1.bf16.msra.mxu1 %v5534_v30  ;;  %v87_v30 = vld [vmem:[%s8890_s0 + $0x228] sm:$0xff] }
  0x29   :  { %2086 = vmatprep.subr.bf16.mxu1 %v5575_v0 }
  0x2a   :  { %2376 = vmatpush1.bf16.msra.mxu0 %v5519_v23  ;;  %v4347_v23 = vcombine.low %v67_v12, %v71_v13  ;;  %v127_v12 = vld [vmem:[%s8890_s0 + $0x368] sm:$0xff] }
  0x2b   :  { %2377 = vmatprep.subr.bf16.mxu0 %v5575_v0 }
  0x2c   :  { %2087 = vmatpush1.bf16.msra.mxu1 %v5535_v31  ;;  %v4337_v31 = vcombine.low %v58_v18, %v62_v19  ;;  %v114_v18 = vld [vmem:[%s8890_s0 + $0x300] sm:$0xff] }
  0x2d   :  { %2088 = vmatprep.subr.bf16.mxu1 %v5575_v0  ;;  %v118_v19 = vld [vmem:[%s8890_s0 + $0x320] sm:$0xff] }
  0x2e   :  { %2378 = vmatpush1.bf16.msra.mxu0 %v5520_v26  ;;  %v5543_v26 = vld [vmem:[%s8889_s1 + $0x110] sm:$0xff]  }
  0x2f   :  { %2379 = vmatprep.subr.bf16.mxu0 %v5575_v0 }
  0x30   :  { %2089 = vmatpush1.bf16.msra.mxu1 %v5536_v36  ;;  %v78_v36 = vld [vmem:[%s8890_s0 + $0x1e0] sm:$0xff] }
  0x31   :  { %2090 = vmatprep.subr.bf16.mxu1 %v5575_v0  ;;  %v4354_v41 = vcombine.high %v74_v35, %v78_v36  ;;  %v4353_v48 = vcombine.low %v74_v35, %v78_v36 }
  0x32   :  { %2380 = vmatpush1.bf16.msra.mxu0 %v5521_v28  ;;  %v70_v28 = vld [vmem:[%s8890_s0 + $0x1a0] sm:$0xff] }
  0x33   :  { %2381 = vmatprep.subr.bf16.mxu0 %v5575_v0 }
  0x34   :  { %2091 = vmatpush1.bf16.msra.mxu1 %v5537_v37  ;;  %v91_v37 = vld [vmem:[%s8890_s0 + $0x248] sm:$0xff] }
  0x35   :  { %2092 = vmatprep.subr.bf16.mxu1 %v5575_v0 }
  0x36   :  { %2382 = vmatpush1.bf16.msra.mxu0 %v5522_v29  ;;  %v83_v29 = vld [vmem:[%s8890_s0 + $0x208] sm:$0xff] }
  0x37   :  { %2383 = vmatprep.subr.bf16.mxu0 %v5575_v0  ;;  %v4364_v34 = vcombine.high %v83_v29, %v87_v30  ;;  %v4363_v40 = vcombine.low %v83_v29, %v87_v30  ;;  %v126_v29 = vld [vmem:[%s8890_s0 + $0x360] sm:$0xff]  ;;  %v5552_v30 = vld [vmem:[%s8889_s1 + $0x158] sm:$0xff]  }
  0x38   :  { %2093 = vmatpush1.bf16.msra.mxu1 %v5538_v42 }
  0x39   :  { %2094 = vmatprep.subr.bf16.mxu1 %v5575_v0 }
  0x3a   :  { %2384 = vmatpush1.bf16.msra.mxu0 %v5523_v32  ;;  %v4355_v32 = vcombine.low %v75_v20, %v79_v21  ;;  %v5550_v20 = vld [vmem:[%s8889_s1 + $0x148] sm:$0xff]  }
  0x3b   :  { %2385 = vmatprep.subr.bf16.mxu0 %v5575_v0  ;;  %v131_v21 = vld [vmem:[%s8890_s0 + $0x388] sm:$0xff] }
  0x3c   :  { %2095 = vmatpush1.bf16.msra.mxu1 %v5539_v43  ;;  %v5544_v43 = vld [vmem:[%s8889_s1 + $0x118] sm:$0xff]  }
  0x3d   :  { %2096 = vmatprep.subr.bf16.mxu1 %v5575_v0 }
  0x3e   :  { %2386 = vmatpush1.bf16.msra.mxu0 %v5525_v33  ;;  %v4346_v33 = vcombine.high %v66_v27, %v70_v28 }
  0x3f   :  { %2644 = vmatprep.subr.bf16.mxu0 %v5575_v0 }
  0x40   :  { %2097 = vmatpush1.bf16.msra.mxu1 %v5540_v46  ;;  %v99_v46 = vld [vmem:[%s8890_s0 + $0x288] sm:$0xff] }
  0x41   :  { %2388 = vmatmul.mubr.bf16.vlgmr.msra.gmra.mrb[0].mxu0 %v4299_v38  ;;  %5205 = vmatprep.subr.bf16.mxu1 %v5575_v0  ;;  %v95_v38 = vld [vmem:[%s8890_s0 + $0x268] sm:$0xff]  ;;  %v4379_v57 = vcombine.low %v99_v46, %v103_v47 }
  0x42   :  { %2395 = vmatprep.mubr.bf16.mxu0 %v4308_v39  ;;  %2645 = vmatpush1.bf16.msra.mxu0 %v5541_v55  ;;  %v4345_v39 = vcombine.low %v66_v27, %v70_v28  ;;  %v4372_v42 = vcombine.high %v91_v37, %v95_v38  ;;  %v4371_v49 = vcombine.low %v91_v37, %v95_v38  ;;  %v111_v55 = vld [vmem:[%s8890_s0 + $0x2e8] sm:$0xff]  ;;  %v5551_v27 = vld [vmem:[%s8889_s1 + $0x150] sm:$0xff]   ;;  %v122_v28 = vld [vmem:[%s8890_s0 + $0x340] sm:$0xff] }
  0x43   :  { %2099 = vmatmul.mubr.bf16.vlgmr.msra.gmra.mrb[0].mxu1 %v4297_v51  ;;  %2646 = vmatprep.subr.bf16.mxu0 %v5575_v0  ;;  %v4380_v51 = vcombine.high %v99_v46, %v103_v47  ;;  %v4402_v35 = vcombine.high %v122_v28, %v126_v29  ;;  %v5553_v37 = vld [vmem:[%s8889_s1 + $0x160] sm:$0xff]   ;;  %v5555_v47 = vld [vmem:[%s8889_s1 + $0x170] sm:$0xff]  }
  0x44   :  { %2106 = vmatprep.mubr.bf16.mxu1 %v4306_v53  ;;  %v94_v53 = vld [vmem:[%s8890_s0 + $0x260] sm:$0xff] }
  0x45   :  { %v130_v38 = vld [vmem:[%s8890_s0 + $0x380] sm:$0xff] }
  0x46   :  { %2647 = vmatpush1.bf16.msra.mxu0 %v5542_v9  ;;  %v110_v9 = vld [vmem:[%s8890_s0 + $0x2e0] sm:$0xff] }
  0x47   :  { %2648 = vmatprep.subr.bf16.mxu0 %v5575_v0 }
  0x49   :  { %2396 = vmatmul.mubr.bf16.gmra.mrb[4].mxu0 %v4307_v44  ;;  %v82_v44 = vld [vmem:[%s8890_s0 + $0x200] sm:$0xff] }
  0x4a   :  { %2403 = vmatprep.mubr.bf16.mxu0 %v4316_v45  ;;  %2649 = vmatpush1.bf16.msra.mxu0 %v5543_v26  ;;  %v86_v45 = vld [vmem:[%s8890_s0 + $0x220] sm:$0xff] }
  0x4b   :  { %2107 = vmatmul.mubr.bf16.gmra.mrb[4].mxu1 %v4305_v60  ;;  %2650 = vmatprep.subr.bf16.mxu0 %v5575_v0  ;;  %v4362_v50 = vcombine.high %v82_v44, %v86_v45  ;;  %v4361_v56 = vcombine.low %v82_v44, %v86_v45  ;;  %v5545_v60 = vld [vmem:[%s8889_s1 + $0x120] sm:$0xff]  }
  0x4c   :  { %2114 = vmatprep.mubr.bf16.mxu1 %v4314_v62  ;;  %v102_v62 = vld [vmem:[%s8890_s0 + $0x2a0] sm:$0xff] }
  0x4e   :  { %2651 = vmatpush1.bf16.msra.mxu0 %v5544_v43  ;;  %v4401_v43 = vcombine.low %v122_v28, %v126_v29  ;;  %v174_v28 = vld [vmem:[%s8890_s0 + $0x4e0] sm:$0xff]  ;;  %v187_v29 = vld [vmem:[%s8890_s0 + $0x548] sm:$0xff] }
  0x4f   :  { %2652 = vmatprep.subr.bf16.mxu0 %v5575_v0 }
  0x51   :  { %2404 = vmatmul.mubr.bf16.gmra.mrb[8].mxu0 %v4315_v52  ;;  %v90_v52 = vld [vmem:[%s8890_s0 + $0x240] sm:$0xff] }
  0x52   :  { %2411 = vmatprep.mubr.bf16.mxu0 %v4324_v54  ;;  %v107_v54 = vld [vmem:[%s8890_s0 + $0x2c8] sm:$0xff]  ;;  %v4370_v58 = vcombine.high %v90_v52, %v94_v53  ;;  %2653 = vmatpush1.bf16.msra.mxu0 %v5545_v60  ;;  %v4369_v3 = vcombine.low %v90_v52, %v94_v53  ;;  %v146_v60 = vld [vmem:[%s8890_s0 + $0x400] sm:$0xff] }
  0x53   :  { %2115 = vmatmul.mubr.bf16.gmra.mrb[8].mxu1 %v4313_v5  ;;  %v4388_v59 = vcombine.high %v107_v54, %v111_v55  ;;  %2654 = vmatprep.subr.bf16.mxu0 %v5575_v0  ;;  %v4387_v4 = vcombine.low %v107_v54, %v111_v55  ;;  %v155_v52 = vld [vmem:[%s8890_s0 + $0x448] sm:$0xff] }
  0x54   :  { %2122 = vmatprep.mubr.bf16.mxu1 %v4322_v7  ;;  %v5547_v7 = vld [vmem:[%s8889_s1 + $0x130] sm:$0xff]   ;;  %v159_v53 = vld [vmem:[%s8890_s0 + $0x468] sm:$0xff] }
  0x55   :  { %v6024_v54 = vld [vmem:[%s8889_s1 + $0x188] sm:$0xff]  }
  0x59   :  { %2412 = vmatmul.mubr.bf16.gmra.mrb[12].mxu0 %v4323_v61  ;;  %v98_v61 = vld [vmem:[%s8890_s0 + $0x280] sm:$0xff] }
  0x5a   :  { %2419 = vmatprep.mubr.bf16.mxu0 %v4332_v63  ;;  %v5546_v63 = vld [vmem:[%s8889_s1 + $0x128] sm:$0xff]   ;;  %v4378_v5 = vcombine.high %v98_v61, %v102_v62  ;;  %v4377_v13 = vcombine.low %v98_v61, %v102_v62  ;;  %v150_v61 = vld [vmem:[%s8890_s0 + $0x420] sm:$0xff] }
  0x5b   :  { %2123 = vmatmul.mubr.bf16.gmra.mrb[12].mxu1 %v4321_v14  ;;  %2655 = vmatpush1.bf16.msra.mxu0 %v5546_v63  ;;  %v4395_v14 = vcombine.low %v115_v1, %v119_v2  ;;  %v163_v62 = vld [vmem:[%s8890_s0 + $0x488] sm:$0xff] }
  0x5c   :  { %2130 = vmatprep.mubr.bf16.mxu1 %v4330_v16  ;;  %2656 = vmatprep.subr.bf16.mxu0 %v5575_v0  ;;  %v4404_v16 = vcombine.high %v123_v11, %v127_v12  ;;  %v167_v63 = vld [vmem:[%s8890_s0 + $0x4a8] sm:$0xff] }
  0x5f   :  { %2657 = vmatpush1.bf16.msra.mxu0 %v5547_v7  ;;  %v154_v7 = vld [vmem:[%s8890_s0 + $0x440] sm:$0xff] }
  0x60   :  { %2658 = vmatprep.subr.bf16.mxu0 %v5575_v0 }
  0x61   :  { %2420 = vmatmul.mubr.bf16.gmra.mrb[16].mxu0 %v4331_v6  ;;  %v4396_v6 = vcombine.high %v115_v1, %v119_v2  ;;  %v6051_v1 = vld [vmem:[%s8889_s1 + $0x198] sm:$0xff]  }
  0x62   :  { %2427 = vmatprep.mubr.bf16.mxu0 %v4340_v8  ;;  %v106_v8 = vld [vmem:[%s8890_s0 + $0x2c0] sm:$0xff] }
  0x63   :  { %2131 = vmatmul.mubr.bf16.gmra.mrb[16].mxu1 %v4329_v22  ;;  %2659 = vmatpush1.bf16.msra.mxu0 %v5548_v10  ;;  %v135_v22 = vld [vmem:[%s8890_s0 + $0x3a8] sm:$0xff] }
  0x64   :  { %2138 = vmatprep.mubr.bf16.mxu1 %v4338_v24  ;;  %2660 = vmatprep.subr.bf16.mxu0 %v5575_v0  ;;  %v4403_v24 = vcombine.low %v123_v11, %v127_v12  ;;  %v4412_v26 = vcombine.high %v131_v21, %v135_v22  ;;  %v175_v10 = vld [vmem:[%s8890_s0 + $0x4e8] sm:$0xff]  ;;  %v4425_v12 = vcombine.low %v146_v60, %v150_v61 }
  0x65   :  { %v6077_v11 = vld [vmem:[%s8889_s1 + $0x1a8] sm:$0xff]  }
  0x69   :  { %2428 = vmatmul.mubr.bf16.gmra.mrb[20].mxu0 %v4339_v15  ;;  %v4386_v15 = vcombine.high %v106_v8, %v110_v9 }
  0x6a   :  { %2435 = vmatprep.mubr.bf16.mxu0 %v4348_v17  ;;  %v5549_v17 = vld [vmem:[%s8889_s1 + $0x140] sm:$0xff]  }
  0x6b   :  { %2139 = vmatmul.mubr.bf16.gmra.mrb[20].mxu1 %v4337_v31  ;;  %2661 = vmatpush1.bf16.msra.mxu0 %v5549_v17  ;;  %v139_v31 = vld [vmem:[%s8890_s0 + $0x3c8] sm:$0xff]  ;;  %v162_v17 = vld [vmem:[%s8890_s0 + $0x480] sm:$0xff] }
  0x6c   :  { %2146 = vmatprep.mubr.bf16.mxu1 %v4346_v33  ;;  %2662 = vmatprep.subr.bf16.mxu0 %v5575_v0  ;;  %v4393_v33 = vcombine.low %v114_v18, %v118_v19 }
  0x6f   :  { %2663 = vmatpush1.bf16.msra.mxu0 %v5550_v20  ;;  %v183_v20 = vld [vmem:[%s8890_s0 + $0x528] sm:$0xff] }
  0x70   :  { %2664 = vmatprep.subr.bf16.mxu0 %v5575_v0 }
  0x71   :  { %2436 = vmatmul.mubr.bf16.gmra.mrb[24].mxu0 %v4347_v23  ;;  %v4385_v23 = vcombine.low %v106_v8, %v110_v9  ;;  %v158_v8 = vld [vmem:[%s8890_s0 + $0x460] sm:$0xff]  ;;  %v171_v9 = vld [vmem:[%s8890_s0 + $0x4c8] sm:$0xff] }
  0x72   :  { %2443 = vmatprep.mubr.bf16.mxu0 %v4356_v25  ;;  %v4394_v25 = vcombine.high %v114_v18, %v118_v19  ;;  %v166_v18 = vld [vmem:[%s8890_s0 + $0x4a0] sm:$0xff]  ;;  %v179_v19 = vld [vmem:[%s8890_s0 + $0x508] sm:$0xff] }
  0x73   :  { %2147 = vmatmul.mubr.bf16.gmra.mrb[24].mxu1 %v4345_v39  ;;  %2665 = vmatpush1.bf16.msra.mxu0 %v5551_v27  ;;  %v134_v39 = vld [vmem:[%s8890_s0 + $0x3a0] sm:$0xff] }
  0x74   :  { %2154 = vmatprep.mubr.bf16.mxu1 %v4354_v41  ;;  %2666 = vmatprep.subr.bf16.mxu0 %v5575_v0  ;;  %v147_v41 = vld [vmem:[%s8890_s0 + $0x408] sm:$0xff]  ;;  %v4410_v45 = vcombine.high %v130_v38, %v134_v39  ;;  %v4409_v55 = vcombine.low %v130_v38, %v134_v39  ;;  %v170_v27 = vld [vmem:[%s8890_s0 + $0x4c0] sm:$0xff] }
  0x75   :  { %v182_v38 = vld [vmem:[%s8890_s0 + $0x520] sm:$0xff]  ;;  %v195_v39 = vld [vmem:[%s8890_s0 + $0x588] sm:$0xff] }
  0x77   :  { %2667 = vmatpush1.bf16.msra.mxu0 %v5552_v30  ;;  %v191_v30 = vld [vmem:[%s8890_s0 + $0x568] sm:$0xff] }
  0x78   :  { %2668 = vmatprep.subr.bf16.mxu0 %v5575_v0 }
  0x79   :  { %2444 = vmatmul.mubr.bf16.gmra.mrb[28].mxu0 %v4355_v32  ;;  %v143_v32 = vld [vmem:[%s8890_s0 + $0x3e8] sm:$0xff] }
  0x7a   :  { %2451 = vmatprep.mubr.bf16.mxu0 %v4364_v34  ;;  %v4411_v34 = vcombine.low %v131_v21, %v135_v22  ;;  %v4420_v36 = vcombine.high %v139_v31, %v143_v32  ;;  %v4419_v44 = vcombine.low %v139_v31, %v143_v32  ;;  %v6103_v21 = vld [vmem:[%s8889_s1 + $0x1b8] sm:$0xff]   ;;  %v4433_v22 = vcombine.low %v154_v7, %v158_v8  ;;  %v6129_v31 = vld [vmem:[%s8889_s1 + $0x1c8] sm:$0xff]  }
  0x7b   :  { %2155 = vmatmul.mubr.bf16.gmra.mrb[28].mxu1 %v4353_v48  ;;  %2669 = vmatpush1.bf16.msra.mxu0 %v5553_v37  ;;  %v6002_v48 = vld [vmem:[%s8889_s1 + $0x180] sm:$0xff]   ;;  %v4441_v32 = vcombine.low %v162_v17, %v166_v18 }
  0x7c   :  { %2162 = vmatprep.mubr.bf16.mxu1 %v4362_v50  ;;  %2670 = vmatprep.subr.bf16.mxu0 %v5575_v0  ;;  %v142_v50 = vld [vmem:[%s8890_s0 + $0x3e0] sm:$0xff] }
  0x7d   :  { %5221 = vmatpush1.bf16.msra.mxu1 %v6002_v48  ;;  %v178_v37 = vld [vmem:[%s8890_s0 + $0x500] sm:$0xff] }
  0x7e   :  { %5206 = vmatprep.subr.bf16.mxu1 %v5575_v0 }
  0x81   :  { %2452 = vmatmul.mubr.bf16.gmra.mrb[32].mxu0 %v4363_v40  ;;  %v5554_v40 = vld [vmem:[%s8889_s1 + $0x168] sm:$0xff]   ;;  %5222 = vmatpush1.bf16.msra.mxu1 %v6024_v54 }
  0x82   :  { %2459 = vmatprep.mubr.bf16.mxu0 %v4372_v42  ;;  %v151_v42 = vld [vmem:[%s8890_s0 + $0x428] sm:$0xff]  ;;  %2671 = vmatpush1.bf16.msra.mxu0 %v5554_v40 }
  0x83   :  { %2163 = vmatmul.mubr.bf16.gmra.mrb[32].mxu1 %v4361_v56  ;;  %v4428_v46 = vcombine.high %v147_v41, %v151_v42  ;;  %2672 = vmatprep.subr.bf16.mxu0 %v5575_v0  ;;  %v4427_v56 = vcombine.low %v147_v41, %v151_v42  ;;  %v199_v40 = vld [vmem:[%s8890_s0 + $0x5a8] sm:$0xff]  ;;  %v6155_v41 = vld [vmem:[%s8889_s1 + $0x1d8] sm:$0xff]   ;;  %v4449_v42 = vcombine.low %v170_v27, %v174_v28 }
  0x84   :  { %2170 = vmatprep.mubr.bf16.mxu1 %v4370_v58  ;;  %v4436_v58 = vcombine.high %v155_v52, %v159_v53  ;;  %5207 = vmatprep.subr.bf16.mxu1 %v5575_v0 }
  0x86   :  { %2673 = vmatpush1.bf16.msra.mxu0 %v5555_v47  ;;  %v186_v47 = vld [vmem:[%s8890_s0 + $0x540] sm:$0xff] }
  0x87   :  { %2674 = vmatprep.subr.bf16.mxu0 %v5575_v0 }
  0x89   :  { %2460 = vmatmul.mubr.bf16.gmra.mrb[36].mxu0 %v4371_v49  ;;  %v138_v49 = vld [vmem:[%s8890_s0 + $0x3c0] sm:$0xff] }
  0x8a   :  { %2467 = vmatprep.mubr.bf16.mxu0 %v4380_v51  ;;  %v5557_v51 = vld [vmem:[%s8889_s1 + $0x178] sm:$0xff]   ;;  %v4417_v2 = vcombine.low %v138_v49, %v142_v50 }
  0x8b   :  { %2171 = vmatmul.mubr.bf16.gmra.mrb[36].mxu1 %v4369_v3  ;;  %2675 = vmatpush1.bf16.msra.mxu0 %v5557_v51  ;;  %v4435_v3 = vcombine.low %v155_v52, %v159_v53  ;;  %v207_v51 = vld [vmem:[%s8890_s0 + $0x5e8] sm:$0xff]  ;;  %v4457_v53 = vcombine.low %v178_v37, %v182_v38 }
  0x8c   :  { %2178 = vmatprep.mubr.bf16.mxu1 %v4378_v5  ;;  %2933 = vmatprep.subr.bf16.mxu0 %v5575_v0  ;;  %v4444_v5 = vcombine.high %v163_v62, %v167_v63  ;;  %v6181_v52 = vld [vmem:[%s8889_s1 + $0x1e8] sm:$0xff]  }
  0x91   :  { %2468 = vmatmul.mubr.bf16.gmra.mrb[40].mxu0 %v4379_v57  ;;  %v4418_v57 = vcombine.high %v138_v49, %v142_v50  ;;  %v190_v49 = vld [vmem:[%s8890_s0 + $0x560] sm:$0xff]  ;;  %v203_v50 = vld [vmem:[%s8890_s0 + $0x5c8] sm:$0xff] }
  0x92   :  { %2475 = vmatprep.mubr.bf16.mxu0 %v4388_v59  ;;  %v6033_v59 = vld [vmem:[%s8889_s1 + $0x190] sm:$0xff]  }
  0x93   :  { %2179 = vmatmul.mubr.bf16.gmra.mrb[40].mxu1 %v4377_v13  ;;  %v4443_v13 = vcombine.low %v163_v62, %v167_v63  ;;  %v211_v62 = vld [vmem:[%s8890_s0 + $0x608] sm:$0xff] }
  0x94   :  { %2186 = vmatprep.mubr.bf16.mxu1 %v4386_v15  ;;  %5223 = vmatpush1.bf16.msra.mxu1 %v6033_v59  ;;  %v4452_v15 = vcombine.high %v171_v9, %v175_v10  ;;  %v215_v63 = vld [vmem:[%s8890_s0 + $0x628] sm:$0xff] }
  0x95   :  { %5208 = vmatprep.subr.bf16.mxu1 %v5575_v0 }
  0x98   :  { %5224 = vmatpush1.bf16.msra.mxu1 %v6051_v1 }
  0x99   :  { %2476 = vmatmul.mubr.bf16.gmra.mrb[44].mxu0 %v4387_v4  ;;  %v4426_v4 = vcombine.high %v146_v60, %v150_v61  ;;  %5209 = vmatprep.subr.bf16.mxu1 %v5575_v0  ;;  %v194_v60 = vld [vmem:[%s8890_s0 + $0x580] sm:$0xff] }
  0x9a   :  { %2483 = vmatprep.mubr.bf16.mxu0 %v4396_v6  ;;  %v6059_v6 = vld [vmem:[%s8889_s1 + $0x1a0] sm:$0xff]  }
  0x9b   :  { %2187 = vmatmul.mubr.bf16.gmra.mrb[44].mxu1 %v4385_v23  ;;  %v4451_v23 = vcombine.low %v171_v9, %v175_v10  ;;  %v198_v61 = vld [vmem:[%s8890_s0 + $0x5a0] sm:$0xff]  ;;  %v219_v10 = vld [vmem:[%s8890_s0 + $0x648] sm:$0xff] }
  0x9c   :  { %2194 = vmatprep.mubr.bf16.mxu1 %v4394_v25  ;;  %5225 = vmatpush1.bf16.msra.mxu1 %v6059_v6  ;;  %v4460_v25 = vcombine.high %v179_v19, %v183_v20  ;;  %v206_v9 = vld [vmem:[%s8890_s0 + $0x5e0] sm:$0xff] }
  0x9d   :  { %5210 = vmatprep.subr.bf16.mxu1 %v5575_v0 }
  0xa0   :  { %5226 = vmatpush1.bf16.msra.mxu1 %v6077_v11 }
  0xa1   :  { %2484 = vmatmul.mubr.bf16.gmra.mrb[48].mxu0 %v4395_v14  ;;  %v4434_v14 = vcombine.high %v154_v7, %v158_v8  ;;  %5211 = vmatprep.subr.bf16.mxu1 %v5575_v0  ;;  %v4492_v7 = vcombine.high %v211_v62, %v215_v63  ;;  %v202_v8 = vld [vmem:[%s8890_s0 + $0x5c0] sm:$0xff] }
  0xa2   :  { %2491 = vmatprep.mubr.bf16.mxu0 %v4404_v16  ;;  %v6085_v16 = vld [vmem:[%s8889_s1 + $0x1b0] sm:$0xff]  }
  0xa3   :  { %2195 = vmatmul.mubr.bf16.gmra.mrb[48].mxu1 %v4393_v33  ;;  %v4459_v33 = vcombine.low %v179_v19, %v183_v20  ;;  %v214_v19 = vld [vmem:[%s8890_s0 + $0x620] sm:$0xff]  ;;  %v227_v20 = vld [vmem:[%s8890_s0 + $0x688] sm:$0xff] }
  0xa4   :  { %2202 = vmatprep.mubr.bf16.mxu1 %v4402_v35  ;;  %5227 = vmatpush1.bf16.msra.mxu1 %v6085_v16  ;;  %v4468_v35 = vcombine.high %v187_v29, %v191_v30 }
  0xa5   :  { %5212 = vmatprep.subr.bf16.mxu1 %v5575_v0 }
  0xa8   :  { %5228 = vmatpush1.bf16.msra.mxu1 %v6103_v21 }
  0xa9   :  { %2492 = vmatmul.mubr.bf16.gmra.mrb[52].mxu0 %v4403_v24  ;;  %v4442_v24 = vcombine.high %v162_v17, %v166_v18  ;;  %5213 = vmatprep.subr.bf16.mxu1 %v5575_v0  ;;  %v210_v18 = vld [vmem:[%s8890_s0 + $0x600] sm:$0xff] }
  0xaa   :  { %2499 = vmatprep.mubr.bf16.mxu0 %v4412_v26  ;;  %v6111_v26 = vld [vmem:[%s8889_s1 + $0x1c0] sm:$0xff]  }
  0xab   :  { %2203 = vmatmul.mubr.bf16.gmra.mrb[52].mxu1 %v4401_v43  ;;  %v4467_v43 = vcombine.low %v187_v29, %v191_v30  ;;  %v222_v29 = vld [vmem:[%s8890_s0 + $0x660] sm:$0xff]  ;;  %v235_v30 = vld [vmem:[%s8890_s0 + $0x6c8] sm:$0xff] }
  0xac   :  { %2210 = vmatprep.mubr.bf16.mxu1 %v4410_v45  ;;  %5229 = vmatpush1.bf16.msra.mxu1 %v6111_v26  ;;  %v4476_v45 = vcombine.high %v195_v39, %v199_v40 }
  0xad   :  { %5214 = vmatprep.subr.bf16.mxu1 %v5575_v0 }
  0xb0   :  { %5230 = vmatpush1.bf16.msra.mxu1 %v6129_v31 }
  0xb1   :  { %2500 = vmatmul.mubr.bf16.gmra.mrb[56].mxu0 %v4411_v34  ;;  %v4450_v34 = vcombine.high %v170_v27, %v174_v28  ;;  %5215 = vmatprep.subr.bf16.mxu1 %v5575_v0  ;;  %v218_v28 = vld [vmem:[%s8890_s0 + $0x640] sm:$0xff] }
  0xb2   :  { %2507 = vmatprep.mubr.bf16.mxu0 %v4420_v36  ;;  %v6137_v36 = vld [vmem:[%s8889_s1 + $0x1d0] sm:$0xff]  }
  0xb3   :  { %2211 = vmatmul.mubr.bf16.gmra.mrb[56].mxu1 %v4409_v55  ;;  %v4475_v55 = vcombine.low %v195_v39, %v199_v40  ;;  %v230_v39 = vld [vmem:[%s8890_s0 + $0x6a0] sm:$0xff]  ;;  %v243_v40 = vld [vmem:[%s8890_s0 + $0x708] sm:$0xff] }
  0xb4   :  { %2218 = vmatprep.mubr.bf16.mxu1 %v4418_v57  ;;  %5231 = vmatpush1.bf16.msra.mxu1 %v6137_v36  ;;  %v4484_v57 = vcombine.high %v203_v50, %v207_v51 }
  0xb5   :  { %5216 = vmatprep.subr.bf16.mxu1 %v5575_v0 }
  0xb8   :  { %5232 = vmatpush1.bf16.msra.mxu1 %v6155_v41 }
  0xb9   :  { %2508 = vmatmul.mubr.bf16.gmra.mrb[60].mxu0 %v4419_v44  ;;  %v4458_v44 = vcombine.high %v178_v37, %v182_v38  ;;  %5217 = vmatprep.subr.bf16.mxu1 %v5575_v0  ;;  %v226_v38 = vld [vmem:[%s8890_s0 + $0x680] sm:$0xff] }
  0xba   :  { %2515 = vmatprep.mubr.bf16.mxu0 %v4428_v46  ;;  %v6163_v46 = vld [vmem:[%s8889_s1 + $0x1e0] sm:$0xff]  }
  0xbb   :  { %2219 = vmatmul.mubr.bf16.gmra.mrb[60].mxu1 %v4417_v2  ;;  %v6207_v2 = vld [vmem:[%s8889_s1 + $0x1f8] sm:$0xff]  }
  0xbc   :  { %2226 = vmatprep.mubr.bf16.mxu1 %v4426_v4  ;;  %5233 = vmatpush1.bf16.msra.mxu1 %v6163_v46  ;;  %v4483_v4 = vcombine.low %v203_v50, %v207_v51  ;;  %v238_v50 = vld [vmem:[%s8890_s0 + $0x6e0] sm:$0xff]  ;;  %v251_v51 = vld [vmem:[%s8890_s0 + $0x748] sm:$0xff] }
  0xbd   :  { %5218 = vmatprep.subr.bf16.mxu1 %v5575_v0 }
  0xc0   :  { %5234 = vmatpush1.bf16.msra.mxu1 %v6181_v52 }
  0xc1   :  { %2516 = vmatmul.mubr.bf16.gmra.mrb[64].mxu0 %v4427_v56  ;;  %v4466_v56 = vcombine.high %v186_v47, %v190_v49  ;;  %5219 = vmatprep.subr.bf16.mxu1 %v5575_v0 }
  0xc2   :  { %2523 = vmatprep.mubr.bf16.mxu0 %v4436_v58  ;;  %v6189_v58 = vld [vmem:[%s8889_s1 + $0x1f0] sm:$0xff]  }
  0xc3   :  { %2227 = vmatmul.mubr.bf16.gmra.mrb[64].mxu1 %v4425_v12  ;;  %v223_v12 = vld [vmem:[%s8890_s0 + $0x668] sm:$0xff] }
  0xc4   :  { %2234 = vmatprep.mubr.bf16.mxu1 %v4434_v14  ;;  %5235 = vmatpush1.bf16.msra.mxu1 %v6189_v58  ;;  %v4491_v14 = vcombine.low %v211_v62, %v215_v63  ;;  %v4500_v17 = vcombine.high %v219_v10, %v223_v12  ;;  %v246_v62 = vld [vmem:[%s8890_s0 + $0x720] sm:$0xff]  ;;  %v259_v63 = vld [vmem:[%s8890_s0 + $0x788] sm:$0xff] }
  0xc5   :  { %5220 = vmatprep.subr.bf16.mxu1 %v5575_v0 }
  0xc8   :  { %5236 = vmatpush1.bf16.msra.mxu1 %v6207_v2 }
  0xc9   :  { %2524 = vmatmul.mubr.bf16.gmra.mrb[68].mxu0 %v4435_v3  ;;  %v4465_v3 = vcombine.low %v186_v47, %v190_v49  ;;  %v234_v49 = vld [vmem:[%s8890_s0 + $0x6c0] sm:$0xff] }
  0xca   :  { %2531 = vmatprep.mubr.bf16.mxu0 %v4444_v5  ;;  %v4474_v5 = vcombine.high %v194_v60, %v198_v61 }
  0xcb   :  { %2235 = vmatmul.mubr.bf16.gmra.mrb[68].mxu1 %v4433_v22  ;;  %v231_v22 = vld [vmem:[%s8890_s0 + $0x6a8] sm:$0xff] }
  0xcc   :  { %2242 = vmatprep.mubr.bf16.mxu1 %v4442_v24  ;;  %v4499_v24 = vcombine.low %v219_v10, %v223_v12  ;;  %v4508_v27 = vcombine.high %v227_v20, %v231_v22 }
  0xd1   :  { %2532 = vmatmul.mubr.bf16.gmra.mrb[72].mxu0 %v4443_v13  ;;  %v4473_v13 = vcombine.low %v194_v60, %v198_v61  ;;  %v242_v61 = vld [vmem:[%s8890_s0 + $0x700] sm:$0xff] }
  0xd2   :  { %2539 = vmatprep.mubr.bf16.mxu0 %v4452_v15  ;;  %v4482_v15 = vcombine.high %v202_v8, %v206_v9 }
  0xd3   :  { %2243 = vmatmul.mubr.bf16.gmra.mrb[72].mxu1 %v4441_v32  ;;  %v239_v32 = vld [vmem:[%s8890_s0 + $0x6e8] sm:$0xff] }
  0xd4   :  { %2250 = vmatprep.mubr.bf16.mxu1 %v4450_v34  ;;  %v4507_v34 = vcombine.low %v227_v20, %v231_v22  ;;  %v4516_v37 = vcombine.high %v235_v30, %v239_v32 }
  0xd9   :  { %2540 = vmatmul.mubr.bf16.gmra.mrb[76].mxu0 %v4451_v23  ;;  %v4481_v23 = vcombine.low %v202_v8, %v206_v9  ;;  %v4522_v8 = vcombine.high %v242_v61, %v246_v62 }
  0xda   :  { %2547 = vmatprep.mubr.bf16.mxu0 %v4460_v25  ;;  %v4490_v25 = vcombine.high %v210_v18, %v214_v19 }
  0xdb   :  { %2251 = vmatmul.mubr.bf16.gmra.mrb[76].mxu1 %v4449_v42  ;;  %v247_v42 = vld [vmem:[%s8890_s0 + $0x728] sm:$0xff] }
  0xdc   :  { %2258 = vmatprep.mubr.bf16.mxu1 %v4458_v44  ;;  %v4515_v44 = vcombine.low %v235_v30, %v239_v32  ;;  %v4524_v47 = vcombine.high %v243_v40, %v247_v42  ;;  %v262_v30 = vld [vmem:[%s8890_s0 + $0x7a0] sm:$0xff]  ;;  %v20_v32 = vld [vmem:[%s8890_s0 + $0x10] sm:$0xff] }
  0xe1   :  { %2548 = vmatmul.mubr.bf16.gmra.mrb[80].mxu0 %v4459_v33  ;;  %v4489_v33 = vcombine.low %v210_v18, %v214_v19  ;;  %v271_v18 = vld [vmem:[%s8890_s0 + $0x7e8] sm:$0xff]  ;;  %v4521_v19 = vcombine.low %v242_v61, %v246_v62  ;;  %v77_v62 = vld [vmem:[%s8890_s0 + $0x1d8] sm:$0xff] }
  0xe2   :  { %2555 = vmatprep.mubr.bf16.mxu0 %v4468_v35  ;;  %v4498_v35 = vcombine.high %v218_v28, %v222_v29 }
  0xe3   :  { %2259 = vmatmul.mubr.bf16.gmra.mrb[80].mxu1 %v4457_v53  ;;  %v255_v53 = vld [vmem:[%s8890_s0 + $0x768] sm:$0xff] }
  0xe4   :  { %2266 = vmatprep.mubr.bf16.mxu1 %v4466_v56  ;;  %v4523_v56 = vcombine.low %v243_v40, %v247_v42  ;;  %v4532_v60 = vcombine.high %v251_v51, %v255_v53 }
  0xe9   :  { %2556 = vmatmul.mubr.bf16.gmra.mrb[84].mxu0 %v4467_v43  ;;  %v4497_v43 = vcombine.low %v218_v28, %v222_v29  ;;  %v258_v29 = vld [vmem:[%s8890_s0 + $0x780] sm:$0xff] }
  0xea   :  { %2563 = vmatprep.mubr.bf16.mxu0 %v4476_v45  ;;  %v4506_v45 = vcombine.high %v226_v38, %v230_v39 }
  0xeb   :  { %2267 = vmatmul.mubr.bf16.gmra.mrb[84].mxu1 %v4465_v3  ;;  %v263_v3 = vld [vmem:[%s8890_s0 + $0x7a8] sm:$0xff] }
  0xec   :  { %2274 = vmatprep.mubr.bf16.mxu1 %v4474_v5  ;;  %v4540_v10 = vcombine.high %v259_v63, %v263_v3  ;;  %v4539_v22 = vcombine.low %v259_v63, %v263_v3  ;;  %v81_v63 = vld [vmem:[%s8890_s0 + $0x1f8] sm:$0xff]  ;;  %v36_v3 = vld [vmem:[%s8890_s0 + $0x90] sm:$0xff] }
  0xf1   :  { %2564 = vmatmul.mubr.bf16.gmra.mrb[88].mxu0 %v4475_v55  ;;  %v4505_v55 = vcombine.low %v226_v38, %v230_v39  ;;  %v4538_v38 = vcombine.high %v258_v29, %v262_v30 }
  0xf2   :  { %2571 = vmatprep.mubr.bf16.mxu0 %v4484_v57  ;;  %v4514_v57 = vcombine.high %v234_v49, %v238_v50 }
  0xf3   :  { %2275 = vmatmul.mubr.bf16.gmra.mrb[88].mxu1 %v4473_v13 }
  0xf4   :  { %2282 = vmatprep.mubr.bf16.mxu1 %v4482_v15  ;;  %v254_v15 = vld [vmem:[%s8890_s0 + $0x760] sm:$0xff] }
  0xf9   :  { %2572 = vmatmul.mubr.bf16.gmra.mrb[92].mxu0 %v4483_v4  ;;  %v4513_v4 = vcombine.low %v234_v49, %v238_v50  ;;  %v32_v49 = vld [vmem:[%s8890_s0 + $0x70] sm:$0xff]  ;;  %v4537_v50 = vcombine.low %v258_v29, %v262_v30 }
  0xfa   :  { %2579 = vmatprep.mubr.bf16.mxu0 %v4492_v7  ;;  %v4531_v7 = vcombine.low %v251_v51, %v255_v53 }
  0xfb   :  { %2283 = vmatmul.mubr.bf16.gmra.mrb[92].mxu1 %v4481_v23 }
  0xfc   :  { %2290 = vmatprep.mubr.bf16.mxu1 %v4490_v25 }
 0x101   :  { %2580 = vmatmul.mubr.bf16.gmra.mrb[96].mxu0 %v4491_v14  ;;  %v250_v14 = vld [vmem:[%s8890_s0 + $0x740] sm:$0xff] }
 0x102   :  { %2587 = vmatprep.mubr.bf16.mxu0 %v4500_v17  ;;  %v267_v17 = vld [vmem:[%s8890_s0 + $0x7c8] sm:$0xff]  ;;  %v4530_v23 = vcombine.high %v250_v14, %v254_v15 }
 0x103   :  { %2291 = vmatmul.mubr.bf16.gmra.mrb[96].mxu1 %v4489_v33  ;;  %v4548_v25 = vcombine.high %v267_v17, %v271_v18  ;;  %v24_v33 = vld [vmem:[%s8890_s0 + $0x30] sm:$0xff] }
 0x104   :  { %2298 = vmatprep.mubr.bf16.mxu1 %v4498_v35  ;;  %v4302_v40 = vcombine.high %v20_v32, %v24_v33  ;;  %v4301_v53 = vcombine.low %v20_v32, %v24_v33  ;;  %v93_v32 = vld [vmem:[%s8890_s0 + $0x258] sm:$0xff] }
 0x105   :  { %v97_v33 = vld [vmem:[%s8890_s0 + $0x278] sm:$0xff] }
 0x109   :  { %2588 = vmatmul.mubr.bf16.gmra.mrb[100].mxu0 %v4499_v24 }
 0x10a   :  { %2595 = vmatprep.mubr.bf16.mxu0 %v4508_v27 }
 0x10b   :  { %2299 = vmatmul.mubr.bf16.gmra.mrb[100].mxu1 %v4497_v43 }
 0x10c   :  { %2306 = vmatprep.mubr.bf16.mxu1 %v4506_v45  ;;  %v270_v45 = vld [vmem:[%s8890_s0 + $0x7e0] sm:$0xff] }
 0x111   :  { %2596 = vmatmul.mubr.bf16.gmra.mrb[104].mxu0 %v4507_v34  ;;  %v4529_v34 = vcombine.low %v250_v14, %v254_v15 }
 0x112   :  { %2603 = vmatprep.mubr.bf16.mxu0 %v4516_v37  ;;  %v4547_v37 = vcombine.low %v267_v17, %v271_v18  ;;  %v85_v17 = vld [vmem:[%s8890_s0 + $0x218] sm:$0xff] }
 0x113   :  { %2307 = vmatmul.mubr.bf16.gmra.mrb[104].mxu1 %v4505_v55  ;;  %v89_v18 = vld [vmem:[%s8890_s0 + $0x238] sm:$0xff] }
 0x114   :  { %2314 = vmatprep.mubr.bf16.mxu1 %v4514_v57 }
 0x116   :  { %v6283_v5 = vpop.f32.mrb[0].mxu1 }
 0x117   :  { %8966 = vst [vmem:[#allocation2_spill] sm:$0xff] %v6283_v5  ;;  %v2102_v9 = vpop.f32.mrb[1].mxu1 }
 0x118   :  { %v6285_v12 = vpop.f32.mrb[2].mxu1 }
 0x119   :  { %2604 = vmatmul.mubr.bf16.gmra.mrb[108].mxu0 %v4515_v44  ;;  %8967 = vst [vmem:[#allocation3_spill] sm:$0xff] %v6285_v12  ;;  %v2105_v13 = vpop.f32.mrb[3].mxu1  ;;  %v266_v44 = vld [vmem:[%s8890_s0 + $0x7c0] sm:$0xff] }
 0x11a   :  { %2611 = vmatprep.mubr.bf16.mxu0 %v4524_v47  ;;  %v28_v47 = vld [vmem:[%s8890_s0 + $0x50] sm:$0xff]  ;;  %v4546_v55 = vcombine.high %v266_v44, %v270_v45 }
 0x11b   :  { %2315 = vmatmul.mubr.bf16.gmra.mrb[108].mxu1 %v4513_v4  ;;  %v4310_v57 = vcombine.high %v28_v47, %v32_v49  ;;  %v40_v4 = vld [vmem:[%s8890_s0 + $0xb0] sm:$0xff]  ;;  %v4309_v9 = vcombine.low %v28_v47, %v32_v49  ;;  %v101_v47 = vld [vmem:[%s8890_s0 + $0x298] sm:$0xff] }
 0x11c   :  { %2322 = vmatprep.mubr.bf16.mxu1 %v4522_v8  ;;  %v4318_v14 = vcombine.high %v36_v3, %v40_v4  ;;  %v105_v49 = vld [vmem:[%s8890_s0 + $0x2b8] sm:$0xff] }
 0x11e   :  { %v6299_v20 = vpop.f32.mrb[4].mxu1 }
 0x11f   :  { %8968 = vst [vmem:[#allocation4_spill] sm:$0xff] %v6299_v20  ;;  %v2110_v24 = vpop.f32.mrb[5].mxu1 }
 0x120   :  { %v6301_v27 = vpop.f32.mrb[6].mxu1  ;;  %v4317_v24 = vcombine.low %v36_v3, %v40_v4  ;;  %v109_v3 = vld [vmem:[%s8890_s0 + $0x2d8] sm:$0xff] }
 0x121   :  { %2612 = vmatmul.mubr.bf16.gmra.mrb[112].mxu0 %v4523_v56  ;;  %8969 = vst [vmem:[#allocation5_spill] sm:$0xff] %v6301_v27  ;;  %v2113_v28 = vpop.f32.mrb[7].mxu1  ;;  %v113_v4 = vld [vmem:[%s8890_s0 + $0x2f8] sm:$0xff] }
 0x122   :  { %2619 = vmatprep.mubr.bf16.mxu0 %v4532_v60 }
 0x123   :  { %2323 = vmatmul.mubr.bf16.gmra.mrb[112].mxu1 %v4521_v19  ;;  %v48_v19 = vld [vmem:[%s8890_s0 + $0xf0] sm:$0xff] }
 0x124   :  { %2330 = vmatprep.mubr.bf16.mxu1 %v4530_v23 }
 0x126   :  { %v6315_v35 = vpop.f32.mrb[8].mxu1 }
 0x127   :  { %8970 = vst [vmem:[#allocation6_spill] sm:$0xff] %v6315_v35  ;;  %v2118_v39 = vpop.f32.mrb[9].mxu1  ;;  %v240_v35 = vld [vmem:[%s8890_s0 + $0x6f0] sm:$0xff] }
 0x128   :  { %v6317_v42 = vpop.f32.mrb[10].mxu1 }
 0x129   :  { %2620 = vmatmul.mubr.bf16.gmra.mrb[116].mxu0 %v4531_v7  ;;  %8971 = vst [vmem:[#allocation7_spill] sm:$0xff] %v6317_v42  ;;  %v2121_v43 = vpop.f32.mrb[11].mxu1  ;;  %v4545_v7 = vcombine.low %v266_v44, %v270_v45  ;;  %v236_v42 = vld [vmem:[%s8890_s0 + $0x6d0] sm:$0xff] }
 0x12a   :  { %2627 = vmatprep.mubr.bf16.mxu0 %v4540_v10  ;;  %v4360_v10 = vcombine.high %v77_v62, %v81_v63 }
 0x12b   :  { %2331 = vmatmul.mubr.bf16.gmra.mrb[116].mxu1 %v4529_v34  ;;  %v56_v34 = vld [vmem:[%s8890_s0 + $0x130] sm:$0xff] }
 0x12c   :  { %2338 = vmatprep.mubr.bf16.mxu1 %v4538_v38 }
 0x12e   :  { %v6331_v51 = vpop.f32.mrb[12].mxu1 }
 0x12f   :  { %8972 = vst [vmem:[#allocation8_spill] sm:$0xff] %v6331_v51  ;;  %v2126_v56 = vpop.f32.mrb[13].mxu1  ;;  %v273_v51 = vld [vmem:[%s8890_s0 + $0x7f8] sm:$0xff] }
 0x130   :  { %v6333_v60 = vpop.f32.mrb[14].mxu1 }
 0x131   :  { %2628 = vmatmul.mubr.bf16.gmra.mrb[120].mxu0 %v4539_v22  ;;  %8973 = vst [vmem:[#allocation9_spill] sm:$0xff] %v6333_v60  ;;  %v2129_v61 = vpop.f32.mrb[15].mxu1  ;;  %v4359_v22 = vcombine.low %v77_v62, %v81_v63  ;;  %v269_v60 = vld [vmem:[%s8890_s0 + $0x7d8] sm:$0xff] }
 0x132   :  { %2635 = vmatprep.mubr.bf16.mxu0 %v4548_v25  ;;  %v4368_v25 = vcombine.high %v85_v17, %v89_v18 }
 0x133   :  { %2339 = vmatmul.mubr.bf16.gmra.mrb[120].mxu1 %v4537_v50  ;;  %v64_v50 = vld [vmem:[%s8890_s0 + $0x170] sm:$0xff] }
 0x134   :  { %2346 = vmatprep.mubr.bf16.mxu1 %v4546_v55 }
 0x136   :  { %v6349_v8 = vpop.f32.mrb[16].mxu1 }
 0x137   :  { %8974 = vst [vmem:[#allocation10_spill] sm:$0xff] %v6349_v8  ;;  %v2134_v13 = vpop.f32.mrb[17].mxu1  ;;  %v265_v8 = vld [vmem:[%s8890_s0 + $0x7b8] sm:$0xff] }
 0x138   :  { %v6351_v15 = vpop.f32.mrb[18].mxu1 }
 0x139   :  { %2636 = vmatmul.mubr.bf16.gmra.mrb[124].mxu0 %v4547_v37  ;;  %8975 = vst [vmem:[#allocation11_spill] sm:$0xff] %v6351_v15  ;;  %v4367_v37 = vcombine.low %v85_v17, %v89_v18  ;;  %v261_v15 = vld [vmem:[%s8890_s0 + $0x798] sm:$0xff] }
 0x13a   :  { %2676 = vmatprep.mubr.bf16.mxu0 %v4302_v40  ;;  %v4376_v40 = vcombine.high %v93_v32, %v97_v33 }
 0x13b   :  { %2347 = vmatmul.mubr.bf16.gmra.mrb[124].mxu1 %v4545_v7  ;;  %v72_v7 = vld [vmem:[%s8890_s0 + $0x1b0] sm:$0xff] }
 0x13c   :  { %3021 = vmatprep.mubr.bf16.mxu1 %v4360_v10 }
 0x141   :  { %2677 = vmatmul.mubr.bf16.vlgmr.msra.gmra.mrb[0].mxu0 %v4301_v53  ;;  %v4375_v53 = vcombine.low %v93_v32, %v97_v33 }
 0x142   :  { %2684 = vmatprep.mubr.bf16.mxu0 %v4310_v57  ;;  %2934 = vmatpush1.bf16.msra.mxu0 %v6002_v48  ;;  %v2137_v48 = vpop.f32.mrb[19].mxu1  ;;  %v4384_v57 = vcombine.high %v101_v47, %v105_v49 }
 0x143   :  { %2935 = vmatprep.subr.bf16.mxu0 %v5575_v0  ;;  %v6369_v23 = vpop.f32.mrb[20].mxu1  ;;  %3022 = vmatmul.mubr.bf16.vlgmr.msra.gmra.mrb[128].mxu1 %v4359_v22  ;;  %v80_v22 = vld [vmem:[%s8890_s0 + $0x1f0] sm:$0xff] }
 0x144   :  { %8976 = vst [vmem:[#allocation12_spill] sm:$0xff] %v6369_v23  ;;  %v2142_v28 = vpop.f32.mrb[21].mxu1  ;;  %3029 = vmatprep.mubr.bf16.mxu1 %v4368_v25  ;;  %v257_v23 = vld [vmem:[%s8890_s0 + $0x778] sm:$0xff] }
 0x145   :  { %v6371_v30 = vpop.f32.mrb[22].mxu1 }
 0x146   :  { %2936 = vmatpush1.bf16.msra.mxu0 %v6024_v54  ;;  %v44_v54 = vld [vmem:[%s8890_s0 + $0xd0] sm:$0xff]  ;;  %8977 = vst [vmem:[#allocation13_spill] sm:$0xff] %v6371_v30  ;;  %v253_v30 = vld [vmem:[%s8890_s0 + $0x758] sm:$0xff] }
 0x147   :  { %2937 = vmatprep.subr.bf16.mxu0 %v5575_v0  ;;  %v4326_v29 = vcombine.high %v44_v54, %v48_v19  ;;  %v4325_v39 = vcombine.low %v44_v54, %v48_v19  ;;  %v117_v54 = vld [vmem:[%s8890_s0 + $0x318] sm:$0xff] }
 0x148   :  { %v121_v19 = vld [vmem:[%s8890_s0 + $0x338] sm:$0xff] }
 0x149   :  { %2685 = vmatmul.mubr.bf16.gmra.mrb[4].mxu0 %v4309_v9  ;;  %v4383_v9 = vcombine.low %v101_v47, %v105_v49 }
 0x14a   :  { %2692 = vmatprep.mubr.bf16.mxu0 %v4318_v14  ;;  %2938 = vmatpush1.bf16.msra.mxu0 %v6033_v59  ;;  %v2145_v59 = vpop.f32.mrb[23].mxu1  ;;  %v4392_v14 = vcombine.high %v109_v3, %v113_v4 }
 0x14b   :  { %2939 = vmatprep.subr.bf16.mxu0 %v5575_v0  ;;  %v6389_v38 = vpop.f32.mrb[24].mxu1  ;;  %3030 = vmatmul.mubr.bf16.gmra.mrb[132].mxu1 %v4367_v37  ;;  %v88_v37 = vld [vmem:[%s8890_s0 + $0x230] sm:$0xff] }
 0x14c   :  { %8978 = vst [vmem:[#allocation14_spill] sm:$0xff] %v6389_v38  ;;  %v2150_v43 = vpop.f32.mrb[25].mxu1  ;;  %3037 = vmatprep.mubr.bf16.mxu1 %v4376_v40  ;;  %v4399_v40 = vcombine.low %v117_v54, %v121_v19  ;;  %v249_v38 = vld [vmem:[%s8890_s0 + $0x738] sm:$0xff] }
 0x14d   :  { %v6391_v45 = vpop.f32.mrb[26].mxu1 }
 0x14e   :  { %2940 = vmatpush1.bf16.msra.mxu0 %v6051_v1  ;;  %v52_v1 = vld [vmem:[%s8890_s0 + $0x110] sm:$0xff]  ;;  %8979 = vst [vmem:[#allocation15_spill] sm:$0xff] %v6391_v45  ;;  %v245_v45 = vld [vmem:[%s8890_s0 + $0x718] sm:$0xff] }
 0x14f   :  { %2941 = vmatprep.subr.bf16.mxu0 %v5575_v0  ;;  %v4334_v44 = vcombine.high %v52_v1, %v56_v34  ;;  %v4333_v56 = vcombine.low %v52_v1, %v56_v34  ;;  %v125_v1 = vld [vmem:[%s8890_s0 + $0x358] sm:$0xff] }
 0x150   :  { %v129_v34 = vld [vmem:[%s8890_s0 + $0x378] sm:$0xff] }
 0x151   :  { %2693 = vmatmul.mubr.bf16.gmra.mrb[8].mxu0 %v4317_v24  ;;  %v4391_v24 = vcombine.low %v109_v3, %v113_v4 }
 0x152   :  { %2700 = vmatprep.mubr.bf16.mxu0 %v4326_v29  ;;  %2942 = vmatpush1.bf16.msra.mxu0 %v6059_v6  ;;  %v2153_v6 = vpop.f32.mrb[27].mxu1  ;;  %v4400_v29 = vcombine.high %v117_v54, %v121_v19 }
 0x153   :  { %2943 = vmatprep.subr.bf16.mxu0 %v5575_v0  ;;  %v6409_v55 = vpop.f32.mrb[28].mxu1  ;;  %3038 = vmatmul.mubr.bf16.gmra.mrb[136].mxu1 %v4375_v53  ;;  %v4408_v6 = vcombine.high %v125_v1, %v129_v34  ;;  %v96_v53 = vld [vmem:[%s8890_s0 + $0x270] sm:$0xff] }
 0x154   :  { %v2158_v61 = vpop.f32.mrb[29].mxu1  ;;  %3045 = vmatprep.mubr.bf16.mxu1 %v4384_v57  ;;  %v4407_v57 = vcombine.low %v125_v1, %v129_v34 }
 0x155   :  { %v6411_v63 = vpop.f32.mrb[30].mxu1 }
 0x156   :  { %2944 = vmatpush1.bf16.msra.mxu0 %v6077_v11  ;;  %v60_v11 = vld [vmem:[%s8890_s0 + $0x150] sm:$0xff] }
 0x157   :  { %2945 = vmatprep.subr.bf16.mxu0 %v5575_v0  ;;  %v4342_v62 = vcombine.high %v60_v11, %v64_v50  ;;  %v4341_v13 = vcombine.low %v60_v11, %v64_v50  ;;  %v133_v11 = vld [vmem:[%s8890_s0 + $0x398] sm:$0xff] }
 0x158   :  { %v137_v50 = vld [vmem:[%s8890_s0 + $0x3b8] sm:$0xff] }
 0x159   :  { %2701 = vmatmul.mubr.bf16.gmra.mrb[12].mxu0 %v4325_v39 }
 0x15a   :  { %2708 = vmatprep.mubr.bf16.mxu0 %v4334_v44  ;;  %2946 = vmatpush1.bf16.msra.mxu0 %v6085_v16  ;;  %v2161_v16 = vpop.f32.mrb[31].mxu1 }
 0x15b   :  { %2947 = vmatprep.subr.bf16.mxu0 %v5575_v0  ;;  %v6429_v10 = vpop.f32.mrb[32].mxu1  ;;  %3046 = vmatmul.mubr.bf16.gmra.mrb[140].mxu1 %v4383_v9  ;;  %v4416_v16 = vcombine.high %v133_v11, %v137_v50 }
 0x15c   :  { %v2166_v48 = vpop.f32.mrb[33].mxu1  ;;  %3053 = vmatprep.mubr.bf16.mxu1 %v4392_v14 }
 0x15d   :  { %v6431_v18 = vpop.f32.mrb[34].mxu1 }
 0x15e   :  { %2948 = vmatpush1.bf16.msra.mxu0 %v6103_v21  ;;  %v68_v21 = vld [vmem:[%s8890_s0 + $0x190] sm:$0xff] }
 0x15f   :  { %2949 = vmatprep.subr.bf16.mxu0 %v5575_v0  ;;  %v4350_v17 = vcombine.high %v68_v21, %v72_v7  ;;  %v4349_v28 = vcombine.low %v68_v21, %v72_v7  ;;  %v141_v21 = vld [vmem:[%s8890_s0 + $0x3d8] sm:$0xff]  ;;  %v100_v7 = vld [vmem:[%s8890_s0 + $0x290] sm:$0xff] }
 0x161   :  { %2709 = vmatmul.mubr.bf16.gmra.mrb[16].mxu0 %v4333_v56 }
 0x162   :  { %2716 = vmatprep.mubr.bf16.mxu0 %v4342_v62  ;;  %2950 = vmatpush1.bf16.msra.mxu0 %v6111_v26  ;;  %v2169_v26 = vpop.f32.mrb[35].mxu1 }
 0x163   :  { %2951 = vmatprep.subr.bf16.mxu0 %v5575_v0  ;;  %v6449_v25 = vpop.f32.mrb[36].mxu1  ;;  %3054 = vmatmul.mubr.bf16.gmra.mrb[144].mxu1 %v4391_v24  ;;  %v108_v24 = vld [vmem:[%s8890_s0 + $0x2d0] sm:$0xff] }
 0x164   :  { %v2174_v59 = vpop.f32.mrb[37].mxu1  ;;  %3061 = vmatprep.mubr.bf16.mxu1 %v4400_v29 }
 0x165   :  { %v6451_v33 = vpop.f32.mrb[38].mxu1 }
 0x166   :  { %2952 = vmatpush1.bf16.msra.mxu0 %v6129_v31  ;;  %v76_v31 = vld [vmem:[%s8890_s0 + $0x1d0] sm:$0xff] }
 0x167   :  { %2953 = vmatprep.subr.bf16.mxu0 %v5575_v0  ;;  %v4358_v32 = vcombine.high %v76_v31, %v80_v22  ;;  %v4357_v44 = vcombine.low %v76_v31, %v80_v22  ;;  %v149_v31 = vld [vmem:[%s8890_s0 + $0x418] sm:$0xff] }
 0x168   :  { %v153_v22 = vld [vmem:[%s8890_s0 + $0x438] sm:$0xff] }
 0x169   :  { %2717 = vmatmul.mubr.bf16.gmra.mrb[20].mxu0 %v4341_v13  ;;  %v4415_v13 = vcombine.low %v133_v11, %v137_v50  ;;  %v4432_v1 = vcombine.high %v149_v31, %v153_v22 }
 0x16a   :  { %2724 = vmatprep.mubr.bf16.mxu0 %v4350_v17  ;;  %2954 = vmatpush1.bf16.msra.mxu0 %v6137_v36  ;;  %v2177_v36 = vpop.f32.mrb[39].mxu1 }
 0x16b   :  { %2955 = vmatprep.subr.bf16.mxu0 %v5575_v0  ;;  %v6468_v39 = vpop.f32.mrb[40].mxu1  ;;  %3062 = vmatmul.mubr.bf16.gmra.mrb[148].mxu1 %v4399_v40  ;;  %v157_v40 = vld [vmem:[%s8890_s0 + $0x458] sm:$0xff] }
 0x16c   :  { %v2182_v43 = vpop.f32.mrb[41].mxu1  ;;  %3069 = vmatprep.mubr.bf16.mxu1 %v4408_v6  ;;  %v120_v6 = vld [vmem:[%s8890_s0 + $0x330] sm:$0xff] }
 0x16d   :  { %v6471_v47 = vpop.f32.mrb[42].mxu1  ;;  %v161_v43 = vld [vmem:[%s8890_s0 + $0x478] sm:$0xff] }
 0x16e   :  { %2956 = vmatpush1.bf16.msra.mxu0 %v6155_v41  ;;  %v84_v41 = vld [vmem:[%s8890_s0 + $0x210] sm:$0xff] }
 0x16f   :  { %2957 = vmatprep.subr.bf16.mxu0 %v5575_v0  ;;  %v4366_v49 = vcombine.high %v84_v41, %v88_v37  ;;  %v4365_v62 = vcombine.low %v84_v41, %v88_v37 }
 0x171   :  { %2725 = vmatmul.mubr.bf16.gmra.mrb[24].mxu0 %v4349_v28  ;;  %v112_v28 = vld [vmem:[%s8890_s0 + $0x2f0] sm:$0xff] }
 0x172   :  { %2732 = vmatprep.mubr.bf16.mxu0 %v4358_v32  ;;  %2958 = vmatpush1.bf16.msra.mxu0 %v6163_v46  ;;  %v2185_v46 = vpop.f32.mrb[43].mxu1  ;;  %v4390_v41 = vcombine.high %v108_v24, %v112_v28  ;;  %v4389_v50 = vcombine.low %v108_v24, %v112_v28 }
 0x173   :  { %2959 = vmatprep.subr.bf16.mxu0 %v5575_v0  ;;  %v6488_v56 = vpop.f32.mrb[44].mxu1  ;;  %3070 = vmatmul.mubr.bf16.gmra.mrb[152].mxu1 %v4407_v57  ;;  %v4431_v46 = vcombine.low %v149_v31, %v153_v22  ;;  %v132_v31 = vld [vmem:[%s8890_s0 + $0x390] sm:$0xff] }
 0x174   :  { %v2190_v61 = vpop.f32.mrb[45].mxu1  ;;  %3077 = vmatprep.mubr.bf16.mxu1 %v4416_v16  ;;  %v169_v16 = vld [vmem:[%s8890_s0 + $0x4b8] sm:$0xff]  ;;  %v136_v22 = vld [vmem:[%s8890_s0 + $0x3b0] sm:$0xff] }
 0x175   :  { %v6491_v3 = vpop.f32.mrb[46].mxu1 }
 0x176   :  { %2960 = vmatpush1.bf16.msra.mxu0 %v6181_v52  ;;  %v92_v52 = vld [vmem:[%s8890_s0 + $0x250] sm:$0xff] }
 0x177   :  { %2961 = vmatprep.subr.bf16.mxu0 %v5575_v0  ;;  %v4374_v4 = vcombine.high %v92_v52, %v96_v53  ;;  %v4373_v48 = vcombine.low %v92_v52, %v96_v53  ;;  %v4440_v52 = vcombine.high %v157_v40, %v161_v43 }
 0x179   :  { %2733 = vmatmul.mubr.bf16.gmra.mrb[28].mxu0 %v4357_v44  ;;  %v116_v44 = vld [vmem:[%s8890_s0 + $0x310] sm:$0xff] }
 0x17a   :  { %2740 = vmatprep.mubr.bf16.mxu0 %v4366_v49  ;;  %2962 = vmatpush1.bf16.msra.mxu0 %v6189_v58  ;;  %v2193_v58 = vpop.f32.mrb[47].mxu1  ;;  %v4398_v57 = vcombine.high %v116_v44, %v120_v6 }
 0x17b   :  { %2963 = vmatprep.subr.bf16.mxu0 %v5575_v0  ;;  %v145_v0 = vld [vmem:[%s8890_s0 + $0x3f8] sm:$0xff]  ;;  %v6506_v9 = vpop.f32.mrb[48].mxu1  ;;  %3078 = vmatmul.mubr.bf16.gmra.mrb[156].mxu1 %v4415_v13  ;;  %v128_v58 = vld [vmem:[%s8890_s0 + $0x370] sm:$0xff] }
 0x17c   :  { %v2198_v14 = vpop.f32.mrb[49].mxu1  ;;  %v4424_v17 = vcombine.high %v141_v21, %v145_v0  ;;  %v4423_v59 = vcombine.low %v141_v21, %v145_v0  ;;  %v4439_v0 = vcombine.low %v157_v40, %v161_v43  ;;  %v181_v40 = vld [vmem:[%s8890_s0 + $0x518] sm:$0xff] }
 0x17d   :  { %v6508_v26 = vpop.f32.mrb[50].mxu1  ;;  %v185_v43 = vld [vmem:[%s8890_s0 + $0x538] sm:$0xff] }
 0x17e   :  { %2964 = vmatpush1.bf16.msra.mxu0 %v6207_v2  ;;  %v104_v2 = vld [vmem:[%s8890_s0 + $0x2b0] sm:$0xff]  ;;  %v2201_v19 = vpop.f32.mrb[51].mxu1  ;;  %3085 = vmatprep.mubr.bf16.mxu1 %v4424_v17 }
 0x17f   :  { %v4382_v54 = vcombine.high %v100_v7, %v104_v2  ;;  %v6522_v29 = vpop.f32.mrb[52].mxu1  ;;  %v4381_v36 = vcombine.low %v100_v7, %v104_v2  ;;  %v4397_v2 = vcombine.low %v116_v44, %v120_v6  ;;  %v177_v19 = vld [vmem:[%s8890_s0 + $0x4f8] sm:$0xff]  ;;  %v140_v44 = vld [vmem:[%s8890_s0 + $0x3d0] sm:$0xff] }
 0x180   :  { %v2206_v32 = vpop.f32.mrb[53].mxu1  ;;  %v144_v6 = vld [vmem:[%s8890_s0 + $0x3f0] sm:$0xff] }
 0x181   :  { %2741 = vmatmul.mubr.bf16.gmra.mrb[32].mxu0 %v4365_v62  ;;  %v6524_v34 = vpop.f32.mrb[54].mxu1  ;;  %v165_v62 = vld [vmem:[%s8890_s0 + $0x498] sm:$0xff] }
 0x182   :  { %2748 = vmatprep.mubr.bf16.mxu0 %v4374_v4  ;;  %v2209_v37 = vpop.f32.mrb[55].mxu1  ;;  %v124_v4 = vld [vmem:[%s8890_s0 + $0x350] sm:$0xff]  ;;  %v4448_v13 = vcombine.high %v165_v62, %v169_v16  ;;  %v4447_v28 = vcombine.low %v165_v62, %v169_v16  ;;  %v4422_v62 = vcombine.high %v140_v44, %v144_v6 }
 0x183   :  { %3086 = vmatmul.mubr.bf16.gmra.mrb[160].mxu1 %v4423_v59  ;;  %v4405_v32 = vcombine.low %v124_v4, %v128_v58 }
 0x184   :  { %3093 = vmatprep.mubr.bf16.mxu1 %v4432_v1 }
 0x186   :  { %v6538_v49 = vpop.f32.mrb[56].mxu1 }
 0x187   :  { %v2214_v11 = vpop.f32.mrb[57].mxu1 }
 0x188   :  { %v6540_v53 = vpop.f32.mrb[58].mxu1 }
 0x189   :  { %2749 = vmatmul.mubr.bf16.gmra.mrb[36].mxu0 %v4373_v48  ;;  %v2217_v61 = vpop.f32.mrb[59].mxu1  ;;  %v4406_v48 = vcombine.high %v124_v4, %v128_v58  ;;  %v189_v4 = vld [vmem:[%s8890_s0 + $0x558] sm:$0xff] }
 0x18a   :  { %2756 = vmatprep.mubr.bf16.mxu0 %v4382_v54  ;;  %v173_v54 = vld [vmem:[%s8890_s0 + $0x4d8] sm:$0xff] }
 0x18b   :  { %3094 = vmatmul.mubr.bf16.gmra.mrb[164].mxu1 %v4431_v46  ;;  %v4455_v11 = vcombine.low %v173_v54, %v177_v19  ;;  %v193_v58 = vld [vmem:[%s8890_s0 + $0x578] sm:$0xff] }
 0x18c   :  { %3101 = vmatprep.mubr.bf16.mxu1 %v4440_v52  ;;  %v4413_v52 = vcombine.low %v132_v31, %v136_v22 }
 0x18e   :  { %v6554_v21 = vpop.f32.mrb[60].mxu1 }
 0x18f   :  { %v2222_v7 = vpop.f32.mrb[61].mxu1 }
 0x190   :  { %v6556_v14 = vpop.f32.mrb[62].mxu1  ;;  %v152_v7 = vld [vmem:[%s8890_s0 + $0x430] sm:$0xff] }
 0x191   :  { %2757 = vmatmul.mubr.bf16.gmra.mrb[40].mxu0 %v4381_v36  ;;  %v2225_v17 = vpop.f32.mrb[63].mxu1  ;;  %v4456_v36 = vcombine.high %v173_v54, %v177_v19  ;;  %v4472_v54 = vcombine.high %v189_v4, %v193_v58 }
 0x192   :  { %2764 = vmatprep.mubr.bf16.mxu0 %v4390_v41  ;;  %v4414_v41 = vcombine.high %v132_v31, %v136_v22  ;;  %v4421_v17 = vcombine.low %v140_v44, %v144_v6 }
 0x193   :  { %3102 = vmatmul.mubr.bf16.gmra.mrb[168].mxu1 %v4439_v0  ;;  %v148_v0 = vld [vmem:[%s8890_s0 + $0x410] sm:$0xff] }
 0x194   :  { %3109 = vmatprep.mubr.bf16.mxu1 %v4448_v13  ;;  %v4463_v13 = vcombine.low %v181_v40, %v185_v43  ;;  %v4430_v31 = vcombine.high %v148_v0, %v152_v7 }
 0x196   :  { %v6570_v24 = vpop.f32.mrb[64].mxu1 }
 0x197   :  { %v2230_v59 = vpop.f32.mrb[65].mxu1 }
 0x198   :  { %v6572_v1 = vpop.f32.mrb[66].mxu1  ;;  %v201_v59 = vld [vmem:[%s8890_s0 + $0x5b8] sm:$0xff] }
 0x199   :  { %2765 = vmatmul.mubr.bf16.gmra.mrb[44].mxu0 %v4389_v50  ;;  %v2233_v37 = vpop.f32.mrb[67].mxu1 }
 0x19a   :  { %2772 = vmatprep.mubr.bf16.mxu0 %v4398_v57  ;;  %v4464_v57 = vcombine.high %v181_v40, %v185_v43  ;;  %v4471_v37 = vcombine.low %v189_v4, %v193_v58  ;;  %v4429_v43 = vcombine.low %v148_v0, %v152_v7 }
 0x19b   :  { %3110 = vmatmul.mubr.bf16.gmra.mrb[172].mxu1 %v4447_v28  ;;  %v197_v28 = vld [vmem:[%s8890_s0 + $0x598] sm:$0xff] }
 0x19c   :  { %3117 = vmatprep.mubr.bf16.mxu1 %v4456_v36  ;;  %v160_v36 = vld [vmem:[%s8890_s0 + $0x470] sm:$0xff]  ;;  %v4480_v44 = vcombine.high %v197_v28, %v201_v59  ;;  %v4479_v58 = vcombine.low %v197_v28, %v201_v59 }
 0x19d   :  { %v172_v28 = vld [vmem:[%s8890_s0 + $0x4d0] sm:$0xff] }
 0x19e   :  { %v6586_v46 = vpop.f32.mrb[68].mxu1  ;;  %v176_v59 = vld [vmem:[%s8890_s0 + $0x4f0] sm:$0xff] }
 0x19f   :  { %v2238_v50 = vpop.f32.mrb[69].mxu1 }
 0x1a0   :  { %v6588_v61 = vpop.f32.mrb[70].mxu1 }
 0x1a1   :  { %2773 = vmatmul.mubr.bf16.gmra.mrb[48].mxu0 %v4397_v2  ;;  %v2241_v16 = vpop.f32.mrb[71].mxu1 }
 0x1a2   :  { %2780 = vmatprep.mubr.bf16.mxu0 %v4406_v48  ;;  %v168_v16 = vld [vmem:[%s8890_s0 + $0x4b0] sm:$0xff] }
 0x1a3   :  { %3118 = vmatmul.mubr.bf16.gmra.mrb[176].mxu1 %v4455_v11 }
 0x1a4   :  { %3125 = vmatprep.mubr.bf16.mxu1 %v4464_v57  ;;  %v209_v57 = vld [vmem:[%s8890_s0 + $0x5f8] sm:$0xff] }
 0x1a6   :  { %v6602_v2 = vpop.f32.mrb[72].mxu1 }
 0x1a7   :  { %v2246_v48 = vpop.f32.mrb[73].mxu1 }
 0x1a8   :  { %v6604_v19 = vpop.f32.mrb[74].mxu1 }
 0x1a9   :  { %2781 = vmatmul.mubr.bf16.gmra.mrb[52].mxu0 %v4405_v32  ;;  %v2249_v22 = vpop.f32.mrb[75].mxu1  ;;  %v156_v32 = vld [vmem:[%s8890_s0 + $0x450] sm:$0xff] }
 0x1aa   :  { %2788 = vmatprep.mubr.bf16.mxu0 %v4414_v41  ;;  %v4438_v11 = vcombine.high %v156_v32, %v160_v36  ;;  %v4437_v7 = vcombine.low %v156_v32, %v160_v36  ;;  %v217_v22 = vld [vmem:[%s8890_s0 + $0x638] sm:$0xff] }
 0x1ab   :  { %3126 = vmatmul.mubr.bf16.gmra.mrb[180].mxu1 %v4463_v13 }
 0x1ac   :  { %3133 = vmatprep.mubr.bf16.mxu1 %v4472_v54 }
 0x1ae   :  { %v6618_v41 = vpop.f32.mrb[76].mxu1 }
 0x1af   :  { %v2254_v40 = vpop.f32.mrb[77].mxu1 }
 0x1b0   :  { %v6620_v6 = vpop.f32.mrb[78].mxu1 }
 0x1b1   :  { %2789 = vmatmul.mubr.bf16.gmra.mrb[56].mxu0 %v4413_v52  ;;  %v2257_v50 = vpop.f32.mrb[79].mxu1  ;;  %v205_v52 = vld [vmem:[%s8890_s0 + $0x5d8] sm:$0xff] }
 0x1b2   :  { %2796 = vmatprep.mubr.bf16.mxu0 %v4422_v62  ;;  %v164_v62 = vld [vmem:[%s8890_s0 + $0x490] sm:$0xff]  ;;  %v4488_v13 = vcombine.high %v205_v52, %v209_v57  ;;  %v4487_v36 = vcombine.low %v205_v52, %v209_v57 }
 0x1b3   :  { %3134 = vmatmul.mubr.bf16.gmra.mrb[184].mxu1 %v4471_v37  ;;  %v4445_v40 = vcombine.low %v164_v62, %v168_v16  ;;  %v180_v52 = vld [vmem:[%s8890_s0 + $0x510] sm:$0xff] }
 0x1b4   :  { %3141 = vmatprep.mubr.bf16.mxu1 %v4480_v44  ;;  %v184_v57 = vld [vmem:[%s8890_s0 + $0x530] sm:$0xff] }
 0x1b6   :  { %v6634_v4 = vpop.f32.mrb[80].mxu1 }
 0x1b7   :  { %v2262_v0 = vpop.f32.mrb[81].mxu1 }
 0x1b8   :  { %v6636_v48 = vpop.f32.mrb[82].mxu1  ;;  %v225_v0 = vld [vmem:[%s8890_s0 + $0x678] sm:$0xff] }
 0x1b9   :  { %2797 = vmatmul.mubr.bf16.gmra.mrb[60].mxu0 %v4421_v17  ;;  %v4446_v17 = vcombine.high %v164_v62, %v168_v16  ;;  %v2265_v54 = vpop.f32.mrb[83].mxu1 }
 0x1ba   :  { %2804 = vmatprep.mubr.bf16.mxu0 %v4430_v31  ;;  %v213_v31 = vld [vmem:[%s8890_s0 + $0x618] sm:$0xff] }
 0x1bb   :  { %3142 = vmatmul.mubr.bf16.gmra.mrb[188].mxu1 %v4479_v58  ;;  %v221_v58 = vld [vmem:[%s8890_s0 + $0x658] sm:$0xff]  ;;  %v4495_v16 = vcombine.low %v213_v31, %v217_v22 }
 0x1bc   :  { %3149 = vmatprep.mubr.bf16.mxu1 %v4488_v13  ;;  %v4453_v13 = vcombine.low %v172_v28, %v176_v59 }
 0x1be   :  { %v6650_v32 = vpop.f32.mrb[84].mxu1 }
 0x1bf   :  { %v2270_v37 = vpop.f32.mrb[85].mxu1 }
 0x1c0   :  { %v6652_v44 = vpop.f32.mrb[86].mxu1 }
 0x1c1   :  { %2805 = vmatmul.mubr.bf16.gmra.mrb[64].mxu0 %v4429_v43  ;;  %v4496_v43 = vcombine.high %v213_v31, %v217_v22  ;;  %v2273_v50 = vpop.f32.mrb[87].mxu1  ;;  %v188_v31 = vld [vmem:[%s8890_s0 + $0x550] sm:$0xff] }
 0x1c2   :  { %2812 = vmatprep.mubr.bf16.mxu0 %v4438_v11  ;;  %v4454_v11 = vcombine.high %v172_v28, %v176_v59  ;;  %v192_v22 = vld [vmem:[%s8890_s0 + $0x570] sm:$0xff]  ;;  %v4503_v59 = vcombine.low %v221_v58, %v225_v0  ;;  %v4461_v50 = vcombine.low %v180_v52, %v184_v57 }
 0x1c3   :  { %3150 = vmatmul.mubr.bf16.gmra.mrb[192].mxu1 %v4487_v36  ;;  %v4462_v36 = vcombine.high %v180_v52, %v184_v57 }
 0x1c4   :  { %3157 = vmatprep.mubr.bf16.mxu1 %v4496_v43  ;;  %v233_v43 = vld [vmem:[%s8890_s0 + $0x6b8] sm:$0xff] }
 0x1c6   :  { %v6666_v62 = vpop.f32.mrb[88].mxu1 }
 0x1c9   :  { %2813 = vmatmul.mubr.bf16.gmra.mrb[68].mxu0 %v4437_v7  ;;  %v2278_v7 = vpop.f32.mrb[89].mxu1 }
 0x1ca   :  { %2820 = vmatprep.mubr.bf16.mxu0 %v4446_v17  ;;  %v4504_v17 = vcombine.high %v221_v58, %v225_v0  ;;  %v6668_v54 = vpop.f32.mrb[90].mxu1  ;;  %v196_v58 = vld [vmem:[%s8890_s0 + $0x590] sm:$0xff] }
 0x1cb   :  { %v2281_v37 = vpop.f32.mrb[91].mxu1  ;;  %3158 = vmatmul.mubr.bf16.gmra.mrb[196].mxu1 %v4495_v16  ;;  %v200_v0 = vld [vmem:[%s8890_s0 + $0x5b0] sm:$0xff] }
 0x1cc   :  { %3165 = vmatprep.mubr.bf16.mxu1 %v4504_v17  ;;  %v241_v37 = vld [vmem:[%s8890_s0 + $0x6f8] sm:$0xff] }
 0x1ce   :  { %v6682_v28 = vpop.f32.mrb[92].mxu1 }
 0x1d1   :  { %2821 = vmatmul.mubr.bf16.gmra.mrb[72].mxu0 %v4445_v40  ;;  %v229_v40 = vld [vmem:[%s8890_s0 + $0x698] sm:$0xff] }
 0x1d2   :  { %2828 = vmatprep.mubr.bf16.mxu0 %v4454_v11  ;;  %v2286_v11 = vpop.f32.mrb[93].mxu1  ;;  %v4512_v16 = vcombine.high %v229_v40, %v233_v43  ;;  %v4511_v57 = vcombine.low %v229_v40, %v233_v43  ;;  %v204_v40 = vld [vmem:[%s8890_s0 + $0x5d0] sm:$0xff] }
 0x1d3   :  { %v6684_v7 = vpop.f32.mrb[94].mxu1  ;;  %3166 = vmatmul.mubr.bf16.gmra.mrb[200].mxu1 %v4503_v59  ;;  %v4469_v11 = vcombine.low %v188_v31, %v192_v22  ;;  %v208_v43 = vld [vmem:[%s8890_s0 + $0x5f0] sm:$0xff] }
 0x1d4   :  { %v2289_v17 = vpop.f32.mrb[95].mxu1  ;;  %3173 = vmatprep.mubr.bf16.mxu1 %v4512_v16 }
 0x1d6   :  { %v6698_v52 = vpop.f32.mrb[96].mxu1 }
 0x1d7   :  { %v2294_v59 = vpop.f32.mrb[97].mxu1 }
 0x1d8   :  { %v6700_v16 = vpop.f32.mrb[98].mxu1  ;;  %v4477_v59 = vcombine.low %v196_v58, %v200_v0 }
 0x1d9   :  { %2829 = vmatmul.mubr.bf16.gmra.mrb[76].mxu0 %v4453_v13  ;;  %v4470_v13 = vcombine.high %v188_v31, %v192_v22  ;;  %v2297_v17 = vpop.f32.mrb[99].mxu1 }
 0x1da   :  { %2836 = vmatprep.mubr.bf16.mxu0 %v4462_v36  ;;  %v237_v36 = vld [vmem:[%s8890_s0 + $0x6d8] sm:$0xff] }
 0x1db   :  { %3174 = vmatmul.mubr.bf16.gmra.mrb[204].mxu1 %v4511_v57  ;;  %v4519_v22 = vcombine.low %v237_v36, %v241_v37 }
 0x1de   :  { %v6714_v31 = vpop.f32.mrb[100].mxu1 }
 0x1df   :  { %8980 = vst [vmem:[#allocation16_spill] sm:$0xff] %v6714_v31  ;;  %v2302_v57 = vpop.f32.mrb[101].mxu1 }
 0x1e0   :  { %v4485_v57 = vcombine.low %v204_v40, %v208_v43 }
 0x1e1   :  { %2837 = vmatmul.mubr.bf16.gmra.mrb[80].mxu0 %v4461_v50  ;;  %v4520_v50 = vcombine.high %v237_v36, %v241_v37  ;;  %v212_v36 = vld [vmem:[%s8890_s0 + $0x610] sm:$0xff] }
 0x1e2   :  { %2844 = vmatprep.mubr.bf16.mxu0 %v4470_v13  ;;  %v4478_v13 = vcombine.high %v196_v58, %v200_v0  ;;  %v216_v37 = vld [vmem:[%s8890_s0 + $0x630] sm:$0xff]  ;;  %v4527_v0 = vcombine.low %v245_v45, %v249_v38 }
 0x1e3   :  { %3181 = vmatprep.mubr.bf16.mxu1 %v4520_v50  ;;  %v6716_v50 = vpop.f32.mrb[102].mxu1 }
 0x1e4   :  { %8981 = vst [vmem:[#allocation17_spill] sm:$0xff] %v6716_v50  ;;  %v2305_v17 = vpop.f32.mrb[103].mxu1  ;;  %3182 = vmatmul.mubr.bf16.gmra.mrb[208].mxu1 %v4519_v22 }
 0x1e6   :  { %v6730_v58 = vpop.f32.mrb[104].mxu1 }
 0x1e7   :  { %8982 = vst [vmem:[#allocation18_spill] sm:$0xff] %v6730_v58  ;;  %v2310_v22 = vpop.f32.mrb[105].mxu1 }
 0x1e8   :  { %v4493_v22 = vcombine.low %v212_v36, %v216_v37 }
 0x1e9   :  { %2845 = vmatmul.mubr.bf16.gmra.mrb[84].mxu0 %v4469_v11  ;;  %v4528_v11 = vcombine.high %v245_v45, %v249_v38  ;;  %v220_v38 = vld [vmem:[%s8890_s0 + $0x650] sm:$0xff] }
 0x1ea   :  { %2852 = vmatprep.mubr.bf16.mxu0 %v4478_v13  ;;  %v4486_v13 = vcombine.high %v204_v40, %v208_v43  ;;  %v224_v45 = vld [vmem:[%s8890_s0 + $0x670] sm:$0xff]  ;;  %v4535_v43 = vcombine.low %v253_v30, %v257_v23 }
 0x1eb   :  { %3189 = vmatprep.mubr.bf16.mxu1 %v4528_v11  ;;  %v6732_v11 = vpop.f32.mrb[106].mxu1 }
 0x1ec   :  { %8983 = vst [vmem:[#allocation19_spill] sm:$0xff] %v6732_v11  ;;  %v2313_v17 = vpop.f32.mrb[107].mxu1  ;;  %3190 = vmatmul.mubr.bf16.gmra.mrb[212].mxu1 %v4527_v0 }
 0x1ee   :  { %v6746_v40 = vpop.f32.mrb[108].mxu1 }
 0x1ef   :  { %8984 = vst [vmem:[#allocation20_spill] sm:$0xff] %v6746_v40  ;;  %v2318_v0 = vpop.f32.mrb[109].mxu1 }
 0x1f0   :  { %v4501_v0 = vcombine.low %v220_v38, %v224_v45 }
 0x1f1   :  { %2853 = vmatmul.mubr.bf16.gmra.mrb[88].mxu0 %v4477_v59  ;;  %v4536_v59 = vcombine.high %v253_v30, %v257_v23  ;;  %v228_v23 = vld [vmem:[%s8890_s0 + $0x690] sm:$0xff] }
 0x1f2   :  { %2860 = vmatprep.mubr.bf16.mxu0 %v4486_v13  ;;  %v4494_v13 = vcombine.high %v212_v36, %v216_v37  ;;  %v232_v30 = vld [vmem:[%s8890_s0 + $0x6b0] sm:$0xff]  ;;  %v4543_v37 = vcombine.low %v261_v15, %v265_v8 }
 0x1f3   :  { %3197 = vmatprep.mubr.bf16.mxu1 %v4536_v59  ;;  %v6748_v59 = vpop.f32.mrb[110].mxu1 }
 0x1f4   :  { %8985 = vst [vmem:[#allocation21_spill] sm:$0xff] %v6748_v59  ;;  %v2321_v17 = vpop.f32.mrb[111].mxu1  ;;  %3198 = vmatmul.mubr.bf16.gmra.mrb[216].mxu1 %v4535_v43 }
 0x1f6   :  { %v6762_v36 = vpop.f32.mrb[112].mxu1 }
 0x1f7   :  { %8986 = vst [vmem:[#allocation22_spill] sm:$0xff] %v6762_v36  ;;  %v2326_v43 = vpop.f32.mrb[113].mxu1 }
 0x1f9   :  { %2861 = vmatmul.mubr.bf16.gmra.mrb[92].mxu0 %v4485_v57  ;;  %v4544_v57 = vcombine.high %v261_v15, %v265_v8  ;;  %v4551_v15 = vcombine.low %v269_v60, %v273_v51 }
 0x1fa   :  { %2868 = vmatprep.mubr.bf16.mxu0 %v4494_v13  ;;  %v4502_v13 = vcombine.high %v220_v38, %v224_v45  ;;  %v4509_v45 = vcombine.low %v228_v23, %v232_v30 }
 0x1fb   :  { %3205 = vmatprep.mubr.bf16.mxu1 %v4544_v57  ;;  %v6764_v57 = vpop.f32.mrb[114].mxu1 }
 0x1fc   :  { %8987 = vst [vmem:[#allocation23_spill] sm:$0xff] %v6764_v57  ;;  %v2329_v17 = vpop.f32.mrb[115].mxu1  ;;  %3206 = vmatmul.mubr.bf16.gmra.mrb[220].mxu1 %v4543_v37 }
 0x1fd   :  { %v4518_v17 = vcombine.high %v236_v42, %v240_v35 }
 0x1fe   :  { %v6772_v8 = vpop.f32.mrb[116].mxu1 }
 0x1ff   :  { %8988 = vst [vmem:[#allocation24_spill] sm:$0xff] %v6772_v8  ;;  %v2334_v38 = vpop.f32.mrb[117].mxu1 }
 0x200   :  { %v6774_v43 = vpop.f32.mrb[118].mxu1 }
 0x201   :  { %2869 = vmatmul.mubr.bf16.gmra.mrb[96].mxu0 %v4493_v22  ;;  %v4552_v22 = vcombine.high %v269_v60, %v273_v51  ;;  %8989 = vst [vmem:[#allocation25_spill] sm:$0xff] %v6774_v43  ;;  %v2337_v37 = vpop.f32.mrb[119].mxu1  ;;  %v4517_v60 = vcombine.low %v236_v42, %v240_v35 }
 0x202   :  { %2876 = vmatprep.mubr.bf16.mxu0 %v4502_v13  ;;  %v4510_v13 = vcombine.high %v228_v23, %v232_v30 }
 0x203   :  { %3213 = vmatprep.mubr.bf16.mxu1 %v4552_v22  ;;  %v248_v22 = vld [vmem:[%s8890_s0 + $0x730] sm:$0xff] }
 0x204   :  { %3214 = vmatmul.mubr.bf16.gmra.mrb[224].mxu1 %v4551_v15  ;;  %v252_v15 = vld [vmem:[%s8890_s0 + $0x750] sm:$0xff] }
 0x209   :  { %2877 = vmatmul.mubr.bf16.gmra.mrb[100].mxu0 %v4501_v0  ;;  %v244_v0 = vld [vmem:[%s8890_s0 + $0x710] sm:$0xff] }
 0x20a   :  { %2884 = vmatprep.mubr.bf16.mxu0 %v4510_v13  ;;  %v6782_v13 = vpop.f32.mrb[120].mxu1  ;;  %v4526_v30 = vcombine.high %v244_v0, %v248_v22  ;;  %v4525_v27 = vcombine.low %v244_v0, %v248_v22  ;;  %v272_v22 = vld [vmem:[%s8890_s0 + $0x7f0] sm:$0xff] }
 0x20b   :  { %8990 = vst [vmem:[#allocation26_spill] sm:$0xff] %v6782_v13  ;;  %v2342_v51 = vpop.f32.mrb[121].mxu1 }
 0x20c   :  { %v6784_v23 = vpop.f32.mrb[122].mxu1 }
 0x20d   :  { %8991 = vst [vmem:[#allocation27_spill] sm:$0xff] %v6784_v23  ;;  %v2345_v38 = vpop.f32.mrb[123].mxu1 }
 0x211   :  { %2885 = vmatmul.mubr.bf16.gmra.mrb[104].mxu0 %v4509_v45  ;;  %v256_v45 = vld [vmem:[%s8890_s0 + $0x770] sm:$0xff] }
 0x212   :  { %2892 = vmatprep.mubr.bf16.mxu0 %v4518_v17  ;;  %v6792_v17 = vpop.f32.mrb[124].mxu1  ;;  %v4534_v35 = vcombine.high %v252_v15, %v256_v45  ;;  %v4533_v12 = vcombine.low %v252_v15, %v256_v45  ;;  %v25_v45 = vld [vmem:[%s8890_s0 + $0x38] sm:$0xff] }
 0x213   :  { %8992 = vst [vmem:[#allocation28_spill] sm:$0xff] %v6792_v17  ;;  %v2350_v37 = vpop.f32.mrb[125].mxu1 }
 0x214   :  { %v6794_v51 = vpop.f32.mrb[126].mxu1 }
 0x215   :  { %8993 = vst [vmem:[#allocation29_spill] sm:$0xff] %v6794_v51  ;;  %v2353_v42 = vpop.f32.mrb[127].mxu1 }
 0x216   :  { %v3023_v38 = vpop.f32.mrb[128].mxu1 }
 0x217   :  { %v3025_v20 = vpop.f32.mrb[129].mxu1 }
 0x218   :  { %v3026_v5 = vpop.f32.mrb[130].mxu1 }
 0x219   :  { %2893 = vmatmul.mubr.bf16.gmra.mrb[108].mxu0 %v4517_v60  ;;  %v260_v60 = vld [vmem:[%s8890_s0 + $0x790] sm:$0xff]  ;;  %v3028_v0 = vpop.f32.mrb[131].mxu1 }
 0x21a   :  { %2900 = vmatprep.mubr.bf16.mxu0 %v4526_v30  ;;  %v264_v30 = vld [vmem:[%s8890_s0 + $0x7b0] sm:$0xff] }
 0x21b   :  { %v4542_v37 = vcombine.high %v260_v60, %v264_v30  ;;  %v4541_v51 = vcombine.low %v260_v60, %v264_v30 }
 0x221   :  { %2901 = vmatmul.mubr.bf16.gmra.mrb[112].mxu0 %v4525_v27  ;;  %v268_v27 = vld [vmem:[%s8890_s0 + $0x7d0] sm:$0xff] }
 0x222   :  { %2908 = vmatprep.mubr.bf16.mxu0 %v4534_v35  ;;  %v6808_v35 = vpop.f32.mrb[132].mxu1  ;;  %v4550_v20 = vcombine.high %v268_v27, %v272_v22  ;;  %v4549_v23 = vcombine.low %v268_v27, %v272_v22 }
 0x223   :  { %v3033_v42 = vpop.f32.mrb[133].mxu1 }
 0x224   :  { %v6810_v17 = vpop.f32.mrb[134].mxu1 }
 0x225   :  { %v3036_v15 = vpop.f32.mrb[135].mxu1 }
 0x229   :  { %2909 = vmatmul.mubr.bf16.gmra.mrb[116].mxu0 %v4533_v12  ;;  %v21_v12 = vld [vmem:[%s8890_s0 + $0x18] sm:$0xff] }
 0x22a   :  { %2916 = vmatprep.mubr.bf16.mxu0 %v4542_v37  ;;  %v6818_v37 = vpop.f32.mrb[136].mxu1  ;;  %v4304_v60 = vcombine.high %v21_v12, %v25_v45  ;;  %v4303_v43 = vcombine.low %v21_v12, %v25_v45 }
 0x22b   :  { %v3041_v0 = vpop.f32.mrb[137].mxu1 }
 0x22c   :  { %v6820_v42 = vpop.f32.mrb[138].mxu1 }
 0x22d   :  { %v3044_v30 = vpop.f32.mrb[139].mxu1 }
 0x22e   :  { %v6828_v15 = vpop.f32.mrb[140].mxu1 }
 0x22f   :  { %v3049_v13 = vpop.f32.mrb[141].mxu1 }
 0x230   :  { %v6830_v0 = vpop.f32.mrb[142].mxu1 }
 0x231   :  { %2917 = vmatmul.mubr.bf16.gmra.mrb[120].mxu0 %v4541_v51  ;;  %v29_v51 = vld [vmem:[%s8890_s0 + $0x58] sm:$0xff]  ;;  %v3052_v22 = vpop.f32.mrb[143].mxu1 }
 0x232   :  { %2924 = vmatprep.mubr.bf16.mxu0 %v4550_v20  ;;  %v33_v20 = vld [vmem:[%s8890_s0 + $0x78] sm:$0xff] }
 0x233   :  { %v4312_v27 = vcombine.high %v29_v51, %v33_v20  ;;  %v4311_v57 = vcombine.low %v29_v51, %v33_v20 }
 0x236   :  { %v6838_v30 = vpop.f32.mrb[144].mxu1 }
 0x237   :  { %v3057_v8 = vpop.f32.mrb[145].mxu1 }
 0x238   :  { %v6840_v13 = vpop.f32.mrb[146].mxu1 }
 0x239   :  { %2925 = vmatmul.mubr.bf16.gmra.mrb[124].mxu0 %v4549_v23  ;;  %v37_v23 = vld [vmem:[%s8890_s0 + $0x98] sm:$0xff]  ;;  %v3060_v45 = vpop.f32.mrb[147].mxu1 }
 0x23a   :  { %2965 = vmatprep.mubr.bf16.mxu0 %v4304_v60  ;;  %v41_v60 = vld [vmem:[%s8890_s0 + $0xb8] sm:$0xff] }
 0x23b   :  { %v4320_v12 = vcombine.high %v37_v23, %v41_v60  ;;  %v4319_v20 = vcombine.low %v37_v23, %v41_v60 }
 0x23e   :  { %v6848_v22 = vpop.f32.mrb[148].mxu1 }
 0x23f   :  { %v3065_v59 = vpop.f32.mrb[149].mxu1 }
 0x240   :  { %v6851_v40 = vpop.f32.mrb[150].mxu1  ;;  %v57_v59 = vld [vmem:[%s8890_s0 + $0x138] sm:$0xff] }
 0x241   :  { %2966 = vmatmul.mubr.bf16.vlgmr.msra.gmra.mrb[0].mxu0 %v4303_v43  ;;  %v45_v43 = vld [vmem:[%s8890_s0 + $0xd8] sm:$0xff]  ;;  %v3068_v45 = vpop.f32.mrb[151].mxu1 }
 0x242   :  { %2973 = vmatprep.mubr.bf16.mxu0 %v4312_v27  ;;  %v49_v27 = vld [vmem:[%s8890_s0 + $0xf8] sm:$0xff] }
 0x249   :  { %2974 = vmatmul.mubr.bf16.gmra.mrb[4].mxu0 %v4311_v57 }
 0x24a   :  { %2981 = vmatprep.mubr.bf16.mxu0 %v4320_v12  ;;  %v4328_v12 = vcombine.high %v45_v43, %v49_v27 }
 0x24c   :  { %v2734_v36 = vpop.f32.mrb[28].mxu0 }
 0x24d   :  { %v5251_v8 = vadd.f32 %v2734_v36, %v6409_v55  ;;  %v2736_v51 = vpop.f32.mrb[29].mxu0  ;;  %v53_v55 = vld [vmem:[%s8890_s0 + $0x118] sm:$0xff]  ;;  %v6864_v36 = vpop.f32.mrb[152].mxu1 }
 0x24e   :  { %v2737_v57 = vpop.f32.mrb[30].mxu0  ;;  %v3073_v60 = vpop.f32.mrb[153].mxu1 }
 0x24f   :  { %v5253_v11 = vadd.f32 %v2737_v57, %v6411_v63  ;;  %v6854_v58 = vadd.f32 %v5251_v8, %v3023_v38  ;;  %v2739_v50 = vpop.f32.mrb[31].mxu0  ;;  %v4336_v8 = vcombine.high %v53_v55, %v57_v59 }
 0x250   :  { %v4327_v50 = vcombine.low %v45_v43, %v49_v27  ;;  %v61_v43 = vld [vmem:[%s8890_s0 + $0x158] sm:$0xff] }
 0x251   :  { %v6856_v31 = vadd.f32 %v5253_v11, %v3026_v5  ;;  %2982 = vmatmul.mubr.bf16.gmra.mrb[8].mxu0 %v4319_v20  ;;  %v6867_v5 = vpop.f32.mrb[154].mxu1 }
 0x252   :  { %2989 = vmatprep.mubr.bf16.mxu0 %v4328_v12  ;;  %v3076_v51 = vpop.f32.mrb[155].mxu1 }
 0x253   :  { %v6884_v27 = vpop.f32.mrb[156].mxu1 }
 0x254   :  { %v2742_v23 = vpop.f32.mrb[32].mxu0 }
 0x255   :  { %v5255_v63 = vadd.f32 %v2742_v23, %v6429_v10  ;;  %v2744_v38 = vpop.f32.mrb[33].mxu0  ;;  %v3081_v23 = vpop.f32.mrb[157].mxu1 }
 0x256   :  { %v2745_v11 = vpop.f32.mrb[34].mxu0  ;;  %v6887_v38 = vpop.f32.mrb[158].mxu1 }
 0x257   :  { %v5257_v20 = vadd.f32 %v2745_v11, %v6431_v18  ;;  %v6871_v57 = vadd.f32 %v5255_v63, %v6808_v35  ;;  %v2747_v12 = vpop.f32.mrb[35].mxu0  ;;  %v65_v18 = vld [vmem:[%s8890_s0 + $0x178] sm:$0xff]  ;;  %v4335_v63 = vcombine.low %v53_v55, %v57_v59 }
 0x258   :  { %v4344_v11 = vcombine.high %v61_v43, %v65_v18  ;;  %v73_v55 = vld [vmem:[%s8890_s0 + $0x1b8] sm:$0xff]  ;;  %v4343_v23 = vcombine.low %v61_v43, %v65_v18 }
 0x259   :  { %8994 = vst [vmem:[#allocation30_spill] sm:$0xff] %v6871_v57  ;;  %v6874_v45 = vadd.f32 %v5257_v20, %v6810_v17  ;;  %2990 = vmatmul.mubr.bf16.gmra.mrb[12].mxu0 %v4327_v50 }
 0x25a   :  { %2997 = vmatprep.mubr.bf16.mxu0 %v4336_v8  ;;  %v3084_v8 = vpop.f32.mrb[159].mxu1 }
 0x25b   :  { %8995 = vst [vmem:[#allocation31_spill] sm:$0xff] %v6874_v45  ;;  %v5077_v10 = vpack.c.bf16 %v6874_v45, %v6871_v57  ;;  %v6902_v59 = vpop.f32.mrb[160].mxu1  ;;  %v9010_v57 = vld [vmem:[#allocation19_spill] sm:$0xff] }
 0x25c   :  { %v2750_v35 = vpop.f32.mrb[36].mxu0 }
 0x25d   :  { %v5259_v17 = vadd.f32 %v2750_v35, %v6449_v25  ;;  %v2752_v60 = vpop.f32.mrb[37].mxu0  ;;  %5078 = vmatprep.subr.bf16.mxu1 %v5077_v10  ;;  %v69_v25 = vld [vmem:[%s8890_s0 + $0x198] sm:$0xff]  ;;  %v3089_v10 = vpop.f32.mrb[161].mxu1 }
 0x25e   :  { %v2753_v50 = vpop.f32.mrb[38].mxu0  ;;  %v4352_v60 = vcombine.high %v69_v25, %v73_v55  ;;  %v4351_v10 = vcombine.low %v69_v25, %v73_v55 }
 0x25f   :  { %v5261_v51 = vadd.f32 %v2753_v50, %v6451_v33  ;;  %v6891_v20 = vadd.f32 %v5259_v17, %v6818_v37  ;;  %v2755_v12 = vpop.f32.mrb[39].mxu0 }
 0x261   :  { %v6894_v45 = vadd.f32 %v5261_v51, %v6820_v42  ;;  %2998 = vmatmul.mubr.bf16.gmra.mrb[16].mxu0 %v4335_v63  ;;  %v6905_v42 = vpop.f32.mrb[162].mxu1 }
 0x262   :  { %3005 = vmatprep.mubr.bf16.mxu0 %v4344_v11  ;;  %v3092_v63 = vpop.f32.mrb[163].mxu1 }
 0x263   :  { %v6914_v12 = vpop.f32.mrb[164].mxu1 }
 0x264   :  { %v2758_v33 = vpop.f32.mrb[40].mxu0  ;;  %v3097_v43 = vpop.f32.mrb[165].mxu1 }
 0x265   :  { %v5263_v37 = vadd.f32 %v2758_v33, %v6468_v39  ;;  %v2760_v35 = vpop.f32.mrb[41].mxu0 }
 0x266   :  { %v2761_v17 = vpop.f32.mrb[42].mxu0  ;;  %v6917_v35 = vpop.f32.mrb[166].mxu1 }
 0x267   :  { %v5265_v50 = vadd.f32 %v2761_v17, %v6471_v47  ;;  %v6909_v11 = vadd.f32 %v5263_v37, %v6828_v15  ;;  %v2763_v8 = vpop.f32.mrb[43].mxu0  ;;  %v3100_v17 = vpop.f32.mrb[167].mxu1 }
 0x269   :  { %v6912_v51 = vadd.f32 %v5265_v50, %v6830_v0  ;;  %3006 = vmatmul.mubr.bf16.gmra.mrb[20].mxu0 %v4343_v23 }
 0x26a   :  { %3013 = vmatprep.mubr.bf16.mxu0 %v4352_v60  ;;  %v6926_v60 = vpop.f32.mrb[168].mxu1 }
 0x26c   :  { %v2766_v39 = vpop.f32.mrb[44].mxu0 }
 0x26d   :  { %v5267_v18 = vadd.f32 %v2766_v39, %v6488_v56  ;;  %v2768_v33 = vpop.f32.mrb[45].mxu0  ;;  %v3105_v56 = vpop.f32.mrb[169].mxu1 }
 0x26e   :  { %v2769_v47 = vpop.f32.mrb[46].mxu0  ;;  %v6929_v50 = vpop.f32.mrb[170].mxu1 }
 0x26f   :  { %v5269_v15 = vadd.f32 %v2769_v47, %v6491_v3  ;;  %v6921_v37 = vadd.f32 %v5267_v18, %v6838_v30  ;;  %v2771_v0 = vpop.f32.mrb[47].mxu0  ;;  %v3108_v39 = vpop.f32.mrb[171].mxu1 }
 0x270   :  { %v6938_v18 = vpop.f32.mrb[172].mxu1 }
 0x271   :  { %v6924_v23 = vadd.f32 %v5269_v15, %v6840_v13  ;;  %3014 = vmatmul.mubr.bf16.gmra.mrb[24].mxu0 %v4351_v10  ;;  %v3113_v10 = vpop.f32.mrb[173].mxu1 }
 0x272   :  { %v6941_v17 = vpop.f32.mrb[174].mxu1 }
 0x273   :  { %8996 = vst [vmem:[#allocation32_spill] sm:$0xff] %v6924_v23  ;;  %v3116_v0 = vpop.f32.mrb[175].mxu1 }
 0x274   :  { %v2774_v63 = vpop.f32.mrb[48].mxu0 }
 0x275   :  { %v5271_v25 = vadd.f32 %v2774_v63, %v6506_v9  ;;  %v2776_v55 = vpop.f32.mrb[49].mxu0 }
 0x276   :  { %v2777_v8 = vpop.f32.mrb[50].mxu0  ;;  %v6950_v56 = vpop.f32.mrb[176].mxu1 }
 0x277   :  { %v5273_v3 = vadd.f32 %v2777_v8, %v6508_v26  ;;  %v6933_v30 = vadd.f32 %v5271_v25, %v6848_v22  ;;  %v2779_v43 = vpop.f32.mrb[51].mxu0  ;;  %v3121_v55 = vpop.f32.mrb[177].mxu1 }
 0x278   :  { %v6953_v39 = vpop.f32.mrb[178].mxu1 }
 0x279   :  { %8997 = vst [vmem:[#allocation33_spill] sm:$0xff] %v6933_v30  ;;  %v6936_v13 = vadd.f32 %v5273_v3, %v6851_v40  ;;  %v3124_v43 = vpop.f32.mrb[179].mxu1 }
 0x27b   :  { %8998 = vst [vmem:[#allocation34_spill] sm:$0xff] %v6936_v13 }
 0x27c   :  { %v2782_v33 = vpop.f32.mrb[52].mxu0 }
 0x27d   :  { %v5275_v9 = vadd.f32 %v2782_v33, %v6522_v29  ;;  %v2784_v47 = vpop.f32.mrb[53].mxu0 }
 0x27e   :  { %v2785_v15 = vpop.f32.mrb[54].mxu0  ;;  %v6962_v10 = vpop.f32.mrb[180].mxu1 }
 0x27f   :  { %v5277_v26 = vadd.f32 %v2785_v15, %v6524_v34  ;;  %v6945_v22 = vadd.f32 %v5275_v9, %v6864_v36  ;;  %v2787_v63 = vpop.f32.mrb[55].mxu0  ;;  %v3129_v47 = vpop.f32.mrb[181].mxu1 }
 0x280   :  { %v6965_v0 = vpop.f32.mrb[182].mxu1 }
 0x281   :  { %8999 = vst [vmem:[#allocation35_spill] sm:$0xff] %v6945_v22  ;;  %v6948_v40 = vadd.f32 %v5277_v26, %v6867_v5  ;;  %v3132_v63 = vpop.f32.mrb[183].mxu1 }
 0x283   :  { %9000 = vst [vmem:[#allocation36_spill] sm:$0xff] %v6948_v40 }
 0x284   :  { %v2790_v25 = vpop.f32.mrb[56].mxu0 }
 0x285   :  { %v5279_v29 = vadd.f32 %v2790_v25, %v6538_v49  ;;  %v2792_v8 = vpop.f32.mrb[57].mxu0 }
 0x286   :  { %v2793_v3 = vpop.f32.mrb[58].mxu0  ;;  %v6974_v55 = vpop.f32.mrb[184].mxu1 }
 0x287   :  { %v5281_v34 = vadd.f32 %v2793_v3, %v6540_v53  ;;  %v6957_v36 = vadd.f32 %v5279_v29, %v6884_v27  ;;  %v2795_v33 = vpop.f32.mrb[59].mxu0  ;;  %v3137_v8 = vpop.f32.mrb[185].mxu1 }
 0x288   :  { %v6977_v43 = vpop.f32.mrb[186].mxu1 }
 0x289   :  { %v6960_v5 = vadd.f32 %v5281_v34, %v6887_v38  ;;  %v3140_v33 = vpop.f32.mrb[187].mxu1 }
 0x28c   :  { %v2798_v9 = vpop.f32.mrb[60].mxu0 }
 0x28d   :  { %v5283_v49 = vadd.f32 %v2798_v9, %v6554_v21  ;;  %v2800_v15 = vpop.f32.mrb[61].mxu0 }
 0x28e   :  { %v2801_v26 = vpop.f32.mrb[62].mxu0  ;;  %v6986_v47 = vpop.f32.mrb[188].mxu1 }
 0x28f   :  { %v5285_v53 = vadd.f32 %v2801_v26, %v6556_v14  ;;  %v6969_v27 = vadd.f32 %v5283_v49, %v6902_v59  ;;  %v2803_v25 = vpop.f32.mrb[63].mxu0  ;;  %v3145_v15 = vpop.f32.mrb[189].mxu1 }
 0x290   :  { %v6989_v63 = vpop.f32.mrb[190].mxu1 }
 0x291   :  { %v6972_v38 = vadd.f32 %v5285_v53, %v6905_v42  ;;  %v3148_v25 = vpop.f32.mrb[191].mxu1 }
 0x294   :  { %v2806_v29 = vpop.f32.mrb[64].mxu0 }
 0x295   :  { %v5287_v21 = vadd.f32 %v2806_v29, %v6570_v24  ;;  %v2808_v3 = vpop.f32.mrb[65].mxu0 }
 0x296   :  { %v2809_v34 = vpop.f32.mrb[66].mxu0  ;;  %v6998_v8 = vpop.f32.mrb[192].mxu1 }
 0x297   :  { %v5289_v14 = vadd.f32 %v2809_v34, %v6572_v1  ;;  %v6981_v59 = vadd.f32 %v5287_v21, %v6914_v12  ;;  %v2811_v9 = vpop.f32.mrb[67].mxu0  ;;  %v3153_v3 = vpop.f32.mrb[193].mxu1 }
 0x298   :  { %v7001_v33 = vpop.f32.mrb[194].mxu1 }
 0x299   :  { %v6984_v42 = vadd.f32 %v5289_v14, %v6917_v35  ;;  %v3156_v9 = vpop.f32.mrb[195].mxu1 }
 0x29c   :  { %v2814_v49 = vpop.f32.mrb[68].mxu0 }
 0x29d   :  { %v5291_v24 = vadd.f32 %v2814_v49, %v6586_v46  ;;  %v2816_v26 = vpop.f32.mrb[69].mxu0 }
 0x29e   :  { %v2817_v53 = vpop.f32.mrb[70].mxu0  ;;  %v7010_v15 = vpop.f32.mrb[196].mxu1 }
 0x29f   :  { %v5293_v1 = vadd.f32 %v2817_v53, %v6588_v61  ;;  %v6993_v12 = vadd.f32 %v5291_v24, %v6926_v60  ;;  %v2819_v29 = vpop.f32.mrb[71].mxu0  ;;  %v3161_v26 = vpop.f32.mrb[197].mxu1 }
 0x2a0   :  { %v7013_v25 = vpop.f32.mrb[198].mxu1 }
 0x2a1   :  { %v6996_v35 = vadd.f32 %v5293_v1, %v6929_v50  ;;  %v3164_v29 = vpop.f32.mrb[199].mxu1 }
 0x2a4   :  { %v2822_v21 = vpop.f32.mrb[72].mxu0 }
 0x2a5   :  { %v5295_v46 = vadd.f32 %v2822_v21, %v6602_v2  ;;  %v2824_v34 = vpop.f32.mrb[73].mxu0 }
 0x2a6   :  { %v2825_v14 = vpop.f32.mrb[74].mxu0  ;;  %v7022_v3 = vpop.f32.mrb[200].mxu1 }
 0x2a7   :  { %v5297_v61 = vadd.f32 %v2825_v14, %v6604_v19  ;;  %v7005_v60 = vadd.f32 %v5295_v46, %v6938_v18  ;;  %v2827_v49 = vpop.f32.mrb[75].mxu0  ;;  %v3169_v34 = vpop.f32.mrb[201].mxu1 }
 0x2a8   :  { %v7025_v9 = vpop.f32.mrb[202].mxu1 }
 0x2a9   :  { %v7008_v50 = vadd.f32 %v5297_v61, %v6941_v17  ;;  %v3172_v49 = vpop.f32.mrb[203].mxu1 }
 0x2ac   :  { %v2830_v24 = vpop.f32.mrb[76].mxu0 }
 0x2ad   :  { %v5299_v2 = vadd.f32 %v2830_v24, %v6618_v41  ;;  %v2832_v53 = vpop.f32.mrb[77].mxu0 }
 0x2ae   :  { %v2833_v1 = vpop.f32.mrb[78].mxu0  ;;  %v7034_v26 = vpop.f32.mrb[204].mxu1 }
 0x2af   :  { %v5301_v19 = vadd.f32 %v2833_v1, %v6620_v6  ;;  %v7017_v18 = vadd.f32 %v5299_v2, %v6950_v56  ;;  %v2835_v21 = vpop.f32.mrb[79].mxu0  ;;  %v3177_v53 = vpop.f32.mrb[205].mxu1 }
 0x2b0   :  { %v7037_v29 = vpop.f32.mrb[206].mxu1 }
 0x2b1   :  { %v7020_v17 = vadd.f32 %v5301_v19, %v6953_v39  ;;  %v3180_v21 = vpop.f32.mrb[207].mxu1 }
 0x2b4   :  { %v2838_v46 = vpop.f32.mrb[80].mxu0 }
 0x2b5   :  { %v5303_v41 = vadd.f32 %v2838_v46, %v6634_v4  ;;  %v2840_v14 = vpop.f32.mrb[81].mxu0 }
 0x2b6   :  { %v2841_v61 = vpop.f32.mrb[82].mxu0 }
 0x2b7   :  { %v5305_v6 = vadd.f32 %v2841_v61, %v6636_v48  ;;  %v7029_v56 = vadd.f32 %v5303_v41, %v6962_v10  ;;  %v2843_v24 = vpop.f32.mrb[83].mxu0  ;;  %v7046_v34 = vpop.f32.mrb[208].mxu1 }
 0x2b8   :  { %v3185_v14 = vpop.f32.mrb[209].mxu1 }
 0x2b9   :  { %v7032_v39 = vadd.f32 %v5305_v6, %v6965_v0  ;;  %v7049_v49 = vpop.f32.mrb[210].mxu1 }
 0x2ba   :  { %v3188_v24 = vpop.f32.mrb[211].mxu1 }
 0x2bc   :  { %v2846_v2 = vpop.f32.mrb[84].mxu0 }
 0x2bd   :  { %v5307_v4 = vadd.f32 %v2846_v2, %v6650_v32  ;;  %v2848_v1 = vpop.f32.mrb[85].mxu0 }
 0x2be   :  { %v2849_v19 = vpop.f32.mrb[86].mxu0 }
 0x2bf   :  { %v5309_v48 = vadd.f32 %v2849_v19, %v6652_v44  ;;  %v7041_v10 = vadd.f32 %v5307_v4, %v6974_v55  ;;  %v2851_v46 = vpop.f32.mrb[87].mxu0  ;;  %v7058_v53 = vpop.f32.mrb[212].mxu1 }
 0x2c0   :  { %v3193_v1 = vpop.f32.mrb[213].mxu1 }
 0x2c1   :  { %9001 = vst [vmem:[#allocation37_spill] sm:$0xff] %v7041_v10  ;;  %v7044_v0 = vadd.f32 %v5309_v48, %v6977_v43  ;;  %v3194_v21 = vpop.f32.mrb[214].mxu1 }
 0x2c2   :  { %v3196_v46 = vpop.f32.mrb[215].mxu1 }
 0x2c3   :  { %9002 = vst [vmem:[#allocation38_spill] sm:$0xff] %v7044_v0  ;;  %v9007_v46 = vld [vmem:[#allocation16_spill] sm:$0xff] }
 0x2c4   :  { %v2854_v41 = vpop.f32.mrb[88].mxu0 }
 0x2c5   :  { %v5311_v32 = vadd.f32 %v2854_v41, %v6666_v62  ;;  %v2856_v61 = vpop.f32.mrb[89].mxu0 }
 0x2c6   :  { %v2857_v6 = vpop.f32.mrb[90].mxu0 }
 0x2c7   :  { %v5313_v44 = vadd.f32 %v2857_v6, %v6668_v54  ;;  %v7053_v55 = vadd.f32 %v5311_v32, %v6986_v47  ;;  %v2859_v2 = vpop.f32.mrb[91].mxu0  ;;  %v3199_v32 = vpop.f32.mrb[216].mxu1 }
 0x2c8   :  { %v3201_v6 = vpop.f32.mrb[217].mxu1 }
 0x2c9   :  { %9003 = vst [vmem:[#allocation39_spill] sm:$0xff] %v7053_v55  ;;  %v7056_v43 = vadd.f32 %v5313_v44, %v6989_v63  ;;  %v8895_v63 = vmov 1.0   ;;  %v3202_v44 = vpop.f32.mrb[218].mxu1 }
 0x2ca   :  { %3286 = vmatprep.mubr.f32.mxu1 %v8895_v63 }
 0x2cb   :  { %9004 = vst [vmem:[#allocation40_spill] sm:$0xff] %v7056_v43 }
 0x2cc   :  { %v2862_v4 = vpop.f32.mrb[92].mxu0 }
 0x2cd   :  { %v5315_v62 = vadd.f32 %v2862_v4, %v6682_v28  ;;  %v2864_v19 = vpop.f32.mrb[93].mxu0  ;;  %v3204_v4 = vpop.f32.mrb[219].mxu1 }
 0x2ce   :  { %v2865_v48 = vpop.f32.mrb[94].mxu0 }
 0x2cf   :  { %v5317_v41 = vadd.f32 %v2865_v48, %v6684_v7  ;;  %v7063_v54 = vadd.f32 %v5315_v62, %v6998_v8  ;;  %v2867_v47 = vpop.f32.mrb[95].mxu0  ;;  %v3207_v62 = vpop.f32.mrb[220].mxu1 }
 0x2d0   :  { %v3209_v48 = vpop.f32.mrb[221].mxu1 }
 0x2d1   :  { %9005 = vst [vmem:[#allocation41_spill] sm:$0xff] %v7063_v54  ;;  %v7066_v14 = vadd.f32 %v5317_v41, %v7001_v33 }
 0x2d3   :  { %9006 = vst [vmem:[#allocation42_spill] sm:$0xff] %v7066_v14  ;;  %v9012_v14 = vld [vmem:[#allocation21_spill] sm:$0xff] }
 0x2d4   :  { %v2870_v61 = vpop.f32.mrb[96].mxu0 }
 0x2d5   :  { %v5319_v28 = vadd.f32 %v2870_v61, %v6698_v52  ;;  %v2872_v24 = vpop.f32.mrb[97].mxu0  ;;  %v3210_v52 = vpop.f32.mrb[222].mxu1 }
 0x2d6   :  { %v2873_v2 = vpop.f32.mrb[98].mxu0  ;;  %v3212_v6 = vpop.f32.mrb[223].mxu1  ;;  %v9008_v24 = vld [vmem:[#allocation17_spill] sm:$0xff] }
 0x2d7   :  { %v5321_v7 = vadd.f32 %v2873_v2, %v6700_v16  ;;  %v7072_v8 = vadd.f32 %v5319_v28, %v7010_v15  ;;  %v2875_v1 = vpop.f32.mrb[99].mxu0 }
 0x2d8   :  { %v9009_v1 = vld [vmem:[#allocation18_spill] sm:$0xff] }
 0x2d9   :  { %v7075_v33 = vadd.f32 %v5321_v7, %v7013_v25  ;;  %v3215_v25 = vpop.f32.mrb[224].mxu1 }
 0x2da   :  { %v3217_v7 = vpop.f32.mrb[225].mxu1 }
 0x2dc   :  { %v2878_v19 = vpop.f32.mrb[100].mxu0 }
 0x2dd   :  { %v5323_v41 = vadd.f32 %v2878_v19, %v9007_v46  ;;  %v2880_v47 = vpop.f32.mrb[101].mxu0  ;;  %v3218_v19 = vpop.f32.mrb[226].mxu1 }
 0x2de   :  { %v2881_v61 = vpop.f32.mrb[102].mxu0  ;;  %v3220_v47 = vpop.f32.mrb[227].mxu1 }
 0x2df   :  { %v5325_v4 = vadd.f32 %v2881_v61, %v9008_v24  ;;  %v7080_v16 = vadd.f32 %v5323_v41, %v7022_v3  ;;  %v2883_v15 = vpop.f32.mrb[103].mxu0  ;;  %v9011_v24 = vld [vmem:[#allocation20_spill] sm:$0xff] }
 0x2e1   :  { %v7083_v28 = vadd.f32 %v5325_v4, %v7025_v9 }
 0x2e4   :  { %v2886_v2 = vpop.f32.mrb[104].mxu0 }
 0x2e5   :  { %v5327_v48 = vadd.f32 %v2886_v2, %v9009_v1  ;;  %v2888_v63 = vpop.f32.mrb[105].mxu0 }
 0x2e6   :  { %v2889_v46 = vpop.f32.mrb[106].mxu0 }
 0x2e7   :  { %v5329_v6 = vadd.f32 %v2889_v46, %v9010_v57  ;;  %v7088_v61 = vadd.f32 %v5327_v48, %v7034_v26  ;;  %v2891_v3 = vpop.f32.mrb[107].mxu0  ;;  %v9013_v48 = vld [vmem:[#allocation22_spill] sm:$0xff] }
 0x2e9   :  { %v7091_v41 = vadd.f32 %v5329_v6, %v7037_v29  ;;  %v9014_v6 = vld [vmem:[#allocation23_spill] sm:$0xff] }
 0x2ec   :  { %v2894_v9 = vpop.f32.mrb[108].mxu0 }
 0x2ed   :  { %v5331_v4 = vadd.f32 %v2894_v9, %v9011_v24  ;;  %v2896_v15 = vpop.f32.mrb[109].mxu0 }
 0x2ee   :  { %v2897_v7 = vpop.f32.mrb[110].mxu0 }
 0x2ef   :  { %v5333_v2 = vadd.f32 %v2897_v7, %v9012_v14  ;;  %v7096_v63 = vadd.f32 %v5331_v4, %v7046_v34  ;;  %v2899_v1 = vpop.f32.mrb[111].mxu0  ;;  %v9015_v34 = vld [vmem:[#allocation24_spill] sm:$0xff] }
 0x2f1   :  { %v7099_v57 = vadd.f32 %v5333_v2, %v7049_v49  ;;  %v9016_v49 = vld [vmem:[#allocation25_spill] sm:$0xff] }
 0x2f4   :  { %v2902_v26 = vpop.f32.mrb[112].mxu0 }
 0x2f5   :  { %v5335_v46 = vadd.f32 %v2902_v26, %v9013_v48  ;;  %v2904_v47 = vpop.f32.mrb[113].mxu0 }
 0x2f6   :  { %v2905_v29 = vpop.f32.mrb[114].mxu0 }
 0x2f7   :  { %v5337_v3 = vadd.f32 %v2905_v29, %v9014_v6  ;;  %v7104_v9 = vadd.f32 %v5335_v46, %v7058_v53  ;;  %v2907_v24 = vpop.f32.mrb[115].mxu0  ;;  %v9017_v29 = vld [vmem:[#allocation26_spill] sm:$0xff] }
 0x2f8   :  { %v9018_v24 = vld [vmem:[#allocation27_spill] sm:$0xff] }
 0x2f9   :  { %v7106_v15 = vadd.f32 %v5337_v3, %v3194_v21 }
 0x2fc   :  { %v2910_v14 = vpop.f32.mrb[116].mxu0 }
 0x2fd   :  { %v5339_v4 = vadd.f32 %v2910_v14, %v9015_v34  ;;  %v2912_v7 = vpop.f32.mrb[117].mxu0 }
 0x2fe   :  { %v2913_v1 = vpop.f32.mrb[118].mxu0  ;;  %v9021_v7 = vld [vmem:[#allocation28_spill] sm:$0xff] }
 0x2ff   :  { %v5341_v2 = vadd.f32 %v2913_v1, %v9016_v49  ;;  %v7110_v54 = vadd.f32 %v5339_v4, %v3199_v32  ;;  %v2915_v26 = vpop.f32.mrb[119].mxu0  ;;  %v9022_v49 = vld [vmem:[#allocation29_spill] sm:$0xff] }
 0x301   :  { %v7112_v48 = vadd.f32 %v5341_v2, %v3202_v44 }
 0x304   :  { %v2918_v47 = vpop.f32.mrb[120].mxu0 }
 0x305   :  { %v5343_v6 = vadd.f32 %v2918_v47, %v9017_v29  ;;  %v2920_v53 = vpop.f32.mrb[121].mxu0 }
 0x306   :  { %v2921_v46 = vpop.f32.mrb[122].mxu0  ;;  %v9023_v53 = vld [vmem:[#allocation2_spill] sm:$0xff] }
 0x307   :  { %v5345_v21 = vadd.f32 %v2921_v46, %v9018_v24  ;;  %v7116_v3 = vadd.f32 %v5343_v6, %v3207_v62  ;;  %v2923_v43 = vpop.f32.mrb[123].mxu0 }
 0x309   :  { %9019 = vst [vmem:[#allocation16_spill] sm:$0xff] %v7116_v3  ;;  %v7118_v14 = vadd.f32 %v5345_v21, %v3210_v52  ;;  %v9024_v52 = vld [vmem:[#allocation3_spill] sm:$0xff] }
 0x30b   :  { %9020 = vst [vmem:[#allocation17_spill] sm:$0xff] %v7118_v14 }
 0x30c   :  { %v2926_v34 = vpop.f32.mrb[124].mxu0 }
 0x30d   :  { %v5347_v1 = vadd.f32 %v2926_v34, %v9021_v7  ;;  %v2928_v32 = vpop.f32.mrb[125].mxu0 }
 0x30e   :  { %v2929_v4 = vpop.f32.mrb[126].mxu0 }
 0x30f   :  { %v5349_v44 = vadd.f32 %v2929_v4, %v9022_v49  ;;  %v7122_v2 = vadd.f32 %v5347_v1, %v3215_v25  ;;  %v2931_v26 = vpop.f32.mrb[127].mxu0  ;;  %v5081_v25 = vpack.c.bf16 %v6894_v45, %v6891_v20  ;;  %v9026_v4 = vld [vmem:[#allocation5_spill] sm:$0xff] }
 0x311   :  { %v7124_v47 = vadd.f32 %v5349_v44, %v3218_v19  ;;  %v9025_v19 = vld [vmem:[#allocation4_spill] sm:$0xff] }
 0x314   :  { %v2967_v29 = vpop.f32.mrb[0].mxu0 }
 0x315   :  { %v7127_v46 = vadd.f32 %v2967_v29, %v9023_v53  ;;  %v2969_v62 = vpop.f32.mrb[1].mxu0  ;;  %v5085_v29 = vpack.c.bf16 %v6912_v51, %v6909_v11 }
 0x316   :  { %v2970_v43 = vpop.f32.mrb[2].mxu0  ;;  %v9027_v62 = vld [vmem:[#allocation6_spill] sm:$0xff] }
 0x317   :  { %v7130_v6 = vadd.f32 %v2970_v43, %v9024_v52  ;;  %v2972_v24 = vpop.f32.mrb[3].mxu0 }
 0x319   :  { %v5079_v21 = vpack.c.bf16 %v7130_v6, %v7127_v46 }
 0x31b   :  { %5080 = vmatpush3.bf16.msra.mxu1 %v5079_v21  ;;  %v9028_v21 = vld [vmem:[#allocation7_spill] sm:$0xff] }
 0x31c   :  { %v2975_v34 = vpop.f32.mrb[4].mxu0  ;;  %5082 = vmatprep.subr.bf16.mxu1 %v5081_v25 }
 0x31d   :  { %v7137_v7 = vadd.f32 %v2975_v34, %v9025_v19  ;;  %v2977_v1 = vpop.f32.mrb[5].mxu0 }
 0x31e   :  { %v2978_v32 = vpop.f32.mrb[6].mxu0  ;;  %v5089_v1 = vpack.c.bf16 %v6924_v23, %v6921_v37 }
 0x31f   :  { %v7140_v49 = vadd.f32 %v2978_v32, %v9026_v4  ;;  %v2980_v44 = vpop.f32.mrb[7].mxu0  ;;  %v9029_v4 = vld [vmem:[#allocation8_spill] sm:$0xff] }
 0x321   :  { %v5083_v26 = vpack.c.bf16 %v7140_v49, %v7137_v7 }
 0x323   :  { %5084 = vmatpush3.bf16.msra.mxu1 %v5083_v26 }
 0x324   :  { %v2983_v53 = vpop.f32.mrb[8].mxu0  ;;  %5086 = vmatprep.subr.bf16.mxu1 %v5085_v29 }
 0x325   :  { %v7147_v43 = vadd.f32 %v2983_v53, %v9027_v62  ;;  %v2985_v52 = vpop.f32.mrb[9].mxu0  ;;  %v9030_v53 = vld [vmem:[#allocation9_spill] sm:$0xff] }
 0x326   :  { %v2986_v24 = vpop.f32.mrb[10].mxu0 }
 0x327   :  { %v7150_v25 = vadd.f32 %v2986_v24, %v9028_v21  ;;  %v2988_v34 = vpop.f32.mrb[11].mxu0  ;;  %v5093_v21 = vpack.c.bf16 %v6936_v13, %v6933_v30 }
 0x329   :  { %v5087_v19 = vpack.c.bf16 %v7150_v25, %v7147_v43 }
 0x32b   :  { %5088 = vmatpush3.bf16.msra.mxu1 %v5087_v19  ;;  %v9031_v19 = vld [vmem:[#allocation10_spill] sm:$0xff] }
 0x32c   :  { %v2991_v32 = vpop.f32.mrb[12].mxu0  ;;  %5090 = vmatprep.subr.bf16.mxu1 %v5089_v1 }
 0x32d   :  { %v7157_v44 = vadd.f32 %v2991_v32, %v9029_v4  ;;  %v2993_v26 = vpop.f32.mrb[13].mxu0 }
 0x32e   :  { %v2994_v29 = vpop.f32.mrb[14].mxu0  ;;  %v9032_v26 = vld [vmem:[#allocation11_spill] sm:$0xff] }
 0x32f   :  { %v7160_v62 = vadd.f32 %v2994_v29, %v9030_v53  ;;  %v2996_v52 = vpop.f32.mrb[15].mxu0 }
 0x330   :  { %v5097_v52 = vpack.c.bf16 %v6948_v40, %v6945_v22 }
 0x331   :  { %v5091_v24 = vpack.c.bf16 %v7160_v62, %v7157_v44 }
 0x333   :  { %5092 = vmatpush3.bf16.msra.mxu1 %v5091_v24  ;;  %v9033_v24 = vld [vmem:[#allocation12_spill] sm:$0xff] }
 0x334   :  { %v2999_v34 = vpop.f32.mrb[16].mxu0  ;;  %5094 = vmatprep.subr.bf16.mxu1 %v5093_v21 }
 0x335   :  { %v7167_v1 = vadd.f32 %v2999_v34, %v9031_v19  ;;  %v3001_v32 = vpop.f32.mrb[17].mxu0 }
 0x336   :  { %v3002_v4 = vpop.f32.mrb[18].mxu0  ;;  %v9034_v32 = vld [vmem:[#allocation13_spill] sm:$0xff] }
 0x337   :  { %v7170_v23 = vadd.f32 %v3002_v4, %v9032_v26  ;;  %v3004_v29 = vpop.f32.mrb[19].mxu0 }
 0x338   :  { %v5101_v29 = vpack.c.bf16 %v6960_v5, %v6957_v36 }
 0x339   :  { %v5095_v53 = vpack.c.bf16 %v7170_v23, %v7167_v1 }
 0x33b   :  { %5096 = vmatpush3.bf16.msra.mxu1 %v5095_v53  ;;  %v9035_v53 = vld [vmem:[#allocation14_spill] sm:$0xff] }
 0x33c   :  { %v3007_v13 = vpop.f32.mrb[20].mxu0  ;;  %5098 = vmatprep.subr.bf16.mxu1 %v5097_v52 }
 0x33d   :  { %v7177_v21 = vadd.f32 %v3007_v13, %v9033_v24  ;;  %v3009_v34 = vpop.f32.mrb[21].mxu0 }
 0x33e   :  { %v3010_v19 = vpop.f32.mrb[22].mxu0  ;;  %v9036_v34 = vld [vmem:[#allocation15_spill] sm:$0xff] }
 0x33f   :  { %v7180_v30 = vadd.f32 %v3010_v19, %v9034_v32  ;;  %v3012_v4 = vpop.f32.mrb[23].mxu0 }
 0x340   :  { %v5105_v4 = vpack.c.bf16 %v6972_v38, %v6969_v27 }
 0x341   :  { %v5099_v26 = vpack.c.bf16 %v7180_v30, %v7177_v21 }
 0x343   :  { %5100 = vmatpush3.bf16.msra.mxu1 %v5099_v26  ;;  %v5107_v26 = vpack.c.bf16 %v6856_v31, %v6854_v58 }
 0x344   :  { %v3015_v40 = vpop.f32.mrb[24].mxu0  ;;  %5102 = vmatprep.subr.bf16.mxu1 %v5101_v29  ;;  %v5111_v29 = vpack.c.bf16 %v6984_v42, %v6981_v59 }
 0x345   :  { %v7187_v52 = vadd.f32 %v3015_v40, %v9035_v53  ;;  %v3017_v13 = vpop.f32.mrb[25].mxu0  ;;  %v5109_v40 = vpack.c.bf16 %v7075_v33, %v7072_v8  ;;  %v5113_v53 = vpack.c.bf16 %v7083_v28, %v7080_v16 }
 0x346   :  { %v3018_v24 = vpop.f32.mrb[26].mxu0  ;;  %v9037_v13 = vmov 1.0  }
 0x347   :  { %v7190_v22 = vadd.f32 %v3018_v24, %v9036_v34  ;;  %v3020_v19 = vpop.f32.mrb[27].mxu0  ;;  %v5115_v24 = vpack.c.bf16 %v6996_v35, %v6993_v12  ;;  %v5117_v34 = vpack.c.bf16 %v7091_v41, %v7088_v61 }
 0x348   :  { %v5119_v19 = vpack.c.bf16 %v7008_v50, %v7005_v60 }
 0x349   :  { %v5103_v32 = vpack.c.bf16 %v7190_v22, %v7187_v52 }
 0x34b   :  { %5104 = vmatpush3.bf16.msra.mxu1 %v5103_v32  ;;  %v5121_v32 = vpack.c.bf16 %v7099_v57, %v7096_v63 }
 0x34c   :  { %5106 = vmatprep.subr.bf16.mxu1 %v5105_v4  ;;  %v5123_v4 = vpack.c.bf16 %v7020_v17, %v7017_v18 }
 0x34f   :  { %5108 = vmatpush3.bf16.msra.mxu1 %v5107_v26  ;;  %v5125_v26 = vpack.c.bf16 %v7106_v15, %v7104_v9 }
 0x350   :  { %5110 = vmatprep.subr.bf16.mxu1 %v5109_v40  ;;  %v5127_v40 = vpack.c.bf16 %v7032_v39, %v7029_v56 }
 0x352   :  { %3287 = vmatmul.mubr.f32.vlgmr.msra.gmra.mrb[228].mxu1 %v9037_v13 }
 0x353   :  { %5112 = vmatpush3.bf16.msra.mxu1 %v5111_v29  ;;  %3356 = vmatprep.mubr.f32.mxu1 %v9037_v13  ;;  %v5129_v29 = vpack.c.bf16 %v7112_v48, %v7110_v54 }
 0x354   :  { %5114 = vmatprep.subr.bf16.mxu1 %v5113_v53  ;;  %v5131_v53 = vpack.c.bf16 %v7044_v0, %v7041_v10 }
 0x357   :  { %5116 = vmatpush3.bf16.msra.mxu1 %v5115_v24  ;;  %v5133_v24 = vpack.c.bf16 %v7118_v14, %v7116_v3 }
 0x358   :  { %5118 = vmatprep.subr.bf16.mxu1 %v5117_v34  ;;  %v9038_v34 = vld [vmem:[#allocation40_spill] sm:$0xff] }
 0x35b   :  { %5120 = vmatpush3.bf16.msra.mxu1 %v5119_v19  ;;  %v5135_v19 = vpack.c.bf16 %v9038_v34, %v7053_v55  ;;  %v3363_v55 = vlaneseq }
 0x35c   :  { %5122 = vmatprep.subr.bf16.mxu1 %v5121_v32  ;;  %v5137_v32 = vpack.c.bf16 %v7124_v47, %v7122_v2 }
 0x35d   :  { %v7234_v10 = vshrl.u32 %v3363_v55, 7  ;;  %v9044_v55 = vld [vmem:[#allocation31_spill] sm:$0xff] }
 0x35f   :  { %5124 = vmatpush3.bf16.msra.mxu1 %v5123_v4  ;;  %v9039_v4 = vld [vmem:[#allocation41_spill] sm:$0xff] }
 0x360   :  { %5126 = vmatprep.subr.bf16.mxu1 %v5125_v26  ;;  %v9040_v26 = vld [vmem:[#allocation42_spill] sm:$0xff] }
 0x363   :  { %5128 = vmatpush3.bf16.msra.mxu1 %v5127_v40  ;;  %v5139_v40 = vpack.c.bf16 %v9040_v26, %v9039_v4 }
 0x364   :  { %5130 = vmatprep.subr.bf16.mxu1 %v5129_v29 }
 0x367   :  { %5132 = vmatpush3.bf16.msra.mxu1 %v5131_v53 }
 0x368   :  { %5134 = vmatprep.subr.bf16.mxu1 %v5133_v24 }
 0x36b   :  { %5136 = vmatpush3.bf16.msra.mxu1 %v5135_v19 }
 0x36c   :  { %5138 = vmatprep.subr.bf16.mxu1 %v5137_v32  ;;  %v8911_v32 = vsub.s32 0, %v7234_v10 }
 0x36f   :  { %5140 = vmatpush3.bf16.msra.mxu1 %v5139_v40 }
 0x372   :  { %3357 = vmatmul.mubr.f32.vlgmr.msra.gmra.mrb[230].mxu1 %v9037_v13 }
 0x373   :  { %3559 = vmatprep.mubr.f32.mxu1 %v9037_v13 }
 0x425   :  { %v4969_v29 = vpop.f32.mrb[228].mxu1 }
 0x426   :  { %v4970_v14 = vpop.f32.mrb[229].mxu1 }
 0x427   :  { %v4971_v53 = vadd.f32 %v4970_v14, %v4969_v29 }
 0x445   :  { %v5004_v24 = vpop.f32.mrb[230].mxu1 }
 0x446   :  { %v5005_v3 = vpop.f32.mrb[231].mxu1 }
 0x447   :  { %v5006_v0 = vadd.f32 %v5005_v3, %v5004_v24 }
 0x449   :  { %v3359_v34 = vadd.f32 %v5006_v0, %v4971_v53  ;;  %v9042_v0 = vld [vmem:[#allocation30_spill] sm:$0xff] }
 0x44b   :  { %v3362_v19 = vmul.f32 0.001953125, %v3359_v34 }
 0x44d   :  { %v7239_v40 = vrot.slane %v3362_v19, %v8911_v32 }
 0x44f   :  { %v7243_v26 = vsub.f32 %v7127_v46, %v7239_v40  ;;  %v7247_v14 = vsub.f32 %v7130_v6, %v7239_v40  ;;  %v7251_v3 = vsub.f32 %v9042_v0, %v7239_v40  ;;  %v7255_v34 = vsub.f32 %v9044_v55, %v7239_v40 }
 0x450   :  { %v7259_v29 = vsub.f32 %v6891_v20, %v7239_v40  ;;  %v7263_v46 = vsub.f32 %v6894_v45, %v7239_v40  ;;  %v7275_v20 = vsub.f32 %v7137_v7, %v7239_v40  ;;  %v7279_v45 = vsub.f32 %v7140_v49, %v7239_v40 }
 0x451   :  { %9041 = vst [vmem:[#allocation18_spill] sm:$0xff] %v7247_v14  ;;  %9043 = vst [vmem:[#allocation19_spill] sm:$0xff] %v7251_v3  ;;  %v3431_v6 = vmul.f32 %v7243_v26, %v7243_v26  ;;  %v3432_v53 = vmul.f32 %v7247_v14, %v7247_v14  ;;  %v3447_v24 = vmul.f32 %v7251_v3, %v7251_v3 }
 0x452   :  { %9045 = vst [vmem:[#allocation20_spill] sm:$0xff] %v7255_v34  ;;  %9046 = vst [vmem:[#allocation21_spill] sm:$0xff] %v7259_v29  ;;  %v3448_v19 = vmul.f32 %v7255_v34, %v7255_v34  ;;  %v7283_v0 = vsub.f32 %v6909_v11, %v7239_v40  ;;  %v7287_v55 = vsub.f32 %v6912_v51, %v7239_v40 }
 0x453   :  { %9047 = vst [vmem:[#allocation22_spill] sm:$0xff] %v7263_v46  ;;  %v3449_v32 = vmul.f32 %v7259_v29, %v7259_v29  ;;  %v3450_v34 = vmul.f32 %v7263_v46, %v7263_v46  ;;  %v5143_v3 = vpack.c.bf16 %v3432_v53, %v3431_v6  ;;  %v7295_v49 = vsub.f32 %v7147_v43, %v7239_v40  ;;  %v9051_v6 = vld [vmem:[#allocation32_spill] sm:$0xff] }
 0x454   :  { %9048 = vst [vmem:[#allocation23_spill] sm:$0xff] %v7283_v0  ;;  %9049 = vst [vmem:[#allocation24_spill] sm:$0xff] %v7287_v55  ;;  %v5141_v7 = vpack.c.bf16 %v3448_v19, %v3447_v24  ;;  %v7299_v11 = vsub.f32 %v7150_v25, %v7239_v40  ;;  %v3433_v51 = vmul.f32 %v7275_v20, %v7275_v20 }
 0x455   :  { %v3434_v14 = vmul.f32 %v7279_v45, %v7279_v45  ;;  %v7307_v29 = vsub.f32 %v6921_v37, %v7239_v40  ;;  %v7311_v53 = vsub.f32 %v9051_v6, %v7239_v40  ;;  %v3451_v43 = vmul.f32 %v7283_v0, %v7283_v0  ;;  %v9053_v6 = vld [vmem:[#allocation33_spill] sm:$0xff] }
 0x456   :  { %v3452_v25 = vmul.f32 %v7287_v55, %v7287_v55  ;;  %5142 = vmatprep.subr.bf16.mxu1 %v5141_v7  ;;  %v7319_v24 = vsub.f32 %v7157_v44, %v7239_v40  ;;  %v7323_v37 = vsub.f32 %v7160_v62, %v7239_v40  ;;  %v5145_v19 = vpack.c.bf16 %v3450_v34, %v3449_v32  ;;  %v9054_v55 = vld [vmem:[#allocation34_spill] sm:$0xff] }
 0x457   :  { %9050 = vst [vmem:[#allocation25_spill] sm:$0xff] %v7307_v29  ;;  %9052 = vst [vmem:[#allocation26_spill] sm:$0xff] %v7311_v53  ;;  %5144 = vmatpush3.bf16.msra.mxu1 %v5143_v3  ;;  %v7327_v46 = vsub.f32 %v9053_v6, %v7239_v40  ;;  %v3435_v0 = vmul.f32 %v7295_v49, %v7295_v49  ;;  %v3436_v7 = vmul.f32 %v7299_v11, %v7299_v11 }
 0x458   :  { %v5147_v3 = vpack.c.bf16 %v3434_v14, %v3433_v51  ;;  %v7335_v44 = vsub.f32 %v9054_v55, %v7239_v40  ;;  %v3453_v62 = vmul.f32 %v7307_v29, %v7307_v29  ;;  %v3454_v32 = vmul.f32 %v7311_v53, %v7311_v53  ;;  %5146 = vmatprep.subr.bf16.mxu1 %v5145_v19  ;;  %v9055_v55 = vld [vmem:[#allocation35_spill] sm:$0xff]  ;;  %v9056_v19 = vld [vmem:[#allocation36_spill] sm:$0xff] }
 0x459   :  { %v5149_v34 = vpack.c.bf16 %v3452_v25, %v3451_v43  ;;  %v7343_v6 = vsub.f32 %v7167_v1, %v7239_v40  ;;  %v7347_v14 = vsub.f32 %v7170_v23, %v7239_v40  ;;  %v7351_v51 = vsub.f32 %v9055_v55, %v7239_v40 }
 0x45a   :  { %v3437_v29 = vmul.f32 %v7319_v24, %v7319_v24  ;;  %v3438_v43 = vmul.f32 %v7323_v37, %v7323_v37  ;;  %v5151_v25 = vpack.c.bf16 %v3436_v7, %v3435_v0  ;;  %v7359_v1 = vsub.f32 %v9056_v19, %v7239_v40 }
 0x45b   :  { %5148 = vmatpush3.bf16.msra.mxu1 %v5147_v3  ;;  %v3455_v23 = vmul.f32 %v7327_v46, %v7327_v46  ;;  %v3456_v3 = vmul.f32 %v7335_v44, %v7335_v44  ;;  %v7367_v55 = vsub.f32 %v7177_v21, %v7239_v40  ;;  %v7371_v53 = vsub.f32 %v7180_v30, %v7239_v40 }
 0x45c   :  { %5150 = vmatprep.subr.bf16.mxu1 %v5149_v34  ;;  %v5153_v34 = vpack.c.bf16 %v3454_v32, %v3453_v62  ;;  %v7375_v0 = vsub.f32 %v6957_v36, %v7239_v40  ;;  %v3439_v7 = vmul.f32 %v7343_v6, %v7343_v6  ;;  %v3440_v62 = vmul.f32 %v7347_v14, %v7347_v14 }
 0x45d   :  { %v5155_v32 = vpack.c.bf16 %v3438_v43, %v3437_v29  ;;  %v7383_v21 = vsub.f32 %v6960_v5, %v7239_v40  ;;  %v3457_v30 = vmul.f32 %v7351_v51, %v7351_v51  ;;  %v5157_v19 = vpack.c.bf16 %v3456_v3, %v3455_v23 }
 0x45e   :  { %v7391_v36 = vsub.f32 %v7187_v52, %v7239_v40  ;;  %v7399_v5 = vsub.f32 %v6969_v27, %v7239_v40  ;;  %v3441_v29 = vmul.f32 %v7367_v55, %v7367_v55  ;;  %v3442_v43 = vmul.f32 %v7371_v53, %v7371_v53 }
 0x45f   :  { %5152 = vmatpush3.bf16.msra.mxu1 %v5151_v25  ;;  %v3458_v25 = vmul.f32 %v7359_v1, %v7359_v1  ;;  %v5159_v23 = vpack.c.bf16 %v3440_v62, %v3439_v7  ;;  %v7407_v52 = vsub.f32 %v6972_v38, %v7239_v40  ;;  %v3460_v3 = vmul.f32 %v7383_v21, %v7383_v21 }
 0x460   :  { %5154 = vmatprep.subr.bf16.mxu1 %v5153_v34  ;;  %v7395_v34 = vsub.f32 %v7190_v22, %v7239_v40  ;;  %v3459_v22 = vmul.f32 %v7375_v0, %v7375_v0  ;;  %v7415_v27 = vsub.f32 %v6854_v58, %v7239_v40  ;;  %v7423_v38 = vsub.f32 %v7072_v8, %v7239_v40 }
 0x461   :  { %v3443_v7 = vmul.f32 %v7391_v36, %v7391_v36  ;;  %v7431_v58 = vsub.f32 %v7075_v33, %v7239_v40  ;;  %v7439_v8 = vsub.f32 %v6981_v59, %v7239_v40  ;;  %v7447_v33 = vsub.f32 %v7080_v16, %v7239_v40 }
 0x462   :  { %v3444_v62 = vmul.f32 %v7395_v34, %v7395_v34  ;;  %v7455_v59 = vsub.f32 %v7083_v28, %v7239_v40  ;;  %v7463_v16 = vsub.f32 %v6993_v12, %v7239_v40  ;;  %v7471_v28 = vsub.f32 %v7088_v61, %v7239_v40 }
 0x463   :  { %5156 = vmatpush3.bf16.msra.mxu1 %v5155_v32  ;;  %v5161_v32 = vpack.c.bf16 %v3458_v25, %v3457_v30  ;;  %v5163_v30 = vpack.c.bf16 %v3442_v43, %v3441_v29  ;;  %v3462_v25 = vmul.f32 %v7407_v52, %v7407_v52  ;;  %v3445_v29 = vmul.f32 %v7415_v27, %v7415_v27 }
 0x464   :  { %5158 = vmatprep.subr.bf16.mxu1 %v5157_v19  ;;  %v7419_v19 = vsub.f32 %v6856_v31, %v7239_v40  ;;  %v3461_v31 = vmul.f32 %v7399_v5, %v7399_v5  ;;  %9057 = vst [vmem:[#allocation27_spill] sm:$0xff] %v7471_v28  ;;  %v7479_v12 = vsub.f32 %v7091_v41, %v7239_v40 }
 0x465   :  { %v7487_v61 = vsub.f32 %v7005_v60, %v7239_v40  ;;  %v7495_v41 = vsub.f32 %v7096_v63, %v7239_v40  ;;  %v7503_v60 = vsub.f32 %v7099_v57, %v7239_v40  ;;  %v7517_v57 = vsub.f32 %v7020_v17, %v7239_v40 }
 0x466   :  { %v3446_v43 = vmul.f32 %v7419_v19, %v7419_v19  ;;  %9058 = vst [vmem:[#allocation28_spill] sm:$0xff] %v7479_v12 }
 0x467   :  { %5160 = vmatpush3.bf16.msra.mxu1 %v5159_v23  ;;  %v5165_v23 = vpack.c.bf16 %v3460_v3, %v3459_v22  ;;  %v5167_v22 = vpack.c.bf16 %v3444_v62, %v3443_v7  ;;  %v3480_v3 = vmul.f32 %v7431_v58, %v7431_v58  ;;  %v3463_v7 = vmul.f32 %v7439_v8, %v7439_v8 }
 0x468   :  { %5162 = vmatprep.subr.bf16.mxu1 %v5161_v32  ;;  %v7443_v32 = vsub.f32 %v6984_v42, %v7239_v40  ;;  %v3479_v42 = vmul.f32 %v7423_v38, %v7423_v38  ;;  %9059 = vst [vmem:[#allocation29_spill] sm:$0xff] %v7495_v41  ;;  %9060 = vst [vmem:[#allocation2_spill] sm:$0xff] %v7503_v60  ;;  %v3485_v17 = vmul.f32 %v7495_v41, %v7495_v41 }
 0x46a   :  { %v3464_v62 = vmul.f32 %v7443_v32, %v7443_v32 }
 0x46b   :  { %5164 = vmatpush3.bf16.msra.mxu1 %v5163_v30  ;;  %v5169_v30 = vpack.c.bf16 %v3462_v25, %v3461_v31  ;;  %v5171_v31 = vpack.c.bf16 %v3446_v43, %v3445_v29  ;;  %v3482_v25 = vmul.f32 %v7455_v59, %v7455_v59  ;;  %v3465_v29 = vmul.f32 %v7463_v16, %v7463_v16 }
 0x46c   :  { %5166 = vmatprep.subr.bf16.mxu1 %v5165_v23  ;;  %v7467_v23 = vsub.f32 %v6996_v35, %v7239_v40  ;;  %v3481_v35 = vmul.f32 %v7447_v33, %v7447_v33 }
 0x46e   :  { %v3466_v43 = vmul.f32 %v7467_v23, %v7467_v23  ;;  %v5177_v63 = vpack.c.bf16 %v3482_v25, %v3481_v35 }
 0x46f   :  { %5168 = vmatpush3.bf16.msra.mxu1 %v5167_v22  ;;  %v5173_v22 = vpack.c.bf16 %v3480_v3, %v3479_v42  ;;  %v5175_v42 = vpack.c.bf16 %v3464_v62, %v3463_v7  ;;  %v3484_v3 = vmul.f32 %v7479_v12, %v7479_v12  ;;  %v7521_v7 = vsub.f32 %v7104_v9, %v7239_v40  ;;  %v9072_v12 = vld [vmem:[#allocation40_spill] sm:$0xff] }
 0x470   :  { %5170 = vmatprep.subr.bf16.mxu1 %v5169_v30  ;;  %v7491_v30 = vsub.f32 %v7008_v50, %v7239_v40  ;;  %v3483_v50 = vmul.f32 %v7471_v28, %v7471_v28  ;;  %v3467_v62 = vmul.f32 %v7487_v61, %v7487_v61  ;;  %v5179_v25 = vpack.c.bf16 %v3466_v43, %v3465_v29 }
 0x471   :  { %9061 = vst [vmem:[#allocation3_spill] sm:$0xff] %v7521_v7  ;;  %v7537_v9 = vsub.f32 %v7029_v56, %v7239_v40  ;;  %v3470_v43 = vmul.f32 %v7517_v57, %v7517_v57  ;;  %v7553_v56 = vsub.f32 %v7112_v48, %v7239_v40  ;;  %v9067_v48 = vld [vmem:[#allocation16_spill] sm:$0xff]  ;;  %v7589_v28 = vsub.f32 %v9072_v12, %v7239_v40 }
 0x472   :  { %v3468_v35 = vmul.f32 %v7491_v30, %v7491_v30 }
 0x473   :  { %5172 = vmatpush3.bf16.msra.mxu1 %v5171_v31  ;;  %v7513_v31 = vsub.f32 %v7017_v18, %v7239_v40  ;;  %v7529_v18 = vsub.f32 %v7106_v15, %v7239_v40  ;;  %v7545_v15 = vsub.f32 %v7110_v54, %v7239_v40  ;;  %9064 = vst [vmem:[#allocation6_spill] sm:$0xff] %v7553_v56  ;;  %v9065_v54 = vld [vmem:[#allocation37_spill] sm:$0xff] }
 0x474   :  { %5174 = vmatprep.subr.bf16.mxu1 %v5173_v22  ;;  %v3486_v22 = vmul.f32 %v7503_v60, %v7503_v60  ;;  %v9066_v60 = vld [vmem:[#allocation38_spill] sm:$0xff] }
 0x475   :  { %9062 = vst [vmem:[#allocation4_spill] sm:$0xff] %v7529_v18  ;;  %9063 = vst [vmem:[#allocation5_spill] sm:$0xff] %v7545_v15  ;;  %v3469_v29 = vmul.f32 %v7513_v31, %v7513_v31  ;;  %v7565_v41 = vsub.f32 %v9066_v60, %v7239_v40  ;;  %v3489_v60 = vmul.f32 %v7545_v15, %v7545_v15 }
 0x476   :  { %3560 = vmatmul.mubr.f32.vlgmr.msra.gmra.mrb[232].mxu1 %v9037_v13 }
 0x477   :  { %5176 = vmatpush3.bf16.msra.mxu1 %v5175_v42  ;;  %3629 = vmatprep.mubr.f32.mxu1 %v9037_v13  ;;  %v5181_v42 = vpack.c.bf16 %v3484_v3, %v3483_v50  ;;  %v5183_v50 = vpack.c.bf16 %v3468_v35, %v3467_v62  ;;  %v3488_v3 = vmul.f32 %v7529_v18, %v7529_v18 }
 0x478   :  { %5178 = vmatprep.subr.bf16.mxu1 %v5177_v63  ;;  %v7541_v63 = vsub.f32 %v7032_v39, %v7239_v40  ;;  %v3487_v39 = vmul.f32 %v7521_v7, %v7521_v7  ;;  %v7569_v62 = vsub.f32 %v9067_v48, %v7239_v40  ;;  %v3471_v35 = vmul.f32 %v7537_v9, %v7537_v9  ;;  %v9071_v48 = vld [vmem:[#allocation39_spill] sm:$0xff] }
 0x479   :  { %v7585_v7 = vsub.f32 %v9071_v48, %v7239_v40  ;;  %v9075_v48 = vld [vmem:[#allocation42_spill] sm:$0xff] }
 0x47a   :  { %9068 = vst [vmem:[#allocation7_spill] sm:$0xff] %v7569_v62  ;;  %v5189_v18 = vpack.c.bf16 %v3488_v3, %v3487_v39  ;;  %v3474_v39 = vmul.f32 %v7565_v41, %v7565_v41  ;;  %v3491_v12 = vmul.f32 %v7569_v62, %v7569_v62 }
 0x47b   :  { %5180 = vmatpush3.bf16.msra.mxu1 %v5179_v25  ;;  %v5185_v25 = vpack.c.bf16 %v3486_v22, %v3485_v17  ;;  %v3472_v17 = vmul.f32 %v7541_v63, %v7541_v63  ;;  %v5187_v22 = vpack.c.bf16 %v3470_v43, %v3469_v29  ;;  %v7593_v29 = vsub.f32 %v7122_v2, %v7239_v40 }
 0x47c   :  { %5182 = vmatprep.subr.bf16.mxu1 %v5181_v42  ;;  %v7561_v42 = vsub.f32 %v9065_v54, %v7239_v40  ;;  %v7609_v2 = vsub.f32 %v9039_v4, %v7239_v40 }
 0x47d   :  { %9073 = vst [vmem:[#allocation9_spill] sm:$0xff] %v7593_v29  ;;  %v5191_v3 = vpack.c.bf16 %v3472_v17, %v3471_v35  ;;  %v7613_v35 = vsub.f32 %v9075_v48, %v7239_v40  ;;  %v3476_v17 = vmul.f32 %v7589_v28, %v7589_v28 }
 0x47e   :  { %v3473_v43 = vmul.f32 %v7561_v42, %v7561_v42 }
 0x47f   :  { %5184 = vmatpush3.bf16.msra.mxu1 %v5183_v50  ;;  %v9069_v50 = vld [vmem:[#allocation17_spill] sm:$0xff] }
 0x480   :  { %5186 = vmatprep.subr.bf16.mxu1 %v5185_v25  ;;  %v7577_v54 = vsub.f32 %v9069_v50, %v7239_v40  ;;  %v3490_v25 = vmul.f32 %v7553_v56, %v7553_v56  ;;  %v5195_v62 = vpack.c.bf16 %v3474_v39, %v3473_v43 }
 0x482   :  { %9070 = vst [vmem:[#allocation8_spill] sm:$0xff] %v7577_v54  ;;  %v5193_v50 = vpack.c.bf16 %v3490_v25, %v3489_v60  ;;  %v3493_v60 = vmul.f32 %v7593_v29, %v7593_v29 }
 0x483   :  { %5188 = vmatpush3.bf16.msra.mxu1 %v5187_v22  ;;  %v7601_v22 = vsub.f32 %v7124_v47, %v7239_v40  ;;  %v3475_v47 = vmul.f32 %v7585_v7, %v7585_v7  ;;  %v3477_v40 = vmul.f32 %v7609_v2, %v7609_v2 }
 0x484   :  { %5190 = vmatprep.subr.bf16.mxu1 %v5189_v18  ;;  %v3492_v18 = vmul.f32 %v7577_v54, %v7577_v54 }
 0x485   :  { %9074 = vst [vmem:[#allocation10_spill] sm:$0xff] %v7601_v22  ;;  %v3494_v25 = vmul.f32 %v7601_v22, %v7601_v22 }
 0x486   :  { %v5197_v4 = vpack.c.bf16 %v3492_v18, %v3491_v12 }
 0x487   :  { %5192 = vmatpush3.bf16.msra.mxu1 %v5191_v3  ;;  %v3478_v3 = vmul.f32 %v7613_v35, %v7613_v35  ;;  %v5201_v48 = vpack.c.bf16 %v3494_v25, %v3493_v60  ;;  %v9076_v60 = vsub.s32 0, %v7234_v10 }
 0x488   :  { %5194 = vmatprep.subr.bf16.mxu1 %v5193_v50  ;;  %v5199_v50 = vpack.c.bf16 %v3476_v17, %v3475_v47  ;;  %v3636_v47 = vld [vmem:[%s8891_s2] sm:$0x1] }
 0x489   :  { %v5203_v43 = vpack.c.bf16 %v3478_v3, %v3477_v40  ;;  %v9078_v40 = vld [vmem:[#allocation19_spill] sm:$0xff]  ;;  %v9079_v3 = vld [vmem:[#allocation20_spill] sm:$0xff] }
 0x48b   :  { %5196 = vmatpush3.bf16.msra.mxu1 %v5195_v62 }
 0x48c   :  { %5198 = vmatprep.subr.bf16.mxu1 %v5197_v4 }
 0x48f   :  { %5200 = vmatpush3.bf16.msra.mxu1 %v5199_v50  ;;  %v9080_v50 = vld [vmem:[#allocation21_spill] sm:$0xff] }
 0x490   :  { %5202 = vmatprep.subr.bf16.mxu1 %v5201_v48  ;;  %v9081_v48 = vld [vmem:[#allocation22_spill] sm:$0xff] }
 0x493   :  { %5204 = vmatpush3.bf16.msra.mxu1 %v5203_v43  ;;  %v9082_v43 = vld [vmem:[#allocation23_spill] sm:$0xff] }
 0x496   :  { %3630 = vmatmul.mubr.f32.vlgmr.msra.gmra.mrb[234].mxu1 %v9037_v13 }
 0x549   :  { %v5039_v39 = vpop.f32.mrb[232].mxu1 }
 0x54a   :  { %v5040_v29 = vpop.f32.mrb[233].mxu1 }
 0x54b   :  { %v5041_v22 = vadd.f32 %v5040_v29, %v5039_v39  ;;  %v9077_v29 = vld [vmem:[#allocation18_spill] sm:$0xff]  ;;  %v9083_v39 = vld [vmem:[#allocation24_spill] sm:$0xff] }
 0x569   :  { %v5074_v12 = vpop.f32.mrb[234].mxu1 }
 0x56a   :  { %v5075_v62 = vpop.f32.mrb[235].mxu1 }
 0x56b   :  { %v5076_v18 = vadd.f32 %v5075_v62, %v5074_v12  ;;  %v9084_v62 = vld [vmem:[#allocation25_spill] sm:$0xff] }
 0x56d   :  { %v3632_v4 = vadd.f32 %v5076_v18, %v5041_v22 }
 0x56f   :  { %v3635_v54 = vmul.f32 0.001953125, %v3632_v4  ;;  %v9085_v4 = vld [vmem:[#allocation26_spill] sm:$0xff] }
 0x571   :  { %v3637_v56 = vadd.f32 1e-05, %v3635_v54 }
 0x573   :  { %5573 = vrsqrt.f32 %v3637_v56 }
 0x57d   :  { %v5574_v15 = vpop.eup %5573 }
 0x57e   :  { %v3639_v17 = vmul.f32 %v5574_v15, %v3636_v47 }
 0x580   :  { %v7633_v25 = vrot.slane %v3639_v17, %v9076_v60 }
 0x582   :  { %v7637_v13 = vmul.f32 %v7633_v25, %v7243_v26  ;;  %v7641_v22 = vmul.f32 %v7633_v25, %v9077_v29  ;;  %v7645_v56 = vmul.f32 %v7633_v25, %v7275_v20  ;;  %v7649_v54 = vmul.f32 %v7633_v25, %v7279_v45 }
 0x583   :  { %v7653_v10 = vmul.f32 %v7633_v25, %v7295_v49  ;;  %v7657_v26 = vmul.f32 %v7633_v25, %v7299_v11  ;;  %v7661_v15 = vmul.f32 %v7633_v25, %v7319_v24  ;;  %v7665_v20 = vmul.f32 %v7633_v25, %v7323_v37 }
 0x584   :  { %v7669_v45 = vmul.f32 %v7633_v25, %v7343_v6  ;;  %v7673_v49 = vmul.f32 %v7633_v25, %v7347_v14  ;;  %v7677_v11 = vmul.f32 %v7633_v25, %v7367_v55  ;;  %v7681_v24 = vmul.f32 %v7633_v25, %v7371_v53 }
 0x585   :  { %v7685_v37 = vmul.f32 %v7633_v25, %v7391_v36  ;;  %v7689_v6 = vmul.f32 %v7633_v25, %v7395_v34  ;;  %v7693_v14 = vmul.f32 %v7633_v25, %v7415_v27  ;;  %v7697_v55 = vmul.f32 %v7633_v25, %v7419_v19 }
 0x586   :  { %v7701_v53 = vmul.f32 %v7633_v25, %v9078_v40  ;;  %v7705_v36 = vmul.f32 %v7633_v25, %v9079_v3  ;;  %v7709_v34 = vmul.f32 %v7633_v25, %v9080_v50  ;;  %v7713_v27 = vmul.f32 %v7633_v25, %v9081_v48  ;;  %v9087_v50 = vld [vmem:[#allocation27_spill] sm:$0xff]  ;;  %v9089_v48 = vld [vmem:[#allocation28_spill] sm:$0xff] }
 0x587   :  { %v7717_v19 = vmul.f32 %v7633_v25, %v9082_v43  ;;  %v7721_v12 = vmul.f32 %v7633_v25, %v9083_v39  ;;  %v7725_v18 = vmul.f32 %v7633_v25, %v9084_v62  ;;  %v7729_v47 = vmul.f32 %v7633_v25, %v9085_v4  ;;  %v9091_v43 = vld [vmem:[#allocation29_spill] sm:$0xff]  ;;  %v9093_v39 = vld [vmem:[#allocation2_spill] sm:$0xff]  ;;  %v9095_v62 = vld [vmem:[#allocation3_spill] sm:$0xff] }
 0x588   :  { %v7733_v17 = vmul.f32 %v7633_v25, %v7327_v46  ;;  %v7737_v60 = vmul.f32 %v7633_v25, %v7335_v44  ;;  %v7741_v29 = vmul.f32 %v7633_v25, %v7351_v51  ;;  %v7745_v40 = vmul.f32 %v7633_v25, %v7359_v1 }
 0x589   :  { %v7749_v3 = vmul.f32 %v7633_v25, %v7375_v0  ;;  %v7753_v46 = vmul.f32 %v7633_v25, %v7383_v21  ;;  %v7757_v44 = vmul.f32 %v7633_v25, %v7399_v5  ;;  %v7761_v51 = vmul.f32 %v7633_v25, %v7407_v52 }
 0x58a   :  { %v7765_v1 = vmul.f32 %v7633_v25, %v7439_v8  ;;  %v7769_v0 = vmul.f32 %v7633_v25, %v7443_v32  ;;  %v7773_v21 = vmul.f32 %v7633_v25, %v7463_v16  ;;  %v7777_v5 = vmul.f32 %v7633_v25, %v7467_v23 }
 0x58b   :  { %v7781_v52 = vmul.f32 %v7633_v25, %v7487_v61  ;;  %v7785_v8 = vmul.f32 %v7633_v25, %v7491_v30  ;;  %v7789_v32 = vmul.f32 %v7633_v25, %v7513_v31  ;;  %v7793_v16 = vmul.f32 %v7633_v25, %v7517_v57 }
 0x58c   :  { %v7797_v23 = vmul.f32 %v7633_v25, %v7537_v9  ;;  %v7801_v61 = vmul.f32 %v7633_v25, %v7541_v63  ;;  %v7805_v30 = vmul.f32 %v7633_v25, %v7561_v42  ;;  %v7809_v31 = vmul.f32 %v7633_v25, %v7565_v41 }
 0x58d   :  { %v7813_v57 = vmul.f32 %v7633_v25, %v7585_v7  ;;  %v7817_v9 = vmul.f32 %v7633_v25, %v7589_v28  ;;  %v7821_v63 = vmul.f32 %v7633_v25, %v7609_v2  ;;  %v7825_v42 = vmul.f32 %v7633_v25, %v7613_v35 }
 0x58e   :  { %v7829_v41 = vmul.f32 %v7633_v25, %v7423_v38  ;;  %v7833_v7 = vmul.f32 %v7633_v25, %v7431_v58  ;;  %v7837_v28 = vmul.f32 %v7633_v25, %v7447_v33  ;;  %v7841_v2 = vmul.f32 %v7633_v25, %v7455_v59  ;;  %v7858_v33 = vld [vmem:[%s8892_s3] ss:$0 sm:$0xff] }
 0x58f   :  { %v7845_v35 = vmul.f32 %v7633_v25, %v9087_v50  ;;  %v7849_v38 = vmul.f32 %v7633_v25, %v9089_v48  ;;  %v7853_v58 = vmul.f32 %v7633_v25, %v9091_v43  ;;  %v7862_v59 = vmul.f32 %v7633_v25, %v9093_v39  ;;  %v9097_v50 = vld [vmem:[#allocation4_spill] sm:$0xff] }
 0x590   :  { %9086 = vst [vmem:[#allocation11_spill] sm:$0xff] %v7841_v2  ;;  %v7866_v4 = vmul.f32 %v7633_v25, %v9095_v62  ;;  %v7870_v48 = vmul.f32 %v7633_v25, %v9097_v50  ;;  %v9101_v2 = vld [vmem:[#allocation7_spill] sm:$0xff] }
 0x591   :  { %9088 = vst [vmem:[#allocation12_spill] sm:$0xff] %v7845_v35  ;;  %9090 = vst [vmem:[#allocation13_spill] sm:$0xff] %v7849_v38  ;;  %v9099_v38 = vld [vmem:[#allocation5_spill] sm:$0xff]  ;;  %v7882_v39 = vmul.f32 %v7633_v25, %v9101_v2  ;;  %v7902_v2 = vadd.f32 %v7858_v33, %v7641_v22  ;;  %v7922_v22 = vadd.f32 %v7858_v33, %v7661_v15 }
 0x592   :  { %9092 = vst [vmem:[#allocation14_spill] sm:$0xff] %v7853_v58  ;;  %9094 = vst [vmem:[#allocation15_spill] sm:$0xff] %v7862_v59  ;;  %v7874_v43 = vmul.f32 %v7633_v25, %v9099_v38  ;;  %v9100_v58 = vld [vmem:[#allocation6_spill] sm:$0xff]  ;;  %v9102_v59 = vld [vmem:[#allocation8_spill] sm:$0xff]  ;;  %v7942_v15 = vadd.f32 %v7858_v33, %v7681_v24  ;;  %v7962_v24 = vadd.f32 %v7858_v33, %v7701_v53 }
 0x593   :  { %9096 = vst [vmem:[#allocation41_spill] sm:$0xff] %v7866_v4  ;;  %9098 = vst [vmem:[#allocation30_spill] sm:$0xff] %v7870_v48  ;;  %v7878_v35 = vmul.f32 %v7633_v25, %v9100_v58  ;;  %v7886_v62 = vmul.f32 %v7633_v25, %v9102_v59  ;;  %v9103_v4 = vld [vmem:[#allocation9_spill] sm:$0xff]  ;;  %v9104_v48 = vld [vmem:[#allocation10_spill] sm:$0xff]  ;;  %v7898_v58 = vadd.f32 %v7858_v33, %v7637_v13  ;;  %vm3782_vm1 = vcmp.gt.f32.partialorder %v7902_v2, 0.0 }
 0x594   :  { %v7890_v50 = vmul.f32 %v7633_v25, %v9103_v4  ;;  %v7894_v38 = vmul.f32 %v7633_v25, %v9104_v48  ;;  %v7906_v59 = vadd.f32 %v7858_v33, %v7645_v56  ;;  %v7910_v4 = vadd.f32 %v7858_v33, %v7649_v54 }
 0x595   :  { %v7914_v25 = vadd.f32 %v7858_v33, %v7653_v10  ;;  %v7918_v13 = vadd.f32 %v7858_v33, %v7657_v26  ;;  %v7926_v56 = vadd.f32 %v7858_v33, %v7665_v20  ;;  %v7930_v54 = vadd.f32 %v7858_v33, %v7669_v45 }
 0x596   :  { %v7934_v10 = vadd.f32 %v7858_v33, %v7673_v49  ;;  %v7938_v26 = vadd.f32 %v7858_v33, %v7677_v11  ;;  %v7946_v20 = vadd.f32 %v7858_v33, %v7685_v37  ;;  %v7950_v45 = vadd.f32 %v7858_v33, %v7689_v6 }
 0x597   :  { %v7954_v49 = vadd.f32 %v7858_v33, %v7693_v14  ;;  %v7958_v11 = vadd.f32 %v7858_v33, %v7697_v55  ;;  %v7966_v37 = vadd.f32 %v7858_v33, %v7705_v36  ;;  %v7970_v6 = vadd.f32 %v7858_v33, %v7709_v34  ;;  %v9111_v48 = vld [vmem:[#allocation11_spill] sm:$0xff] }
 0x598   :  { %v7974_v14 = vadd.f32 %v7858_v33, %v7713_v27  ;;  %v7978_v55 = vadd.f32 %v7858_v33, %v7717_v19  ;;  %v7982_v53 = vadd.f32 %v7858_v33, %v7721_v12  ;;  %v7986_v36 = vadd.f32 %v7858_v33, %v7725_v18 }
 0x599   :  { %v7990_v34 = vadd.f32 %v7858_v33, %v7729_v47  ;;  %v7994_v27 = vadd.f32 %v7858_v33, %v7733_v17  ;;  %v7998_v19 = vadd.f32 %v7858_v33, %v7737_v60  ;;  %v8002_v12 = vadd.f32 %v7858_v33, %v7741_v29 }
 0x59a   :  { %v8006_v18 = vadd.f32 %v7858_v33, %v7745_v40  ;;  %v8010_v47 = vadd.f32 %v7858_v33, %v7749_v3  ;;  %v8014_v17 = vadd.f32 %v7858_v33, %v7753_v46  ;;  %v8018_v60 = vadd.f32 %v7858_v33, %v7757_v44 }
 0x59b   :  { %v8022_v29 = vadd.f32 %v7858_v33, %v7761_v51  ;;  %v8026_v40 = vadd.f32 %v7858_v33, %v7765_v1  ;;  %v8030_v3 = vadd.f32 %v7858_v33, %v7769_v0  ;;  %v8034_v46 = vadd.f32 %v7858_v33, %v7773_v21 }
 0x59c   :  { %v8038_v44 = vadd.f32 %v7858_v33, %v7777_v5  ;;  %v8042_v51 = vadd.f32 %v7858_v33, %v7781_v52  ;;  %v8046_v1 = vadd.f32 %v7858_v33, %v7785_v8  ;;  %v8050_v0 = vadd.f32 %v7858_v33, %v7789_v32 }
 0x59d   :  { %v8054_v21 = vadd.f32 %v7858_v33, %v7793_v16  ;;  %v8058_v5 = vadd.f32 %v7858_v33, %v7797_v23  ;;  %v8062_v52 = vadd.f32 %v7858_v33, %v7801_v61  ;;  %v8066_v8 = vadd.f32 %v7858_v33, %v7805_v30 }
 0x59e   :  { %v8070_v32 = vadd.f32 %v7858_v33, %v7809_v31  ;;  %v8074_v16 = vadd.f32 %v7858_v33, %v7813_v57  ;;  %v8078_v23 = vadd.f32 %v7858_v33, %v7817_v9  ;;  %v8082_v61 = vadd.f32 %v7858_v33, %v7821_v63 }
 0x59f   :  { %9105 = vst [vmem:[#allocation31_spill] sm:$0xff] %v8062_v52  ;;  %v8086_v30 = vadd.f32 %v7858_v33, %v7825_v42  ;;  %v8090_v31 = vadd.f32 %v7858_v33, %v7829_v41  ;;  %v8094_v57 = vadd.f32 %v7858_v33, %v7833_v7  ;;  %v8098_v9 = vadd.f32 %v7858_v33, %v7837_v28 }
 0x5a0   :  { %9106 = vst [vmem:[#allocation32_spill] sm:$0xff] %v8082_v61  ;;  %v8102_v63 = vadd.f32 %v7858_v33, %v9111_v48  ;;  %v9113_v61 = vld [vmem:[#allocation12_spill] sm:$0xff]  ;;  %vm3781_vm0 = vcmp.gt.f32.partialorder %v7898_v58, 0.0  ;;  %vm3783_vm2 = vcmp.gt.f32.partialorder %v7906_v59, 0.0  ;;  %vm3784_vm3 = vcmp.gt.f32.partialorder %v7910_v4, 0.0 }
 0x5a1   :  { %9107 = vst [vmem:[#allocation33_spill] sm:$0xff] %v8086_v30  ;;  %9108 = vst [vmem:[#allocation34_spill] sm:$0xff] %v8090_v31  ;;  %v8106_v42 = vadd.f32 %v7858_v33, %v9113_v61  ;;  %v9115_v30 = vld [vmem:[#allocation13_spill] sm:$0xff]  ;;  %v9117_v31 = vld [vmem:[#allocation14_spill] sm:$0xff]  ;;  %vm3785_vm4 = vcmp.gt.f32.partialorder %v7914_v25, 0.0  ;;  %vm3786_vm5 = vcmp.gt.f32.partialorder %v7918_v13, 0.0 }
 0x5a2   :  { %9109 = vst [vmem:[#allocation35_spill] sm:$0xff] %v8094_v57  ;;  %9110 = vst [vmem:[#allocation36_spill] sm:$0xff] %v8098_v9  ;;  %v8110_v41 = vadd.f32 %v7858_v33, %v9115_v30  ;;  %v8114_v7 = vadd.f32 %v7858_v33, %v9117_v31  ;;  %v9119_v57 = vld [vmem:[#allocation15_spill] sm:$0xff]  ;;  %v9121_v9 = vld [vmem:[#allocation41_spill] sm:$0xff]  ;;  %v8130_v30 = vadd.f32 %v7858_v33, %v7874_v43  ;;  %vm3787_vm6 = vcmp.gt.f32.partialorder %v7922_v22, 0.0 }
 0x5a3   :  { %9112 = vst [vmem:[#allocation37_spill] sm:$0xff] %v8102_v63  ;;  %9114 = vst [vmem:[#allocation38_spill] sm:$0xff] %v8106_v42  ;;  %v8118_v28 = vadd.f32 %v7858_v33, %v9119_v57  ;;  %v8122_v48 = vadd.f32 %v7858_v33, %v9121_v9  ;;  %v9123_v63 = vld [vmem:[#allocation30_spill] sm:$0xff]  ;;  %v8134_v31 = vadd.f32 %v7858_v33, %v7878_v35  ;;  %vm3788_vm7 = vcmp.gt.f32.partialorder %v7926_v56, 0.0 }
 0x5a4   :  { %9116 = vst [vmem:[#allocation16_spill] sm:$0xff] %v8110_v41  ;;  %9118 = vst [vmem:[#allocation17_spill] sm:$0xff] %v8114_v7  ;;  %v8126_v61 = vadd.f32 %v7858_v33, %v9123_v63  ;;  %v8138_v57 = vadd.f32 %v7858_v33, %v7882_v39  ;;  %v8142_v9 = vadd.f32 %v7858_v33, %v7886_v62  ;;  %vm3789_vm8 = vcmp.gt.f32.partialorder %v7930_v54, 0.0 }
 0x5a5   :  { %9120 = vst [vmem:[#allocation39_spill] sm:$0xff] %v8118_v28  ;;  %9122 = vst [vmem:[#allocation40_spill] sm:$0xff] %v8122_v48  ;;  %v8155_v35 = vadd.f32 %v7858_v33, %v7890_v50  ;;  %vm3790_vm9 = vcmp.gt.f32.partialorder %v7934_v10, 0.0  ;;  %v3845_v43 = vmul.f32 0.2, %v7898_v58  ;;  %v8163_v63 = vadd.f32 %v7858_v33, %v7894_v38 }
 0x5a6   :  { %9124 = vst [vmem:[#allocation42_spill] sm:$0xff] %v8126_v61  ;;  %9125 = vst [vmem:[#allocation18_spill] sm:$0xff] %v8130_v30  ;;  %v3846_v39 = vmul.f32 0.2, %v7902_v2  ;;  %v3847_v62 = vmul.f32 0.2, %v7906_v59 }
 0x5a7   :  { %9126 = vst [vmem:[#allocation19_spill] sm:$0xff] %v8134_v31  ;;  %9127 = vst [vmem:[#allocation20_spill] sm:$0xff] %v8138_v57  ;;  %vm3791_vm10 = vcmp.gt.f32.partialorder %v7938_v26, 0.0  ;;  %v3849_v57 = vmul.f32 0.2, %v7914_v25  ;;  %vm3792_vm11 = vcmp.gt.f32.partialorder %v7942_v15, 0.0  ;;  %v8176_v33 = vsel %vm3781_vm0, %v7898_v58, %v3845_v43 }
 0x5a8   :  { %9128 = vst [vmem:[#allocation21_spill] sm:$0xff] %v8142_v9  ;;  %9129 = vst [vmem:[#allocation22_spill] sm:$0xff] %v8155_v35  ;;  %v3848_v9 = vmul.f32 0.2, %v7910_v4  ;;  %v3850_v50 = vmul.f32 0.2, %v7918_v13  ;;  %v8187_v48 = vsel %vm3782_vm1, %v7902_v2, %v3846_v39 }
 0x5a9   :  { %9130 = vst [vmem:[#allocation23_spill] sm:$0xff] %v8163_v63  ;;  %v3851_v35 = vmul.f32 0.2, %v7922_v22  ;;  %v3852_v31 = vmul.f32 0.2, %v7926_v56  ;;  %9131 = vst [vmem:[#allocation24_spill] sm:$0xff] %v8176_v33  ;;  %v8202_v33 = vsel %vm3783_vm2, %v7906_v59, %v3847_v62 }
 0x5aa   :  { %v3853_v30 = vmul.f32 0.2, %v7930_v54  ;;  %vm3793_vm12 = vcmp.gt.f32.partialorder %v7946_v20, 0.0  ;;  %v3854_v38 = vmul.f32 0.2, %v7934_v10  ;;  %9132 = vst [vmem:[#allocation25_spill] sm:$0xff] %v8187_v48  ;;  %v8217_v7 = vsel %vm3784_vm3, %v7910_v4, %v3848_v9 }
 0x5ab   :  { %v3855_v63 = vmul.f32 0.2, %v7938_v26  ;;  %v8182_v61 = vmul.f32 0.2, %v7942_v15  ;;  %vm3794_vm13 = vcmp.gt.f32.partialorder %v7950_v45, 0.0  ;;  %9133 = vst [vmem:[#allocation26_spill] sm:$0xff] %v8202_v33 }
 0x5ac   :  { %v8191_v28 = vmul.f32 0.2, %v7946_v20  ;;  %v8194_v58 = vmul.f32 0.2, %v7950_v45  ;;  %v8197_v43 = vmul.f32 0.2, %v7954_v49 }
 0x5ad   :  { %vm3795_vm14 = vcmp.gt.f32.partialorder %v7954_v49, 0.0  ;;  %v8206_v2 = vmul.f32 0.2, %v7958_v11  ;;  %v8209_v39 = vmul.f32 0.2, %v7962_v24  ;;  %9135 = vst [vmem:[#allocation28_spill] sm:$0xff] %v8217_v7 }
 0x5ae   :  { %v8212_v48 = vmul.f32 0.2, %v7966_v37  ;;  %vm3796_vm15 = vcmp.gt.f32.partialorder %v7958_v11, 0.0  ;;  %v8221_v59 = vmul.f32 0.2, %v7970_v6  ;;  %vm3797_vm0 = vcmp.gt.f32.partialorder %v7962_v24, 0.0 }
 0x5af   :  { %v8224_v62 = vmul.f32 0.2, %v7974_v14  ;;  %v8227_v33 = vmul.f32 0.2, %v7978_v55  ;;  %v8236_v4 = vmul.f32 0.2, %v7982_v53 }
 0x5b0   :  { %9134 = vst [vmem:[#allocation27_spill] sm:$0xff] %v8212_v48  ;;  %v8232_v48 = vsel %vm3785_vm4, %v7914_v25, %v3849_v57  ;;  %v8239_v9 = vmul.f32 0.2, %v7986_v36  ;;  %v8242_v7 = vmul.f32 0.2, %v7990_v34  ;;  %vm3798_vm1 = vcmp.gt.f32.partialorder %v7966_v37, 0.0 }
 0x5b1   :  { %9136 = vst [vmem:[#allocation29_spill] sm:$0xff] %v8227_v33  ;;  %9137 = vst [vmem:[#allocation2_spill] sm:$0xff] %v8232_v48  ;;  %v8247_v33 = vsel %vm3786_vm5, %v7918_v13, %v3850_v50  ;;  %v8251_v25 = vmul.f32 0.2, %v7994_v27  ;;  %v8254_v57 = vmul.f32 0.2, %v7998_v19 }
 0x5b2   :  { %9138 = vst [vmem:[#allocation3_spill] sm:$0xff] %v8242_v7  ;;  %9139 = vst [vmem:[#allocation4_spill] sm:$0xff] %v8247_v33  ;;  %v8257_v48 = vmul.f32 0.2, %v8002_v12  ;;  %v8262_v7 = vsel %vm3787_vm6, %v7922_v22, %v3851_v35  ;;  %vm3799_vm2 = vcmp.gt.f32.partialorder %v7970_v6, 0.0  ;;  %vm3800_vm3 = vcmp.gt.f32.partialorder %v7974_v14, 0.0 }
 0x5b3   :  { %9141 = vst [vmem:[#allocation6_spill] sm:$0xff] %v8262_v7  ;;  %v8266_v13 = vmul.f32 0.2, %v8006_v18  ;;  %v8269_v50 = vmul.f32 0.2, %v8010_v47  ;;  %vm3803_vm6 = vcmp.gt.f32.partialorder %v7986_v36, 0.0 }
 0x5b4   :  { %9140 = vst [vmem:[#allocation5_spill] sm:$0xff] %v8257_v48  ;;  %v8272_v33 = vmul.f32 0.2, %v8014_v17  ;;  %v8277_v48 = vsel %vm3788_vm7, %v7926_v56, %v3852_v31  ;;  %v8283_v22 = vmul.f32 0.2, %v8018_v60  ;;  %v8294_v56 = vsel %vm3789_vm8, %v7930_v54, %v3853_v30 }
 0x5b5   :  { %9142 = vst [vmem:[#allocation7_spill] sm:$0xff] %v8277_v48  ;;  %v8286_v35 = vmul.f32 0.2, %v8022_v29  ;;  %v8289_v7 = vmul.f32 0.2, %v8026_v40  ;;  %9144 = vst [vmem:[#allocation9_spill] sm:$0xff] %v8294_v56  ;;  %v8312_v54 = vsel %vm3790_vm9, %v7934_v10, %v3854_v38  ;;  %v8330_v10 = vsel %vm3791_vm10, %v7938_v26, %v3855_v63 }
 0x5b6   :  { %v8301_v31 = vmul.f32 0.2, %v8030_v3  ;;  %v8304_v48 = vmul.f32 0.2, %v8034_v46  ;;  %9146 = vst [vmem:[#allocation11_spill] sm:$0xff] %v8312_v54  ;;  %vm3807_vm8 = vcmp.gt.f32.partialorder %v8002_v12, 0.0  ;;  %v8349_v26 = vsel %vm3792_vm11, %v7942_v15, %v8182_v61 }
 0x5b7   :  { %9143 = vst [vmem:[#allocation8_spill] sm:$0xff] %v8289_v7  ;;  %v8307_v7 = vmul.f32 0.2, %v8038_v44  ;;  %v8319_v30 = vmul.f32 0.2, %v8042_v51  ;;  %9148 = vst [vmem:[#allocation13_spill] sm:$0xff] %v8330_v10  ;;  %v8368_v15 = vsel %vm3793_vm12, %v7946_v20, %v8191_v28  ;;  %v8387_v20 = vsel %vm3794_vm13, %v7950_v45, %v8194_v58 }
 0x5b8   :  { %v8322_v56 = vmul.f32 0.2, %v8046_v1  ;;  %vm3811_vm9 = vcmp.gt.f32.partialorder %v8018_v60, 0.0  ;;  %v8337_v38 = vmul.f32 0.2, %v8054_v21  ;;  %9150 = vst [vmem:[#allocation15_spill] sm:$0xff] %v8349_v26  ;;  %v8406_v45 = vsel %vm3795_vm14, %v7954_v49, %v8197_v43 }
 0x5b9   :  { %9145 = vst [vmem:[#allocation10_spill] sm:$0xff] %v8307_v7  ;;  %v8325_v7 = vmul.f32 0.2, %v8050_v0  ;;  %v8340_v54 = vmul.f32 0.2, %v8058_v5  ;;  %vm3815_vm10 = vcmp.gt.f32.partialorder %v8034_v46, 0.0  ;;  %v8425_v49 = vsel %vm3796_vm15, %v7958_v11, %v8206_v2 }
 0x5ba   :  { %v8356_v63 = vmul.f32 0.2, %v8066_v8  ;;  %v8359_v10 = vmul.f32 0.2, %v8070_v32  ;;  %9154 = vst [vmem:[#allocation44_spill] sm:$0xff] %v8368_v15  ;;  %vm3819_vm11 = vcmp.gt.f32.partialorder %v8050_v0, 0.0  ;;  %v8438_v11 = vsel %vm3797_vm0, %v7962_v24, %v8209_v39 }
 0x5bb   :  { %9147 = vst [vmem:[#allocation12_spill] sm:$0xff] %v8325_v7  ;;  %v8343_v7 = vmul.f32 0.2, %v8062_v52  ;;  %v8375_v61 = vmul.f32 0.2, %v8078_v23  ;;  %v9156_v26 = vld [vmem:[#allocation32_spill] sm:$0xff] }
 0x5bc   :  { %9151 = vst [vmem:[#allocation41_spill] sm:$0xff] %v8356_v63  ;;  %9152 = vst [vmem:[#allocation30_spill] sm:$0xff] %v8359_v10  ;;  %v8378_v10 = vmul.f32 0.2, %v9156_v26  ;;  %vm3823_vm12 = vcmp.gt.f32.partialorder %v8066_v8, 0.0  ;;  %v9161_v28 = vld [vmem:[#allocation34_spill] sm:$0xff] }
 0x5bd   :  { %9149 = vst [vmem:[#allocation14_spill] sm:$0xff] %v8343_v7  ;;  %v8362_v7 = vmul.f32 0.2, %v8074_v16  ;;  %9155 = vst [vmem:[#allocation45_spill] sm:$0xff] %v8375_v61  ;;  %v8394_v15 = vmul.f32 0.2, %v9161_v28 }
 0x5be   :  { %9157 = vst [vmem:[#allocation32_spill] sm:$0xff] %v8378_v10  ;;  %9160 = vst [vmem:[#allocation46_spill] sm:$0xff] %v8387_v20  ;;  %v9162_v10 = vld [vmem:[#allocation35_spill] sm:$0xff]  ;;  %vm3827_vm13 = vcmp.gt.f32.partialorder %v9156_v26, 0.0  ;;  %v9167_v58 = vld [vmem:[#allocation37_spill] sm:$0xff]  ;;  %vm9186_vm7 = vcmp.gt.f32.partialorder %v7978_v55, 0.0 }
 0x5bf   :  { %9153 = vst [vmem:[#allocation43_spill] sm:$0xff] %v8362_v7  ;;  %v9158_v7 = vld [vmem:[#allocation33_spill] sm:$0xff]  ;;  %v8397_v61 = vmul.f32 0.2, %v9162_v10  ;;  %9166 = vst [vmem:[#allocation49_spill] sm:$0xff] %v8406_v45  ;;  %v9174_v10 = vld [vmem:[#allocation40_spill] sm:$0xff] }
 0x5c0   :  { %v8381_v63 = vmul.f32 0.2, %v9158_v7  ;;  %v8413_v20 = vmul.f32 0.2, %v9167_v58  ;;  %9171 = vst [vmem:[#allocation53_spill] sm:$0xff] %v8425_v49  ;;  %v9172_v43 = vld [vmem:[#allocation17_spill] sm:$0xff] }
 0x5c1   :  { %9163 = vst [vmem:[#allocation47_spill] sm:$0xff] %v8397_v61  ;;  %v8416_v61 = vmul.f32 0.2, %v8106_v42  ;;  %v3899_v45 = vmul.f32 0.2, %v9172_v43  ;;  %9175 = vst [vmem:[#allocation54_spill] sm:$0xff] %v8438_v11 }
 0x5c2   :  { %9159 = vst [vmem:[#allocation33_spill] sm:$0xff] %v8381_v63  ;;  %v9164_v63 = vld [vmem:[#allocation36_spill] sm:$0xff]  ;;  %9168 = vst [vmem:[#allocation50_spill] sm:$0xff] %v8413_v20  ;;  %vm3835_vm15 = vcmp.gt.f32.partialorder %v9172_v43, 0.0  ;;  %v9176_v2 = vld [vmem:[#allocation42_spill] sm:$0xff] }
 0x5c3   :  { %v8400_v52 = vmul.f32 0.2, %v9164_v63  ;;  %9169 = vst [vmem:[#allocation51_spill] sm:$0xff] %v8416_v61  ;;  %vm3831_vm14 = vcmp.gt.f32.partialorder %v9164_v63, 0.0  ;;  %v9173_v61 = vld [vmem:[#allocation39_spill] sm:$0xff]  ;;  %v9181_v39 = vld [vmem:[#allocation20_spill] sm:$0xff] }
 0x5c4   :  { %v3900_v20 = vmul.f32 0.2, %v9173_v61  ;;  %v3902_v49 = vmul.f32 0.2, %v9176_v2  ;;  %v9178_v58 = vld [vmem:[#allocation19_spill] sm:$0xff]  ;;  %vm3841_vm4 = vcmp.gt.f32.partialorder %v9181_v39, 0.0 }
 0x5c5   :  { %9165 = vst [vmem:[#allocation48_spill] sm:$0xff] %v8400_v52  ;;  %v8419_v52 = vmul.f32 0.2, %v8110_v41  ;;  %v9177_v41 = vld [vmem:[#allocation18_spill] sm:$0xff]  ;;  %v3904_v63 = vmul.f32 0.2, %v9178_v58 }
 0x5c6   :  { %v3903_v42 = vmul.f32 0.2, %v9177_v41  ;;  %v9179_v28 = vld [vmem:[#allocation27_spill] sm:$0xff]  ;;  %vm3839_vm0 = vcmp.gt.f32.partialorder %v9177_v41, 0.0  ;;  %v9182_v11 = vld [vmem:[#allocation21_spill] sm:$0xff]  ;;  %v9183_v61 = vld [vmem:[#allocation22_spill] sm:$0xff] }
 0x5c7   :  { %9170 = vst [vmem:[#allocation52_spill] sm:$0xff] %v8419_v52  ;;  %v3901_v52 = vmul.f32 0.2, %v9174_v10  ;;  %v8451_v24 = vsel %vm3798_vm1, %v7966_v37, %v9179_v28  ;;  %v3905_v2 = vmul.f32 0.2, %v9181_v39  ;;  %v8464_v37 = vsel %vm3799_vm2, %v7970_v6, %v8221_v59  ;;  %v9184_v28 = vld [vmem:[#allocation23_spill] sm:$0xff] }
 0x5c8   :  { %9180 = vst [vmem:[#allocation18_spill] sm:$0xff] %v8451_v24  ;;  %v3906_v10 = vmul.f32 0.2, %v9182_v11  ;;  %v3907_v43 = vmul.f32 0.2, %v9183_v61  ;;  %vm3843_vm1 = vcmp.gt.f32.partialorder %v9183_v61, 0.0  ;;  %v8473_v39 = vsel %vm3800_vm3, %v7974_v14, %v8224_v62 }
 0x5c9   :  { %vm3844_vm5 = vcmp.gt.f32.partialorder %v9184_v28, 0.0  ;;  %v3908_v24 = vmul.f32 0.2, %v9184_v28  ;;  %v9185_v11 = vld [vmem:[#allocation29_spill] sm:$0xff]  ;;  %vm9187_vm2 = vcmp.gt.f32.partialorder %v7982_v53, 0.0  ;;  %v8491_v59 = vsel %vm3803_vm6, %v7986_v36, %v8239_v9  ;;  %v9188_v14 = vld [vmem:[#allocation3_spill] sm:$0xff] }
 0x5ca   :  { %v8479_v58 = vsel %vm9186_vm7, %v7978_v55, %v9185_v11  ;;  %v8485_v6 = vsel %vm9187_vm2, %v7982_v53, %v8236_v4  ;;  %vm9189_vm3 = vcmp.gt.f32.partialorder %v7990_v34, 0.0  ;;  %vm9190_vm7 = vcmp.gt.f32.partialorder %v7994_v27, 0.0  ;;  %v9192_v36 = vld [vmem:[#allocation5_spill] sm:$0xff] }
 0x5cb   :  { %v8497_v62 = vsel %vm9189_vm3, %v7990_v34, %v9188_v14  ;;  %v8503_v55 = vsel %vm9190_vm7, %v7994_v27, %v8251_v25  ;;  %vm9191_vm2 = vcmp.gt.f32.partialorder %v7998_v19, 0.0  ;;  %v8515_v4 = vsel %vm3807_vm8, %v8002_v12, %v9192_v36  ;;  %v9208_v25 = vld [vmem:[#allocation31_spill] sm:$0xff]  ;;  %v9226_v14 = vld [vmem:[#allocation36_spill] sm:$0xff] }
 0x5cc   :  { %v8509_v53 = vsel %vm9191_vm2, %v7998_v19, %v8254_v57  ;;  %vm9193_vm6 = vcmp.gt.f32.partialorder %v8006_v18, 0.0  ;;  %vm9194_vm3 = vcmp.gt.f32.partialorder %v8010_v47, 0.0  ;;  %vm9195_vm7 = vcmp.gt.f32.partialorder %v8014_v17, 0.0 }
 0x5cd   :  { %v8521_v34 = vsel %vm9193_vm6, %v8006_v18, %v8266_v13  ;;  %v8527_v27 = vsel %vm9194_vm3, %v8010_v47, %v8269_v50  ;;  %v8533_v19 = vsel %vm9195_vm7, %v8014_v17, %v8272_v33  ;;  %v8539_v12 = vsel %vm3811_vm9, %v8018_v60, %v8283_v22  ;;  %v9197_v47 = vld [vmem:[#allocation8_spill] sm:$0xff] }
 0x5ce   :  { %vm9196_vm8 = vcmp.gt.f32.partialorder %v8022_v29, 0.0  ;;  %vm9198_vm2 = vcmp.gt.f32.partialorder %v8026_v40, 0.0  ;;  %vm9199_vm6 = vcmp.gt.f32.partialorder %v8030_v3, 0.0  ;;  %v8563_v60 = vsel %vm3815_vm10, %v8034_v46, %v8304_v48  ;;  %v9204_v46 = vld [vmem:[#allocation12_spill] sm:$0xff] }
 0x5cf   :  { %v8545_v18 = vsel %vm9196_vm8, %v8022_v29, %v8286_v35  ;;  %v8551_v9 = vsel %vm9198_vm2, %v8026_v40, %v9197_v47  ;;  %v8557_v17 = vsel %vm9199_vm6, %v8030_v3, %v8301_v31  ;;  %v9200_v29 = vld [vmem:[#allocation10_spill] sm:$0xff]  ;;  %vm9201_vm9 = vcmp.gt.f32.partialorder %v8038_v44, 0.0  ;;  %v9215_v35 = vld [vmem:[#allocation45_spill] sm:$0xff] }
 0x5d0   :  { %v8569_v33 = vsel %vm9201_vm9, %v8038_v44, %v9200_v29  ;;  %vm9202_vm3 = vcmp.gt.f32.partialorder %v8042_v51, 0.0  ;;  %vm9203_vm7 = vcmp.gt.f32.partialorder %v8046_v1, 0.0  ;;  %v8587_v48 = vsel %vm3819_vm11, %v8050_v0, %v9204_v46  ;;  %v9210_v0 = vld [vmem:[#allocation41_spill] sm:$0xff]  ;;  %v9231_v46 = vld [vmem:[#allocation38_spill] sm:$0xff] }
 0x5d1   :  { %v8575_v40 = vsel %vm9202_vm3, %v8042_v51, %v8319_v30  ;;  %v8581_v3 = vsel %vm9203_vm7, %v8046_v1, %v8322_v56  ;;  %vm9205_vm10 = vcmp.gt.f32.partialorder %v8054_v21, 0.0  ;;  %vm9206_vm8 = vcmp.gt.f32.partialorder %v8058_v5, 0.0  ;;  %v9207_v1 = vld [vmem:[#allocation14_spill] sm:$0xff]  ;;  %v9228_v47 = vld [vmem:[#allocation37_spill] sm:$0xff] }
 0x5d2   :  { %v8593_v44 = vsel %vm9205_vm10, %v8054_v21, %v8337_v38  ;;  %v8599_v51 = vsel %vm9206_vm8, %v8058_v5, %v8340_v54  ;;  %vm9209_vm2 = vcmp.gt.f32.partialorder %v9208_v25, 0.0  ;;  %v8611_v13 = vsel %vm3823_vm12, %v8066_v8, %v9210_v0  ;;  %v9211_v21 = vld [vmem:[#allocation30_spill] sm:$0xff]  ;;  %v9213_v5 = vld [vmem:[#allocation43_spill] sm:$0xff]  ;;  %v9217_v8 = vld [vmem:[#allocation32_spill] sm:$0xff] }
 0x5d3   :  { %v8605_v57 = vsel %vm9209_vm2, %v9208_v25, %v9207_v1  ;;  %vm9212_vm11 = vcmp.gt.f32.partialorder %v8070_v32, 0.0  ;;  %vm9214_vm6 = vcmp.gt.f32.partialorder %v8074_v16, 0.0  ;;  %vm9216_vm9 = vcmp.gt.f32.partialorder %v8078_v23, 0.0  ;;  %v9223_v38 = vld [vmem:[#allocation35_spill] sm:$0xff]  ;;  %v9233_v25 = vld [vmem:[#allocation52_spill] sm:$0xff] }
 0x5d4   :  { %v8617_v50 = vsel %vm9212_vm11, %v8070_v32, %v9211_v21  ;;  %v8623_v22 = vsel %vm9214_vm6, %v8074_v16, %v9213_v5  ;;  %v8629_v56 = vsel %vm9216_vm9, %v8078_v23, %v9215_v35  ;;  %v8635_v31 = vsel %vm3827_vm13, %v9156_v26, %v9217_v8  ;;  %v9218_v32 = vld [vmem:[#allocation33_spill] sm:$0xff]  ;;  %v9220_v16 = vld [vmem:[#allocation34_spill] sm:$0xff]  ;;  %v9222_v23 = vld [vmem:[#allocation47_spill] sm:$0xff] }
 0x5d5   :  { %vm9219_vm12 = vcmp.gt.f32.partialorder %v9158_v7, 0.0  ;;  %vm9221_vm3 = vcmp.gt.f32.partialorder %v9220_v16, 0.0  ;;  %vm9224_vm7 = vcmp.gt.f32.partialorder %v9223_v38, 0.0  ;;  %v9225_v26 = vld [vmem:[#allocation48_spill] sm:$0xff]  ;;  %vm9229_vm13 = vcmp.gt.f32.partialorder %v9228_v47, 0.0  ;;  %v9236_v5 = vld [vmem:[#allocation17_spill] sm:$0xff] }
 0x5d6   :  { %v8641_v54 = vsel %vm9219_vm12, %v9158_v7, %v9218_v32  ;;  %v8647_v30 = vsel %vm9221_vm3, %v9220_v16, %v8394_v15  ;;  %v8653_v11 = vsel %vm9224_vm7, %v9223_v38, %v9222_v23  ;;  %v8659_v36 = vsel %vm3831_vm14, %v9226_v14, %v9225_v26  ;;  %v9227_v7 = vld [vmem:[#allocation50_spill] sm:$0xff]  ;;  %v9230_v15 = vld [vmem:[#allocation51_spill] sm:$0xff]  ;;  %v9234_v0 = vld [vmem:[#allocation16_spill] sm:$0xff] }
 0x5d7   :  { %v8665_v29 = vsel %vm9229_vm13, %v9228_v47, %v9227_v7  ;;  %vm9232_vm10 = vcmp.gt.f32.partialorder %v9231_v46, 0.0  ;;  %vm9235_vm8 = vcmp.gt.f32.partialorder %v9234_v0, 0.0  ;;  %v8682_v35 = vsel %vm3835_vm15, %v9236_v5, %v3899_v45  ;;  %v9237_v8 = vld [vmem:[#allocation39_spill] sm:$0xff]  ;;  %v9239_v16 = vld [vmem:[#allocation40_spill] sm:$0xff]  ;;  %v9241_v38 = vld [vmem:[#allocation42_spill] sm:$0xff] }
 0x5d8   :  { %v8671_v1 = vsel %vm9232_vm10, %v9231_v46, %v9230_v15  ;;  %v8677_v21 = vsel %vm9235_vm8, %v9234_v0, %v9233_v25  ;;  %vm9238_vm14 = vcmp.gt.f32.partialorder %v9237_v8, 0.0  ;;  %vm9240_vm2 = vcmp.gt.f32.partialorder %v9239_v16, 0.0  ;;  %v9243_v14 = vld [vmem:[#allocation19_spill] sm:$0xff]  ;;  %v9245_v7 = vld [vmem:[#allocation20_spill] sm:$0xff]  ;;  %v9246_v47 = vld [vmem:[#allocation21_spill] sm:$0xff] }
 0x5d9   :  { %v8687_v32 = vsel %vm9238_vm14, %v9237_v8, %v3900_v20  ;;  %v8692_v23 = vsel %vm9240_vm2, %v9239_v16, %v3901_v52  ;;  %vm9242_vm11 = vcmp.gt.f32.partialorder %v9241_v38, 0.0  ;;  %v8702_v45 = vsel %vm3839_vm0, %v9177_v41, %v3903_v42  ;;  %v9251_v15 = vld [vmem:[#allocation25_spill] sm:$0xff]  ;;  %v9253_v25 = vld [vmem:[#allocation28_spill] sm:$0xff]  ;;  %v9254_v5 = vld [vmem:[#allocation2_spill] sm:$0xff] }
 0x5da   :  { %v8697_v26 = vsel %vm9242_vm11, %v9241_v38, %v3902_v49  ;;  %vm9244_vm15 = vcmp.gt.f32.partialorder %v9243_v14, 0.0  ;;  %v8712_v52 = vsel %vm3841_vm4, %v9245_v7, %v3905_v2  ;;  %vm9247_vm6 = vcmp.gt.f32.partialorder %v9246_v47, 0.0  ;;  %v9252_v2 = vld [vmem:[#allocation26_spill] sm:$0xff]  ;;  %v9255_v8 = vld [vmem:[#allocation4_spill] sm:$0xff]  ;;  %v9257_v38 = vld [vmem:[#allocation7_spill] sm:$0xff] }
 0x5db   :  { %v8707_v20 = vsel %vm9244_vm15, %v9243_v14, %v3904_v63  ;;  %v8717_v49 = vsel %vm9247_vm6, %v9246_v47, %v3906_v10  ;;  %v8722_v42 = vsel %vm3843_vm1, %v9183_v61, %v3907_v43  ;;  %v8727_v41 = vsel %vm3844_vm5, %v9184_v28, %v3908_v24  ;;  %v9250_v63 = vld [vmem:[#allocation24_spill] sm:$0xff]  ;;  %v9256_v16 = vld [vmem:[#allocation6_spill] sm:$0xff]  ;;  %v9258_v7 = vld [vmem:[#allocation9_spill] sm:$0xff] }
 0x5dc   :  { %9248 = vst [vmem:[#allocation27_spill] sm:$0xff] %v8717_v49  ;;  %9249 = vst [vmem:[#allocation22_spill] sm:$0xff] %v8722_v42  ;;  %v4749_v46 = vpack.c.bf16 %v9251_v15, %v9250_v63  ;;  %v4754_v0 = vpack.c.bf16 %v9253_v25, %v9252_v2  ;;  %v4759_v10 = vpack.c.bf16 %v9255_v8, %v9254_v5  ;;  %v9259_v61 = vld [vmem:[#allocation11_spill] sm:$0xff]  ;;  %v9260_v47 = vld [vmem:[#allocation13_spill] sm:$0xff] }
 0x5dd   :  { %v4764_v14 = vpack.c.bf16 %v9257_v38, %v9256_v16  ;;  %v4769_v43 = vpack.c.bf16 %v9259_v61, %v9258_v7  ;;  %v9261_v42 = vld [vmem:[#allocation15_spill] sm:$0xff]  ;;  %v9262_v24 = vld [vmem:[#allocation44_spill] sm:$0xff]  ;;  %v9263_v28 = vld [vmem:[#allocation46_spill] sm:$0xff] }
 0x5de   :  { %v4774_v49 = vpack.c.bf16 %v9261_v42, %v9260_v47  ;;  %4750 = vst [vmem:[%s8893_s4] sm:$0xff] %v4749_v46   ;;  %4906 = vst [vmem:[%s8893_s4 + $0x8] sm:$0xff] %v4754_v0   ;;  %v4779_v63 = vpack.c.bf16 %v9263_v28, %v9262_v24  ;;  %v9264_v15 = vld [vmem:[#allocation49_spill] sm:$0xff]  ;;  %v9266_v5 = vld [vmem:[#allocation54_spill] sm:$0xff]  ;;  %v4794_v42 = vpack.c.bf16 %v8473_v39, %v8464_v37 }
 0x5df   :  { %v9265_v2 = vld [vmem:[#allocation53_spill] sm:$0xff]  ;;  %v9267_v8 = vld [vmem:[#allocation18_spill] sm:$0xff]  ;;  %4907 = vst [vmem:[%s8893_s4 + $0x10] sm:$0xff] %v4759_v10   ;;  %4908 = vst [vmem:[%s8893_s4 + $0x18] sm:$0xff] %v4764_v14   ;;  %v4799_v46 = vpack.c.bf16 %v8485_v6, %v8479_v58  ;;  %v4804_v39 = vpack.c.bf16 %v8497_v62, %v8491_v59  ;;  %v4809_v37 = vpack.c.bf16 %v8509_v53, %v8503_v55 }
 0x5e0   :  { %v4784_v25 = vpack.c.bf16 %v9265_v2, %v9264_v15  ;;  %v4789_v16 = vpack.c.bf16 %v9267_v8, %v9266_v5  ;;  %4909 = vst [vmem:[%s8893_s4 + $0x20] sm:$0xff] %v4769_v43   ;;  %4910 = vst [vmem:[%s8893_s4 + $0x28] sm:$0xff] %v4774_v49   ;;  %v4814_v0 = vpack.c.bf16 %v8521_v34, %v8515_v4 }
 0x5e1   :  { %4911 = vst [vmem:[%s8893_s4 + $0x30] sm:$0xff] %v4779_v63   ;;  %4914 = vst [vmem:[%s8893_s4 + $0x48] sm:$0xff] %v4794_v42   ;;  %v4819_v58 = vpack.c.bf16 %v8533_v19, %v8527_v27  ;;  %v4824_v6 = vpack.c.bf16 %v8545_v18, %v8539_v12  ;;  %v4829_v59 = vpack.c.bf16 %v8557_v17, %v8551_v9 }
 0x5e2   :  { %4912 = vst [vmem:[%s8893_s4 + $0x38] sm:$0xff] %v4784_v25   ;;  %4913 = vst [vmem:[%s8893_s4 + $0x40] sm:$0xff] %v4789_v16   ;;  %v4834_v62 = vpack.c.bf16 %v8569_v33, %v8563_v60  ;;  %v4839_v55 = vpack.c.bf16 %v8581_v3, %v8575_v40  ;;  %v4844_v53 = vpack.c.bf16 %v8593_v44, %v8587_v48 }
 0x5e3   :  { %4915 = vst [vmem:[%s8893_s4 + $0x50] sm:$0xff] %v4799_v46   ;;  %4916 = vst [vmem:[%s8893_s4 + $0x58] sm:$0xff] %v4804_v39   ;;  %v4849_v4 = vpack.c.bf16 %v8605_v57, %v8599_v51  ;;  %v4854_v34 = vpack.c.bf16 %v8617_v50, %v8611_v13  ;;  %v4859_v27 = vpack.c.bf16 %v8629_v56, %v8623_v22  ;;  %v9268_v40 = vld [vmem:[#allocation27_spill] sm:$0xff]  ;;  %v9269_v48 = vld [vmem:[#allocation22_spill] sm:$0xff] }
 0x5e4   :  { %4917 = vst [vmem:[%s8893_s4 + $0x60] sm:$0xff] %v4809_v37   ;;  %4918 = vst [vmem:[%s8893_s4 + $0x68] sm:$0xff] %v4814_v0   ;;  %v4864_v19 = vpack.c.bf16 %v8641_v54, %v8635_v31  ;;  %v4869_v12 = vpack.c.bf16 %v8653_v11, %v8647_v30  ;;  %v4874_v18 = vpack.c.bf16 %v8665_v29, %v8659_v36 }
 0x5e5   :  { %4919 = vst [vmem:[%s8893_s4 + $0x70] sm:$0xff] %v4819_v58   ;;  %4920 = vst [vmem:[%s8893_s4 + $0x78] sm:$0xff] %v4824_v6   ;;  %v4879_v9 = vpack.c.bf16 %v8677_v21, %v8671_v1  ;;  %v4884_v17 = vpack.c.bf16 %v8687_v32, %v8682_v35  ;;  %v4889_v60 = vpack.c.bf16 %v8697_v26, %v8692_v23 }
 0x5e6   :  { %4921 = vst [vmem:[%s8893_s4 + $0x80] sm:$0xff] %v4829_v59   ;;  %4922 = vst [vmem:[%s8893_s4 + $0x88] sm:$0xff] %v4834_v62   ;;  %v4894_v33 = vpack.c.bf16 %v8707_v20, %v8702_v45  ;;  %v4899_v3 = vpack.c.bf16 %v9268_v40, %v8712_v52  ;;  %v4904_v44 = vpack.c.bf16 %v8727_v41, %v9269_v48 }
 0x5e7   :  { %4923 = vst [vmem:[%s8893_s4 + $0x90] sm:$0xff] %v4839_v55   ;;  %4924 = vst [vmem:[%s8893_s4 + $0x98] sm:$0xff] %v4844_v53  }
 0x5e8   :  { %4925 = vst [vmem:[%s8893_s4 + $0xa0] sm:$0xff] %v4849_v4   ;;  %4926 = vst [vmem:[%s8893_s4 + $0xa8] sm:$0xff] %v4854_v34  }
 0x5e9   :  { %4927 = vst [vmem:[%s8893_s4 + $0xb0] sm:$0xff] %v4859_v27   ;;  %4928 = vst [vmem:[%s8893_s4 + $0xb8] sm:$0xff] %v4864_v19  }
 0x5ea   :  { %4929 = vst [vmem:[%s8893_s4 + $0xc0] sm:$0xff] %v4869_v12   ;;  %4930 = vst [vmem:[%s8893_s4 + $0xc8] sm:$0xff] %v4874_v18  }
 0x5eb   :  { %4931 = vst [vmem:[%s8893_s4 + $0xd0] sm:$0xff] %v4879_v9   ;;  %4932 = vst [vmem:[%s8893_s4 + $0xd8] sm:$0xff] %v4884_v17  }
 0x5ec   :  { %4933 = vst [vmem:[%s8893_s4 + $0xe0] sm:$0xff] %v4889_v60   ;;  %4934 = vst [vmem:[%s8893_s4 + $0xe8] sm:$0xff] %v4894_v33  }
 0x5ed   :  { %4935 = vst [vmem:[%s8893_s4 + $0xf0] sm:$0xff] %v4899_v3   ;;  %4936 = vst [vmem:[%s8893_s4 + $0xf8] sm:$0xff] %v4904_v44  }

// kernel: discriminator_forward.6
= control target key start
LH: loop header
LB: loop body
LE: loop exit
PB: predicated region body
PF: predicated region fallthrough
CT: control target
= control target key end

     0   :  { %s5611_s15 = smov 0   ;;  %s5613_s16 = smov 0   ;;  %s7029_s0 = inlined_call_operand.vmem [shape: bf16[128,2048], index: 0, kind: input, shape index: {}]   ;;  %s7030_s1 = inlined_call_operand.vmem [shape: bf16[2048,256], index: 1, kind: input, shape index: {}]   ;;  %s7031_s2 = inlined_call_operand.vmem [shape: f32[1,256], index: 2, kind: input, shape index: {}]   ;;  %s7032_s3 = inlined_call_operand.vmem [shape: f32[1,256], index: 3, kind: input, shape index: {}]   ;;  %s7033_s4 = inlined_call_operand.vmem [shape: bf16[128,256], index: 4, kind: output, shape index: {}]  }
   0x1   :  { %s5615_s17 = smov 0  }
   0x2 LB: > { %s5627_s18 = sadd.s32 4294967295, %s5580_s17   ;;  %s5630_s19 = sadd.s32 1, %s5580_s17   ;;  %s5580_s17 = sphi %s5615_s17, %s7037_s17   ;;  %s5576_s16 = sphi %s5613_s16, %s7036_s16   ;;  %s5572_s15 = sphi %s5611_s15, %s7035_s15  }
   0x3   : > { %s39_s20 = ssub.s32 %s5580_s17, %s5630_s19  ;;  %s42_s21 = sadd.s32 1, %s5576_s16 }
   0x4   : > { %p40_p0 = scmp.eq.s32.totalorder %s39_s20, 0  ;;  %p49_p1 = scmp.ne.s32.totalorder %s5576_s16, %s5572_s15 }
   0x5   : > { %p50_p2 = scmp.eq.s32.totalorder %s5580_s17, 0  ;;  %p131_p3 = scmp.eq.s32.totalorder %s5627_s18, 1 }
   0x6   : > { %s5640_s22 = scalar_select %p40_p0, %s5576_s16, %s42_s21  }
   0x7   : > { %p51_p4 = por %p50_p2, %p49_p1  ;;  %p5642_p5 = por %p131_p3, %p49_p1 }
   0x8   : > { %p4390_p6 = scmp.ge.s32.totalorder %s5580_s17, 2 }
   0xa   : > { %156 = sbr.rel (%p4390_p6) target bundleno = 191 (0xbf), region = 20 }
  0x11   : > { %159 = sbr.rel (!%p51_p4) target bundleno = 191 (0xbf), region = 24  ;;  %s161_s24 = sand.u32 (%p51_p4), 1, %s5576_s16  }
  0x12   : > { %s4392_s25 = sshll.u32 (%p51_p4), %s5580_s17, 2  ;;  %s4391_s26 = sshll.u32 (%p51_p4), %s161_s24, 10 }
  0x13   : > { %s5652_s29 = scalar_lea.vmem (%p51_p4), %s7030_s1, %s4392_s25  ;;  %s5656_s30 = scalar_lea.vmem (%p51_p4), [#allocation2], %s4391_s26 }
  0x14   : > { %v181_v0 = vld [vmem:[%s5652_s29] sm:$0xf] (%p51_p4)  ;;  %v183_v1 = vld [vmem:[%s5652_s29 + $0x8] sm:$0xf] (%p51_p4)  ;;  %v185_v2 = vld [vmem:[%s5652_s29 + $0x10] sm:$0xf] (%p51_p4) }
  0x15   : > { %182 = vst [vmem:[%s5656_s30] sm:$0xf] (%p51_p4), %v181_v0  ;;  %184 = vst [vmem:[%s5656_s30 + $0x4] sm:$0xf] (%p51_p4), %v183_v1  ;;  %v187_v3 = vld [vmem:[%s5652_s29 + $0x18] sm:$0xf] (%p51_p4) }
  0x16   : > { %v189_v4 = vld [vmem:[%s5652_s29 + $0x20] sm:$0xf] (%p51_p4)  ;;  %186 = vst [vmem:[%s5656_s30 + $0x8] sm:$0xf] (%p51_p4), %v185_v2  ;;  %188 = vst [vmem:[%s5656_s30 + $0xc] sm:$0xf] (%p51_p4), %v187_v3 }
  0x17   : > { %190 = vst [vmem:[%s5656_s30 + $0x10] sm:$0xf] (%p51_p4), %v189_v4  ;;  %v191_v5 = vld [vmem:[%s5652_s29 + $0x28] sm:$0xf] (%p51_p4)  ;;  %v193_v6 = vld [vmem:[%s5652_s29 + $0x30] sm:$0xf] (%p51_p4) }
  0x18   : > { %v195_v7 = vld [vmem:[%s5652_s29 + $0x38] sm:$0xf]  ;;  %192 = vst [vmem:[%s5656_s30 + $0x14] sm:$0xf] %v191_v5  ;;  %194 = vst [vmem:[%s5656_s30 + $0x18] sm:$0xf] %v193_v6 }
  0x19   : > { %196 = vst [vmem:[%s5656_s30 + $0x1c] sm:$0xf] %v195_v7  ;;  %v197_v8 = vld [vmem:[%s5652_s29 + $0x40] sm:$0xf]  ;;  %v199_v9 = vld [vmem:[%s5652_s29 + $0x48] sm:$0xf] }
  0x1a   : > { %v201_v10 = vld [vmem:[%s5652_s29 + $0x50] sm:$0xf]  ;;  %198 = vst [vmem:[%s5656_s30 + $0x20] sm:$0xf] %v197_v8  ;;  %200 = vst [vmem:[%s5656_s30 + $0x24] sm:$0xf] %v199_v9 }
  0x1b   : > { %202 = vst [vmem:[%s5656_s30 + $0x28] sm:$0xf] %v201_v10  ;;  %v203_v11 = vld [vmem:[%s5652_s29 + $0x58] sm:$0xf]  ;;  %v205_v12 = vld [vmem:[%s5652_s29 + $0x60] sm:$0xf] }
  0x1c   : > { %v207_v13 = vld [vmem:[%s5652_s29 + $0x68] sm:$0xf]  ;;  %204 = vst [vmem:[%s5656_s30 + $0x2c] sm:$0xf] %v203_v11  ;;  %206 = vst [vmem:[%s5656_s30 + $0x30] sm:$0xf] %v205_v12 }
  0x1d   : > { %208 = vst [vmem:[%s5656_s30 + $0x34] sm:$0xf] %v207_v13  ;;  %v209_v14 = vld [vmem:[%s5652_s29 + $0x70] sm:$0xf]  ;;  %v211_v15 = vld [vmem:[%s5652_s29 + $0x78] sm:$0xf] }
  0x1e   : > { %v213_v16 = vld [vmem:[%s5652_s29 + $0x80] sm:$0xf]  ;;  %210 = vst [vmem:[%s5656_s30 + $0x38] sm:$0xf] %v209_v14  ;;  %212 = vst [vmem:[%s5656_s30 + $0x3c] sm:$0xf] %v211_v15 }
  0x1f   : > { %214 = vst [vmem:[%s5656_s30 + $0x40] sm:$0xf] %v213_v16  ;;  %v215_v17 = vld [vmem:[%s5652_s29 + $0x88] sm:$0xf]  ;;  %v217_v18 = vld [vmem:[%s5652_s29 + $0x90] sm:$0xf] }
  0x20   : > { %v219_v19 = vld [vmem:[%s5652_s29 + $0x98] sm:$0xf]  ;;  %216 = vst [vmem:[%s5656_s30 + $0x44] sm:$0xf] %v215_v17  ;;  %218 = vst [vmem:[%s5656_s30 + $0x48] sm:$0xf] %v217_v18 }
  0x21   : > { %220 = vst [vmem:[%s5656_s30 + $0x4c] sm:$0xf] %v219_v19  ;;  %v221_v20 = vld [vmem:[%s5652_s29 + $0xa0] sm:$0xf]  ;;  %v223_v21 = vld [vmem:[%s5652_s29 + $0xa8] sm:$0xf] }
  0x22   : > { %v225_v22 = vld [vmem:[%s5652_s29 + $0xb0] sm:$0xf]  ;;  %222 = vst [vmem:[%s5656_s30 + $0x50] sm:$0xf] %v221_v20  ;;  %224 = vst [vmem:[%s5656_s30 + $0x54] sm:$0xf] %v223_v21 }
  0x23   : > { %226 = vst [vmem:[%s5656_s30 + $0x58] sm:$0xf] %v225_v22  ;;  %v227_v23 = vld [vmem:[%s5652_s29 + $0xb8] sm:$0xf]  ;;  %v229_v24 = vld [vmem:[%s5652_s29 + $0xc0] sm:$0xf] }
  0x24   : > { %v231_v25 = vld [vmem:[%s5652_s29 + $0xc8] sm:$0xf]  ;;  %228 = vst [vmem:[%s5656_s30 + $0x5c] sm:$0xf] %v227_v23  ;;  %230 = vst [vmem:[%s5656_s30 + $0x60] sm:$0xf] %v229_v24 }
  0x25   : > { %232 = vst [vmem:[%s5656_s30 + $0x64] sm:$0xf] %v231_v25  ;;  %v233_v26 = vld [vmem:[%s5652_s29 + $0xd0] sm:$0xf]  ;;  %v235_v27 = vld [vmem:[%s5652_s29 + $0xd8] sm:$0xf] }
  0x26   : > { %v237_v28 = vld [vmem:[%s5652_s29 + $0xe0] sm:$0xf]  ;;  %234 = vst [vmem:[%s5656_s30 + $0x68] sm:$0xf] %v233_v26  ;;  %236 = vst [vmem:[%s5656_s30 + $0x6c] sm:$0xf] %v235_v27 }
  0x27   : > { %238 = vst [vmem:[%s5656_s30 + $0x70] sm:$0xf] %v237_v28  ;;  %v239_v29 = vld [vmem:[%s5652_s29 + $0xe8] sm:$0xf]  ;;  %v241_v30 = vld [vmem:[%s5652_s29 + $0xf0] sm:$0xf] }
  0x28   : > { %v243_v31 = vld [vmem:[%s5652_s29 + $0xf8] sm:$0xf]  ;;  %240 = vst [vmem:[%s5656_s30 + $0x74] sm:$0xf] %v239_v29  ;;  %242 = vst [vmem:[%s5656_s30 + $0x78] sm:$0xf] %v241_v30 }
  0x29   : > { %244 = vst [vmem:[%s5656_s30 + $0x7c] sm:$0xf] %v243_v31  ;;  %v245_v32 = vld [vmem:[%s5652_s29 + $0x100] sm:$0xf]  ;;  %v247_v33 = vld [vmem:[%s5652_s29 + $0x108] sm:$0xf] }
  0x2a   : > { %v249_v34 = vld [vmem:[%s5652_s29 + $0x110] sm:$0xf]  ;;  %246 = vst [vmem:[%s5656_s30 + $0x80] sm:$0xf] %v245_v32  ;;  %248 = vst [vmem:[%s5656_s30 + $0x84] sm:$0xf] %v247_v33 }
  0x2b   : > { %250 = vst [vmem:[%s5656_s30 + $0x88] sm:$0xf] %v249_v34  ;;  %v251_v35 = vld [vmem:[%s5652_s29 + $0x118] sm:$0xf]  ;;  %v253_v36 = vld [vmem:[%s5652_s29 + $0x120] sm:$0xf] }
  0x2c   : > { %v255_v37 = vld [vmem:[%s5652_s29 + $0x128] sm:$0xf]  ;;  %252 = vst [vmem:[%s5656_s30 + $0x8c] sm:$0xf] %v251_v35  ;;  %254 = vst [vmem:[%s5656_s30 + $0x90] sm:$0xf] %v253_v36 }
  0x2d   : > { %256 = vst [vmem:[%s5656_s30 + $0x94] sm:$0xf] %v255_v37  ;;  %v257_v38 = vld [vmem:[%s5652_s29 + $0x130] sm:$0xf]  ;;  %v259_v39 = vld [vmem:[%s5652_s29 + $0x138] sm:$0xf] }
  0x2e   : > { %v261_v40 = vld [vmem:[%s5652_s29 + $0x140] sm:$0xf]  ;;  %258 = vst [vmem:[%s5656_s30 + $0x98] sm:$0xf] %v257_v38  ;;  %260 = vst [vmem:[%s5656_s30 + $0x9c] sm:$0xf] %v259_v39 }
  0x2f   : > { %262 = vst [vmem:[%s5656_s30 + $0xa0] sm:$0xf] %v261_v40  ;;  %v263_v41 = vld [vmem:[%s5652_s29 + $0x148] sm:$0xf]  ;;  %v265_v42 = vld [vmem:[%s5652_s29 + $0x150] sm:$0xf] }
  0x30   : > { %v267_v43 = vld [vmem:[%s5652_s29 + $0x158] sm:$0xf]  ;;  %264 = vst [vmem:[%s5656_s30 + $0xa4] sm:$0xf] %v263_v41  ;;  %266 = vst [vmem:[%s5656_s30 + $0xa8] sm:$0xf] %v265_v42 }
  0x31   : > { %268 = vst [vmem:[%s5656_s30 + $0xac] sm:$0xf] %v267_v43  ;;  %v269_v44 = vld [vmem:[%s5652_s29 + $0x160] sm:$0xf]  ;;  %v271_v45 = vld [vmem:[%s5652_s29 + $0x168] sm:$0xf] }
  0x32   : > { %v273_v46 = vld [vmem:[%s5652_s29 + $0x170] sm:$0xf]  ;;  %270 = vst [vmem:[%s5656_s30 + $0xb0] sm:$0xf] %v269_v44  ;;  %272 = vst [vmem:[%s5656_s30 + $0xb4] sm:$0xf] %v271_v45 }
  0x33   : > { %274 = vst [vmem:[%s5656_s30 + $0xb8] sm:$0xf] %v273_v46  ;;  %v275_v47 = vld [vmem:[%s5652_s29 + $0x178] sm:$0xf]  ;;  %v277_v48 = vld [vmem:[%s5652_s29 + $0x180] sm:$0xf] }
  0x34   : > { %v279_v49 = vld [vmem:[%s5652_s29 + $0x188] sm:$0xf]  ;;  %276 = vst [vmem:[%s5656_s30 + $0xbc] sm:$0xf] %v275_v47  ;;  %278 = vst [vmem:[%s5656_s30 + $0xc0] sm:$0xf] %v277_v48 }
  0x35   : > { %280 = vst [vmem:[%s5656_s30 + $0xc4] sm:$0xf] %v279_v49  ;;  %v281_v50 = vld [vmem:[%s5652_s29 + $0x190] sm:$0xf]  ;;  %v283_v51 = vld [vmem:[%s5652_s29 + $0x198] sm:$0xf] }
  0x36   : > { %v285_v52 = vld [vmem:[%s5652_s29 + $0x1a0] sm:$0xf]  ;;  %282 = vst [vmem:[%s5656_s30 + $0xc8] sm:$0xf] %v281_v50  ;;  %284 = vst [vmem:[%s5656_s30 + $0xcc] sm:$0xf] %v283_v51 }
  0x37   : > { %286 = vst [vmem:[%s5656_s30 + $0xd0] sm:$0xf] %v285_v52  ;;  %v287_v53 = vld [vmem:[%s5652_s29 + $0x1a8] sm:$0xf]  ;;  %v289_v54 = vld [vmem:[%s5652_s29 + $0x1b0] sm:$0xf] }
  0x38   : > { %v291_v55 = vld [vmem:[%s5652_s29 + $0x1b8] sm:$0xf]  ;;  %288 = vst [vmem:[%s5656_s30 + $0xd4] sm:$0xf] %v287_v53  ;;  %290 = vst [vmem:[%s5656_s30 + $0xd8] sm:$0xf] %v289_v54 }
  0x39   : > { %292 = vst [vmem:[%s5656_s30 + $0xdc] sm:$0xf] %v291_v55  ;;  %v293_v56 = vld [vmem:[%s5652_s29 + $0x1c0] sm:$0xf]  ;;  %v295_v57 = vld [vmem:[%s5652_s29 + $0x1c8] sm:$0xf] }
  0x3a   : > { %v297_v58 = vld [vmem:[%s5652_s29 + $0x1d0] sm:$0xf]  ;;  %294 = vst [vmem:[%s5656_s30 + $0xe0] sm:$0xf] %v293_v56  ;;  %296 = vst [vmem:[%s5656_s30 + $0xe4] sm:$0xf] %v295_v57 }
  0x3b   : > { %298 = vst [vmem:[%s5656_s30 + $0xe8] sm:$0xf] %v297_v58  ;;  %v299_v59 = vld [vmem:[%s5652_s29 + $0x1d8] sm:$0xf]  ;;  %v301_v60 = vld [vmem:[%s5652_s29 + $0x1e0] sm:$0xf] }
  0x3c   : > { %v303_v61 = vld [vmem:[%s5652_s29 + $0x1e8] sm:$0xf]  ;;  %300 = vst [vmem:[%s5656_s30 + $0xec] sm:$0xf] %v299_v59  ;;  %302 = vst [vmem:[%s5656_s30 + $0xf0] sm:$0xf] %v301_v60 }
  0x3d   : > { %304 = vst [vmem:[%s5656_s30 + $0xf4] sm:$0xf] %v303_v61  ;;  %v305_v62 = vld [vmem:[%s5652_s29 + $0x1f0] sm:$0xf]  ;;  %v307_v63 = vld [vmem:[%s5652_s29 + $0x1f8] sm:$0xf] }
  0x3e   : > { %v309_v0 = vld [vmem:[%s5652_s29 + $0x200] sm:$0xf]  ;;  %306 = vst [vmem:[%s5656_s30 + $0xf8] sm:$0xf] %v305_v62  ;;  %308 = vst [vmem:[%s5656_s30 + $0xfc] sm:$0xf] %v307_v63 }
  0x3f   : > { %310 = vst [vmem:[%s5656_s30 + $0x100] sm:$0xf] %v309_v0  ;;  %v311_v1 = vld [vmem:[%s5652_s29 + $0x208] sm:$0xf]  ;;  %v313_v2 = vld [vmem:[%s5652_s29 + $0x210] sm:$0xf] }
  0x40   : > { %v315_v3 = vld [vmem:[%s5652_s29 + $0x218] sm:$0xf]  ;;  %312 = vst [vmem:[%s5656_s30 + $0x104] sm:$0xf] %v311_v1  ;;  %314 = vst [vmem:[%s5656_s30 + $0x108] sm:$0xf] %v313_v2 }
  0x41   : > { %316 = vst [vmem:[%s5656_s30 + $0x10c] sm:$0xf] %v315_v3  ;;  %v317_v4 = vld [vmem:[%s5652_s29 + $0x220] sm:$0xf]  ;;  %v319_v5 = vld [vmem:[%s5652_s29 + $0x228] sm:$0xf] }
  0x42   : > { %v321_v6 = vld [vmem:[%s5652_s29 + $0x230] sm:$0xf]  ;;  %318 = vst [vmem:[%s5656_s30 + $0x110] sm:$0xf] %v317_v4  ;;  %320 = vst [vmem:[%s5656_s30 + $0x114] sm:$0xf] %v319_v5 }
  0x43   : > { %322 = vst [vmem:[%s5656_s30 + $0x118] sm:$0xf] %v321_v6  ;;  %v323_v7 = vld [vmem:[%s5652_s29 + $0x238] sm:$0xf]  ;;  %v325_v8 = vld [vmem:[%s5652_s29 + $0x240] sm:$0xf] }
  0x44   : > { %v327_v9 = vld [vmem:[%s5652_s29 + $0x248] sm:$0xf]  ;;  %324 = vst [vmem:[%s5656_s30 + $0x11c] sm:$0xf] %v323_v7  ;;  %326 = vst [vmem:[%s5656_s30 + $0x120] sm:$0xf] %v325_v8 }
  0x45   : > { %328 = vst [vmem:[%s5656_s30 + $0x124] sm:$0xf] %v327_v9  ;;  %v329_v10 = vld [vmem:[%s5652_s29 + $0x250] sm:$0xf]  ;;  %v331_v11 = vld [vmem:[%s5652_s29 + $0x258] sm:$0xf] }
  0x46   : > { %v333_v12 = vld [vmem:[%s5652_s29 + $0x260] sm:$0xf]  ;;  %330 = vst [vmem:[%s5656_s30 + $0x128] sm:$0xf] %v329_v10  ;;  %332 = vst [vmem:[%s5656_s30 + $0x12c] sm:$0xf] %v331_v11 }
  0x47   : > { %334 = vst [vmem:[%s5656_s30 + $0x130] sm:$0xf] %v333_v12  ;;  %v335_v13 = vld [vmem:[%s5652_s29 + $0x268] sm:$0xf]  ;;  %v337_v14 = vld [vmem:[%s5652_s29 + $0x270] sm:$0xf] }
  0x48   : > { %v339_v15 = vld [vmem:[%s5652_s29 + $0x278] sm:$0xf]  ;;  %336 = vst [vmem:[%s5656_s30 + $0x134] sm:$0xf] %v335_v13  ;;  %338 = vst [vmem:[%s5656_s30 + $0x138] sm:$0xf] %v337_v14 }
  0x49   : > { %340 = vst [vmem:[%s5656_s30 + $0x13c] sm:$0xf] %v339_v15  ;;  %v341_v16 = vld [vmem:[%s5652_s29 + $0x280] sm:$0xf]  ;;  %v343_v17 = vld [vmem:[%s5652_s29 + $0x288] sm:$0xf] }
  0x4a   : > { %v345_v18 = vld [vmem:[%s5652_s29 + $0x290] sm:$0xf]  ;;  %342 = vst [vmem:[%s5656_s30 + $0x140] sm:$0xf] %v341_v16  ;;  %344 = vst [vmem:[%s5656_s30 + $0x144] sm:$0xf] %v343_v17 }
  0x4b   : > { %346 = vst [vmem:[%s5656_s30 + $0x148] sm:$0xf] %v345_v18  ;;  %v347_v19 = vld [vmem:[%s5652_s29 + $0x298] sm:$0xf]  ;;  %v349_v20 = vld [vmem:[%s5652_s29 + $0x2a0] sm:$0xf] }
  0x4c   : > { %v351_v21 = vld [vmem:[%s5652_s29 + $0x2a8] sm:$0xf]  ;;  %348 = vst [vmem:[%s5656_s30 + $0x14c] sm:$0xf] %v347_v19  ;;  %350 = vst [vmem:[%s5656_s30 + $0x150] sm:$0xf] %v349_v20 }
  0x4d   : > { %352 = vst [vmem:[%s5656_s30 + $0x154] sm:$0xf] %v351_v21  ;;  %v353_v22 = vld [vmem:[%s5652_s29 + $0x2b0] sm:$0xf]  ;;  %v355_v23 = vld [vmem:[%s5652_s29 + $0x2b8] sm:$0xf] }
  0x4e   : > { %v357_v24 = vld [vmem:[%s5652_s29 + $0x2c0] sm:$0xf]  ;;  %354 = vst [vmem:[%s5656_s30 + $0x158] sm:$0xf] %v353_v22  ;;  %356 = vst [vmem:[%s5656_s30 + $0x15c] sm:$0xf] %v355_v23 }
  0x4f   : > { %358 = vst [vmem:[%s5656_s30 + $0x160] sm:$0xf] %v357_v24  ;;  %v359_v25 = vld [vmem:[%s5652_s29 + $0x2c8] sm:$0xf]  ;;  %v361_v26 = vld [vmem:[%s5652_s29 + $0x2d0] sm:$0xf] }
  0x50   : > { %v363_v27 = vld [vmem:[%s5652_s29 + $0x2d8] sm:$0xf]  ;;  %360 = vst [vmem:[%s5656_s30 + $0x164] sm:$0xf] %v359_v25  ;;  %362 = vst [vmem:[%s5656_s30 + $0x168] sm:$0xf] %v361_v26 }
  0x51   : > { %364 = vst [vmem:[%s5656_s30 + $0x16c] sm:$0xf] %v363_v27  ;;  %v365_v28 = vld [vmem:[%s5652_s29 + $0x2e0] sm:$0xf]  ;;  %v367_v29 = vld [vmem:[%s5652_s29 + $0x2e8] sm:$0xf] }
  0x52   : > { %v369_v30 = vld [vmem:[%s5652_s29 + $0x2f0] sm:$0xf]  ;;  %366 = vst [vmem:[%s5656_s30 + $0x170] sm:$0xf] %v365_v28  ;;  %368 = vst [vmem:[%s5656_s30 + $0x174] sm:$0xf] %v367_v29 }
  0x53   : > { %370 = vst [vmem:[%s5656_s30 + $0x178] sm:$0xf] %v369_v30  ;;  %v371_v31 = vld [vmem:[%s5652_s29 + $0x2f8] sm:$0xf]  ;;  %v373_v32 = vld [vmem:[%s5652_s29 + $0x300] sm:$0xf] }
  0x54   : > { %v375_v33 = vld [vmem:[%s5652_s29 + $0x308] sm:$0xf]  ;;  %372 = vst [vmem:[%s5656_s30 + $0x17c] sm:$0xf] %v371_v31  ;;  %374 = vst [vmem:[%s5656_s30 + $0x180] sm:$0xf] %v373_v32 }
  0x55   : > { %376 = vst [vmem:[%s5656_s30 + $0x184] sm:$0xf] %v375_v33  ;;  %v377_v34 = vld [vmem:[%s5652_s29 + $0x310] sm:$0xf]  ;;  %v379_v35 = vld [vmem:[%s5652_s29 + $0x318] sm:$0xf] }
  0x56   : > { %v381_v36 = vld [vmem:[%s5652_s29 + $0x320] sm:$0xf]  ;;  %378 = vst [vmem:[%s5656_s30 + $0x188] sm:$0xf] %v377_v34  ;;  %380 = vst [vmem:[%s5656_s30 + $0x18c] sm:$0xf] %v379_v35 }
  0x57   : > { %382 = vst [vmem:[%s5656_s30 + $0x190] sm:$0xf] %v381_v36  ;;  %v383_v37 = vld [vmem:[%s5652_s29 + $0x328] sm:$0xf]  ;;  %v385_v38 = vld [vmem:[%s5652_s29 + $0x330] sm:$0xf] }
  0x58   : > { %v387_v39 = vld [vmem:[%s5652_s29 + $0x338] sm:$0xf]  ;;  %384 = vst [vmem:[%s5656_s30 + $0x194] sm:$0xf] %v383_v37  ;;  %386 = vst [vmem:[%s5656_s30 + $0x198] sm:$0xf] %v385_v38 }
  0x59   : > { %388 = vst [vmem:[%s5656_s30 + $0x19c] sm:$0xf] %v387_v39  ;;  %v389_v40 = vld [vmem:[%s5652_s29 + $0x340] sm:$0xf]  ;;  %v391_v41 = vld [vmem:[%s5652_s29 + $0x348] sm:$0xf] }
  0x5a   : > { %v393_v42 = vld [vmem:[%s5652_s29 + $0x350] sm:$0xf]  ;;  %390 = vst [vmem:[%s5656_s30 + $0x1a0] sm:$0xf] %v389_v40  ;;  %392 = vst [vmem:[%s5656_s30 + $0x1a4] sm:$0xf] %v391_v41 }
  0x5b   : > { %394 = vst [vmem:[%s5656_s30 + $0x1a8] sm:$0xf] %v393_v42  ;;  %v395_v43 = vld [vmem:[%s5652_s29 + $0x358] sm:$0xf]  ;;  %v397_v44 = vld [vmem:[%s5652_s29 + $0x360] sm:$0xf] }
  0x5c   : > { %v399_v45 = vld [vmem:[%s5652_s29 + $0x368] sm:$0xf]  ;;  %396 = vst [vmem:[%s5656_s30 + $0x1ac] sm:$0xf] %v395_v43  ;;  %398 = vst [vmem:[%s5656_s30 + $0x1b0] sm:$0xf] %v397_v44 }
  0x5d   : > { %400 = vst [vmem:[%s5656_s30 + $0x1b4] sm:$0xf] %v399_v45  ;;  %v401_v46 = vld [vmem:[%s5652_s29 + $0x370] sm:$0xf]  ;;  %v403_v47 = vld [vmem:[%s5652_s29 + $0x378] sm:$0xf] }
  0x5e   : > { %v405_v48 = vld [vmem:[%s5652_s29 + $0x380] sm:$0xf]  ;;  %402 = vst [vmem:[%s5656_s30 + $0x1b8] sm:$0xf] %v401_v46  ;;  %404 = vst [vmem:[%s5656_s30 + $0x1bc] sm:$0xf] %v403_v47 }
  0x5f   : > { %406 = vst [vmem:[%s5656_s30 + $0x1c0] sm:$0xf] %v405_v48  ;;  %v407_v49 = vld [vmem:[%s5652_s29 + $0x388] sm:$0xf]  ;;  %v409_v50 = vld [vmem:[%s5652_s29 + $0x390] sm:$0xf] }
  0x60   : > { %v411_v51 = vld [vmem:[%s5652_s29 + $0x398] sm:$0xf]  ;;  %408 = vst [vmem:[%s5656_s30 + $0x1c4] sm:$0xf] %v407_v49  ;;  %410 = vst [vmem:[%s5656_s30 + $0x1c8] sm:$0xf] %v409_v50 }
  0x61   : > { %412 = vst [vmem:[%s5656_s30 + $0x1cc] sm:$0xf] %v411_v51  ;;  %v413_v52 = vld [vmem:[%s5652_s29 + $0x3a0] sm:$0xf]  ;;  %v415_v53 = vld [vmem:[%s5652_s29 + $0x3a8] sm:$0xf] }
  0x62   : > { %v417_v54 = vld [vmem:[%s5652_s29 + $0x3b0] sm:$0xf]  ;;  %414 = vst [vmem:[%s5656_s30 + $0x1d0] sm:$0xf] %v413_v52  ;;  %416 = vst [vmem:[%s5656_s30 + $0x1d4] sm:$0xf] %v415_v53 }
  0x63   : > { %418 = vst [vmem:[%s5656_s30 + $0x1d8] sm:$0xf] %v417_v54  ;;  %v419_v55 = vld [vmem:[%s5652_s29 + $0x3b8] sm:$0xf]  ;;  %v421_v56 = vld [vmem:[%s5652_s29 + $0x3c0] sm:$0xf] }
  0x64   : > { %v423_v57 = vld [vmem:[%s5652_s29 + $0x3c8] sm:$0xf]  ;;  %420 = vst [vmem:[%s5656_s30 + $0x1dc] sm:$0xf] %v419_v55  ;;  %422 = vst [vmem:[%s5656_s30 + $0x1e0] sm:$0xf] %v421_v56 }
  0x65   : > { %424 = vst [vmem:[%s5656_s30 + $0x1e4] sm:$0xf] %v423_v57  ;;  %v425_v58 = vld [vmem:[%s5652_s29 + $0x3d0] sm:$0xf]  ;;  %v427_v59 = vld [vmem:[%s5652_s29 + $0x3d8] sm:$0xf] }
  0x66   : > { %v429_v60 = vld [vmem:[%s5652_s29 + $0x3e0] sm:$0xf]  ;;  %426 = vst [vmem:[%s5656_s30 + $0x1e8] sm:$0xf] %v425_v58  ;;  %428 = vst [vmem:[%s5656_s30 + $0x1ec] sm:$0xf] %v427_v59 }
  0x67   : > { %430 = vst [vmem:[%s5656_s30 + $0x1f0] sm:$0xf] %v429_v60  ;;  %v431_v61 = vld [vmem:[%s5652_s29 + $0x3e8] sm:$0xf]  ;;  %v433_v62 = vld [vmem:[%s5652_s29 + $0x3f0] sm:$0xf] }
  0x68   : > { %v435_v63 = vld [vmem:[%s5652_s29 + $0x3f8] sm:$0xf]  ;;  %432 = vst [vmem:[%s5656_s30 + $0x1f4] sm:$0xf] %v431_v61  ;;  %434 = vst [vmem:[%s5656_s30 + $0x1f8] sm:$0xf] %v433_v62 }
  0x69   : > { %436 = vst [vmem:[%s5656_s30 + $0x1fc] sm:$0xf] %v435_v63  ;;  %v437_v0 = vld [vmem:[%s5652_s29 + $0x400] sm:$0xf]  ;;  %v439_v1 = vld [vmem:[%s5652_s29 + $0x408] sm:$0xf] }
  0x6a   : > { %v441_v2 = vld [vmem:[%s5652_s29 + $0x410] sm:$0xf]  ;;  %438 = vst [vmem:[%s5656_s30 + $0x200] sm:$0xf] %v437_v0  ;;  %440 = vst [vmem:[%s5656_s30 + $0x204] sm:$0xf] %v439_v1 }
  0x6b   : > { %442 = vst [vmem:[%s5656_s30 + $0x208] sm:$0xf] %v441_v2  ;;  %v443_v3 = vld [vmem:[%s5652_s29 + $0x418] sm:$0xf]  ;;  %v445_v4 = vld [vmem:[%s5652_s29 + $0x420] sm:$0xf] }
  0x6c   : > { %v447_v5 = vld [vmem:[%s5652_s29 + $0x428] sm:$0xf]  ;;  %444 = vst [vmem:[%s5656_s30 + $0x20c] sm:$0xf] %v443_v3  ;;  %446 = vst [vmem:[%s5656_s30 + $0x210] sm:$0xf] %v445_v4 }
  0x6d   : > { %448 = vst [vmem:[%s5656_s30 + $0x214] sm:$0xf] %v447_v5  ;;  %v449_v6 = vld [vmem:[%s5652_s29 + $0x430] sm:$0xf]  ;;  %v451_v7 = vld [vmem:[%s5652_s29 + $0x438] sm:$0xf] }
  0x6e   : > { %v453_v8 = vld [vmem:[%s5652_s29 + $0x440] sm:$0xf]  ;;  %450 = vst [vmem:[%s5656_s30 + $0x218] sm:$0xf] %v449_v6  ;;  %452 = vst [vmem:[%s5656_s30 + $0x21c] sm:$0xf] %v451_v7 }
  0x6f   : > { %454 = vst [vmem:[%s5656_s30 + $0x220] sm:$0xf] %v453_v8  ;;  %v455_v9 = vld [vmem:[%s5652_s29 + $0x448] sm:$0xf]  ;;  %v457_v10 = vld [vmem:[%s5652_s29 + $0x450] sm:$0xf] }
  0x70   : > { %v459_v11 = vld [vmem:[%s5652_s29 + $0x458] sm:$0xf]  ;;  %456 = vst [vmem:[%s5656_s30 + $0x224] sm:$0xf] %v455_v9  ;;  %458 = vst [vmem:[%s5656_s30 + $0x228] sm:$0xf] %v457_v10 }
  0x71   : > { %460 = vst [vmem:[%s5656_s30 + $0x22c] sm:$0xf] %v459_v11  ;;  %v461_v12 = vld [vmem:[%s5652_s29 + $0x460] sm:$0xf]  ;;  %v463_v13 = vld [vmem:[%s5652_s29 + $0x468] sm:$0xf] }
  0x72   : > { %v465_v14 = vld [vmem:[%s5652_s29 + $0x470] sm:$0xf]  ;;  %462 = vst [vmem:[%s5656_s30 + $0x230] sm:$0xf] %v461_v12  ;;  %464 = vst [vmem:[%s5656_s30 + $0x234] sm:$0xf] %v463_v13 }
  0x73   : > { %466 = vst [vmem:[%s5656_s30 + $0x238] sm:$0xf] %v465_v14  ;;  %v467_v15 = vld [vmem:[%s5652_s29 + $0x478] sm:$0xf]  ;;  %v469_v16 = vld [vmem:[%s5652_s29 + $0x480] sm:$0xf] }
  0x74   : > { %v471_v17 = vld [vmem:[%s5652_s29 + $0x488] sm:$0xf]  ;;  %468 = vst [vmem:[%s5656_s30 + $0x23c] sm:$0xf] %v467_v15  ;;  %470 = vst [vmem:[%s5656_s30 + $0x240] sm:$0xf] %v469_v16 }
  0x75   : > { %472 = vst [vmem:[%s5656_s30 + $0x244] sm:$0xf] %v471_v17  ;;  %v473_v18 = vld [vmem:[%s5652_s29 + $0x490] sm:$0xf]  ;;  %v475_v19 = vld [vmem:[%s5652_s29 + $0x498] sm:$0xf] }
  0x76   : > { %v477_v20 = vld [vmem:[%s5652_s29 + $0x4a0] sm:$0xf]  ;;  %474 = vst [vmem:[%s5656_s30 + $0x248] sm:$0xf] %v473_v18  ;;  %476 = vst [vmem:[%s5656_s30 + $0x24c] sm:$0xf] %v475_v19 }
  0x77   : > { %478 = vst [vmem:[%s5656_s30 + $0x250] sm:$0xf] %v477_v20  ;;  %v479_v21 = vld [vmem:[%s5652_s29 + $0x4a8] sm:$0xf]  ;;  %v481_v22 = vld [vmem:[%s5652_s29 + $0x4b0] sm:$0xf] }
  0x78   : > { %v483_v23 = vld [vmem:[%s5652_s29 + $0x4b8] sm:$0xf]  ;;  %480 = vst [vmem:[%s5656_s30 + $0x254] sm:$0xf] %v479_v21  ;;  %482 = vst [vmem:[%s5656_s30 + $0x258] sm:$0xf] %v481_v22 }
  0x79   : > { %484 = vst [vmem:[%s5656_s30 + $0x25c] sm:$0xf] %v483_v23  ;;  %v485_v24 = vld [vmem:[%s5652_s29 + $0x4c0] sm:$0xf]  ;;  %v487_v25 = vld [vmem:[%s5652_s29 + $0x4c8] sm:$0xf] }
  0x7a   : > { %v489_v26 = vld [vmem:[%s5652_s29 + $0x4d0] sm:$0xf]  ;;  %486 = vst [vmem:[%s5656_s30 + $0x260] sm:$0xf] %v485_v24  ;;  %488 = vst [vmem:[%s5656_s30 + $0x264] sm:$0xf] %v487_v25 }
  0x7b   : > { %490 = vst [vmem:[%s5656_s30 + $0x268] sm:$0xf] %v489_v26  ;;  %v491_v27 = vld [vmem:[%s5652_s29 + $0x4d8] sm:$0xf]  ;;  %v493_v28 = vld [vmem:[%s5652_s29 + $0x4e0] sm:$0xf] }
  0x7c   : > { %v495_v29 = vld [vmem:[%s5652_s29 + $0x4e8] sm:$0xf]  ;;  %492 = vst [vmem:[%s5656_s30 + $0x26c] sm:$0xf] %v491_v27  ;;  %494 = vst [vmem:[%s5656_s30 + $0x270] sm:$0xf] %v493_v28 }
  0x7d   : > { %496 = vst [vmem:[%s5656_s30 + $0x274] sm:$0xf] %v495_v29  ;;  %v497_v30 = vld [vmem:[%s5652_s29 + $0x4f0] sm:$0xf]  ;;  %v499_v31 = vld [vmem:[%s5652_s29 + $0x4f8] sm:$0xf] }
  0x7e   : > { %v501_v32 = vld [vmem:[%s5652_s29 + $0x500] sm:$0xf]  ;;  %498 = vst [vmem:[%s5656_s30 + $0x278] sm:$0xf] %v497_v30  ;;  %500 = vst [vmem:[%s5656_s30 + $0x27c] sm:$0xf] %v499_v31 }
  0x7f   : > { %502 = vst [vmem:[%s5656_s30 + $0x280] sm:$0xf] %v501_v32  ;;  %v503_v33 = vld [vmem:[%s5652_s29 + $0x508] sm:$0xf]  ;;  %v505_v34 = vld [vmem:[%s5652_s29 + $0x510] sm:$0xf] }
  0x80   : > { %v507_v35 = vld [vmem:[%s5652_s29 + $0x518] sm:$0xf]  ;;  %504 = vst [vmem:[%s5656_s30 + $0x284] sm:$0xf] %v503_v33  ;;  %506 = vst [vmem:[%s5656_s30 + $0x288] sm:$0xf] %v505_v34 }
  0x81   : > { %508 = vst [vmem:[%s5656_s30 + $0x28c] sm:$0xf] %v507_v35  ;;  %v509_v36 = vld [vmem:[%s5652_s29 + $0x520] sm:$0xf]  ;;  %v511_v37 = vld [vmem:[%s5652_s29 + $0x528] sm:$0xf] }
  0x82   : > { %v513_v38 = vld [vmem:[%s5652_s29 + $0x530] sm:$0xf]  ;;  %510 = vst [vmem:[%s5656_s30 + $0x290] sm:$0xf] %v509_v36  ;;  %512 = vst [vmem:[%s5656_s30 + $0x294] sm:$0xf] %v511_v37 }
  0x83   : > { %514 = vst [vmem:[%s5656_s30 + $0x298] sm:$0xf] %v513_v38  ;;  %v515_v39 = vld [vmem:[%s5652_s29 + $0x538] sm:$0xf]  ;;  %v517_v40 = vld [vmem:[%s5652_s29 + $0x540] sm:$0xf] }
  0x84   : > { %v519_v41 = vld [vmem:[%s5652_s29 + $0x548] sm:$0xf]  ;;  %516 = vst [vmem:[%s5656_s30 + $0x29c] sm:$0xf] %v515_v39  ;;  %518 = vst [vmem:[%s5656_s30 + $0x2a0] sm:$0xf] %v517_v40 }
  0x85   : > { %520 = vst [vmem:[%s5656_s30 + $0x2a4] sm:$0xf] %v519_v41  ;;  %v521_v42 = vld [vmem:[%s5652_s29 + $0x550] sm:$0xf]  ;;  %v523_v43 = vld [vmem:[%s5652_s29 + $0x558] sm:$0xf] }
  0x86   : > { %v525_v44 = vld [vmem:[%s5652_s29 + $0x560] sm:$0xf]  ;;  %522 = vst [vmem:[%s5656_s30 + $0x2a8] sm:$0xf] %v521_v42  ;;  %524 = vst [vmem:[%s5656_s30 + $0x2ac] sm:$0xf] %v523_v43 }
  0x87   : > { %526 = vst [vmem:[%s5656_s30 + $0x2b0] sm:$0xf] %v525_v44  ;;  %v527_v45 = vld [vmem:[%s5652_s29 + $0x568] sm:$0xf]  ;;  %v529_v46 = vld [vmem:[%s5652_s29 + $0x570] sm:$0xf] }
  0x88   : > { %v531_v47 = vld [vmem:[%s5652_s29 + $0x578] sm:$0xf]  ;;  %528 = vst [vmem:[%s5656_s30 + $0x2b4] sm:$0xf] %v527_v45  ;;  %530 = vst [vmem:[%s5656_s30 + $0x2b8] sm:$0xf] %v529_v46 }
  0x89   : > { %532 = vst [vmem:[%s5656_s30 + $0x2bc] sm:$0xf] %v531_v47  ;;  %v533_v48 = vld [vmem:[%s5652_s29 + $0x580] sm:$0xf]  ;;  %v535_v49 = vld [vmem:[%s5652_s29 + $0x588] sm:$0xf] }
  0x8a   : > { %v537_v50 = vld [vmem:[%s5652_s29 + $0x590] sm:$0xf]  ;;  %534 = vst [vmem:[%s5656_s30 + $0x2c0] sm:$0xf] %v533_v48  ;;  %536 = vst [vmem:[%s5656_s30 + $0x2c4] sm:$0xf] %v535_v49 }
  0x8b   : > { %538 = vst [vmem:[%s5656_s30 + $0x2c8] sm:$0xf] %v537_v50  ;;  %v539_v51 = vld [vmem:[%s5652_s29 + $0x598] sm:$0xf]  ;;  %v541_v52 = vld [vmem:[%s5652_s29 + $0x5a0] sm:$0xf] }
  0x8c   : > { %v543_v53 = vld [vmem:[%s5652_s29 + $0x5a8] sm:$0xf]  ;;  %540 = vst [vmem:[%s5656_s30 + $0x2cc] sm:$0xf] %v539_v51  ;;  %542 = vst [vmem:[%s5656_s30 + $0x2d0] sm:$0xf] %v541_v52 }
  0x8d   : > { %544 = vst [vmem:[%s5656_s30 + $0x2d4] sm:$0xf] %v543_v53  ;;  %v545_v54 = vld [vmem:[%s5652_s29 + $0x5b0] sm:$0xf]  ;;  %v547_v55 = vld [vmem:[%s5652_s29 + $0x5b8] sm:$0xf] }
  0x8e   : > { %v549_v56 = vld [vmem:[%s5652_s29 + $0x5c0] sm:$0xf]  ;;  %546 = vst [vmem:[%s5656_s30 + $0x2d8] sm:$0xf] %v545_v54  ;;  %548 = vst [vmem:[%s5656_s30 + $0x2dc] sm:$0xf] %v547_v55 }
  0x8f   : > { %550 = vst [vmem:[%s5656_s30 + $0x2e0] sm:$0xf] %v549_v56  ;;  %v551_v57 = vld [vmem:[%s5652_s29 + $0x5c8] sm:$0xf]  ;;  %v553_v58 = vld [vmem:[%s5652_s29 + $0x5d0] sm:$0xf] }
  0x90   : > { %v555_v59 = vld [vmem:[%s5652_s29 + $0x5d8] sm:$0xf]  ;;  %552 = vst [vmem:[%s5656_s30 + $0x2e4] sm:$0xf] %v551_v57  ;;  %554 = vst [vmem:[%s5656_s30 + $0x2e8] sm:$0xf] %v553_v58 }
  0x91   : > { %556 = vst [vmem:[%s5656_s30 + $0x2ec] sm:$0xf] %v555_v59  ;;  %v557_v60 = vld [vmem:[%s5652_s29 + $0x5e0] sm:$0xf]  ;;  %v559_v61 = vld [vmem:[%s5652_s29 + $0x5e8] sm:$0xf] }
  0x92   : > { %v561_v62 = vld [vmem:[%s5652_s29 + $0x5f0] sm:$0xf]  ;;  %558 = vst [vmem:[%s5656_s30 + $0x2f0] sm:$0xf] %v557_v60  ;;  %560 = vst [vmem:[%s5656_s30 + $0x2f4] sm:$0xf] %v559_v61 }
  0x93   : > { %562 = vst [vmem:[%s5656_s30 + $0x2f8] sm:$0xf] %v561_v62  ;;  %v563_v63 = vld [vmem:[%s5652_s29 + $0x5f8] sm:$0xf]  ;;  %v565_v0 = vld [vmem:[%s5652_s29 + $0x600] sm:$0xf] }
  0x94   : > { %v567_v1 = vld [vmem:[%s5652_s29 + $0x608] sm:$0xf]  ;;  %564 = vst [vmem:[%s5656_s30 + $0x2fc] sm:$0xf] %v563_v63  ;;  %566 = vst [vmem:[%s5656_s30 + $0x300] sm:$0xf] %v565_v0 }
  0x95   : > { %568 = vst [vmem:[%s5656_s30 + $0x304] sm:$0xf] %v567_v1  ;;  %v569_v2 = vld [vmem:[%s5652_s29 + $0x610] sm:$0xf]  ;;  %v571_v3 = vld [vmem:[%s5652_s29 + $0x618] sm:$0xf] }
  0x96   : > { %v573_v4 = vld [vmem:[%s5652_s29 + $0x620] sm:$0xf]  ;;  %570 = vst [vmem:[%s5656_s30 + $0x308] sm:$0xf] %v569_v2  ;;  %572 = vst [vmem:[%s5656_s30 + $0x30c] sm:$0xf] %v571_v3 }
  0x97   : > { %574 = vst [vmem:[%s5656_s30 + $0x310] sm:$0xf] %v573_v4  ;;  %v575_v5 = vld [vmem:[%s5652_s29 + $0x628] sm:$0xf]  ;;  %v577_v6 = vld [vmem:[%s5652_s29 + $0x630] sm:$0xf] }
  0x98   : > { %v579_v7 = vld [vmem:[%s5652_s29 + $0x638] sm:$0xf]  ;;  %576 = vst [vmem:[%s5656_s30 + $0x314] sm:$0xf] %v575_v5  ;;  %578 = vst [vmem:[%s5656_s30 + $0x318] sm:$0xf] %v577_v6 }
  0x99   : > { %580 = vst [vmem:[%s5656_s30 + $0x31c] sm:$0xf] %v579_v7  ;;  %v581_v8 = vld [vmem:[%s5652_s29 + $0x640] sm:$0xf]  ;;  %v583_v9 = vld [vmem:[%s5652_s29 + $0x648] sm:$0xf] }
  0x9a   : > { %v585_v10 = vld [vmem:[%s5652_s29 + $0x650] sm:$0xf]  ;;  %582 = vst [vmem:[%s5656_s30 + $0x320] sm:$0xf] %v581_v8  ;;  %584 = vst [vmem:[%s5656_s30 + $0x324] sm:$0xf] %v583_v9 }
  0x9b   : > { %586 = vst [vmem:[%s5656_s30 + $0x328] sm:$0xf] %v585_v10  ;;  %v587_v11 = vld [vmem:[%s5652_s29 + $0x658] sm:$0xf]  ;;  %v589_v12 = vld [vmem:[%s5652_s29 + $0x660] sm:$0xf] }
  0x9c   : > { %v591_v13 = vld [vmem:[%s5652_s29 + $0x668] sm:$0xf]  ;;  %588 = vst [vmem:[%s5656_s30 + $0x32c] sm:$0xf] %v587_v11  ;;  %590 = vst [vmem:[%s5656_s30 + $0x330] sm:$0xf] %v589_v12 }
  0x9d   : > { %592 = vst [vmem:[%s5656_s30 + $0x334] sm:$0xf] %v591_v13  ;;  %v593_v14 = vld [vmem:[%s5652_s29 + $0x670] sm:$0xf]  ;;  %v595_v15 = vld [vmem:[%s5652_s29 + $0x678] sm:$0xf] }
  0x9e   : > { %v597_v16 = vld [vmem:[%s5652_s29 + $0x680] sm:$0xf]  ;;  %594 = vst [vmem:[%s5656_s30 + $0x338] sm:$0xf] %v593_v14  ;;  %596 = vst [vmem:[%s5656_s30 + $0x33c] sm:$0xf] %v595_v15 }
  0x9f   : > { %598 = vst [vmem:[%s5656_s30 + $0x340] sm:$0xf] %v597_v16  ;;  %v599_v17 = vld [vmem:[%s5652_s29 + $0x688] sm:$0xf]  ;;  %v601_v18 = vld [vmem:[%s5652_s29 + $0x690] sm:$0xf] }
  0xa0   : > { %v603_v19 = vld [vmem:[%s5652_s29 + $0x698] sm:$0xf]  ;;  %600 = vst [vmem:[%s5656_s30 + $0x344] sm:$0xf] %v599_v17  ;;  %602 = vst [vmem:[%s5656_s30 + $0x348] sm:$0xf] %v601_v18 }
  0xa1   : > { %604 = vst [vmem:[%s5656_s30 + $0x34c] sm:$0xf] %v603_v19  ;;  %v605_v20 = vld [vmem:[%s5652_s29 + $0x6a0] sm:$0xf]  ;;  %v607_v21 = vld [vmem:[%s5652_s29 + $0x6a8] sm:$0xf] }
  0xa2   : > { %v609_v22 = vld [vmem:[%s5652_s29 + $0x6b0] sm:$0xf]  ;;  %606 = vst [vmem:[%s5656_s30 + $0x350] sm:$0xf] %v605_v20  ;;  %608 = vst [vmem:[%s5656_s30 + $0x354] sm:$0xf] %v607_v21 }
  0xa3   : > { %610 = vst [vmem:[%s5656_s30 + $0x358] sm:$0xf] %v609_v22  ;;  %v611_v23 = vld [vmem:[%s5652_s29 + $0x6b8] sm:$0xf]  ;;  %v613_v24 = vld [vmem:[%s5652_s29 + $0x6c0] sm:$0xf] }
  0xa4   : > { %v615_v25 = vld [vmem:[%s5652_s29 + $0x6c8] sm:$0xf]  ;;  %612 = vst [vmem:[%s5656_s30 + $0x35c] sm:$0xf] %v611_v23  ;;  %614 = vst [vmem:[%s5656_s30 + $0x360] sm:$0xf] %v613_v24 }
  0xa5   : > { %616 = vst [vmem:[%s5656_s30 + $0x364] sm:$0xf] %v615_v25  ;;  %v617_v26 = vld [vmem:[%s5652_s29 + $0x6d0] sm:$0xf]  ;;  %v619_v27 = vld [vmem:[%s5652_s29 + $0x6d8] sm:$0xf] }
  0xa6   : > { %v621_v28 = vld [vmem:[%s5652_s29 + $0x6e0] sm:$0xf]  ;;  %618 = vst [vmem:[%s5656_s30 + $0x368] sm:$0xf] %v617_v26  ;;  %620 = vst [vmem:[%s5656_s30 + $0x36c] sm:$0xf] %v619_v27 }
  0xa7   : > { %622 = vst [vmem:[%s5656_s30 + $0x370] sm:$0xf] %v621_v28  ;;  %v623_v29 = vld [vmem:[%s5652_s29 + $0x6e8] sm:$0xf]  ;;  %v625_v30 = vld [vmem:[%s5652_s29 + $0x6f0] sm:$0xf] }
  0xa8   : > { %v627_v31 = vld [vmem:[%s5652_s29 + $0x6f8] sm:$0xf]  ;;  %624 = vst [vmem:[%s5656_s30 + $0x374] sm:$0xf] %v623_v29  ;;  %626 = vst [vmem:[%s5656_s30 + $0x378] sm:$0xf] %v625_v30 }
  0xa9   : > { %628 = vst [vmem:[%s5656_s30 + $0x37c] sm:$0xf] %v627_v31  ;;  %v629_v32 = vld [vmem:[%s5652_s29 + $0x700] sm:$0xf]  ;;  %v631_v33 = vld [vmem:[%s5652_s29 + $0x708] sm:$0xf] }
  0xaa   : > { %v633_v34 = vld [vmem:[%s5652_s29 + $0x710] sm:$0xf]  ;;  %630 = vst [vmem:[%s5656_s30 + $0x380] sm:$0xf] %v629_v32  ;;  %632 = vst [vmem:[%s5656_s30 + $0x384] sm:$0xf] %v631_v33 }
  0xab   : > { %634 = vst [vmem:[%s5656_s30 + $0x388] sm:$0xf] %v633_v34  ;;  %v635_v35 = vld [vmem:[%s5652_s29 + $0x718] sm:$0xf]  ;;  %v637_v36 = vld [vmem:[%s5652_s29 + $0x720] sm:$0xf] }
  0xac   : > { %v639_v37 = vld [vmem:[%s5652_s29 + $0x728] sm:$0xf]  ;;  %636 = vst [vmem:[%s5656_s30 + $0x38c] sm:$0xf] %v635_v35  ;;  %638 = vst [vmem:[%s5656_s30 + $0x390] sm:$0xf] %v637_v36 }
  0xad   : > { %640 = vst [vmem:[%s5656_s30 + $0x394] sm:$0xf] %v639_v37  ;;  %v641_v38 = vld [vmem:[%s5652_s29 + $0x730] sm:$0xf]  ;;  %v643_v39 = vld [vmem:[%s5652_s29 + $0x738] sm:$0xf] }
  0xae   : > { %v645_v40 = vld [vmem:[%s5652_s29 + $0x740] sm:$0xf]  ;;  %642 = vst [vmem:[%s5656_s30 + $0x398] sm:$0xf] %v641_v38  ;;  %644 = vst [vmem:[%s5656_s30 + $0x39c] sm:$0xf] %v643_v39 }
  0xaf   : > { %646 = vst [vmem:[%s5656_s30 + $0x3a0] sm:$0xf] %v645_v40  ;;  %v647_v41 = vld [vmem:[%s5652_s29 + $0x748] sm:$0xf]  ;;  %v649_v42 = vld [vmem:[%s5652_s29 + $0x750] sm:$0xf] }
  0xb0   : > { %v651_v43 = vld [vmem:[%s5652_s29 + $0x758] sm:$0xf]  ;;  %648 = vst [vmem:[%s5656_s30 + $0x3a4] sm:$0xf] %v647_v41  ;;  %650 = vst [vmem:[%s5656_s30 + $0x3a8] sm:$0xf] %v649_v42 }
  0xb1   : > { %652 = vst [vmem:[%s5656_s30 + $0x3ac] sm:$0xf] %v651_v43  ;;  %v653_v44 = vld [vmem:[%s5652_s29 + $0x760] sm:$0xf]  ;;  %v655_v45 = vld [vmem:[%s5652_s29 + $0x768] sm:$0xf] }
  0xb2   : > { %v657_v46 = vld [vmem:[%s5652_s29 + $0x770] sm:$0xf]  ;;  %654 = vst [vmem:[%s5656_s30 + $0x3b0] sm:$0xf] %v653_v44  ;;  %656 = vst [vmem:[%s5656_s30 + $0x3b4] sm:$0xf] %v655_v45 }
  0xb3   : > { %658 = vst [vmem:[%s5656_s30 + $0x3b8] sm:$0xf] %v657_v46  ;;  %v659_v47 = vld [vmem:[%s5652_s29 + $0x778] sm:$0xf]  ;;  %v661_v48 = vld [vmem:[%s5652_s29 + $0x780] sm:$0xf] }
  0xb4   : > { %v663_v49 = vld [vmem:[%s5652_s29 + $0x788] sm:$0xf]  ;;  %660 = vst [vmem:[%s5656_s30 + $0x3bc] sm:$0xf] %v659_v47  ;;  %662 = vst [vmem:[%s5656_s30 + $0x3c0] sm:$0xf] %v661_v48 }
  0xb5   : > { %664 = vst [vmem:[%s5656_s30 + $0x3c4] sm:$0xf] %v663_v49  ;;  %v665_v50 = vld [vmem:[%s5652_s29 + $0x790] sm:$0xf]  ;;  %v667_v51 = vld [vmem:[%s5652_s29 + $0x798] sm:$0xf] }
  0xb6   : > { %v669_v52 = vld [vmem:[%s5652_s29 + $0x7a0] sm:$0xf]  ;;  %666 = vst [vmem:[%s5656_s30 + $0x3c8] sm:$0xf] %v665_v50  ;;  %668 = vst [vmem:[%s5656_s30 + $0x3cc] sm:$0xf] %v667_v51 }
  0xb7   : > { %670 = vst [vmem:[%s5656_s30 + $0x3d0] sm:$0xf] %v669_v52  ;;  %v671_v53 = vld [vmem:[%s5652_s29 + $0x7a8] sm:$0xf]  ;;  %v673_v54 = vld [vmem:[%s5652_s29 + $0x7b0] sm:$0xf] }
  0xb8   : > { %v675_v55 = vld [vmem:[%s5652_s29 + $0x7b8] sm:$0xf]  ;;  %672 = vst [vmem:[%s5656_s30 + $0x3d4] sm:$0xf] %v671_v53  ;;  %674 = vst [vmem:[%s5656_s30 + $0x3d8] sm:$0xf] %v673_v54 }
  0xb9   : > { %676 = vst [vmem:[%s5656_s30 + $0x3dc] sm:$0xf] %v675_v55  ;;  %v677_v56 = vld [vmem:[%s5652_s29 + $0x7c0] sm:$0xf]  ;;  %v679_v57 = vld [vmem:[%s5652_s29 + $0x7c8] sm:$0xf] }
  0xba   : > { %v681_v58 = vld [vmem:[%s5652_s29 + $0x7d0] sm:$0xf]  ;;  %678 = vst [vmem:[%s5656_s30 + $0x3e0] sm:$0xf] %v677_v56  ;;  %680 = vst [vmem:[%s5656_s30 + $0x3e4] sm:$0xf] %v679_v57 }
  0xbb   : > { %682 = vst [vmem:[%s5656_s30 + $0x3e8] sm:$0xf] %v681_v58  ;;  %v683_v59 = vld [vmem:[%s5652_s29 + $0x7d8] sm:$0xf]  ;;  %v685_v60 = vld [vmem:[%s5652_s29 + $0x7e0] sm:$0xf] }
  0xbc   : > { %v687_v61 = vld [vmem:[%s5652_s29 + $0x7e8] sm:$0xf]  ;;  %684 = vst [vmem:[%s5656_s30 + $0x3ec] sm:$0xf] %v683_v59  ;;  %686 = vst [vmem:[%s5656_s30 + $0x3f0] sm:$0xf] %v685_v60 }
  0xbd   : > { %688 = vst [vmem:[%s5656_s30 + $0x3f4] sm:$0xf] %v687_v61  ;;  %v689_v62 = vld [vmem:[%s5652_s29 + $0x7f0] sm:$0xf]  ;;  %v691_v63 = vld [vmem:[%s5652_s29 + $0x7f8] sm:$0xf] }
  0xbe   : > { %690 = vst [vmem:[%s5656_s30 + $0x3f8] sm:$0xf] %v689_v62  ;;  %692 = vst [vmem:[%s5656_s30 + $0x3fc] sm:$0xf] %v691_v63 }
  0xbf PF: > { %p4393_p7 = scmp.ge.s32.totalorder %s5580_s17, 1  ;;  %p1238_p8 = scmp.lt.s32.totalorder %s5580_s17, 3 }
  0xc1   : > { %p1239_p9 = pnand %p4393_p7, %p1238_p8 }
  0xc2   : > { %s1245_s5 = sand.u32 (!%p1239_p9), 1, %s5572_s15   ;;  %v6174_v0 = vld [vmem:[%s7029_s0] sm:$0xff] (!%p1239_p9)  ;;  %v6184_v2 = vld [vmem:[%s7029_s0 + $0x8] sm:$0xff] (!%p1239_p9)  ;;  %vm5583_vm0 = vmmov (!%p1239_p9), 0   ;;  %p1275_p10 = scmp.lt.s32.totalorder (!%p1239_p9), %s5627_s18, 1 }
  0xc3   : > { %1242 = sbr.rel (%p1239_p9) target bundleno = 1229 (0x4cd), region = 73  ;;  %v6179_v1 = vld [vmem:[%s7029_s0 + $0x40] sm:$0xff] (!%p1239_p9)  ;;  %s4394_s12 = sshll.u32 (!%p1239_p9), %s1245_s5, 10  ;;  %v6193_v4 = vld [vmem:[%s7029_s0 + $0x48] sm:$0xff] (!%p1239_p9) }
  0xc4   : > { %v4397_v3 = vcombine.high (!%p1239_p9), %v6174_v0, %v6179_v1  ;;  %v4399_v5 = vcombine.high (!%p1239_p9), %v6184_v2, %v6193_v4  ;;  %s6197_s17 = scalar_lea.vmem (!%p1239_p9), [#allocation2], %s4394_s12  ;;  %v1298_v34 = vld [vmem:[%s7029_s0 + $0x80] sm:$0xff] (!%p1239_p9)  ;;  %v1299_v37 = vld [vmem:[%s7029_s0 + $0x88] sm:$0xff] (!%p1239_p9)  ;;  %v4396_v42 = vcombine.low (!%p1239_p9), %v6174_v0, %v6179_v1  ;;  %v4398_v43 = vcombine.low (!%p1239_p9), %v6184_v2, %v6193_v4  ;;  %s6968_s13 = sshll.u32 (!%p1239_p9), %s1245_s5, 6 }
  0xc5   : > { %v5428_v6 = vld [vmem:[%s6197_s17 + $0x40] sm:$0xff] (!%p1239_p9)   ;;  %v5432_v10 = vld [vmem:[%s6197_s17 + $0x48] sm:$0xff] (!%p1239_p9)   ;;  %v5436_v14 = vld [vmem:[%s6197_s17 + $0x50] sm:$0xff] (!%p1239_p9)   ;;  %s6987_s15 = scalar_lea.vmem (!%p1239_p9), [#allocation3], %s6968_s13 }
  0xc6   : > { %3106 = vmatprep.mubr.bf16.mxu0 (!%p1239_p9), %v4397_v3  ;;  %v5429_v7 = vld [vmem:[%s6197_s17 + $0xc0] sm:$0xff] (!%p1239_p9)   ;;  %3203 = vmatprep.mubr.bf16.mxu1 (!%p1239_p9), %v4399_v5  ;;  %v5433_v11 = vld [vmem:[%s6197_s17 + $0xc8] sm:$0xff] (!%p1239_p9)   ;;  %v5437_v15 = vld [vmem:[%s6197_s17 + $0xd0] sm:$0xff] (!%p1239_p9)  }
  0xc7   : > { %4736 = vmatprep.subr.bf16.mxu0 (!%p1239_p9), %v5428_v6  ;;  %v5430_v8 = vld [vmem:[%s6197_s17] sm:$0xff] (!%p1239_p9)   ;;  %4800 = vmatprep.subr.bf16.mxu1 (!%p1239_p9), %v5429_v7  ;;  %v5434_v12 = vld [vmem:[%s6197_s17 + $0x8] sm:$0xff] (!%p1239_p9)   ;;  %v5438_v16 = vld [vmem:[%s6197_s17 + $0x10] sm:$0xff] (!%p1239_p9)  }
  0xc8   : > { %v5431_v9 = vld [vmem:[%s6197_s17 + $0x80] sm:$0xff] (!%p1239_p9)   ;;  %4737 = vmatpush3.bf16.msra.mxu0 (!%p1239_p9), %v5430_v8  ;;  %v5435_v13 = vld [vmem:[%s6197_s17 + $0x88] sm:$0xff] (!%p1239_p9)   ;;  %v5439_v17 = vld [vmem:[%s6197_s17 + $0x90] sm:$0xff] (!%p1239_p9)  }
  0xc9   : > { %4801 = vmatpush3.bf16.msra.mxu1 (!%p1239_p9), %v5431_v9  ;;  %4738 = vmatprep.subr.bf16.mxu0 (!%p1239_p9), %v5432_v10  ;;  %v5440_v18 = vld [vmem:[%s6197_s17 + $0x58] sm:$0xff] (!%p1239_p9)   ;;  %v5444_v22 = vld [vmem:[%s6197_s17 + $0x60] sm:$0xff] (!%p1239_p9)   ;;  %v5448_v26 = vld [vmem:[%s6197_s17 + $0x68] sm:$0xff] (!%p1239_p9)  }
  0xca   : > { %4802 = vmatprep.subr.bf16.mxu1 %v5433_v11  ;;  %v5441_v19 = vld [vmem:[%s6197_s17 + $0xd8] sm:$0xff]   ;;  %v5445_v23 = vld [vmem:[%s6197_s17 + $0xe0] sm:$0xff]   ;;  %v5449_v27 = vld [vmem:[%s6197_s17 + $0xe8] sm:$0xff]   ;;  %s4670_s5 = sshll.u32 (%p5642_p5), %s5627_s18, 2 }
  0xcb   : > { %v5442_v20 = vld [vmem:[%s6197_s17 + $0x18] sm:$0xff]   ;;  %v5446_v24 = vld [vmem:[%s6197_s17 + $0x20] sm:$0xff]   ;;  %v5450_v28 = vld [vmem:[%s6197_s17 + $0x28] sm:$0xff]   ;;  %s4213_s21 = scalar_lea.vmem (%p5642_p5), %s7033_s4, %s4670_s5 }
  0xcc   : > { %4739 = vmatpush3.bf16.msra.mxu0 %v5434_v12  ;;  %v5443_v21 = vld [vmem:[%s6197_s17 + $0x98] sm:$0xff]   ;;  %v5447_v25 = vld [vmem:[%s6197_s17 + $0xa0] sm:$0xff]   ;;  %v5451_v29 = vld [vmem:[%s6197_s17 + $0xa8] sm:$0xff]  }
  0xcd   : > { %4803 = vmatpush3.bf16.msra.mxu1 %v5435_v13  ;;  %4740 = vmatprep.subr.bf16.mxu0 %v5436_v14  ;;  %v5452_v30 = vld [vmem:[%s6197_s17 + $0x70] sm:$0xff]   ;;  %v1306_v35 = vld [vmem:[%s7029_s0 + $0xc0] sm:$0xff]  ;;  %v5456_v36 = vld [vmem:[%s6197_s17 + $0x78] sm:$0xff]  }
  0xce   : > { %4804 = vmatprep.subr.bf16.mxu1 %v5437_v15  ;;  %v5453_v31 = vld [vmem:[%s6197_s17 + $0xf0] sm:$0xff]   ;;  %v1307_v38 = vld [vmem:[%s7029_s0 + $0xc8] sm:$0xff]  ;;  %v5457_v39 = vld [vmem:[%s6197_s17 + $0xf8] sm:$0xff]   ;;  %v4413_v44 = vcombine.high %v1298_v34, %v1306_v35  ;;  %v4412_v53 = vcombine.low %v1298_v34, %v1306_v35 }
  0xcf   : > { %v5454_v32 = vld [vmem:[%s6197_s17 + $0x30] sm:$0xff]   ;;  %v5458_v40 = vld [vmem:[%s6197_s17 + $0x38] sm:$0xff]   ;;  %v4415_v45 = vcombine.high %v1299_v37, %v1307_v38  ;;  %v1314_v46 = vld [vmem:[%s7029_s0 + $0x100] sm:$0xff]  ;;  %v4414_v55 = vcombine.low %v1299_v37, %v1307_v38 }
  0xd0   : > { %4741 = vmatpush3.bf16.msra.mxu0 %v5438_v16  ;;  %v5455_v33 = vld [vmem:[%s6197_s17 + $0xb0] sm:$0xff]   ;;  %v5459_v41 = vld [vmem:[%s6197_s17 + $0xb8] sm:$0xff]   ;;  %v1322_v47 = vld [vmem:[%s7029_s0 + $0x140] sm:$0xff] }
  0xd1   : > { %4805 = vmatpush3.bf16.msra.mxu1 %v5439_v17  ;;  %4742 = vmatprep.subr.bf16.mxu0 %v5440_v18  ;;  %v1315_v48 = vld [vmem:[%s7029_s0 + $0x108] sm:$0xff]  ;;  %v5460_v50 = vld [vmem:[%s6197_s17 + $0x140] sm:$0xff]   ;;  %v4429_v56 = vcombine.high %v1314_v46, %v1322_v47  ;;  %v5468_v2 = vld [vmem:[%s6197_s17 + $0x150] sm:$0xff]   ;;  %v4428_v4 = vcombine.low %v1314_v46, %v1322_v47 }
  0xd2   : > { %4806 = vmatprep.subr.bf16.mxu1 %v5441_v19  ;;  %v1323_v49 = vld [vmem:[%s7029_s0 + $0x148] sm:$0xff]  ;;  %v5461_v51 = vld [vmem:[%s6197_s17 + $0x1c0] sm:$0xff]   ;;  %v5469_v3 = vld [vmem:[%s6197_s17 + $0x1d0] sm:$0xff]  }
  0xd3   : > { %v5462_v52 = vld [vmem:[%s6197_s17 + $0x100] sm:$0xff]   ;;  %v5464_v57 = vld [vmem:[%s6197_s17 + $0x148] sm:$0xff]   ;;  %v4431_v58 = vcombine.high %v1315_v48, %v1323_v49  ;;  %v5470_v5 = vld [vmem:[%s6197_s17 + $0x110] sm:$0xff]   ;;  %v4430_v6 = vcombine.low %v1315_v48, %v1323_v49 }
  0xd4   : > { %4743 = vmatpush3.bf16.msra.mxu0 %v5442_v20  ;;  %v5463_v54 = vld [vmem:[%s6197_s17 + $0x180] sm:$0xff]   ;;  %v5465_v59 = vld [vmem:[%s6197_s17 + $0x1c8] sm:$0xff]   ;;  %v5471_v8 = vld [vmem:[%s6197_s17 + $0x190] sm:$0xff]  }
  0xd5   : > { %4807 = vmatpush3.bf16.msra.mxu1 %v5443_v21  ;;  %4744 = vmatprep.subr.bf16.mxu0 %v5444_v22  ;;  %v5466_v60 = vld [vmem:[%s6197_s17 + $0x108] sm:$0xff]   ;;  %v1330_v61 = vld [vmem:[%s7029_s0 + $0x180] sm:$0xff]  ;;  %v5472_v10 = vld [vmem:[%s6197_s17 + $0x158] sm:$0xff]  }
  0xd6   : > { %4808 = vmatprep.subr.bf16.mxu1 %v5445_v23  ;;  %v5467_v62 = vld [vmem:[%s6197_s17 + $0x188] sm:$0xff]   ;;  %v1338_v63 = vld [vmem:[%s7029_s0 + $0x1c0] sm:$0xff]  ;;  %v5473_v11 = vld [vmem:[%s6197_s17 + $0x1d8] sm:$0xff]  }
  0xd7   : > { %v1331_v0 = vld [vmem:[%s7029_s0 + $0x188] sm:$0xff]  ;;  %v4445_v7 = vcombine.high %v1330_v61, %v1338_v63  ;;  %v5474_v12 = vld [vmem:[%s6197_s17 + $0x118] sm:$0xff]   ;;  %v1346_v14 = vld [vmem:[%s7029_s0 + $0x200] sm:$0xff]  ;;  %v4444_v18 = vcombine.low %v1330_v61, %v1338_v63 }
  0xd8   : > { %4745 = vmatpush3.bf16.msra.mxu0 %v5446_v24  ;;  %v1339_v1 = vld [vmem:[%s7029_s0 + $0x1c8] sm:$0xff]  ;;  %v5475_v13 = vld [vmem:[%s6197_s17 + $0x198] sm:$0xff]   ;;  %v1354_v15 = vld [vmem:[%s7029_s0 + $0x240] sm:$0xff] }
  0xd9   : > { %4809 = vmatpush3.bf16.msra.mxu1 %v5447_v25  ;;  %4746 = vmatprep.subr.bf16.mxu0 %v5448_v26  ;;  %v4447_v9 = vcombine.high %v1331_v0, %v1339_v1  ;;  %v1347_v16 = vld [vmem:[%s7029_s0 + $0x208] sm:$0xff]  ;;  %v5476_v19 = vld [vmem:[%s6197_s17 + $0x160] sm:$0xff]   ;;  %v4446_v20 = vcombine.low %v1331_v0, %v1339_v1  ;;  %v4461_v21 = vcombine.high %v1346_v14, %v1354_v15  ;;  %v5484_v37 = vld [vmem:[%s6197_s17 + $0x170] sm:$0xff]  }
  0xda   : > { %4810 = vmatprep.subr.bf16.mxu1 %v5449_v27  ;;  %v1355_v17 = vld [vmem:[%s7029_s0 + $0x248] sm:$0xff]  ;;  %v5477_v22 = vld [vmem:[%s6197_s17 + $0x1e0] sm:$0xff]   ;;  %v4460_v34 = vcombine.low %v1346_v14, %v1354_v15  ;;  %v5488_v46 = vld [vmem:[%s6197_s17 + $0x178] sm:$0xff]  }
  0xdb   : > { %v4463_v23 = vcombine.high %v1347_v16, %v1355_v17  ;;  %v5478_v24 = vld [vmem:[%s6197_s17 + $0x120] sm:$0xff]   ;;  %v4462_v35 = vcombine.low %v1347_v16, %v1355_v17  ;;  %v5489_v47 = vld [vmem:[%s6197_s17 + $0x1f8] sm:$0xff]   ;;  %v1284_v0 = vld [vmem:[%s7029_s0 + $0x10] sm:$0xff] }
  0xdc   : > { %4747 = vmatpush3.bf16.msra.mxu0 %v5450_v28  ;;  %v5479_v25 = vld [vmem:[%s6197_s17 + $0x1a0] sm:$0xff]   ;;  %v5480_v28 = vld [vmem:[%s6197_s17 + $0x168] sm:$0xff]   ;;  %v5490_v48 = vld [vmem:[%s6197_s17 + $0x138] sm:$0xff]  }
  0xdd   : > { %4811 = vmatpush3.bf16.msra.mxu1 %v5451_v29  ;;  %4748 = vmatprep.subr.bf16.mxu0 %v5452_v30  ;;  %v1362_v26 = vld [vmem:[%s7029_s0 + $0x280] sm:$0xff]  ;;  %v5481_v29 = vld [vmem:[%s6197_s17 + $0x1e8] sm:$0xff]   ;;  %v1292_v1 = vld [vmem:[%s7029_s0 + $0x50] sm:$0xff] }
  0xde   : > { %4812 = vmatprep.subr.bf16.mxu1 %v5453_v31  ;;  %v1370_v27 = vld [vmem:[%s7029_s0 + $0x2c0] sm:$0xff]  ;;  %v5482_v30 = vld [vmem:[%s6197_s17 + $0x128] sm:$0xff]  }
  0xdf   : > { %v1363_v31 = vld [vmem:[%s7029_s0 + $0x288] sm:$0xff]  ;;  %v4476_v49 = vcombine.low %v1362_v26, %v1370_v27  ;;  %v5494_v15 = vld [vmem:[%s6197_s17 + $0x200] sm:$0xff]  }
  0xe0   : > { %4749 = vmatpush3.bf16.msra.mxu0 %v5454_v32  ;;  %v1371_v32 = vld [vmem:[%s7029_s0 + $0x2c8] sm:$0xff]  ;;  %v5495_v17 = vld [vmem:[%s6197_s17 + $0x280] sm:$0xff]  }
  0xe1   : > { %4813 = vmatpush3.bf16.msra.mxu1 %v5455_v33  ;;  %4750 = vmatprep.subr.bf16.mxu0 %v5456_v36  ;;  %v5483_v33 = vld [vmem:[%s6197_s17 + $0x1a8] sm:$0xff]   ;;  %v4477_v36 = vcombine.high %v1362_v26, %v1370_v27  ;;  %v4479_v38 = vcombine.high %v1363_v31, %v1371_v32  ;;  %v5500_v26 = vld [vmem:[%s6197_s17 + $0x250] sm:$0xff]  }
  0xe2   : > { %4814 = vmatprep.subr.bf16.mxu1 %v5457_v39  ;;  %v5485_v39 = vld [vmem:[%s6197_s17 + $0x1f0] sm:$0xff]  }
  0xe4   : > { %4751 = vmatpush3.bf16.msra.mxu0 %v5458_v40  ;;  %v5486_v40 = vld [vmem:[%s6197_s17 + $0x130] sm:$0xff]  }
  0xe5   : > { %4815 = vmatpush3.bf16.msra.mxu1 %v5459_v41  ;;  %4864 = vmatprep.subr.bf16.mxu0 %v5460_v50  ;;  %v1378_v41 = vld [vmem:[%s7029_s0 + $0x300] sm:$0xff]  ;;  %v5491_v50 = vld [vmem:[%s6197_s17 + $0x1b8] sm:$0xff]  }
  0xe6   : > { %4928 = vmatprep.subr.bf16.mxu1 %v5461_v51  ;;  %v4478_v51 = vcombine.low %v1363_v31, %v1371_v32  ;;  %v5502_v32 = vld [vmem:[%s6197_s17 + $0x210] sm:$0xff]  }
  0xe7   : > { %3107 = vmatmul.mubr.bf16.vlgmr.msra.gmra.mrb[0].mxu0 %v4396_v42  ;;  %v1386_v42 = vld [vmem:[%s7029_s0 + $0x340] sm:$0xff] }
  0xe8   : > { %3204 = vmatmul.mubr.bf16.vlgmr.msra.gmra.mrb[0].mxu1 %v4398_v43  ;;  %3114 = vmatprep.mubr.bf16.mxu0 %v4413_v44  ;;  %v5487_v43 = vld [vmem:[%s6197_s17 + $0x1b0] sm:$0xff]   ;;  %v1379_v44 = vld [vmem:[%s7029_s0 + $0x308] sm:$0xff] }
  0xe9   : > { %3211 = vmatprep.mubr.bf16.mxu1 %v4415_v45  ;;  %4865 = vmatpush3.bf16.msra.mxu0 %v5462_v52  ;;  %v1387_v45 = vld [vmem:[%s7029_s0 + $0x348] sm:$0xff]  ;;  %v4493_v52 = vcombine.high %v1378_v41, %v1386_v42 }
  0xea   : > { %4929 = vmatpush3.bf16.msra.mxu1 %v5463_v54  ;;  %4866 = vmatprep.subr.bf16.mxu0 %v5464_v57  ;;  %v1394_v54 = vld [vmem:[%s7029_s0 + $0x380] sm:$0xff]  ;;  %v1403_v57 = vld [vmem:[%s7029_s0 + $0x3c8] sm:$0xff] }
  0xeb   : > { %4930 = vmatprep.subr.bf16.mxu1 %v5465_v59  ;;  %v5492_v59 = vld [vmem:[%s6197_s17 + $0x240] sm:$0xff]  }
  0xed   : > { %4867 = vmatpush3.bf16.msra.mxu0 %v5466_v60  ;;  %v4494_v60 = vcombine.low %v1379_v44, %v1387_v45 }
  0xee   : > { %4931 = vmatpush3.bf16.msra.mxu1 %v5467_v62  ;;  %4868 = vmatprep.subr.bf16.mxu0 %v5468_v2  ;;  %v5493_v62 = vld [vmem:[%s6197_s17 + $0x2c0] sm:$0xff]   ;;  %v1285_v2 = vld [vmem:[%s7029_s0 + $0x18] sm:$0xff] }
  0xef   : > { %3115 = vmatmul.mubr.bf16.gmra.mrb[4].mxu0 %v4412_v53  ;;  %4932 = vmatprep.subr.bf16.mxu1 %v5469_v3  ;;  %v4495_v53 = vcombine.high %v1379_v44, %v1387_v45  ;;  %v1293_v3 = vld [vmem:[%s7029_s0 + $0x58] sm:$0xff]  ;;  %v5509_v44 = vld [vmem:[%s6197_s17 + $0x2e0] sm:$0xff]  }
  0xf0   : > { %3212 = vmatmul.mubr.bf16.gmra.mrb[4].mxu1 %v4414_v55  ;;  %3122 = vmatprep.mubr.bf16.mxu0 %v4429_v56  ;;  %v1402_v55 = vld [vmem:[%s7029_s0 + $0x3c0] sm:$0xff]  ;;  %v1395_v56 = vld [vmem:[%s7029_s0 + $0x388] sm:$0xff] }
  0xf1   : > { %3219 = vmatprep.mubr.bf16.mxu1 %v4431_v58  ;;  %4869 = vmatpush3.bf16.msra.mxu0 %v5470_v5  ;;  %v4492_v58 = vcombine.low %v1378_v41, %v1386_v42  ;;  %v4509_v61 = vcombine.high %v1394_v54, %v1402_v55  ;;  %v4511_v63 = vcombine.high %v1395_v56, %v1403_v57  ;;  %v5507_v41 = vld [vmem:[%s6197_s17 + $0x298] sm:$0xff]   ;;  %v5508_v42 = vld [vmem:[%s6197_s17 + $0x260] sm:$0xff]  }
  0xf2   : > { %4933 = vmatpush3.bf16.msra.mxu1 %v5471_v8  ;;  %4870 = vmatprep.subr.bf16.mxu0 %v5472_v10  ;;  %v4510_v5 = vcombine.low %v1395_v56, %v1403_v57  ;;  %v1300_v8 = vld [vmem:[%s7029_s0 + $0x90] sm:$0xff]  ;;  %v1301_v10 = vld [vmem:[%s7029_s0 + $0x98] sm:$0xff]  ;;  %v5515_v57 = vld [vmem:[%s6197_s17 + $0x2a8] sm:$0xff]  }
  0xf3   : > { %4934 = vmatprep.subr.bf16.mxu1 %v5473_v11  ;;  %v1309_v11 = vld [vmem:[%s7029_s0 + $0xd8] sm:$0xff] }
  0xf4   : > { %v4419_v16 = vcombine.high %v1301_v10, %v1309_v11  ;;  %v1357_v56 = vld [vmem:[%s7029_s0 + $0x258] sm:$0xff] }
  0xf5   : > { %4871 = vmatpush3.bf16.msra.mxu0 %v5474_v12  ;;  %v4400_v12 = vcombine.low %v1284_v0, %v1292_v1 }
  0xf6   : > { %4935 = vmatpush3.bf16.msra.mxu1 %v5475_v13  ;;  %4872 = vmatprep.subr.bf16.mxu0 %v5476_v19  ;;  %v4402_v13 = vcombine.low %v1285_v2, %v1293_v3  ;;  %v1316_v19 = vld [vmem:[%s7029_s0 + $0x110] sm:$0xff] }
  0xf7   : > { %3123 = vmatmul.mubr.bf16.gmra.mrb[8].mxu0 %v4428_v4  ;;  %4936 = vmatprep.subr.bf16.mxu1 %v5477_v22  ;;  %v4508_v4 = vcombine.low %v1394_v54, %v1402_v55  ;;  %v1317_v22 = vld [vmem:[%s7029_s0 + $0x118] sm:$0xff]  ;;  %v5514_v55 = vld [vmem:[%s6197_s17 + $0x228] sm:$0xff]  }
  0xf8   : > { %3220 = vmatmul.mubr.bf16.gmra.mrb[8].mxu1 %v4430_v6  ;;  %3130 = vmatprep.mubr.bf16.mxu0 %v4445_v7  ;;  %v4401_v6 = vcombine.high %v1284_v0, %v1292_v1  ;;  %v4403_v7 = vcombine.high %v1285_v2, %v1293_v3  ;;  %v1349_v54 = vld [vmem:[%s7029_s0 + $0x218] sm:$0xff]  ;;  %v5519_v1 = vld [vmem:[%s6197_s17 + $0x2b0] sm:$0xff]  }
  0xf9   : > { %3227 = vmatprep.mubr.bf16.mxu1 %v4447_v9  ;;  %4873 = vmatpush3.bf16.msra.mxu0 %v5478_v24  ;;  %v1308_v9 = vld [vmem:[%s7029_s0 + $0xd0] sm:$0xff]  ;;  %v5498_v24 = vld [vmem:[%s6197_s17 + $0x208] sm:$0xff]   ;;  %v4467_v0 = vcombine.high %v1349_v54, %v1357_v56  ;;  %v5520_v2 = vld [vmem:[%s6197_s17 + $0x278] sm:$0xff]  }
  0xfa   : > { %4937 = vmatpush3.bf16.msra.mxu1 %v5479_v25  ;;  %4874 = vmatprep.subr.bf16.mxu0 %v5480_v28  ;;  %v4417_v14 = vcombine.high %v1300_v8, %v1308_v9  ;;  %v5499_v25 = vld [vmem:[%s6197_s17 + $0x288] sm:$0xff]   ;;  %v4416_v27 = vcombine.low %v1300_v8, %v1308_v9  ;;  %v5501_v28 = vld [vmem:[%s6197_s17 + $0x2d0] sm:$0xff]   ;;  %v5522_v8 = vld [vmem:[%s6197_s17 + $0x238] sm:$0xff]  }
  0xfb   : > { %4938 = vmatprep.subr.bf16.mxu1 %v5481_v29  ;;  %v4418_v29 = vcombine.low %v1301_v10, %v1309_v11  ;;  %v1364_v3 = vld [vmem:[%s7029_s0 + $0x290] sm:$0xff]  ;;  %v5523_v9 = vld [vmem:[%s6197_s17 + $0x2b8] sm:$0xff]   ;;  %v5524_v10 = vld [vmem:[%s6197_s17 + $0x340] sm:$0xff]  }
  0xfd   : > { %4875 = vmatpush3.bf16.msra.mxu0 %v5482_v30 }
  0xfe   : > { %4939 = vmatpush3.bf16.msra.mxu1 %v5483_v33  ;;  %4876 = vmatprep.subr.bf16.mxu0 %v5484_v37  ;;  %v5503_v33 = vld [vmem:[%s6197_s17 + $0x290] sm:$0xff]   ;;  %v5505_v37 = vld [vmem:[%s6197_s17 + $0x2d8] sm:$0xff]  }
  0xff   : > { %3131 = vmatmul.mubr.bf16.gmra.mrb[12].mxu0 %v4444_v18  ;;  %4940 = vmatprep.subr.bf16.mxu1 %v5485_v39  ;;  %v5496_v18 = vld [vmem:[%s6197_s17 + $0x248] sm:$0xff]   ;;  %v1341_v39 = vld [vmem:[%s7029_s0 + $0x1d8] sm:$0xff] }
 0x100   : > { %3228 = vmatmul.mubr.bf16.gmra.mrb[12].mxu1 %v4446_v20  ;;  %3138 = vmatprep.mubr.bf16.mxu0 %v4461_v21  ;;  %v1324_v20 = vld [vmem:[%s7029_s0 + $0x150] sm:$0xff]  ;;  %v5497_v21 = vld [vmem:[%s6197_s17 + $0x2c8] sm:$0xff]  }
 0x101   : > { %3235 = vmatprep.mubr.bf16.mxu1 %v4463_v23  ;;  %4877 = vmatpush3.bf16.msra.mxu0 %v5486_v40  ;;  %v1325_v23 = vld [vmem:[%s7029_s0 + $0x158] sm:$0xff]  ;;  %v4433_v30 = vcombine.high %v1316_v19, %v1324_v20 }
 0x102   : > { %4941 = vmatpush3.bf16.msra.mxu1 %v5487_v43  ;;  %4878 = vmatprep.subr.bf16.mxu0 %v5488_v46  ;;  %v4435_v31 = vcombine.high %v1317_v22, %v1325_v23  ;;  %v5506_v40 = vld [vmem:[%s6197_s17 + $0x218] sm:$0xff]   ;;  %v4432_v43 = vcombine.low %v1316_v19, %v1324_v20  ;;  %v4434_v45 = vcombine.low %v1317_v22, %v1325_v23 }
 0x103   : > { %4942 = vmatprep.subr.bf16.mxu1 %v5489_v47  ;;  %v1389_v19 = vld [vmem:[%s7029_s0 + $0x358] sm:$0xff] }
 0x105   : > { %4879 = vmatpush3.bf16.msra.mxu0 %v5490_v48  ;;  %v5510_v48 = vld [vmem:[%s6197_s17 + $0x220] sm:$0xff]  }
 0x106   : > { %4943 = vmatpush3.bf16.msra.mxu1 %v5491_v50  ;;  %4992 = vmatprep.subr.bf16.mxu0 %v5492_v59  ;;  %v5512_v50 = vld [vmem:[%s6197_s17 + $0x268] sm:$0xff]  }
 0x107   : > { %3139 = vmatmul.mubr.bf16.gmra.mrb[16].mxu0 %v4460_v34  ;;  %5056 = vmatprep.subr.bf16.mxu1 %v5493_v62  ;;  %v5504_v34 = vld [vmem:[%s6197_s17 + $0x258] sm:$0xff]  }
 0x108   : > { %3236 = vmatmul.mubr.bf16.gmra.mrb[16].mxu1 %v4462_v35  ;;  %3146 = vmatprep.mubr.bf16.mxu0 %v4477_v36  ;;  %v1332_v35 = vld [vmem:[%s7029_s0 + $0x190] sm:$0xff] }
 0x109   : > { %3243 = vmatprep.mubr.bf16.mxu1 %v4479_v38  ;;  %v1340_v36 = vld [vmem:[%s7029_s0 + $0x1d0] sm:$0xff]  ;;  %v1333_v38 = vld [vmem:[%s7029_s0 + $0x198] sm:$0xff] }
 0x10a   : > { %v4449_v46 = vcombine.high %v1332_v35, %v1340_v36  ;;  %v4451_v47 = vcombine.high %v1333_v38, %v1341_v39  ;;  %v4448_v59 = vcombine.low %v1332_v35, %v1340_v36  ;;  %v1295_v35 = vld [vmem:[%s7029_s0 + $0x68] sm:$0xff] }
 0x10f   : > { %3147 = vmatmul.mubr.bf16.gmra.mrb[20].mxu0 %v4476_v49  ;;  %v5511_v49 = vld [vmem:[%s6197_s17 + $0x2a0] sm:$0xff]  }
 0x110   : > { %3244 = vmatmul.mubr.bf16.gmra.mrb[20].mxu1 %v4478_v51  ;;  %3154 = vmatprep.mubr.bf16.mxu0 %v4493_v52  ;;  %v5513_v51 = vld [vmem:[%s6197_s17 + $0x2e8] sm:$0xff]   ;;  %v1348_v52 = vld [vmem:[%s7029_s0 + $0x210] sm:$0xff] }
 0x111   : > { %3251 = vmatprep.mubr.bf16.mxu1 %v4495_v53  ;;  %v1356_v53 = vld [vmem:[%s7029_s0 + $0x250] sm:$0xff] }
 0x112   : > { %v4465_v62 = vcombine.high %v1348_v52, %v1356_v53  ;;  %v4464_v11 = vcombine.low %v1348_v52, %v1356_v53  ;;  %v1318_v52 = vld [vmem:[%s7029_s0 + $0x120] sm:$0xff] }
 0x113   : > { %v1326_v53 = vld [vmem:[%s7029_s0 + $0x160] sm:$0xff] }
 0x117   : > { %3155 = vmatmul.mubr.bf16.gmra.mrb[24].mxu0 %v4492_v58  ;;  %v5516_v58 = vld [vmem:[%s6197_s17 + $0x270] sm:$0xff]  }
 0x118   : > { %3252 = vmatmul.mubr.bf16.gmra.mrb[24].mxu1 %v4494_v60  ;;  %3162 = vmatprep.mubr.bf16.mxu0 %v4509_v61  ;;  %v5517_v60 = vld [vmem:[%s6197_s17 + $0x2f0] sm:$0xff]   ;;  %v4450_v61 = vcombine.low %v1333_v38, %v1341_v39 }
 0x119   : > { %3259 = vmatprep.mubr.bf16.mxu1 %v4511_v63  ;;  %v5518_v63 = vld [vmem:[%s6197_s17 + $0x230] sm:$0xff]  }
 0x11f   : > { %3163 = vmatmul.mubr.bf16.gmra.mrb[28].mxu0 %v4508_v4  ;;  %v1372_v4 = vld [vmem:[%s7029_s0 + $0x2d0] sm:$0xff] }
 0x120   : > { %3260 = vmatmul.mubr.bf16.gmra.mrb[28].mxu1 %v4510_v5  ;;  %3300 = vmatprep.mubr.bf16.mxu0 %v4401_v6  ;;  %v5521_v5 = vld [vmem:[%s6197_s17 + $0x2f8] sm:$0xff]   ;;  %v4480_v20 = vcombine.low %v1364_v3, %v1372_v4 }
 0x121   : > { %3397 = vmatprep.mubr.bf16.mxu1 %v4403_v7  ;;  %v1365_v6 = vld [vmem:[%s7029_s0 + $0x298] sm:$0xff] }
 0x122   : > { %v1373_v7 = vld [vmem:[%s7029_s0 + $0x2d8] sm:$0xff] }
 0x127   : > { %3301 = vmatmul.mubr.bf16.vlgmr.msra.gmra.mrb[32].mxu0 %v4400_v12  ;;  %v5525_v12 = vld [vmem:[%s6197_s17 + $0x3c0] sm:$0xff]  }
 0x128   : > { %3398 = vmatmul.mubr.bf16.vlgmr.msra.gmra.mrb[32].mxu1 %v4402_v13  ;;  %3308 = vmatprep.mubr.bf16.mxu0 %v4417_v14  ;;  %v4466_v13 = vcombine.low %v1349_v54, %v1357_v56  ;;  %v4481_v14 = vcombine.high %v1364_v3, %v1372_v4  ;;  %v1319_v54 = vld [vmem:[%s7029_s0 + $0x128] sm:$0xff]  ;;  %v5537_v3 = vld [vmem:[%s6197_s17 + $0x3d8] sm:$0xff]   ;;  %v1334_v4 = vld [vmem:[%s7029_s0 + $0x1a0] sm:$0xff] }
 0x129   : > { %3405 = vmatprep.mubr.bf16.mxu1 %v4419_v16  ;;  %4993 = vmatpush3.bf16.msra.mxu0 %v5494_v15  ;;  %v4483_v15 = vcombine.high %v1365_v6, %v1373_v7  ;;  %v1380_v16 = vld [vmem:[%s7029_s0 + $0x310] sm:$0xff]  ;;  %v1327_v56 = vld [vmem:[%s7029_s0 + $0x168] sm:$0xff] }
 0x12a   : > { %5057 = vmatpush3.bf16.msra.mxu1 %v5495_v17  ;;  %4994 = vmatprep.subr.bf16.mxu0 %v5496_v18  ;;  %v1388_v17 = vld [vmem:[%s7029_s0 + $0x350] sm:$0xff]  ;;  %v1381_v18 = vld [vmem:[%s7029_s0 + $0x318] sm:$0xff] }
 0x12b   : > { %5058 = vmatprep.subr.bf16.mxu1 %v5497_v21  ;;  %v4482_v21 = vcombine.low %v1365_v6, %v1373_v7  ;;  %v4497_v22 = vcombine.high %v1380_v16, %v1388_v17  ;;  %v4499_v23 = vcombine.high %v1381_v18, %v1389_v19  ;;  %v1335_v6 = vld [vmem:[%s7029_s0 + $0x1a8] sm:$0xff]  ;;  %v5538_v7 = vld [vmem:[%s6197_s17 + $0x318] sm:$0xff]  }
 0x12d   : > { %4995 = vmatpush3.bf16.msra.mxu0 %v5498_v24  ;;  %v1396_v24 = vld [vmem:[%s7029_s0 + $0x390] sm:$0xff] }
 0x12e   : > { %5059 = vmatpush3.bf16.msra.mxu1 %v5499_v25  ;;  %4996 = vmatprep.subr.bf16.mxu0 %v5500_v26  ;;  %v1404_v25 = vld [vmem:[%s7029_s0 + $0x3d0] sm:$0xff]  ;;  %v1397_v26 = vld [vmem:[%s7029_s0 + $0x398] sm:$0xff] }
 0x12f   : > { %3309 = vmatmul.mubr.bf16.gmra.mrb[36].mxu0 %v4416_v27  ;;  %5060 = vmatprep.subr.bf16.mxu1 %v5501_v28  ;;  %v1405_v27 = vld [vmem:[%s7029_s0 + $0x3d8] sm:$0xff]  ;;  %v4496_v28 = vcombine.low %v1380_v16, %v1388_v17  ;;  %v4512_v36 = vcombine.low %v1396_v24, %v1404_v25  ;;  %v5542_v16 = vld [vmem:[%s6197_s17 + $0x320] sm:$0xff]  }
 0x130   : > { %3406 = vmatmul.mubr.bf16.gmra.mrb[36].mxu1 %v4418_v29  ;;  %3316 = vmatprep.mubr.bf16.mxu0 %v4433_v30  ;;  %v4498_v29 = vcombine.low %v1381_v18, %v1389_v19  ;;  %v4513_v30 = vcombine.high %v1396_v24, %v1404_v25  ;;  %v5543_v17 = vld [vmem:[%s6197_s17 + $0x3a0] sm:$0xff]   ;;  %v5544_v18 = vld [vmem:[%s6197_s17 + $0x368] sm:$0xff]  }
 0x131   : > { %3413 = vmatprep.mubr.bf16.mxu1 %v4435_v31  ;;  %4997 = vmatpush3.bf16.msra.mxu0 %v5502_v32  ;;  %v4515_v31 = vcombine.high %v1397_v26, %v1405_v27  ;;  %v1286_v32 = vld [vmem:[%s7029_s0 + $0x20] sm:$0xff]  ;;  %v5545_v19 = vld [vmem:[%s6197_s17 + $0x3e8] sm:$0xff]  }
 0x132   : > { %5061 = vmatpush3.bf16.msra.mxu1 %v5503_v33  ;;  %4998 = vmatprep.subr.bf16.mxu0 %v5504_v34  ;;  %v1294_v33 = vld [vmem:[%s7029_s0 + $0x60] sm:$0xff]  ;;  %v1287_v34 = vld [vmem:[%s7029_s0 + $0x28] sm:$0xff] }
 0x133   : > { %5062 = vmatprep.subr.bf16.mxu1 %v5505_v37  ;;  %v4514_v37 = vcombine.low %v1397_v26, %v1405_v27  ;;  %v4405_v38 = vcombine.high %v1286_v32, %v1294_v33  ;;  %v4407_v39 = vcombine.high %v1287_v34, %v1295_v35  ;;  %v1359_v24 = vld [vmem:[%s7029_s0 + $0x268] sm:$0xff]  ;;  %v5548_v26 = vld [vmem:[%s6197_s17 + $0x370] sm:$0xff]  }
 0x134   : > { %v5547_v25 = vld [vmem:[%s6197_s17 + $0x3a8] sm:$0xff]  }
 0x135   : > { %4999 = vmatpush3.bf16.msra.mxu0 %v5506_v40  ;;  %v1302_v40 = vld [vmem:[%s7029_s0 + $0xa0] sm:$0xff] }
 0x136   : > { %5063 = vmatpush3.bf16.msra.mxu1 %v5507_v41  ;;  %5000 = vmatprep.subr.bf16.mxu0 %v5508_v42  ;;  %v1310_v41 = vld [vmem:[%s7029_s0 + $0xe0] sm:$0xff]  ;;  %v1303_v42 = vld [vmem:[%s7029_s0 + $0xa8] sm:$0xff] }
 0x137   : > { %3317 = vmatmul.mubr.bf16.gmra.mrb[40].mxu0 %v4432_v43  ;;  %5064 = vmatprep.subr.bf16.mxu1 %v5509_v44  ;;  %v1311_v43 = vld [vmem:[%s7029_s0 + $0xe8] sm:$0xff]  ;;  %v4404_v44 = vcombine.low %v1286_v32, %v1294_v33  ;;  %v5550_v32 = vld [vmem:[%s6197_s17 + $0x330] sm:$0xff]  }
 0x138   : > { %3414 = vmatmul.mubr.bf16.gmra.mrb[40].mxu1 %v4434_v45  ;;  %3324 = vmatprep.mubr.bf16.mxu0 %v4449_v46  ;;  %v4406_v45 = vcombine.low %v1287_v34, %v1295_v35  ;;  %v4421_v46 = vcombine.high %v1302_v40, %v1310_v41  ;;  %v5551_v33 = vld [vmem:[%s6197_s17 + $0x3b0] sm:$0xff]   ;;  %v5552_v34 = vld [vmem:[%s6197_s17 + $0x378] sm:$0xff]  }
 0x139   : > { %3421 = vmatprep.mubr.bf16.mxu1 %v4451_v47  ;;  %5001 = vmatpush3.bf16.msra.mxu0 %v5510_v48  ;;  %v4423_v47 = vcombine.high %v1303_v42, %v1311_v43  ;;  %v5526_v48 = vld [vmem:[%s6197_s17 + $0x300] sm:$0xff]   ;;  %v5553_v35 = vld [vmem:[%s6197_s17 + $0x3f8] sm:$0xff]  }
 0x13a   : > { %5065 = vmatpush3.bf16.msra.mxu1 %v5511_v49  ;;  %5002 = vmatprep.subr.bf16.mxu0 %v5512_v50  ;;  %v5527_v49 = vld [vmem:[%s6197_s17 + $0x380] sm:$0xff]   ;;  %v5528_v50 = vld [vmem:[%s6197_s17 + $0x348] sm:$0xff]  }
 0x13b   : > { %5066 = vmatprep.subr.bf16.mxu1 %v5513_v51  ;;  %v5529_v51 = vld [vmem:[%s6197_s17 + $0x3c8] sm:$0xff]  }
 0x13d   : > { %5003 = vmatpush3.bf16.msra.mxu0 %v5514_v55  ;;  %v5530_v55 = vld [vmem:[%s6197_s17 + $0x308] sm:$0xff]  }
 0x13e   : > { %5067 = vmatpush3.bf16.msra.mxu1 %v5515_v57  ;;  %5004 = vmatprep.subr.bf16.mxu0 %v5516_v58  ;;  %v5531_v57 = vld [vmem:[%s6197_s17 + $0x388] sm:$0xff]   ;;  %v5532_v58 = vld [vmem:[%s6197_s17 + $0x350] sm:$0xff]  }
 0x13f   : > { %3325 = vmatmul.mubr.bf16.gmra.mrb[44].mxu0 %v4448_v59  ;;  %5068 = vmatprep.subr.bf16.mxu1 %v5517_v60  ;;  %v4420_v59 = vcombine.low %v1302_v40, %v1310_v41  ;;  %v5533_v60 = vld [vmem:[%s6197_s17 + $0x3d0] sm:$0xff]   ;;  %v1375_v40 = vld [vmem:[%s7029_s0 + $0x2e8] sm:$0xff]  ;;  %v5555_v41 = vld [vmem:[%s6197_s17 + $0x3b8] sm:$0xff]  }
 0x140   : > { %3422 = vmatmul.mubr.bf16.gmra.mrb[44].mxu1 %v4450_v61  ;;  %3332 = vmatprep.mubr.bf16.mxu0 %v4465_v62  ;;  %v4422_v61 = vcombine.low %v1303_v42, %v1311_v43  ;;  %v4437_v62 = vcombine.high %v1318_v52, %v1326_v53 }
 0x141   : > { %3429 = vmatprep.mubr.bf16.mxu1 %v4467_v0  ;;  %5005 = vmatpush3.bf16.msra.mxu0 %v5518_v63  ;;  %v4439_v63 = vcombine.high %v1319_v54, %v1327_v56  ;;  %v5534_v0 = vld [vmem:[%s6197_s17 + $0x310] sm:$0xff]  }
 0x142   : > { %5069 = vmatpush3.bf16.msra.mxu1 %v5519_v1  ;;  %5006 = vmatprep.subr.bf16.mxu0 %v5520_v2  ;;  %v5535_v1 = vld [vmem:[%s6197_s17 + $0x390] sm:$0xff]   ;;  %v5536_v2 = vld [vmem:[%s6197_s17 + $0x358] sm:$0xff]  }
 0x143   : > { %5070 = vmatprep.subr.bf16.mxu1 %v5521_v5  ;;  %v1342_v5 = vld [vmem:[%s7029_s0 + $0x1e0] sm:$0xff] }
 0x144   : > { %v4452_v27 = vcombine.low %v1334_v4, %v1342_v5 }
 0x145   : > { %5007 = vmatpush3.bf16.msra.mxu0 %v5522_v8  ;;  %v1343_v8 = vld [vmem:[%s7029_s0 + $0x1e8] sm:$0xff] }
 0x146   : > { %5071 = vmatpush3.bf16.msra.mxu1 %v5523_v9  ;;  %5120 = vmatprep.subr.bf16.mxu0 %v5524_v10  ;;  %v5539_v9 = vld [vmem:[%s6197_s17 + $0x398] sm:$0xff]   ;;  %v5540_v10 = vld [vmem:[%s6197_s17 + $0x360] sm:$0xff]  }
 0x147   : > { %3333 = vmatmul.mubr.bf16.gmra.mrb[48].mxu0 %v4464_v11  ;;  %5184 = vmatprep.subr.bf16.mxu1 %v5525_v12  ;;  %v4436_v11 = vcombine.low %v1318_v52, %v1326_v53  ;;  %v5541_v12 = vld [vmem:[%s6197_s17 + $0x3e0] sm:$0xff]  }
 0x148   : > { %3430 = vmatmul.mubr.bf16.gmra.mrb[48].mxu1 %v4466_v13  ;;  %3340 = vmatprep.mubr.bf16.mxu0 %v4481_v14  ;;  %v4438_v13 = vcombine.low %v1319_v54, %v1327_v56  ;;  %v4453_v14 = vcombine.high %v1334_v4, %v1342_v5  ;;  %v1398_v54 = vld [vmem:[%s7029_s0 + $0x3a0] sm:$0xff]  ;;  %v1399_v56 = vld [vmem:[%s7029_s0 + $0x3a8] sm:$0xff] }
 0x149   : > { %3437 = vmatprep.mubr.bf16.mxu1 %v4483_v15  ;;  %v4455_v15 = vcombine.high %v1335_v6, %v1343_v8 }
 0x14f   : > { %3341 = vmatmul.mubr.bf16.gmra.mrb[52].mxu0 %v4480_v20  ;;  %v1350_v20 = vld [vmem:[%s7029_s0 + $0x220] sm:$0xff] }
 0x150   : > { %3438 = vmatmul.mubr.bf16.gmra.mrb[52].mxu1 %v4482_v21  ;;  %3348 = vmatprep.mubr.bf16.mxu0 %v4497_v22  ;;  %v1358_v21 = vld [vmem:[%s7029_s0 + $0x260] sm:$0xff]  ;;  %v1351_v22 = vld [vmem:[%s7029_s0 + $0x228] sm:$0xff] }
 0x151   : > { %3445 = vmatprep.mubr.bf16.mxu1 %v4499_v23  ;;  %v5546_v23 = vld [vmem:[%s6197_s17 + $0x328] sm:$0xff]   ;;  %v4468_v42 = vcombine.low %v1350_v20, %v1358_v21  ;;  %v4470_v43 = vcombine.low %v1351_v22, %v1359_v24 }
 0x157   : > { %3349 = vmatmul.mubr.bf16.gmra.mrb[56].mxu0 %v4496_v28  ;;  %v5549_v28 = vld [vmem:[%s6197_s17 + $0x3f0] sm:$0xff]  }
 0x158   : > { %3446 = vmatmul.mubr.bf16.gmra.mrb[56].mxu1 %v4498_v29  ;;  %3356 = vmatprep.mubr.bf16.mxu0 %v4513_v30  ;;  %v4454_v29 = vcombine.low %v1335_v6, %v1343_v8  ;;  %v4469_v30 = vcombine.high %v1350_v20, %v1358_v21  ;;  %v1304_v6 = vld [vmem:[%s7029_s0 + $0xb0] sm:$0xff]  ;;  %v1305_v8 = vld [vmem:[%s7029_s0 + $0xb8] sm:$0xff] }
 0x159   : > { %3453 = vmatprep.mubr.bf16.mxu1 %v4515_v31  ;;  %v4471_v31 = vcombine.high %v1351_v22, %v1359_v24  ;;  %v1336_v22 = vld [vmem:[%s7029_s0 + $0x1b0] sm:$0xff]  ;;  %v1337_v24 = vld [vmem:[%s7029_s0 + $0x1b8] sm:$0xff] }
 0x15f   : > { %3357 = vmatmul.mubr.bf16.gmra.mrb[60].mxu0 %v4512_v36  ;;  %v1366_v36 = vld [vmem:[%s7029_s0 + $0x2a0] sm:$0xff] }
 0x160   : > { %3454 = vmatmul.mubr.bf16.gmra.mrb[60].mxu1 %v4514_v37  ;;  %3494 = vmatprep.mubr.bf16.mxu0 %v4405_v38  ;;  %v1374_v37 = vld [vmem:[%s7029_s0 + $0x2e0] sm:$0xff]  ;;  %v5554_v38 = vld [vmem:[%s6197_s17 + $0x338] sm:$0xff]   ;;  %s1276_s17 = scalar_select %p1275_p10, %s5627_s18, 1 }
 0x161   : > { %3591 = vmatprep.mubr.bf16.mxu1 %v4407_v39  ;;  %v1367_v39 = vld [vmem:[%s7029_s0 + $0x2a8] sm:$0xff] }
 0x162   : > { %s1277_s9 = scalar_lea.vmem %s7031_s2, %s1276_s17  ;;  %s1280_s12 = scalar_lea.vmem %s7032_s3, %s1276_s17 }
 0x167   : > { %3495 = vmatmul.mubr.bf16.vlgmr.msra.gmra.mrb[64].mxu0 %v4404_v44  ;;  %v4485_v44 = vcombine.high %v1366_v36, %v1374_v37 }
 0x168   : > { %3592 = vmatmul.mubr.bf16.vlgmr.msra.gmra.mrb[64].mxu1 %v4406_v45  ;;  %3502 = vmatprep.mubr.bf16.mxu0 %v4421_v46  ;;  %v4487_v45 = vcombine.high %v1367_v39, %v1375_v40  ;;  %v1382_v46 = vld [vmem:[%s7029_s0 + $0x320] sm:$0xff] }
 0x169   : > { %3599 = vmatprep.mubr.bf16.mxu1 %v4423_v47  ;;  %5121 = vmatpush3.bf16.msra.mxu0 %v5526_v48  ;;  %v1390_v47 = vld [vmem:[%s7029_s0 + $0x360] sm:$0xff]  ;;  %v1383_v48 = vld [vmem:[%s7029_s0 + $0x328] sm:$0xff] }
 0x16a   : > { %5185 = vmatpush3.bf16.msra.mxu1 %v5527_v49  ;;  %5122 = vmatprep.subr.bf16.mxu0 %v5528_v50  ;;  %v1391_v49 = vld [vmem:[%s7029_s0 + $0x368] sm:$0xff]  ;;  %v4484_v50 = vcombine.low %v1366_v36, %v1374_v37  ;;  %v4501_v52 = vcombine.high %v1382_v46, %v1390_v47 }
 0x16b   : > { %5186 = vmatprep.subr.bf16.mxu1 %v5529_v51  ;;  %v4486_v51 = vcombine.low %v1367_v39, %v1375_v40  ;;  %v4503_v53 = vcombine.high %v1383_v48, %v1391_v49 }
 0x16d   : > { %5123 = vmatpush3.bf16.msra.mxu0 %v5530_v55  ;;  %v1406_v55 = vld [vmem:[%s7029_s0 + $0x3e0] sm:$0xff] }
 0x16e   : > { %5187 = vmatpush3.bf16.msra.mxu1 %v5531_v57  ;;  %5124 = vmatprep.subr.bf16.mxu0 %v5532_v58  ;;  %v1407_v57 = vld [vmem:[%s7029_s0 + $0x3e8] sm:$0xff]  ;;  %v4500_v58 = vcombine.low %v1382_v46, %v1390_v47 }
 0x16f   : > { %3503 = vmatmul.mubr.bf16.gmra.mrb[68].mxu0 %v4420_v59  ;;  %5188 = vmatprep.subr.bf16.mxu1 %v5533_v60  ;;  %v4502_v59 = vcombine.low %v1383_v48, %v1391_v49  ;;  %v4517_v60 = vcombine.high %v1398_v54, %v1406_v55 }
 0x170   : > { %3600 = vmatmul.mubr.bf16.gmra.mrb[68].mxu1 %v4422_v61  ;;  %3510 = vmatprep.mubr.bf16.mxu0 %v4437_v62  ;;  %v4519_v61 = vcombine.high %v1399_v56, %v1407_v57  ;;  %v1288_v62 = vld [vmem:[%s7029_s0 + $0x30] sm:$0xff] }
 0x171   : > { %3607 = vmatprep.mubr.bf16.mxu1 %v4439_v63  ;;  %5125 = vmatpush3.bf16.msra.mxu0 %v5534_v0  ;;  %v1296_v63 = vld [vmem:[%s7029_s0 + $0x70] sm:$0xff]  ;;  %v1289_v0 = vld [vmem:[%s7029_s0 + $0x38] sm:$0xff] }
 0x172   : > { %5189 = vmatpush3.bf16.msra.mxu1 %v5535_v1  ;;  %5126 = vmatprep.subr.bf16.mxu0 %v5536_v2  ;;  %v1297_v1 = vld [vmem:[%s7029_s0 + $0x78] sm:$0xff]  ;;  %v4516_v2 = vcombine.low %v1398_v54, %v1406_v55  ;;  %v4409_v4 = vcombine.high %v1288_v62, %v1296_v63 }
 0x173   : > { %5190 = vmatprep.subr.bf16.mxu1 %v5537_v3  ;;  %v4518_v3 = vcombine.low %v1399_v56, %v1407_v57  ;;  %v4411_v5 = vcombine.high %v1289_v0, %v1297_v1  ;;  %v1369_v55 = vld [vmem:[%s7029_s0 + $0x2b8] sm:$0xff] }
 0x174   : > { %v1377_v56 = vld [vmem:[%s7029_s0 + $0x2f8] sm:$0xff] }
 0x175   : > { %5127 = vmatpush3.bf16.msra.mxu0 %v5538_v7  ;;  %v1312_v7 = vld [vmem:[%s7029_s0 + $0xf0] sm:$0xff] }
 0x176   : > { %5191 = vmatpush3.bf16.msra.mxu1 %v5539_v9  ;;  %5128 = vmatprep.subr.bf16.mxu0 %v5540_v10  ;;  %v1313_v9 = vld [vmem:[%s7029_s0 + $0xf8] sm:$0xff]  ;;  %v4408_v10 = vcombine.low %v1288_v62, %v1296_v63 }
 0x177   : > { %3511 = vmatmul.mubr.bf16.gmra.mrb[72].mxu0 %v4436_v11  ;;  %5192 = vmatprep.subr.bf16.mxu1 %v5541_v12  ;;  %v4410_v11 = vcombine.low %v1289_v0, %v1297_v1  ;;  %v4425_v12 = vcombine.high %v1304_v6, %v1312_v7 }
 0x178   : > { %3608 = vmatmul.mubr.bf16.gmra.mrb[72].mxu1 %v4438_v13  ;;  %3518 = vmatprep.mubr.bf16.mxu0 %v4453_v14  ;;  %v4427_v13 = vcombine.high %v1305_v8, %v1313_v9  ;;  %v1320_v14 = vld [vmem:[%s7029_s0 + $0x130] sm:$0xff] }
 0x179   : > { %3615 = vmatprep.mubr.bf16.mxu1 %v4455_v15  ;;  %5129 = vmatpush3.bf16.msra.mxu0 %v5542_v16  ;;  %v1328_v15 = vld [vmem:[%s7029_s0 + $0x170] sm:$0xff]  ;;  %v1321_v16 = vld [vmem:[%s7029_s0 + $0x138] sm:$0xff] }
 0x17a   : > { %5193 = vmatpush3.bf16.msra.mxu1 %v5543_v17  ;;  %5130 = vmatprep.subr.bf16.mxu0 %v5544_v18  ;;  %v1329_v17 = vld [vmem:[%s7029_s0 + $0x178] sm:$0xff]  ;;  %v4424_v18 = vcombine.low %v1304_v6, %v1312_v7  ;;  %v4441_v20 = vcombine.high %v1320_v14, %v1328_v15 }
 0x17b   : > { %5194 = vmatprep.subr.bf16.mxu1 %v5545_v19  ;;  %v4426_v19 = vcombine.low %v1305_v8, %v1313_v9  ;;  %v4443_v21 = vcombine.high %v1321_v16, %v1329_v17 }
 0x17d   : > { %5131 = vmatpush3.bf16.msra.mxu0 %v5546_v23  ;;  %v1344_v23 = vld [vmem:[%s7029_s0 + $0x1f0] sm:$0xff] }
 0x17e   : > { %5195 = vmatpush3.bf16.msra.mxu1 %v5547_v25  ;;  %5132 = vmatprep.subr.bf16.mxu0 %v5548_v26  ;;  %v1345_v25 = vld [vmem:[%s7029_s0 + $0x1f8] sm:$0xff]  ;;  %v4440_v26 = vcombine.low %v1320_v14, %v1328_v15  ;;  %v4456_v37 = vcombine.low %v1336_v22, %v1344_v23 }
 0x17f   : > { %3519 = vmatmul.mubr.bf16.gmra.mrb[76].mxu0 %v4452_v27  ;;  %5196 = vmatprep.subr.bf16.mxu1 %v5549_v28  ;;  %v4442_v27 = vcombine.low %v1321_v16, %v1329_v17  ;;  %v4457_v28 = vcombine.high %v1336_v22, %v1344_v23  ;;  %v1393_v14 = vld [vmem:[%s7029_s0 + $0x378] sm:$0xff] }
 0x180   : > { %3616 = vmatmul.mubr.bf16.gmra.mrb[76].mxu1 %v4454_v29  ;;  %3526 = vmatprep.mubr.bf16.mxu0 %v4469_v30  ;;  %v4459_v29 = vcombine.high %v1337_v24, %v1345_v25  ;;  %v1352_v30 = vld [vmem:[%s7029_s0 + $0x230] sm:$0xff] }
 0x181   : > { %3623 = vmatprep.mubr.bf16.mxu1 %v4471_v31  ;;  %5133 = vmatpush3.bf16.msra.mxu0 %v5550_v32  ;;  %v1360_v31 = vld [vmem:[%s7029_s0 + $0x270] sm:$0xff] }
 0x182   : > { %5197 = vmatpush3.bf16.msra.mxu1 %v5551_v33  ;;  %5134 = vmatprep.subr.bf16.mxu0 %v5552_v34  ;;  %v1353_v33 = vld [vmem:[%s7029_s0 + $0x238] sm:$0xff] }
 0x183   : > { %5198 = vmatprep.subr.bf16.mxu1 %v5553_v35  ;;  %v1361_v34 = vld [vmem:[%s7029_s0 + $0x278] sm:$0xff] }
 0x184   : > { %v4475_v46 = vcombine.high %v1353_v33, %v1361_v34  ;;  %v4474_v63 = vcombine.low %v1353_v33, %v1361_v34  ;;  %v1408_v33 = vld [vmem:[%s7029_s0 + $0x3f0] sm:$0xff] }
 0x185   : > { %5135 = vmatpush3.bf16.msra.mxu0 %v5554_v38 }
 0x186   : > { %5199 = vmatpush3.bf16.msra.mxu1 %v5555_v41  ;;  %v4458_v41 = vcombine.low %v1337_v24, %v1345_v25 }
 0x187   : > { %3527 = vmatmul.mubr.bf16.gmra.mrb[80].mxu0 %v4468_v42  ;;  %v4473_v42 = vcombine.high %v1352_v30, %v1360_v31 }
 0x188   : > { %3624 = vmatmul.mubr.bf16.gmra.mrb[80].mxu1 %v4470_v43  ;;  %3534 = vmatprep.mubr.bf16.mxu0 %v4485_v44 }
 0x189   : > { %3631 = vmatprep.mubr.bf16.mxu1 %v4487_v45 }
 0x18f   : > { %3535 = vmatmul.mubr.bf16.gmra.mrb[84].mxu0 %v4484_v50 }
 0x190   : > { %3632 = vmatmul.mubr.bf16.gmra.mrb[84].mxu1 %v4486_v51  ;;  %3542 = vmatprep.mubr.bf16.mxu0 %v4501_v52  ;;  %v1368_v52 = vld [vmem:[%s7029_s0 + $0x2b0] sm:$0xff] }
 0x191   : > { %3639 = vmatprep.mubr.bf16.mxu1 %v4503_v53  ;;  %v1376_v53 = vld [vmem:[%s7029_s0 + $0x2f0] sm:$0xff] }
 0x192   : > { %v4489_v0 = vcombine.high %v1368_v52, %v1376_v53  ;;  %v4488_v17 = vcombine.low %v1368_v52, %v1376_v53 }
 0x197   : > { %3543 = vmatmul.mubr.bf16.gmra.mrb[88].mxu0 %v4500_v58 }
 0x198   : > { %3640 = vmatmul.mubr.bf16.gmra.mrb[88].mxu1 %v4502_v59  ;;  %3550 = vmatprep.mubr.bf16.mxu0 %v4517_v60  ;;  %v4472_v59 = vcombine.low %v1352_v30, %v1360_v31 }
 0x199   : > { %3647 = vmatprep.mubr.bf16.mxu1 %v4519_v61 }
 0x19f   : > { %3551 = vmatmul.mubr.bf16.gmra.mrb[92].mxu0 %v4516_v2 }
 0x1a0   : > { %3648 = vmatmul.mubr.bf16.gmra.mrb[92].mxu1 %v4518_v3  ;;  %3688 = vmatprep.mubr.bf16.mxu0 %v4409_v4  ;;  %v4491_v4 = vcombine.high %v1369_v55, %v1377_v56 }
 0x1a1   : > { %3785 = vmatprep.mubr.bf16.mxu1 %v4411_v5 }
 0x1a7   : > { %3689 = vmatmul.mubr.bf16.vlgmr.msra.gmra.mrb[96].mxu0 %v4408_v10  ;;  %v1384_v10 = vld [vmem:[%s7029_s0 + $0x330] sm:$0xff] }
 0x1a8   : > { %3786 = vmatmul.mubr.bf16.vlgmr.msra.gmra.mrb[96].mxu1 %v4410_v11  ;;  %3696 = vmatprep.mubr.bf16.mxu0 %v4425_v12  ;;  %v1392_v11 = vld [vmem:[%s7029_s0 + $0x370] sm:$0xff] }
 0x1a9   : > { %3793 = vmatprep.mubr.bf16.mxu1 %v4427_v13  ;;  %v1385_v13 = vld [vmem:[%s7029_s0 + $0x338] sm:$0xff]  ;;  %v4505_v22 = vcombine.high %v1384_v10, %v1392_v11 }
 0x1af   : > { %3697 = vmatmul.mubr.bf16.gmra.mrb[100].mxu0 %v4424_v18 }
 0x1b0   : > { %3794 = vmatmul.mubr.bf16.gmra.mrb[100].mxu1 %v4426_v19  ;;  %3704 = vmatprep.mubr.bf16.mxu0 %v4441_v20 }
 0x1b1   : > { %3801 = vmatprep.mubr.bf16.mxu1 %v4443_v21  ;;  %v4490_v21 = vcombine.low %v1369_v55, %v1377_v56 }
 0x1b7   : > { %3705 = vmatmul.mubr.bf16.gmra.mrb[104].mxu0 %v4440_v26  ;;  %v4507_v26 = vcombine.high %v1385_v13, %v1393_v14 }
 0x1b8   : > { %3802 = vmatmul.mubr.bf16.gmra.mrb[104].mxu1 %v4442_v27  ;;  %3712 = vmatprep.mubr.bf16.mxu0 %v4457_v28 }
 0x1b9   : > { %3809 = vmatprep.mubr.bf16.mxu1 %v4459_v29 }
 0x1ba   : > { %v4752_v32 = vpop.f32.mrb[0].mxu0 }
 0x1bb   : > { %v4816_v35 = vpop.f32.mrb[0].mxu1  ;;  %v4753_v36 = vpop.f32.mrb[1].mxu0 }
 0x1bc   : > { %v4754_v38 = vadd.f32 %v4753_v36, %v4752_v32  ;;  %v4817_v39 = vpop.f32.mrb[1].mxu1  ;;  %v4755_v40 = vpop.f32.mrb[2].mxu0  ;;  %v1400_v32 = vld [vmem:[%s7029_s0 + $0x3b0] sm:$0xff]  ;;  %v1409_v36 = vld [vmem:[%s7029_s0 + $0x3f8] sm:$0xff] }
 0x1bd   : > { %v4818_v43 = vadd.f32 %v4817_v39, %v4816_v35  ;;  %v4819_v44 = vpop.f32.mrb[2].mxu1  ;;  %v4756_v45 = vpop.f32.mrb[3].mxu0  ;;  %v1401_v35 = vld [vmem:[%s7029_s0 + $0x3b8] sm:$0xff]  ;;  %v4504_v39 = vcombine.low %v1384_v10, %v1392_v11 }
 0x1be   : > { %v4757_v47 = vadd.f32 %v4756_v45, %v4755_v40  ;;  %v4820_v48 = vpop.f32.mrb[3].mxu1 }
 0x1bf   : > { %v6667_v49 = vadd.f32 %v4818_v43, %v4754_v38  ;;  %v4821_v50 = vadd.f32 %v4820_v48, %v4819_v44  ;;  %3713 = vmatmul.mubr.bf16.gmra.mrb[108].mxu0 %v4456_v37  ;;  %v4506_v43 = vcombine.low %v1385_v13, %v1393_v14  ;;  %v4521_v44 = vcombine.high %v1400_v32, %v1408_v33 }
 0x1c0   : > { %3810 = vmatmul.mubr.bf16.gmra.mrb[108].mxu1 %v4458_v41  ;;  %3720 = vmatprep.mubr.bf16.mxu0 %v4473_v42  ;;  %v4523_v48 = vcombine.high %v1401_v35, %v1409_v36 }
 0x1c1   : > { %v6669_v51 = vadd.f32 %v4821_v50, %v4757_v47  ;;  %3817 = vmatprep.mubr.bf16.mxu1 %v4475_v46 }
 0x1c2   : > { %v4758_v54 = vpop.f32.mrb[4].mxu0 }
 0x1c3   : > { %v4822_v57 = vpop.f32.mrb[4].mxu1  ;;  %v4759_v58 = vpop.f32.mrb[5].mxu0 }
 0x1c4   : > { %v4760_v60 = vadd.f32 %v4759_v58, %v4758_v54  ;;  %v4823_v61 = vpop.f32.mrb[5].mxu1  ;;  %v4761_v62 = vpop.f32.mrb[6].mxu0 }
 0x1c5   : > { %v4824_v1 = vadd.f32 %v4823_v61, %v4822_v57  ;;  %v4825_v2 = vpop.f32.mrb[6].mxu1  ;;  %v4762_v3 = vpop.f32.mrb[7].mxu0 }
 0x1c6   : > { %v4763_v5 = vadd.f32 %v4762_v3, %v4761_v62  ;;  %v4826_v6 = vpop.f32.mrb[7].mxu1 }
 0x1c7   : > { %v6683_v7 = vadd.f32 %v4824_v1, %v4760_v60  ;;  %v4827_v8 = vadd.f32 %v4826_v6, %v4825_v2  ;;  %3721 = vmatmul.mubr.bf16.gmra.mrb[112].mxu0 %v4472_v59  ;;  %v4520_v59 = vcombine.low %v1400_v32, %v1408_v33 }
 0x1c8   : > { %3818 = vmatmul.mubr.bf16.gmra.mrb[112].mxu1 %v4474_v63  ;;  %3728 = vmatprep.mubr.bf16.mxu0 %v4489_v0  ;;  %v4522_v63 = vcombine.low %v1401_v35, %v1409_v36 }
 0x1c9   : > { %v6685_v9 = vadd.f32 %v4827_v8, %v4763_v5  ;;  %3825 = vmatprep.mubr.bf16.mxu1 %v4491_v4 }
 0x1ca   : > { %v4764_v12 = vpop.f32.mrb[8].mxu0 }
 0x1cb   : > { %v4828_v15 = vpop.f32.mrb[8].mxu1  ;;  %v4765_v16 = vpop.f32.mrb[9].mxu0 }
 0x1cc   : > { %v4766_v18 = vadd.f32 %v4765_v16, %v4764_v12  ;;  %v4829_v19 = vpop.f32.mrb[9].mxu1  ;;  %v4767_v20 = vpop.f32.mrb[10].mxu0 }
 0x1cd   : > { %v4830_v23 = vadd.f32 %v4829_v19, %v4828_v15  ;;  %v4831_v24 = vpop.f32.mrb[10].mxu1  ;;  %v4768_v25 = vpop.f32.mrb[11].mxu0 }
 0x1ce   : > { %v4769_v27 = vadd.f32 %v4768_v25, %v4767_v20  ;;  %v4832_v28 = vpop.f32.mrb[11].mxu1 }
 0x1cf   : > { %v6699_v29 = vadd.f32 %v4830_v23, %v4766_v18  ;;  %v4833_v30 = vadd.f32 %v4832_v28, %v4831_v24  ;;  %3729 = vmatmul.mubr.bf16.gmra.mrb[116].mxu0 %v4488_v17 }
 0x1d0   : > { %3826 = vmatmul.mubr.bf16.gmra.mrb[116].mxu1 %v4490_v21  ;;  %3736 = vmatprep.mubr.bf16.mxu0 %v4505_v22 }
 0x1d1   : > { %v6701_v31 = vadd.f32 %v4833_v30, %v4769_v27  ;;  %3833 = vmatprep.mubr.bf16.mxu1 %v4507_v26 }
 0x1d2   : > { %v4770_v34 = vpop.f32.mrb[12].mxu0 }
 0x1d3   : > { %v4834_v37 = vpop.f32.mrb[12].mxu1  ;;  %v4771_v38 = vpop.f32.mrb[13].mxu0 }
 0x1d4   : > { %v4772_v40 = vadd.f32 %v4771_v38, %v4770_v34  ;;  %v4835_v41 = vpop.f32.mrb[13].mxu1  ;;  %v4773_v42 = vpop.f32.mrb[14].mxu0 }
 0x1d5   : > { %v4836_v45 = vadd.f32 %v4835_v41, %v4834_v37  ;;  %v4837_v46 = vpop.f32.mrb[14].mxu1  ;;  %v4774_v47 = vpop.f32.mrb[15].mxu0 }
 0x1d6   : > { %v4775_v50 = vadd.f32 %v4774_v47, %v4773_v42  ;;  %v4838_v52 = vpop.f32.mrb[15].mxu1 }
 0x1d7   : > { %v6715_v53 = vadd.f32 %v4836_v45, %v4772_v40  ;;  %v4839_v54 = vadd.f32 %v4838_v52, %v4837_v46  ;;  %3737 = vmatmul.mubr.bf16.gmra.mrb[120].mxu0 %v4504_v39 }
 0x1d8   : > { %3834 = vmatmul.mubr.bf16.gmra.mrb[120].mxu1 %v4506_v43  ;;  %3744 = vmatprep.mubr.bf16.mxu0 %v4521_v44 }
 0x1d9   : > { %v6717_v55 = vadd.f32 %v4839_v54, %v4775_v50  ;;  %3841 = vmatprep.mubr.bf16.mxu1 %v4523_v48 }
 0x1da   : > { %v4776_v56 = vpop.f32.mrb[16].mxu0 }
 0x1db   : > { %v4840_v57 = vpop.f32.mrb[16].mxu1  ;;  %v4777_v58 = vpop.f32.mrb[17].mxu0 }
 0x1dc   : > { %v4778_v60 = vadd.f32 %v4777_v58, %v4776_v56  ;;  %v4841_v61 = vpop.f32.mrb[17].mxu1  ;;  %v4779_v62 = vpop.f32.mrb[18].mxu0 }
 0x1dd   : > { %v4842_v0 = vadd.f32 %v4841_v61, %v4840_v57  ;;  %v4843_v1 = vpop.f32.mrb[18].mxu1  ;;  %v4780_v2 = vpop.f32.mrb[19].mxu0 }
 0x1de   : > { %v4781_v3 = vadd.f32 %v4780_v2, %v4779_v62  ;;  %v4844_v4 = vpop.f32.mrb[19].mxu1 }
 0x1df   : > { %v6719_v5 = vadd.f32 %v4842_v0, %v4778_v60  ;;  %v4845_v6 = vadd.f32 %v4844_v4, %v4843_v1  ;;  %3745 = vmatmul.mubr.bf16.gmra.mrb[124].mxu0 %v4520_v59 }
 0x1e0   : > { %3842 = vmatmul.mubr.bf16.gmra.mrb[124].mxu1 %v4522_v63 }
 0x1e1   : > { %v6721_v8 = vadd.f32 %v4845_v6, %v4781_v3 }
 0x1e2   : > { %v4782_v10 = vpop.f32.mrb[20].mxu0 }
 0x1e3   : > { %v4846_v11 = vpop.f32.mrb[20].mxu1  ;;  %v4783_v12 = vpop.f32.mrb[21].mxu0 }
 0x1e4   : > { %v4784_v13 = vadd.f32 %v4783_v12, %v4782_v10  ;;  %v4847_v14 = vpop.f32.mrb[21].mxu1  ;;  %v4785_v15 = vpop.f32.mrb[22].mxu0 }
 0x1e5   : > { %v4848_v16 = vadd.f32 %v4847_v14, %v4846_v11  ;;  %v4849_v17 = vpop.f32.mrb[22].mxu1  ;;  %v4786_v18 = vpop.f32.mrb[23].mxu0 }
 0x1e6   : > { %v4787_v19 = vadd.f32 %v4786_v18, %v4785_v15  ;;  %v4850_v20 = vpop.f32.mrb[23].mxu1 }
 0x1e7   : > { %v6723_v21 = vadd.f32 %v4848_v16, %v4784_v13  ;;  %v4851_v22 = vadd.f32 %v4850_v20, %v4849_v17 }
 0x1e9   : > { %v6725_v23 = vadd.f32 %v4851_v22, %v4787_v19 }
 0x1ea   : > { %v4788_v24 = vpop.f32.mrb[24].mxu0 }
 0x1eb   : > { %v4852_v25 = vpop.f32.mrb[24].mxu1  ;;  %v4789_v26 = vpop.f32.mrb[25].mxu0 }
 0x1ec   : > { %v4790_v27 = vadd.f32 %v4789_v26, %v4788_v24  ;;  %v4853_v28 = vpop.f32.mrb[25].mxu1  ;;  %v4791_v30 = vpop.f32.mrb[26].mxu0 }
 0x1ed   : > { %v4854_v32 = vadd.f32 %v4853_v28, %v4852_v25  ;;  %v4855_v33 = vpop.f32.mrb[26].mxu1  ;;  %v4792_v34 = vpop.f32.mrb[27].mxu0 }
 0x1ee   : > { %v4793_v35 = vadd.f32 %v4792_v34, %v4791_v30  ;;  %v4856_v36 = vpop.f32.mrb[27].mxu1 }
 0x1ef   : > { %v6727_v37 = vadd.f32 %v4854_v32, %v4790_v27  ;;  %v4857_v38 = vadd.f32 %v4856_v36, %v4855_v33  ;;  %v5582_v27 = vmov 0.0|0.0  }
 0x1f0   : > { %5352 = vmatprep.subr.bf16.mxu0 %v5582_v27  ;;  %5376 = vmatprep.subr.bf16.mxu1 %v5582_v27 }
 0x1f1   : > { %v6729_v39 = vadd.f32 %v4857_v38, %v4793_v35 }
 0x1f2   : > { %v4794_v40 = vpop.f32.mrb[28].mxu0 }
 0x1f3   : > { %v4858_v41 = vpop.f32.mrb[28].mxu1  ;;  %v4795_v42 = vpop.f32.mrb[29].mxu0 }
 0x1f4   : > { %v4796_v43 = vadd.f32 %v4795_v42, %v4794_v40  ;;  %v4859_v44 = vpop.f32.mrb[29].mxu1  ;;  %v4797_v45 = vpop.f32.mrb[30].mxu0 }
 0x1f5   : > { %v4860_v46 = vadd.f32 %v4859_v44, %v4858_v41  ;;  %v4861_v47 = vpop.f32.mrb[30].mxu1  ;;  %v4798_v48 = vpop.f32.mrb[31].mxu0 }
 0x1f6   : > { %v4799_v50 = vadd.f32 %v4798_v48, %v4797_v45  ;;  %v4862_v52 = vpop.f32.mrb[31].mxu1 }
 0x1f7   : > { %v6731_v54 = vadd.f32 %v4860_v46, %v4796_v43  ;;  %v4863_v56 = vadd.f32 %v4862_v52, %v4861_v47 }
 0x1f9   : > { %v6733_v57 = vadd.f32 %v4863_v56, %v4799_v50 }
 0x1fa   : > { %v4880_v58 = vpop.f32.mrb[32].mxu0 }
 0x1fb   : > { %v4944_v59 = vpop.f32.mrb[32].mxu1  ;;  %v4881_v60 = vpop.f32.mrb[33].mxu0 }
 0x1fc   : > { %v4882_v61 = vadd.f32 %v4881_v60, %v4880_v58  ;;  %v4945_v62 = vpop.f32.mrb[33].mxu1  ;;  %v4883_v63 = vpop.f32.mrb[34].mxu0 }
 0x1fd   : > { %v4946_v0 = vadd.f32 %v4945_v62, %v4944_v59  ;;  %v4947_v1 = vpop.f32.mrb[34].mxu1  ;;  %v4884_v2 = vpop.f32.mrb[35].mxu0 }
 0x1fe   : > { %v3303_v3 = vadd.f32 %v4882_v61, %v6667_v49  ;;  %v4885_v4 = vadd.f32 %v4884_v2, %v4883_v63  ;;  %v4948_v6 = vpop.f32.mrb[35].mxu1 }
 0x1ff   : > { %v4949_v10 = vadd.f32 %v4948_v6, %v4947_v1 }
 0x200   : > { %v6736_v11 = vadd.f32 %v4946_v0, %v3303_v3  ;;  %v3306_v12 = vadd.f32 %v4885_v4, %v6669_v51 }
 0x202   : > { %v6739_v13 = vadd.f32 %v4949_v10, %v3306_v12  ;;  %v4886_v14 = vpop.f32.mrb[36].mxu0 }
 0x203   : > { %v4950_v15 = vpop.f32.mrb[36].mxu1  ;;  %v4887_v16 = vpop.f32.mrb[37].mxu0 }
 0x204   : > { %v4888_v17 = vadd.f32 %v4887_v16, %v4886_v14  ;;  %v4951_v18 = vpop.f32.mrb[37].mxu1  ;;  %v4889_v19 = vpop.f32.mrb[38].mxu0 }
 0x205   : > { %v4952_v20 = vadd.f32 %v4951_v18, %v4950_v15  ;;  %v4953_v22 = vpop.f32.mrb[38].mxu1  ;;  %v4890_v24 = vpop.f32.mrb[39].mxu0 }
 0x206   : > { %v3311_v49 = vadd.f32 %v4888_v17, %v6683_v7  ;;  %v4891_v25 = vadd.f32 %v4890_v24, %v4889_v19  ;;  %v4954_v26 = vpop.f32.mrb[39].mxu1 }
 0x207   : > { %v4955_v51 = vadd.f32 %v4954_v26, %v4953_v22 }
 0x208   : > { %v6744_v28 = vadd.f32 %v4952_v20, %v3311_v49  ;;  %v3314_v30 = vadd.f32 %v4891_v25, %v6685_v9 }
 0x20a   : > { %v6747_v32 = vadd.f32 %v4955_v51, %v3314_v30  ;;  %v4892_v33 = vpop.f32.mrb[40].mxu0 }
 0x20b   : > { %v4956_v34 = vpop.f32.mrb[40].mxu1  ;;  %v4893_v35 = vpop.f32.mrb[41].mxu0 }
 0x20c   : > { %v4894_v36 = vadd.f32 %v4893_v35, %v4892_v33  ;;  %v4957_v38 = vpop.f32.mrb[41].mxu1  ;;  %v4895_v7 = vpop.f32.mrb[42].mxu0 }
 0x20d   : > { %v4958_v40 = vadd.f32 %v4957_v38, %v4956_v34  ;;  %v4959_v41 = vpop.f32.mrb[42].mxu1  ;;  %v4896_v42 = vpop.f32.mrb[43].mxu0 }
 0x20e   : > { %v3319_v43 = vadd.f32 %v4894_v36, %v6699_v29  ;;  %v4897_v44 = vadd.f32 %v4896_v42, %v4895_v7  ;;  %v4960_v45 = vpop.f32.mrb[43].mxu1 }
 0x20f   : > { %v4961_v46 = vadd.f32 %v4960_v45, %v4959_v41 }
 0x210   : > { %v6750_v47 = vadd.f32 %v4958_v40, %v3319_v43  ;;  %v3322_v9 = vadd.f32 %v4897_v44, %v6701_v31 }
 0x212   : > { %v6753_v48 = vadd.f32 %v4961_v46, %v3322_v9  ;;  %v4898_v50 = vpop.f32.mrb[44].mxu0 }
 0x213   : > { %v4962_v52 = vpop.f32.mrb[44].mxu1  ;;  %v4899_v56 = vpop.f32.mrb[45].mxu0 }
 0x214   : > { %v4900_v58 = vadd.f32 %v4899_v56, %v4898_v50  ;;  %v4963_v59 = vpop.f32.mrb[45].mxu1  ;;  %v4901_v60 = vpop.f32.mrb[46].mxu0 }
 0x215   : > { %v4964_v61 = vadd.f32 %v4963_v59, %v4962_v52  ;;  %v4965_v62 = vpop.f32.mrb[46].mxu1  ;;  %v4902_v63 = vpop.f32.mrb[47].mxu0 }
 0x216   : > { %v3327_v29 = vadd.f32 %v4900_v58, %v6715_v53  ;;  %v4903_v0 = vadd.f32 %v4902_v63, %v4901_v60  ;;  %v4966_v1 = vpop.f32.mrb[47].mxu1 }
 0x217   : > { %v4967_v2 = vadd.f32 %v4966_v1, %v4965_v62 }
 0x218   : > { %v6756_v3 = vadd.f32 %v4964_v61, %v3327_v29  ;;  %v3330_v31 = vadd.f32 %v4903_v0, %v6717_v55 }
 0x21a   : > { %v6759_v4 = vadd.f32 %v4967_v2, %v3330_v31  ;;  %v4904_v6 = vpop.f32.mrb[48].mxu0 }
 0x21b   : > { %v4968_v10 = vpop.f32.mrb[48].mxu1  ;;  %v4905_v12 = vpop.f32.mrb[49].mxu0 }
 0x21c   : > { %v4906_v14 = vadd.f32 %v4905_v12, %v4904_v6  ;;  %v4969_v15 = vpop.f32.mrb[49].mxu1  ;;  %v4907_v16 = vpop.f32.mrb[50].mxu0 }
 0x21d   : > { %v4970_v17 = vadd.f32 %v4969_v15, %v4968_v10  ;;  %v4971_v18 = vpop.f32.mrb[50].mxu1  ;;  %v4908_v19 = vpop.f32.mrb[51].mxu0 }
 0x21e   : > { %v3335_v53 = vadd.f32 %v4906_v14, %v6719_v5  ;;  %v4909_v20 = vadd.f32 %v4908_v19, %v4907_v16  ;;  %v4972_v22 = vpop.f32.mrb[51].mxu1 }
 0x21f   : > { %v4973_v24 = vadd.f32 %v4972_v22, %v4971_v18 }
 0x220   : > { %v6762_v49 = vadd.f32 %v4970_v17, %v3335_v53  ;;  %v3338_v55 = vadd.f32 %v4909_v20, %v6721_v8 }
 0x222   : > { %v6765_v25 = vadd.f32 %v4973_v24, %v3338_v55  ;;  %v4910_v26 = vpop.f32.mrb[52].mxu0 }
 0x223   : > { %v4974_v51 = vpop.f32.mrb[52].mxu1  ;;  %v4911_v30 = vpop.f32.mrb[53].mxu0 }
 0x224   : > { %v4912_v33 = vadd.f32 %v4911_v30, %v4910_v26  ;;  %v4975_v34 = vpop.f32.mrb[53].mxu1  ;;  %v4913_v35 = vpop.f32.mrb[54].mxu0 }
 0x225   : > { %v4976_v36 = vadd.f32 %v4975_v34, %v4974_v51  ;;  %v4977_v38 = vpop.f32.mrb[54].mxu1  ;;  %v4914_v7 = vpop.f32.mrb[55].mxu0 }
 0x226   : > { %v3343_v5 = vadd.f32 %v4912_v33, %v6723_v21  ;;  %v4915_v40 = vadd.f32 %v4914_v7, %v4913_v35  ;;  %v4978_v41 = vpop.f32.mrb[55].mxu1 }
 0x227   : > { %v4979_v42 = vadd.f32 %v4978_v41, %v4977_v38 }
 0x228   : > { %v6768_v43 = vadd.f32 %v4976_v36, %v3343_v5  ;;  %v3346_v8 = vadd.f32 %v4915_v40, %v6725_v23  ;;  %v5584_v5 = vmov 0.0  }
 0x229   : > { %5314 = vmatprep.mubr.msk.f32.mxu0 %vm5583_vm0, %v5584_v5  ;;  %5349 = vmatprep.mubr.msk.f32.mxu1 %vm5583_vm0, %v5584_v5 }
 0x22a   : > { %v6771_v44 = vadd.f32 %v4979_v42, %v3346_v8  ;;  %v4916_v45 = vpop.f32.mrb[56].mxu0 }
 0x22b   : > { %v4980_v46 = vpop.f32.mrb[56].mxu1  ;;  %v4917_v9 = vpop.f32.mrb[57].mxu0 }
 0x22c   : > { %v4918_v50 = vadd.f32 %v4917_v9, %v4916_v45  ;;  %v4981_v52 = vpop.f32.mrb[57].mxu1  ;;  %v4919_v56 = vpop.f32.mrb[58].mxu0 }
 0x22d   : > { %v4982_v58 = vadd.f32 %v4981_v52, %v4980_v46  ;;  %v4983_v59 = vpop.f32.mrb[58].mxu1  ;;  %v4920_v60 = vpop.f32.mrb[59].mxu0 }
 0x22e   : > { %v3351_v21 = vadd.f32 %v4918_v50, %v6727_v37  ;;  %v4921_v61 = vadd.f32 %v4920_v60, %v4919_v56  ;;  %v4984_v62 = vpop.f32.mrb[59].mxu1 }
 0x22f   : > { %v4985_v63 = vadd.f32 %v4984_v62, %v4983_v59 }
 0x230   : > { %v6774_v29 = vadd.f32 %v4982_v58, %v3351_v21  ;;  %v3354_v23 = vadd.f32 %v4921_v61, %v6729_v39 }
 0x232   : > { %v6777_v0 = vadd.f32 %v4985_v63, %v3354_v23  ;;  %v4922_v1 = vpop.f32.mrb[60].mxu0 }
 0x233   : > { %v4986_v2 = vpop.f32.mrb[60].mxu1  ;;  %v4923_v31 = vpop.f32.mrb[61].mxu0 }
 0x234   : > { %v4924_v6 = vadd.f32 %v4923_v31, %v4922_v1  ;;  %v4987_v10 = vpop.f32.mrb[61].mxu1  ;;  %v4925_v12 = vpop.f32.mrb[62].mxu0 }
 0x235   : > { %v4988_v14 = vadd.f32 %v4987_v10, %v4986_v2  ;;  %v4989_v15 = vpop.f32.mrb[62].mxu1  ;;  %v4926_v16 = vpop.f32.mrb[63].mxu0 }
 0x236   : > { %v3359_v37 = vadd.f32 %v4924_v6, %v6731_v54  ;;  %v4927_v17 = vadd.f32 %v4926_v16, %v4925_v12  ;;  %v4990_v18 = vpop.f32.mrb[63].mxu1 }
 0x237   : > { %v4991_v19 = vadd.f32 %v4990_v18, %v4989_v15 }
 0x238   : > { %v6780_v53 = vadd.f32 %v4988_v14, %v3359_v37  ;;  %v3362_v39 = vadd.f32 %v4927_v17, %v6733_v57 }
 0x23a   : > { %v6783_v20 = vadd.f32 %v4991_v19, %v3362_v39  ;;  %v5008_v22 = vpop.f32.mrb[64].mxu0 }
 0x23b   : > { %v5072_v24 = vpop.f32.mrb[64].mxu1  ;;  %v5009_v55 = vpop.f32.mrb[65].mxu0 }
 0x23c   : > { %v5010_v26 = vadd.f32 %v5009_v55, %v5008_v22  ;;  %v5073_v51 = vpop.f32.mrb[65].mxu1  ;;  %v5011_v30 = vpop.f32.mrb[66].mxu0 }
 0x23d   : > { %v5074_v33 = vadd.f32 %v5073_v51, %v5072_v24  ;;  %v5075_v34 = vpop.f32.mrb[66].mxu1  ;;  %v5012_v35 = vpop.f32.mrb[67].mxu0 }
 0x23e   : > { %v3497_v54 = vadd.f32 %v5010_v26, %v6736_v11  ;;  %v5013_v36 = vadd.f32 %v5012_v35, %v5011_v30  ;;  %v5076_v38 = vpop.f32.mrb[67].mxu1 }
 0x23f   : > { %v5077_v7 = vadd.f32 %v5076_v38, %v5075_v34 }
 0x240   : > { %v6786_v57 = vadd.f32 %v5074_v33, %v3497_v54  ;;  %v3500_v40 = vadd.f32 %v5013_v36, %v6739_v13 }
 0x242   : > { %v6789_v41 = vadd.f32 %v5077_v7, %v3500_v40  ;;  %v5014_v42 = vpop.f32.mrb[68].mxu0 }
 0x243   : > { %v5078_v8 = vpop.f32.mrb[68].mxu1  ;;  %v5015_v45 = vpop.f32.mrb[69].mxu0 }
 0x244   : > { %v5016_v46 = vadd.f32 %v5015_v45, %v5014_v42  ;;  %v5079_v9 = vpop.f32.mrb[69].mxu1  ;;  %v5017_v50 = vpop.f32.mrb[70].mxu0 }
 0x245   : > { %v5080_v11 = vadd.f32 %v5079_v9, %v5078_v8  ;;  %v5081_v52 = vpop.f32.mrb[70].mxu1  ;;  %v5018_v56 = vpop.f32.mrb[71].mxu0 }
 0x246   : > { %v3505_v58 = vadd.f32 %v5016_v46, %v6744_v28  ;;  %v5019_v59 = vadd.f32 %v5018_v56, %v5017_v50  ;;  %v5082_v60 = vpop.f32.mrb[71].mxu1 }
 0x247   : > { %v5083_v21 = vadd.f32 %v5082_v60, %v5081_v52 }
 0x248   : > { %v6792_v61 = vadd.f32 %v5080_v11, %v3505_v58  ;;  %v3508_v13 = vadd.f32 %v5019_v59, %v6747_v32 }
 0x24a   : > { %v6795_v62 = vadd.f32 %v5083_v21, %v3508_v13  ;;  %v5020_v63 = vpop.f32.mrb[72].mxu0 }
 0x24b   : > { %v5084_v23 = vpop.f32.mrb[72].mxu1  ;;  %v5021_v1 = vpop.f32.mrb[73].mxu0 }
 0x24c   : > { %v5022_v2 = vadd.f32 %v5021_v1, %v5020_v63  ;;  %v5085_v31 = vpop.f32.mrb[73].mxu1  ;;  %v5023_v6 = vpop.f32.mrb[74].mxu0 }
 0x24d   : > { %v5086_v10 = vadd.f32 %v5085_v31, %v5084_v23  ;;  %v5087_v12 = vpop.f32.mrb[74].mxu1  ;;  %v5024_v14 = vpop.f32.mrb[75].mxu0 }
 0x24e   : > { %v3513_v28 = vadd.f32 %v5022_v2, %v6750_v47  ;;  %v5025_v15 = vadd.f32 %v5024_v14, %v5023_v6  ;;  %v5088_v16 = vpop.f32.mrb[75].mxu1 }
 0x24f   : > { %v5089_v37 = vadd.f32 %v5088_v16, %v5087_v12 }
 0x250   : > { %v6798_v17 = vadd.f32 %v5086_v10, %v3513_v28  ;;  %v3516_v32 = vadd.f32 %v5025_v15, %v6753_v48 }
 0x252   : > { %v6801_v18 = vadd.f32 %v5089_v37, %v3516_v32  ;;  %v5026_v19 = vpop.f32.mrb[76].mxu0 }
 0x253   : > { %v5090_v39 = vpop.f32.mrb[76].mxu1  ;;  %v5027_v22 = vpop.f32.mrb[77].mxu0 }
 0x254   : > { %v5028_v24 = vadd.f32 %v5027_v22, %v5026_v19  ;;  %v5091_v55 = vpop.f32.mrb[77].mxu1  ;;  %v5029_v26 = vpop.f32.mrb[78].mxu0 }
 0x255   : > { %v5092_v51 = vadd.f32 %v5091_v55, %v5090_v39  ;;  %v5093_v30 = vpop.f32.mrb[78].mxu1  ;;  %v5030_v33 = vpop.f32.mrb[79].mxu0 }
 0x256   : > { %v3521_v47 = vadd.f32 %v5028_v24, %v6756_v3  ;;  %v5031_v34 = vadd.f32 %v5030_v33, %v5029_v26  ;;  %v5094_v35 = vpop.f32.mrb[79].mxu1 }
 0x257   : > { %v5095_v54 = vadd.f32 %v5094_v35, %v5093_v30 }
 0x258   : > { %v6804_v36 = vadd.f32 %v5092_v51, %v3521_v47  ;;  %v3524_v48 = vadd.f32 %v5031_v34, %v6759_v4 }
 0x25a   : > { %v6807_v38 = vadd.f32 %v5095_v54, %v3524_v48  ;;  %v5032_v7 = vpop.f32.mrb[80].mxu0 }
 0x25b   : > { %v5096_v5 = vpop.f32.mrb[80].mxu1  ;;  %v5033_v40 = vpop.f32.mrb[81].mxu0 }
 0x25c   : > { %v5034_v42 = vadd.f32 %v5033_v40, %v5032_v7  ;;  %v5097_v8 = vpop.f32.mrb[81].mxu1  ;;  %v5035_v45 = vpop.f32.mrb[82].mxu0 }
 0x25d   : > { %v5098_v46 = vadd.f32 %v5097_v8, %v5096_v5  ;;  %v5099_v9 = vpop.f32.mrb[82].mxu1  ;;  %v5036_v50 = vpop.f32.mrb[83].mxu0 }
 0x25e   : > { %v3529_v3 = vadd.f32 %v5034_v42, %v6762_v49  ;;  %v5037_v11 = vadd.f32 %v5036_v50, %v5035_v45  ;;  %v5100_v52 = vpop.f32.mrb[83].mxu1 }
 0x25f   : > { %v5101_v56 = vadd.f32 %v5100_v52, %v5099_v9 }
 0x260   : > { %v6810_v58 = vadd.f32 %v5098_v46, %v3529_v3  ;;  %v3532_v4 = vadd.f32 %v5037_v11, %v6765_v25 }
 0x262   : > { %v6813_v59 = vadd.f32 %v5101_v56, %v3532_v4  ;;  %v5038_v60 = vpop.f32.mrb[84].mxu0 }
 0x263   : > { %v5102_v21 = vpop.f32.mrb[84].mxu1  ;;  %v5039_v13 = vpop.f32.mrb[85].mxu0 }
 0x264   : > { %v5040_v63 = vadd.f32 %v5039_v13, %v5038_v60  ;;  %v5103_v23 = vpop.f32.mrb[85].mxu1  ;;  %v5041_v1 = vpop.f32.mrb[86].mxu0 }
 0x265   : > { %v5104_v2 = vadd.f32 %v5103_v23, %v5102_v21  ;;  %v5105_v31 = vpop.f32.mrb[86].mxu1  ;;  %v5042_v6 = vpop.f32.mrb[87].mxu0 }
 0x266   : > { %v3537_v49 = vadd.f32 %v5040_v63, %v6768_v43  ;;  %v5043_v10 = vadd.f32 %v5042_v6, %v5041_v1  ;;  %v5106_v12 = vpop.f32.mrb[87].mxu1 }
 0x267   : > { %v5107_v14 = vadd.f32 %v5106_v12, %v5105_v31 }
 0x268   : > { %v6816_v28 = vadd.f32 %v5104_v2, %v3537_v49  ;;  %v3540_v25 = vadd.f32 %v5043_v10, %v6771_v44 }
 0x26a   : > { %v6819_v15 = vadd.f32 %v5107_v14, %v3540_v25  ;;  %v5044_v16 = vpop.f32.mrb[88].mxu0 }
 0x26b   : > { %v5108_v37 = vpop.f32.mrb[88].mxu1  ;;  %v5045_v32 = vpop.f32.mrb[89].mxu0 }
 0x26c   : > { %v5046_v19 = vadd.f32 %v5045_v32, %v5044_v16  ;;  %v5109_v39 = vpop.f32.mrb[89].mxu1  ;;  %v5047_v22 = vpop.f32.mrb[90].mxu0 }
 0x26d   : > { %v5110_v24 = vadd.f32 %v5109_v39, %v5108_v37  ;;  %v5111_v55 = vpop.f32.mrb[90].mxu1  ;;  %v5048_v26 = vpop.f32.mrb[91].mxu0 }
 0x26e   : > { %v3545_v43 = vadd.f32 %v5046_v19, %v6774_v29  ;;  %v5049_v51 = vadd.f32 %v5048_v26, %v5047_v22  ;;  %v5112_v30 = vpop.f32.mrb[91].mxu1 }
 0x26f   : > { %v5113_v33 = vadd.f32 %v5112_v30, %v5111_v55 }
 0x270   : > { %v6822_v47 = vadd.f32 %v5110_v24, %v3545_v43  ;;  %v3548_v44 = vadd.f32 %v5049_v51, %v6777_v0 }
 0x272   : > { %v6825_v34 = vadd.f32 %v5113_v33, %v3548_v44  ;;  %v5050_v35 = vpop.f32.mrb[92].mxu0 }
 0x273   : > { %v5114_v54 = vpop.f32.mrb[92].mxu1  ;;  %v5051_v48 = vpop.f32.mrb[93].mxu0 }
 0x274   : > { %v5052_v7 = vadd.f32 %v5051_v48, %v5050_v35  ;;  %v5115_v5 = vpop.f32.mrb[93].mxu1  ;;  %v5053_v40 = vpop.f32.mrb[94].mxu0 }
 0x275   : > { %v5116_v42 = vadd.f32 %v5115_v5, %v5114_v54  ;;  %v5117_v8 = vpop.f32.mrb[94].mxu1  ;;  %v5054_v45 = vpop.f32.mrb[95].mxu0 }
 0x276   : > { %v3553_v29 = vadd.f32 %v5052_v7, %v6780_v53  ;;  %v5055_v46 = vadd.f32 %v5054_v45, %v5053_v40  ;;  %v5118_v9 = vpop.f32.mrb[95].mxu1 }
 0x277   : > { %v5119_v50 = vadd.f32 %v5118_v9, %v5117_v8 }
 0x278   : > { %v6828_v3 = vadd.f32 %v5116_v42, %v3553_v29  ;;  %v3556_v0 = vadd.f32 %v5055_v46, %v6783_v20 }
 0x27a   : > { %v6831_v11 = vadd.f32 %v5119_v50, %v3556_v0  ;;  %v5136_v52 = vpop.f32.mrb[96].mxu0 }
 0x27b   : > { %v5200_v56 = vpop.f32.mrb[96].mxu1  ;;  %v5137_v4 = vpop.f32.mrb[97].mxu0 }
 0x27c   : > { %v5138_v60 = vadd.f32 %v5137_v4, %v5136_v52  ;;  %v5201_v21 = vpop.f32.mrb[97].mxu1  ;;  %v5139_v13 = vpop.f32.mrb[98].mxu0 }
 0x27d   : > { %v5202_v63 = vadd.f32 %v5201_v21, %v5200_v56  ;;  %v5203_v23 = vpop.f32.mrb[98].mxu1  ;;  %v5140_v1 = vpop.f32.mrb[99].mxu0 }
 0x27e   : > { %v3691_v53 = vadd.f32 %v5138_v60, %v6786_v57  ;;  %v5141_v2 = vadd.f32 %v5140_v1, %v5139_v13  ;;  %v5204_v31 = vpop.f32.mrb[99].mxu1 }
 0x27f   : > { %v5205_v6 = vadd.f32 %v5204_v31, %v5203_v23 }
 0x280   : > { %v6834_v49 = vadd.f32 %v5202_v63, %v3691_v53  ;;  %v3694_v20 = vadd.f32 %v5141_v2, %v6789_v41 }
 0x282   : > { %v6837_v10 = vadd.f32 %v5205_v6, %v3694_v20  ;;  %v5142_v12 = vpop.f32.mrb[100].mxu0 }
 0x283   : > { %v5206_v14 = vpop.f32.mrb[100].mxu1  ;;  %v5143_v25 = vpop.f32.mrb[101].mxu0 }
 0x284   : > { %v5353_v16 = vpack.c.bf16 %v6837_v10, %v6834_v49  ;;  %v5144_v37 = vadd.f32 %v5143_v25, %v5142_v12  ;;  %v5207_v32 = vpop.f32.mrb[101].mxu1  ;;  %v5145_v19 = vpop.f32.mrb[102].mxu0 }
 0x285   : > { %v5208_v39 = vadd.f32 %v5207_v32, %v5206_v14  ;;  %v5209_v57 = vpop.f32.mrb[102].mxu1  ;;  %v5146_v22 = vpop.f32.mrb[103].mxu0 }
 0x286   : > { %v3699_v24 = vadd.f32 %v5144_v37, %v6792_v61  ;;  %v5147_v55 = vadd.f32 %v5146_v22, %v5145_v19  ;;  %v5210_v26 = vpop.f32.mrb[103].mxu1  ;;  %5354 = vmatpush3.bf16.msra.mxu0 %v5353_v16 }
 0x287   : > { %v5211_v41 = vadd.f32 %v5210_v26, %v5209_v57  ;;  %5355 = vmatprep.subr.bf16.mxu0 %v5582_v27 }
 0x288   : > { %v6843_v43 = vadd.f32 %v5208_v39, %v3699_v24  ;;  %v3702_v51 = vadd.f32 %v5147_v55, %v6795_v62 }
 0x28a   : > { %v6846_v30 = vadd.f32 %v5211_v41, %v3702_v51  ;;  %v5148_v33 = vpop.f32.mrb[104].mxu0 }
 0x28b   : > { %v5212_v44 = vpop.f32.mrb[104].mxu1  ;;  %v5149_v35 = vpop.f32.mrb[105].mxu0 }
 0x28c   : > { %v5356_v54 = vpack.c.bf16 %v6846_v30, %v6843_v43  ;;  %v5150_v48 = vadd.f32 %v5149_v35, %v5148_v33  ;;  %v5213_v61 = vpop.f32.mrb[105].mxu1  ;;  %v5151_v7 = vpop.f32.mrb[106].mxu0 }
 0x28d   : > { %v5214_v5 = vadd.f32 %v5213_v61, %v5212_v44  ;;  %v5215_v40 = vpop.f32.mrb[106].mxu1  ;;  %v5152_v42 = vpop.f32.mrb[107].mxu0 }
 0x28e   : > { %v3707_v8 = vadd.f32 %v5150_v48, %v6798_v17  ;;  %v5153_v45 = vadd.f32 %v5152_v42, %v5151_v7  ;;  %v5216_v29 = vpop.f32.mrb[107].mxu1  ;;  %5357 = vmatpush3.bf16.msra.mxu0 %v5356_v54 }
 0x28f   : > { %v5217_v62 = vadd.f32 %v5216_v29, %v5215_v40  ;;  %5358 = vmatprep.subr.bf16.mxu0 %v5582_v27 }
 0x290   : > { %v6852_v46 = vadd.f32 %v5214_v5, %v3707_v8  ;;  %v3710_v9 = vadd.f32 %v5153_v45, %v6801_v18 }
 0x292   : > { %v6855_v50 = vadd.f32 %v5217_v62, %v3710_v9  ;;  %v5154_v0 = vpop.f32.mrb[108].mxu0 }
 0x293   : > { %v5218_v52 = vpop.f32.mrb[108].mxu1  ;;  %v5155_v56 = vpop.f32.mrb[109].mxu0 }
 0x294   : > { %v5359_v4 = vpack.c.bf16 %v6855_v50, %v6852_v46  ;;  %v5156_v60 = vadd.f32 %v5155_v56, %v5154_v0  ;;  %v5219_v17 = vpop.f32.mrb[109].mxu1  ;;  %v5157_v21 = vpop.f32.mrb[110].mxu0 }
 0x295   : > { %v5220_v13 = vadd.f32 %v5219_v17, %v5218_v52  ;;  %v5221_v63 = vpop.f32.mrb[110].mxu1  ;;  %v5158_v23 = vpop.f32.mrb[111].mxu0 }
 0x296   : > { %v3715_v1 = vadd.f32 %v5156_v60, %v6804_v36  ;;  %v5159_v53 = vadd.f32 %v5158_v23, %v5157_v21  ;;  %v5222_v2 = vpop.f32.mrb[111].mxu1  ;;  %5360 = vmatpush3.bf16.msra.mxu0 %v5359_v4 }
 0x297   : > { %v5223_v18 = vadd.f32 %v5222_v2, %v5221_v63  ;;  %5361 = vmatprep.subr.bf16.mxu0 %v5582_v27 }
 0x298   : > { %v6861_v31 = vadd.f32 %v5220_v13, %v3715_v1  ;;  %v3718_v6 = vadd.f32 %v5159_v53, %v6807_v38 }
 0x29a   : > { %v6864_v20 = vadd.f32 %v5223_v18, %v3718_v6  ;;  %v5160_v12 = vpop.f32.mrb[112].mxu0 }
 0x29b   : > { %v5224_v14 = vpop.f32.mrb[112].mxu1  ;;  %v5161_v25 = vpop.f32.mrb[113].mxu0 }
 0x29c   : > { %v5362_v16 = vpack.c.bf16 %v6864_v20, %v6861_v31  ;;  %v5162_v37 = vadd.f32 %v5161_v25, %v5160_v12  ;;  %v5225_v36 = vpop.f32.mrb[113].mxu1  ;;  %v5163_v32 = vpop.f32.mrb[114].mxu0 }
 0x29d   : > { %v5226_v19 = vadd.f32 %v5225_v36, %v5224_v14  ;;  %v5227_v39 = vpop.f32.mrb[114].mxu1  ;;  %v5164_v57 = vpop.f32.mrb[115].mxu0 }
 0x29e   : > { %v3723_v22 = vadd.f32 %v5162_v37, %v6810_v58  ;;  %v5165_v24 = vadd.f32 %v5164_v57, %v5163_v32  ;;  %v5228_v55 = vpop.f32.mrb[115].mxu1  ;;  %5363 = vmatpush3.bf16.msra.mxu0 %v5362_v16 }
 0x29f   : > { %v5229_v38 = vadd.f32 %v5228_v55, %v5227_v39  ;;  %5364 = vmatprep.subr.bf16.mxu0 %v5582_v27 }
 0x2a0   : > { %v6870_v26 = vadd.f32 %v5226_v19, %v3723_v22  ;;  %v3726_v41 = vadd.f32 %v5165_v24, %v6813_v59 }
 0x2a2   : > { %v6873_v51 = vadd.f32 %v5229_v38, %v3726_v41  ;;  %v5166_v33 = vpop.f32.mrb[116].mxu0 }
 0x2a3   : > { %v5230_v44 = vpop.f32.mrb[116].mxu1  ;;  %v5167_v35 = vpop.f32.mrb[117].mxu0 }
 0x2a4   : > { %v5365_v54 = vpack.c.bf16 %v6873_v51, %v6870_v26  ;;  %v5168_v48 = vadd.f32 %v5167_v35, %v5166_v33  ;;  %v5231_v58 = vpop.f32.mrb[117].mxu1  ;;  %v5169_v61 = vpop.f32.mrb[118].mxu0  ;;  %v3921_v35 = vlaneseq }
 0x2a5   : > { %v5232_v7 = vadd.f32 %v5231_v58, %v5230_v44  ;;  %v5233_v5 = vpop.f32.mrb[118].mxu1  ;;  %v5170_v40 = vpop.f32.mrb[119].mxu0  ;;  %v5585_v44 = vmov 1.0  }
 0x2a6   : > { %v3731_v42 = vadd.f32 %v5168_v48, %v6816_v28  ;;  %v5171_v8 = vadd.f32 %v5170_v40, %v5169_v61  ;;  %v5234_v45 = vpop.f32.mrb[119].mxu1  ;;  %5366 = vmatpush3.bf16.msra.mxu0 %v5365_v54  ;;  %v6899_v54 = vshrl.u32 %v3921_v35, 7 }
 0x2a7   : > { %v5235_v59 = vadd.f32 %v5234_v45, %v5233_v5  ;;  %5367 = vmatprep.subr.bf16.mxu0 %v5582_v27 }
 0x2a8   : > { %v6879_v29 = vadd.f32 %v5232_v7, %v3731_v42  ;;  %v3734_v62 = vadd.f32 %v5171_v8, %v6819_v15 }
 0x2aa   : > { %v6882_v9 = vadd.f32 %v5235_v59, %v3734_v62  ;;  %v5172_v0 = vpop.f32.mrb[120].mxu0 }
 0x2ab   : > { %v5236_v52 = vpop.f32.mrb[120].mxu1  ;;  %v5173_v56 = vpop.f32.mrb[121].mxu0 }
 0x2ac   : > { %v5368_v4 = vpack.c.bf16 %v6882_v9, %v6879_v29  ;;  %v5174_v60 = vadd.f32 %v5173_v56, %v5172_v0  ;;  %v5237_v28 = vpop.f32.mrb[121].mxu1  ;;  %v5175_v17 = vpop.f32.mrb[122].mxu0 }
 0x2ad   : > { %v5238_v21 = vadd.f32 %v5237_v28, %v5236_v52  ;;  %v5239_v13 = vpop.f32.mrb[122].mxu1  ;;  %v5176_v63 = vpop.f32.mrb[123].mxu0 }
 0x2ae   : > { %v3739_v23 = vadd.f32 %v5174_v60, %v6822_v47  ;;  %v5177_v1 = vadd.f32 %v5176_v63, %v5175_v17  ;;  %v5240_v53 = vpop.f32.mrb[123].mxu1  ;;  %5369 = vmatpush3.bf16.msra.mxu0 %v5368_v4 }
 0x2af   : > { %v5241_v15 = vadd.f32 %v5240_v53, %v5239_v13  ;;  %5370 = vmatprep.subr.bf16.mxu0 %v5582_v27 }
 0x2b0   : > { %v6888_v2 = vadd.f32 %v5238_v21, %v3739_v23  ;;  %v3742_v18 = vadd.f32 %v5177_v1, %v6825_v34 }
 0x2b2   : > { %v6891_v6 = vadd.f32 %v5241_v15, %v3742_v18  ;;  %v5178_v12 = vpop.f32.mrb[124].mxu0 }
 0x2b3   : > { %v5242_v14 = vpop.f32.mrb[124].mxu1  ;;  %v5179_v25 = vpop.f32.mrb[125].mxu0 }
 0x2b4   : > { %v5371_v16 = vpack.c.bf16 %v6891_v6, %v6888_v2  ;;  %v5180_v37 = vadd.f32 %v5179_v25, %v5178_v12  ;;  %v5243_v47 = vpop.f32.mrb[125].mxu1  ;;  %v5181_v36 = vpop.f32.mrb[126].mxu0 }
 0x2b5   : > { %v5244_v32 = vadd.f32 %v5243_v47, %v5242_v14  ;;  %v5245_v19 = vpop.f32.mrb[126].mxu1  ;;  %v5182_v39 = vpop.f32.mrb[127].mxu0 }
 0x2b6   : > { %v3747_v57 = vadd.f32 %v5180_v37, %v6828_v3  ;;  %v5183_v22 = vadd.f32 %v5182_v39, %v5181_v36  ;;  %v5246_v24 = vpop.f32.mrb[127].mxu1  ;;  %5372 = vmatpush3.bf16.msra.mxu0 %v5371_v16  ;;  %v3923_v3 = vsub.s32 0, %v6899_v54 }
 0x2b7   : > { %v5247_v34 = vadd.f32 %v5246_v24, %v5245_v19  ;;  %5373 = vmatprep.subr.bf16.mxu0 %v5582_v27 }
 0x2b8   : > { %v3844_v55 = vadd.f32 %v5244_v32, %v3747_v57  ;;  %v3750_v38 = vadd.f32 %v5183_v22, %v6831_v11  ;;  %v4028_v32 = vld [vmem:[%s1277_s9] sm:$0x1] }
 0x2ba   : > { %v3847_v41 = vadd.f32 %v5247_v34, %v3750_v38 }
 0x2bc   : > { %v5374_v33 = vpack.c.bf16 %v3847_v41, %v3844_v55 }
 0x2be   : > { %5375 = vmatpush3.bf16.msra.mxu0 %v5374_v33 }
 0x2c1   : > { %5315 = vmatmul.mubr.f32.vlgmr.msra.gmra.mrb[128].mxu0 %v5585_v44 }
 0x394   : > { %v3916_v48 = vpop.f32.mrb[128].mxu0 }
 0x395   : > { %v3920_v58 = vmul.f32 0.0078125, %v3916_v48  ;;  %v5316_v61 = vpop.f32.mrb[129].mxu0 }
 0x397   : > { %v3924_v7 = vrot.slane %v3920_v58, %v3923_v3 }
 0x399   : > { %v6905_v5 = vsub.f32 %v6834_v49, %v3924_v7  ;;  %v6908_v11 = vsub.f32 %v6837_v10, %v3924_v7  ;;  %v6911_v40 = vsub.f32 %v6843_v43, %v3924_v7  ;;  %v6914_v42 = vsub.f32 %v6846_v30, %v3924_v7 }
 0x39a   : > { %v6921_v59 = vsub.f32 %v6852_v46, %v3924_v7  ;;  %v6928_v62 = vsub.f32 %v6855_v50, %v3924_v7  ;;  %v3931_v30 = vsub.f32 %v6861_v31, %v3924_v7  ;;  %v3932_v0 = vsub.f32 %v6864_v20, %v3924_v7 }
 0x39b   : > { %v3941_v8 = vmul.f32 %v6905_v5, %v6905_v5  ;;  %v3942_v45 = vmul.f32 %v6908_v11, %v6908_v11  ;;  %v3943_v10 = vmul.f32 %v6911_v40, %v6911_v40  ;;  %v3944_v43 = vmul.f32 %v6914_v42, %v6914_v42 }
 0x39c   : > { %v3945_v46 = vmul.f32 %v6921_v59, %v6921_v59  ;;  %v3946_v56 = vmul.f32 %v6928_v62, %v6928_v62  ;;  %v3947_v4 = vmul.f32 %v3931_v30, %v3931_v30  ;;  %v3948_v50 = vmul.f32 %v3932_v0, %v3932_v0 }
 0x39d   : > { %v5377_v49 = vpack.c.bf16 %v3942_v45, %v3941_v8  ;;  %v5380_v52 = vpack.c.bf16 %v3944_v43, %v3943_v10  ;;  %v3933_v28 = vsub.f32 %v6870_v26, %v3924_v7  ;;  %v3934_v17 = vsub.f32 %v6873_v51, %v3924_v7 }
 0x39e   : > { %v5383_v60 = vpack.c.bf16 %v3946_v56, %v3945_v46  ;;  %v5386_v31 = vpack.c.bf16 %v3948_v50, %v3947_v4  ;;  %v3935_v13 = vsub.f32 %v6879_v29, %v3924_v7  ;;  %v3936_v63 = vsub.f32 %v6882_v9, %v3924_v7 }
 0x39f   : > { %5378 = vmatpush3.bf16.msra.mxu1 %v5377_v49  ;;  %v3949_v20 = vmul.f32 %v3933_v28, %v3933_v28  ;;  %v3950_v21 = vmul.f32 %v3934_v17, %v3934_v17  ;;  %v3937_v23 = vsub.f32 %v6888_v2, %v3924_v7  ;;  %v3938_v51 = vsub.f32 %v6891_v6, %v3924_v7 }
 0x3a0   : > { %5379 = vmatprep.subr.bf16.mxu1 %v5582_v27  ;;  %v3951_v53 = vmul.f32 %v3935_v13, %v3935_v13  ;;  %v3952_v26 = vmul.f32 %v3936_v63, %v3936_v63  ;;  %v3939_v15 = vsub.f32 %v3844_v55, %v3924_v7  ;;  %v3940_v14 = vsub.f32 %v3847_v41, %v3924_v7 }
 0x3a1   : > { %v5389_v1 = vpack.c.bf16 %v3950_v21, %v3949_v20  ;;  %v3953_v12 = vmul.f32 %v3937_v23, %v3937_v23  ;;  %v3954_v29 = vmul.f32 %v3938_v51, %v3938_v51 }
 0x3a2   : > { %v5392_v18 = vpack.c.bf16 %v3952_v26, %v3951_v53  ;;  %v3955_v2 = vmul.f32 %v3939_v15, %v3939_v15  ;;  %v3956_v25 = vmul.f32 %v3940_v14, %v3940_v14 }
 0x3a3   : > { %5381 = vmatpush3.bf16.msra.mxu1 %v5380_v52  ;;  %v5395_v9 = vpack.c.bf16 %v3954_v29, %v3953_v12 }
 0x3a4   : > { %5382 = vmatprep.subr.bf16.mxu1 %v5582_v27  ;;  %v5398_v6 = vpack.c.bf16 %v3956_v25, %v3955_v2 }
 0x3a7   : > { %5384 = vmatpush3.bf16.msra.mxu1 %v5383_v60 }
 0x3a8   : > { %5385 = vmatprep.subr.bf16.mxu1 %v5582_v27 }
 0x3ab   : > { %5387 = vmatpush3.bf16.msra.mxu1 %v5386_v31 }
 0x3ac   : > { %5388 = vmatprep.subr.bf16.mxu1 %v5582_v27 }
 0x3af   : > { %5390 = vmatpush3.bf16.msra.mxu1 %v5389_v1 }
 0x3b0   : > { %5391 = vmatprep.subr.bf16.mxu1 %v5582_v27 }
 0x3b3   : > { %5393 = vmatpush3.bf16.msra.mxu1 %v5392_v18 }
 0x3b4   : > { %5394 = vmatprep.subr.bf16.mxu1 %v5582_v27 }
 0x3b7   : > { %5396 = vmatpush3.bf16.msra.mxu1 %v5395_v9 }
 0x3b8   : > { %5397 = vmatprep.subr.bf16.mxu1 %v5582_v27 }
 0x3bb   : > { %5399 = vmatpush3.bf16.msra.mxu1 %v5398_v6 }
 0x3be   : > { %5350 = vmatmul.mubr.f32.vlgmr.msra.gmra.mrb[128].mxu1 %v5585_v44  ;;  %v4652_v44 = vld [vmem:[%s1280_s12] ss:$0 sm:$0xff] }
 0x491   : > { %v4023_v16 = vpop.f32.mrb[128].mxu1 }
 0x492   : > { %v4027_v37 = vmul.f32 0.0078125, %v4023_v16  ;;  %v5351_v47 = vpop.f32.mrb[129].mxu1 }
 0x494   : > { %v4029_v36 = vadd.f32 1e-05, %v4027_v37 }
 0x496   : > { %5556 = vrsqrt.f32 %v4029_v36 }
 0x4a0   : > { %v5557_v19 = vpop.eup %5556 }
 0x4a1   : > { %v4031_v39 = vmul.f32 %v5557_v19, %v4028_v32 }
 0x4a3   : > { %v4036_v27 = vrot.slane %v4031_v39, %v3923_v3 }
 0x4a5   : > { %v4038_v57 = vmul.f32 %v4036_v27, %v6905_v5  ;;  %v4039_v22 = vmul.f32 %v4036_v27, %v6908_v11  ;;  %v4040_v24 = vmul.f32 %v4036_v27, %v6911_v40  ;;  %v4041_v34 = vmul.f32 %v4036_v27, %v6914_v42 }
 0x4a6   : > { %v4042_v55 = vmul.f32 %v4036_v27, %v6921_v59  ;;  %v4043_v38 = vmul.f32 %v4036_v27, %v6928_v62  ;;  %v4044_v41 = vmul.f32 %v4036_v27, %v3931_v30  ;;  %v4045_v33 = vmul.f32 %v4036_v27, %v3932_v0 }
 0x4a7   : > { %v4046_v35 = vmul.f32 %v4036_v27, %v3933_v28  ;;  %v4047_v48 = vmul.f32 %v4036_v27, %v3934_v17  ;;  %v4048_v58 = vmul.f32 %v4036_v27, %v3935_v13  ;;  %v4049_v54 = vmul.f32 %v4036_v27, %v3936_v63 }
 0x4a8   : > { %v4050_v3 = vmul.f32 %v4036_v27, %v3937_v23  ;;  %v4051_v61 = vmul.f32 %v4036_v27, %v3938_v51  ;;  %v4052_v7 = vmul.f32 %v4036_v27, %v3939_v15  ;;  %v4053_v5 = vmul.f32 %v4036_v27, %v3940_v14 }
 0x4a9   : > { %v4061_v11 = vadd.f32 %v4652_v44, %v4038_v57  ;;  %v4062_v8 = vadd.f32 %v4652_v44, %v4039_v22  ;;  %v4063_v40 = vadd.f32 %v4652_v44, %v4040_v24  ;;  %v4064_v45 = vadd.f32 %v4652_v44, %v4041_v34 }
 0x4aa   : > { %v4065_v42 = vadd.f32 %v4652_v44, %v4042_v55  ;;  %v4066_v49 = vadd.f32 %v4652_v44, %v4043_v38  ;;  %v4067_v59 = vadd.f32 %v4652_v44, %v4044_v41  ;;  %v4068_v10 = vadd.f32 %v4652_v44, %v4045_v33 }
 0x4ab   : > { %v4069_v43 = vadd.f32 %v4652_v44, %v4046_v35  ;;  %v4070_v62 = vadd.f32 %v4652_v44, %v4047_v48  ;;  %v4071_v30 = vadd.f32 %v4652_v44, %v4048_v58  ;;  %v4072_v0 = vadd.f32 %v4652_v44, %v4049_v54 }
 0x4ac   : > { %v4073_v52 = vadd.f32 %v4652_v44, %v4050_v3  ;;  %v4074_v46 = vadd.f32 %v4652_v44, %v4051_v61  ;;  %v4075_v56 = vadd.f32 %v4652_v44, %v4052_v7  ;;  %v4076_v4 = vadd.f32 %v4652_v44, %v4053_v5 }
 0x4ad   : > { %vm4077_vm1 = vcmp.gt.f32.partialorder %v4061_v11, 0.0  ;;  %vm4078_vm2 = vcmp.gt.f32.partialorder %v4062_v8, 0.0  ;;  %vm4079_vm3 = vcmp.gt.f32.partialorder %v4063_v40, 0.0  ;;  %vm4080_vm4 = vcmp.gt.f32.partialorder %v4064_v45, 0.0 }
 0x4ae   : > { %vm4081_vm5 = vcmp.gt.f32.partialorder %v4065_v42, 0.0  ;;  %vm4082_vm6 = vcmp.gt.f32.partialorder %v4066_v49, 0.0  ;;  %vm4083_vm7 = vcmp.gt.f32.partialorder %v4067_v59, 0.0  ;;  %vm4084_vm8 = vcmp.gt.f32.partialorder %v4068_v10, 0.0 }
 0x4af   : > { %vm4085_vm9 = vcmp.gt.f32.partialorder %v4069_v43, 0.0  ;;  %vm4086_vm10 = vcmp.gt.f32.partialorder %v4070_v62, 0.0  ;;  %vm4087_vm11 = vcmp.gt.f32.partialorder %v4071_v30, 0.0  ;;  %vm4088_vm12 = vcmp.gt.f32.partialorder %v4072_v0, 0.0 }
 0x4b0   : > { %vm4089_vm13 = vcmp.gt.f32.partialorder %v4073_v52, 0.0  ;;  %vm4090_vm14 = vcmp.gt.f32.partialorder %v4074_v46, 0.0  ;;  %vm4091_vm15 = vcmp.gt.f32.partialorder %v4075_v56, 0.0  ;;  %vm4092_vm0 = vcmp.gt.f32.partialorder %v4076_v4, 0.0 }
 0x4b1   : > { %v4093_v50 = vmul.f32 0.2, %v4061_v11  ;;  %v4094_v60 = vmul.f32 0.2, %v4062_v8  ;;  %v4095_v28 = vmul.f32 0.2, %v4063_v40 }
 0x4b2   : > { %v4096_v17 = vmul.f32 0.2, %v4064_v45  ;;  %v4097_v31 = vmul.f32 0.2, %v4065_v42  ;;  %v4098_v20 = vmul.f32 0.2, %v4066_v49 }
 0x4b3   : > { %v4099_v21 = vmul.f32 0.2, %v4067_v59  ;;  %v4100_v13 = vmul.f32 0.2, %v4068_v10  ;;  %v4101_v63 = vmul.f32 0.2, %v4069_v43  ;;  %v4109_v23 = vsel %vm4077_vm1, %v4061_v11, %v4093_v50 }
 0x4b4   : > { %v4102_v1 = vmul.f32 0.2, %v4070_v62  ;;  %v4103_v53 = vmul.f32 0.2, %v4071_v30  ;;  %v4104_v26 = vmul.f32 0.2, %v4072_v0  ;;  %v4110_v51 = vsel %vm4078_vm2, %v4062_v8, %v4094_v60 }
 0x4b5   : > { %v4105_v15 = vmul.f32 0.2, %v4073_v52  ;;  %v4106_v18 = vmul.f32 0.2, %v4074_v46  ;;  %v4107_v12 = vmul.f32 0.2, %v4075_v56  ;;  %v4111_v29 = vsel %vm4079_vm3, %v4063_v40, %v4095_v28 }
 0x4b6   : > { %v4108_v14 = vmul.f32 0.2, %v4076_v4  ;;  %v4112_v9 = vsel %vm4080_vm4, %v4064_v45, %v4096_v17  ;;  %v4113_v2 = vsel %vm4081_vm5, %v4065_v42, %v4097_v31  ;;  %v4114_v25 = vsel %vm4082_vm6, %v4066_v49, %v4098_v20 }
 0x4b7   : > { %v4115_v6 = vsel %vm4083_vm7, %v4067_v59, %v4099_v21  ;;  %v4116_v16 = vsel %vm4084_vm8, %v4068_v10, %v4100_v13  ;;  %v4117_v37 = vsel %vm4085_vm9, %v4069_v43, %v4101_v63  ;;  %v4118_v47 = vsel %vm4086_vm10, %v4070_v62, %v4102_v1 }
 0x4b8   : > { %v4119_v36 = vsel %vm4087_vm11, %v4071_v30, %v4103_v53  ;;  %v4120_v32 = vsel %vm4088_vm12, %v4072_v0, %v4104_v26  ;;  %v4121_v19 = vsel %vm4089_vm13, %v4073_v52, %v4105_v15  ;;  %v4122_v39 = vsel %vm4090_vm14, %v4074_v46, %v4106_v18  ;;  %4211 = sbr.rel (!%p5642_p5) target bundleno = 1229 (0x4cd), region = 81 }
 0x4b9   : > { %v4123_v27 = vsel %vm4091_vm15, %v4075_v56, %v4107_v12  ;;  %v4124_v57 = vsel %vm4092_vm0, %v4076_v4, %v4108_v14  ;;  %v4692_v22 = vpack.c.bf16 %v4110_v51, %v4109_v23  ;;  %v4697_v24 = vpack.c.bf16 %v4112_v9, %v4111_v29 }
 0x4ba   : > { %v4702_v34 = vpack.c.bf16 %v4114_v25, %v4113_v2  ;;  %v4707_v55 = vpack.c.bf16 %v4116_v16, %v4115_v6  ;;  %v4712_v38 = vpack.c.bf16 %v4118_v47, %v4117_v37  ;;  %v4717_v41 = vpack.c.bf16 %v4120_v32, %v4119_v36 }
 0x4bb   : > { %4693 = vst [vmem:[%s6987_s15] sm:$0xff] %v4692_v22   ;;  %4729 = vst [vmem:[%s6987_s15 + $0x8] sm:$0xff] %v4697_v24   ;;  %v4722_v33 = vpack.c.bf16 %v4122_v39, %v4121_v19  ;;  %v4727_v44 = vpack.c.bf16 %v4124_v57, %v4123_v27 }
 0x4bc   : > { %4730 = vst [vmem:[%s6987_s15 + $0x10] sm:$0xff] %v4702_v34   ;;  %4731 = vst [vmem:[%s6987_s15 + $0x18] sm:$0xff] %v4707_v55  }
 0x4bd   : > { %4732 = vst [vmem:[%s6987_s15 + $0x20] sm:$0xff] %v4712_v38   ;;  %4733 = vst [vmem:[%s6987_s15 + $0x28] sm:$0xff] %v4717_v41  }
 0x4be   : > { %4734 = vst [vmem:[%s6987_s15 + $0x30] sm:$0xff] %v4722_v33   ;;  %4735 = vst [vmem:[%s6987_s15 + $0x38] sm:$0xff] %v4727_v44  }
 0x4c2   : > { %v4229_v35 = vld [vmem:[%s6987_s15] sm:$0xf]  ;;  %v4231_v48 = vld [vmem:[%s6987_s15 + $0x4] sm:$0xf]  ;;  %v4233_v58 = vld [vmem:[%s6987_s15 + $0x8] sm:$0xf] }
 0x4c3   : > { %v4235_v54 = vld [vmem:[%s6987_s15 + $0xc] sm:$0xf]  ;;  %v4237_v3 = vld [vmem:[%s6987_s15 + $0x10] sm:$0xf]  ;;  %4230 = vst [vmem:[%s4213_s21] sm:$0xf] %v4229_v35 }
 0x4c4   : > { %4232 = vst [vmem:[%s4213_s21 + $0x8] sm:$0xf] %v4231_v48  ;;  %4234 = vst [vmem:[%s4213_s21 + $0x10] sm:$0xf] %v4233_v58  ;;  %v4239_v61 = vld [vmem:[%s6987_s15 + $0x14] sm:$0xf] }
 0x4c5   : > { %4236 = vst [vmem:[%s4213_s21 + $0x18] sm:$0xf] %v4235_v54  ;;  %4238 = vst [vmem:[%s4213_s21 + $0x20] sm:$0xf] %v4237_v3  ;;  %v4241_v7 = vld [vmem:[%s6987_s15 + $0x18] sm:$0xf] }
 0x4c6   : > { %v4243_v5 = vld [vmem:[%s6987_s15 + $0x1c] sm:$0xf]  ;;  %4240 = vst [vmem:[%s4213_s21 + $0x28] sm:$0xf] %v4239_v61  ;;  %4242 = vst [vmem:[%s4213_s21 + $0x30] sm:$0xf] %v4241_v7 }
 0x4c7   : > { %4244 = vst [vmem:[%s4213_s21 + $0x38] sm:$0xf] %v4243_v5  ;;  %v4245_v11 = vld [vmem:[%s6987_s15 + $0x20] sm:$0xf]  ;;  %v4247_v8 = vld [vmem:[%s6987_s15 + $0x24] sm:$0xf] }
 0x4c8   : > { %v4249_v40 = vld [vmem:[%s6987_s15 + $0x28] sm:$0xf]  ;;  %4246 = vst [vmem:[%s4213_s21 + $0x40] sm:$0xf] %v4245_v11  ;;  %4248 = vst [vmem:[%s4213_s21 + $0x48] sm:$0xf] %v4247_v8 }
 0x4c9   : > { %4250 = vst [vmem:[%s4213_s21 + $0x50] sm:$0xf] %v4249_v40  ;;  %v4251_v45 = vld [vmem:[%s6987_s15 + $0x2c] sm:$0xf]  ;;  %v4253_v42 = vld [vmem:[%s6987_s15 + $0x30] sm:$0xf] }
 0x4ca   : > { %v4255_v49 = vld [vmem:[%s6987_s15 + $0x34] sm:$0xf]  ;;  %4252 = vst [vmem:[%s4213_s21 + $0x58] sm:$0xf] %v4251_v45  ;;  %4254 = vst [vmem:[%s4213_s21 + $0x60] sm:$0xf] %v4253_v42 }
 0x4cb   : > { %4256 = vst [vmem:[%s4213_s21 + $0x68] sm:$0xf] %v4255_v49  ;;  %v4257_v59 = vld [vmem:[%s6987_s15 + $0x38] sm:$0xf]  ;;  %v4259_v10 = vld [vmem:[%s6987_s15 + $0x3c] sm:$0xf] }
 0x4cc   : > { %4258 = vst [vmem:[%s4213_s21 + $0x70] sm:$0xf] %v4257_v59  ;;  %4260 = vst [vmem:[%s4213_s21 + $0x78] sm:$0xf] %v4259_v10 }
 0x4cd PF: > { %p11_p11 = scmp.ge.s32.totalorder %s5630_s19, 4   ;;  %s7035_s15 = smov %s5576_s16 }
 0x4ce   : > { %s7036_s16 = smov %s5640_s22  ;;  %s7037_s17 = smov %s5630_s19 }
 0x4cf   :  { %13 = sbr.rel (!%p11_p11) target bundleno = 2 (0x2), region = 159 }

// kernel: discriminator_forward.7
= control target key start
LH: loop header
LB: loop body
LE: loop exit
PB: predicated region body
PF: predicated region fallthrough
CT: control target
= control target key end

     0   :  { %s9176_s18 = smov 0   ;;  %s9178_s19 = smov 0   ;;  %s10762_s0 = inlined_call_operand.vmem [shape: bf16[32,4096], index: 0, kind: input, shape index: {}]   ;;  %s10763_s1 = inlined_call_operand.vmem [shape: bf16[4096,512], index: 1, kind: input, shape index: {}]   ;;  %s10764_s2 = inlined_call_operand.vmem [shape: f32[1,512], index: 2, kind: input, shape index: {}]   ;;  %s10765_s3 = inlined_call_operand.vmem [shape: f32[1,512], index: 3, kind: input, shape index: {}]   ;;  %s10766_s4 = inlined_call_operand.vmem [shape: f32[16,512], index: 4, kind: input, shape index: {}]   ;;  %s10767_s5 = inlined_call_operand.vmem [shape: f32[2,128], index: 5, kind: output, shape index: {}]  }
   0x1   :  { %s9180_s20 = smov 0  }
   0x2 LB: > { %s9192_s21 = sadd.s32 4294967295, %s9139_s20   ;;  %s9195_s22 = sadd.s32 1, %s9139_s20   ;;  %s9139_s20 = sphi %s9180_s20, %s10771_s20   ;;  %s9135_s19 = sphi %s9178_s19, %s10770_s19   ;;  %s9131_s18 = sphi %s9176_s18, %s10769_s18  }
   0x3   : > { %s40_s23 = ssub.s32 %s9139_s20, %s9195_s22  ;;  %s43_s24 = sadd.s32 1, %s9135_s19 }
   0x4   : > { %p41_p0 = scmp.eq.s32.totalorder %s40_s23, 0  ;;  %p50_p1 = scmp.ne.s32.totalorder %s9135_s19, %s9131_s18 }
   0x5   : > { %p51_p2 = scmp.eq.s32.totalorder %s9139_s20, 0  ;;  %p7998_p4 = scmp.ge.s32.totalorder %s9139_s20, 4 }
   0x6   : > { %s9204_s25 = scalar_select %p41_p0, %s9135_s19, %s43_s24  }
   0x7   : > { %p9206_p3 = por %p51_p2, %p50_p1  ;;  %178 = sbr.rel (%p7998_p4) target bundleno = 366 (0x16e), region = 20 }
   0xe   : > { %181 = sbr.rel (!%p9206_p3) target bundleno = 359 (0x167), region = 24  ;;  %s183_s27 = sand.u32 (%p9206_p3), 1, %s9135_s19  }
   0xf   : > { %s8000_s28 = sshll.u32 (%p9206_p3), %s9139_s20, 2  ;;  %s7999_s29 = sshll.u32 (%p9206_p3), %s183_s27, 11 }
  0x10   : > { %s9218_s7 = scalar_lea.vmem (%p9206_p3), %s10763_s1, %s8000_s28  ;;  %s9222_s8 = scalar_lea.vmem (%p9206_p3), [#allocation3], %s7999_s29 }
  0x11   : > { %v203_v0 = vld [vmem:[%s9218_s7] sm:$0xf] (%p9206_p3)  ;;  %v205_v1 = vld [vmem:[%s9218_s7 + $0x10] sm:$0xf] (%p9206_p3) }
  0x12   : > { %204 = vst [vmem:[%s9222_s8] sm:$0xf] (%p9206_p3), %v203_v0  ;;  %206 = vst [vmem:[%s9222_s8 + $0x4] sm:$0xf] (%p9206_p3), %v205_v1  ;;  %v207_v2 = vld [vmem:[%s9218_s7 + $0x20] sm:$0xf] (%p9206_p3) }
  0x13   : > { %v209_v3 = vld [vmem:[%s9218_s7 + $0x30] sm:$0xf] (%p9206_p3)  ;;  %v211_v4 = vld [vmem:[%s9218_s7 + $0x40] sm:$0xf] (%p9206_p3)  ;;  %208 = vst [vmem:[%s9222_s8 + $0x8] sm:$0xf] (%p9206_p3), %v207_v2 }
  0x14   : > { %210 = vst [vmem:[%s9222_s8 + $0xc] sm:$0xf] (%p9206_p3), %v209_v3  ;;  %212 = vst [vmem:[%s9222_s8 + $0x10] sm:$0xf] (%p9206_p3), %v211_v4  ;;  %v213_v5 = vld [vmem:[%s9218_s7 + $0x50] sm:$0xf] (%p9206_p3) }
  0x15   : > { %v215_v6 = vld [vmem:[%s9218_s7 + $0x60] sm:$0xf]  ;;  %v217_v7 = vld [vmem:[%s9218_s7 + $0x70] sm:$0xf]  ;;  %214 = vst [vmem:[%s9222_s8 + $0x14] sm:$0xf] %v213_v5 }
  0x16   : > { %216 = vst [vmem:[%s9222_s8 + $0x18] sm:$0xf] %v215_v6  ;;  %218 = vst [vmem:[%s9222_s8 + $0x1c] sm:$0xf] %v217_v7  ;;  %v219_v8 = vld [vmem:[%s9218_s7 + $0x80] sm:$0xf] }
  0x17   : > { %v221_v9 = vld [vmem:[%s9218_s7 + $0x90] sm:$0xf]  ;;  %v223_v10 = vld [vmem:[%s9218_s7 + $0xa0] sm:$0xf]  ;;  %220 = vst [vmem:[%s9222_s8 + $0x20] sm:$0xf] %v219_v8 }
  0x18   : > { %222 = vst [vmem:[%s9222_s8 + $0x24] sm:$0xf] %v221_v9  ;;  %224 = vst [vmem:[%s9222_s8 + $0x28] sm:$0xf] %v223_v10  ;;  %v225_v11 = vld [vmem:[%s9218_s7 + $0xb0] sm:$0xf] }
  0x19   : > { %v227_v12 = vld [vmem:[%s9218_s7 + $0xc0] sm:$0xf]  ;;  %v229_v13 = vld [vmem:[%s9218_s7 + $0xd0] sm:$0xf]  ;;  %226 = vst [vmem:[%s9222_s8 + $0x2c] sm:$0xf] %v225_v11 }
  0x1a   : > { %228 = vst [vmem:[%s9222_s8 + $0x30] sm:$0xf] %v227_v12  ;;  %230 = vst [vmem:[%s9222_s8 + $0x34] sm:$0xf] %v229_v13  ;;  %v231_v14 = vld [vmem:[%s9218_s7 + $0xe0] sm:$0xf] }
  0x1b   : > { %v233_v15 = vld [vmem:[%s9218_s7 + $0xf0] sm:$0xf]  ;;  %v235_v16 = vld [vmem:[%s9218_s7 + $0x100] sm:$0xf]  ;;  %232 = vst [vmem:[%s9222_s8 + $0x38] sm:$0xf] %v231_v14 }
  0x1c   : > { %234 = vst [vmem:[%s9222_s8 + $0x3c] sm:$0xf] %v233_v15  ;;  %236 = vst [vmem:[%s9222_s8 + $0x40] sm:$0xf] %v235_v16  ;;  %v237_v17 = vld [vmem:[%s9218_s7 + $0x110] sm:$0xf] }
  0x1d   : > { %v239_v18 = vld [vmem:[%s9218_s7 + $0x120] sm:$0xf]  ;;  %v241_v19 = vld [vmem:[%s9218_s7 + $0x130] sm:$0xf]  ;;  %238 = vst [vmem:[%s9222_s8 + $0x44] sm:$0xf] %v237_v17 }
  0x1e   : > { %240 = vst [vmem:[%s9222_s8 + $0x48] sm:$0xf] %v239_v18  ;;  %242 = vst [vmem:[%s9222_s8 + $0x4c] sm:$0xf] %v241_v19  ;;  %v243_v20 = vld [vmem:[%s9218_s7 + $0x140] sm:$0xf] }
  0x1f   : > { %v245_v21 = vld [vmem:[%s9218_s7 + $0x150] sm:$0xf]  ;;  %v247_v22 = vld [vmem:[%s9218_s7 + $0x160] sm:$0xf]  ;;  %244 = vst [vmem:[%s9222_s8 + $0x50] sm:$0xf] %v243_v20 }
  0x20   : > { %246 = vst [vmem:[%s9222_s8 + $0x54] sm:$0xf] %v245_v21  ;;  %248 = vst [vmem:[%s9222_s8 + $0x58] sm:$0xf] %v247_v22  ;;  %v249_v23 = vld [vmem:[%s9218_s7 + $0x170] sm:$0xf] }
  0x21   : > { %v251_v24 = vld [vmem:[%s9218_s7 + $0x180] sm:$0xf]  ;;  %v253_v25 = vld [vmem:[%s9218_s7 + $0x190] sm:$0xf]  ;;  %250 = vst [vmem:[%s9222_s8 + $0x5c] sm:$0xf] %v249_v23 }
  0x22   : > { %252 = vst [vmem:[%s9222_s8 + $0x60] sm:$0xf] %v251_v24  ;;  %254 = vst [vmem:[%s9222_s8 + $0x64] sm:$0xf] %v253_v25  ;;  %v255_v26 = vld [vmem:[%s9218_s7 + $0x1a0] sm:$0xf] }
  0x23   : > { %v257_v27 = vld [vmem:[%s9218_s7 + $0x1b0] sm:$0xf]  ;;  %v259_v28 = vld [vmem:[%s9218_s7 + $0x1c0] sm:$0xf]  ;;  %256 = vst [vmem:[%s9222_s8 + $0x68] sm:$0xf] %v255_v26 }
  0x24   : > { %258 = vst [vmem:[%s9222_s8 + $0x6c] sm:$0xf] %v257_v27  ;;  %260 = vst [vmem:[%s9222_s8 + $0x70] sm:$0xf] %v259_v28  ;;  %v261_v29 = vld [vmem:[%s9218_s7 + $0x1d0] sm:$0xf] }
  0x25   : > { %v263_v30 = vld [vmem:[%s9218_s7 + $0x1e0] sm:$0xf]  ;;  %v265_v31 = vld [vmem:[%s9218_s7 + $0x1f0] sm:$0xf]  ;;  %262 = vst [vmem:[%s9222_s8 + $0x74] sm:$0xf] %v261_v29 }
  0x26   : > { %264 = vst [vmem:[%s9222_s8 + $0x78] sm:$0xf] %v263_v30  ;;  %266 = vst [vmem:[%s9222_s8 + $0x7c] sm:$0xf] %v265_v31  ;;  %v267_v32 = vld [vmem:[%s9218_s7 + $0x200] sm:$0xf] }
  0x27   : > { %v269_v33 = vld [vmem:[%s9218_s7 + $0x210] sm:$0xf]  ;;  %v271_v34 = vld [vmem:[%s9218_s7 + $0x220] sm:$0xf]  ;;  %268 = vst [vmem:[%s9222_s8 + $0x80] sm:$0xf] %v267_v32 }
  0x28   : > { %270 = vst [vmem:[%s9222_s8 + $0x84] sm:$0xf] %v269_v33  ;;  %272 = vst [vmem:[%s9222_s8 + $0x88] sm:$0xf] %v271_v34  ;;  %v273_v35 = vld [vmem:[%s9218_s7 + $0x230] sm:$0xf] }
  0x29   : > { %v275_v36 = vld [vmem:[%s9218_s7 + $0x240] sm:$0xf]  ;;  %v277_v37 = vld [vmem:[%s9218_s7 + $0x250] sm:$0xf]  ;;  %274 = vst [vmem:[%s9222_s8 + $0x8c] sm:$0xf] %v273_v35 }
  0x2a   : > { %276 = vst [vmem:[%s9222_s8 + $0x90] sm:$0xf] %v275_v36  ;;  %278 = vst [vmem:[%s9222_s8 + $0x94] sm:$0xf] %v277_v37  ;;  %v279_v38 = vld [vmem:[%s9218_s7 + $0x260] sm:$0xf] }
  0x2b   : > { %v281_v39 = vld [vmem:[%s9218_s7 + $0x270] sm:$0xf]  ;;  %v283_v40 = vld [vmem:[%s9218_s7 + $0x280] sm:$0xf]  ;;  %280 = vst [vmem:[%s9222_s8 + $0x98] sm:$0xf] %v279_v38 }
  0x2c   : > { %282 = vst [vmem:[%s9222_s8 + $0x9c] sm:$0xf] %v281_v39  ;;  %284 = vst [vmem:[%s9222_s8 + $0xa0] sm:$0xf] %v283_v40  ;;  %v285_v41 = vld [vmem:[%s9218_s7 + $0x290] sm:$0xf] }
  0x2d   : > { %v287_v42 = vld [vmem:[%s9218_s7 + $0x2a0] sm:$0xf]  ;;  %v289_v43 = vld [vmem:[%s9218_s7 + $0x2b0] sm:$0xf]  ;;  %286 = vst [vmem:[%s9222_s8 + $0xa4] sm:$0xf] %v285_v41 }
  0x2e   : > { %288 = vst [vmem:[%s9222_s8 + $0xa8] sm:$0xf] %v287_v42  ;;  %290 = vst [vmem:[%s9222_s8 + $0xac] sm:$0xf] %v289_v43  ;;  %v291_v44 = vld [vmem:[%s9218_s7 + $0x2c0] sm:$0xf] }
  0x2f   : > { %v293_v45 = vld [vmem:[%s9218_s7 + $0x2d0] sm:$0xf]  ;;  %v295_v46 = vld [vmem:[%s9218_s7 + $0x2e0] sm:$0xf]  ;;  %292 = vst [vmem:[%s9222_s8 + $0xb0] sm:$0xf] %v291_v44 }
  0x30   : > { %294 = vst [vmem:[%s9222_s8 + $0xb4] sm:$0xf] %v293_v45  ;;  %296 = vst [vmem:[%s9222_s8 + $0xb8] sm:$0xf] %v295_v46  ;;  %v297_v47 = vld [vmem:[%s9218_s7 + $0x2f0] sm:$0xf] }
  0x31   : > { %v299_v48 = vld [vmem:[%s9218_s7 + $0x300] sm:$0xf]  ;;  %v301_v49 = vld [vmem:[%s9218_s7 + $0x310] sm:$0xf]  ;;  %298 = vst [vmem:[%s9222_s8 + $0xbc] sm:$0xf] %v297_v47 }
  0x32   : > { %300 = vst [vmem:[%s9222_s8 + $0xc0] sm:$0xf] %v299_v48  ;;  %302 = vst [vmem:[%s9222_s8 + $0xc4] sm:$0xf] %v301_v49  ;;  %v303_v50 = vld [vmem:[%s9218_s7 + $0x320] sm:$0xf] }
  0x33   : > { %v305_v51 = vld [vmem:[%s9218_s7 + $0x330] sm:$0xf]  ;;  %v307_v52 = vld [vmem:[%s9218_s7 + $0x340] sm:$0xf]  ;;  %304 = vst [vmem:[%s9222_s8 + $0xc8] sm:$0xf] %v303_v50 }
  0x34   : > { %306 = vst [vmem:[%s9222_s8 + $0xcc] sm:$0xf] %v305_v51  ;;  %308 = vst [vmem:[%s9222_s8 + $0xd0] sm:$0xf] %v307_v52  ;;  %v309_v53 = vld [vmem:[%s9218_s7 + $0x350] sm:$0xf] }
  0x35   : > { %v311_v54 = vld [vmem:[%s9218_s7 + $0x360] sm:$0xf]  ;;  %v313_v55 = vld [vmem:[%s9218_s7 + $0x370] sm:$0xf]  ;;  %310 = vst [vmem:[%s9222_s8 + $0xd4] sm:$0xf] %v309_v53 }
  0x36   : > { %312 = vst [vmem:[%s9222_s8 + $0xd8] sm:$0xf] %v311_v54  ;;  %314 = vst [vmem:[%s9222_s8 + $0xdc] sm:$0xf] %v313_v55  ;;  %v315_v56 = vld [vmem:[%s9218_s7 + $0x380] sm:$0xf] }
  0x37   : > { %v317_v57 = vld [vmem:[%s9218_s7 + $0x390] sm:$0xf]  ;;  %v319_v58 = vld [vmem:[%s9218_s7 + $0x3a0] sm:$0xf]  ;;  %316 = vst [vmem:[%s9222_s8 + $0xe0] sm:$0xf] %v315_v56 }
  0x38   : > { %318 = vst [vmem:[%s9222_s8 + $0xe4] sm:$0xf] %v317_v57  ;;  %320 = vst [vmem:[%s9222_s8 + $0xe8] sm:$0xf] %v319_v58  ;;  %v321_v59 = vld [vmem:[%s9218_s7 + $0x3b0] sm:$0xf] }
  0x39   : > { %v323_v60 = vld [vmem:[%s9218_s7 + $0x3c0] sm:$0xf]  ;;  %v325_v61 = vld [vmem:[%s9218_s7 + $0x3d0] sm:$0xf]  ;;  %322 = vst [vmem:[%s9222_s8 + $0xec] sm:$0xf] %v321_v59 }
  0x3a   : > { %324 = vst [vmem:[%s9222_s8 + $0xf0] sm:$0xf] %v323_v60  ;;  %326 = vst [vmem:[%s9222_s8 + $0xf4] sm:$0xf] %v325_v61  ;;  %v327_v62 = vld [vmem:[%s9218_s7 + $0x3e0] sm:$0xf] }
  0x3b   : > { %v329_v63 = vld [vmem:[%s9218_s7 + $0x3f0] sm:$0xf]  ;;  %v331_v0 = vld [vmem:[%s9218_s7 + $0x400] sm:$0xf]  ;;  %328 = vst [vmem:[%s9222_s8 + $0xf8] sm:$0xf] %v327_v62 }
  0x3c   : > { %330 = vst [vmem:[%s9222_s8 + $0xfc] sm:$0xf] %v329_v63  ;;  %332 = vst [vmem:[%s9222_s8 + $0x100] sm:$0xf] %v331_v0  ;;  %v333_v1 = vld [vmem:[%s9218_s7 + $0x410] sm:$0xf] }
  0x3d   : > { %v335_v2 = vld [vmem:[%s9218_s7 + $0x420] sm:$0xf]  ;;  %v337_v3 = vld [vmem:[%s9218_s7 + $0x430] sm:$0xf]  ;;  %334 = vst [vmem:[%s9222_s8 + $0x104] sm:$0xf] %v333_v1 }
  0x3e   : > { %336 = vst [vmem:[%s9222_s8 + $0x108] sm:$0xf] %v335_v2  ;;  %338 = vst [vmem:[%s9222_s8 + $0x10c] sm:$0xf] %v337_v3  ;;  %v339_v4 = vld [vmem:[%s9218_s7 + $0x440] sm:$0xf] }
  0x3f   : > { %v341_v5 = vld [vmem:[%s9218_s7 + $0x450] sm:$0xf]  ;;  %v343_v6 = vld [vmem:[%s9218_s7 + $0x460] sm:$0xf]  ;;  %340 = vst [vmem:[%s9222_s8 + $0x110] sm:$0xf] %v339_v4 }
  0x40   : > { %342 = vst [vmem:[%s9222_s8 + $0x114] sm:$0xf] %v341_v5  ;;  %344 = vst [vmem:[%s9222_s8 + $0x118] sm:$0xf] %v343_v6  ;;  %v345_v7 = vld [vmem:[%s9218_s7 + $0x470] sm:$0xf] }
  0x41   : > { %v347_v8 = vld [vmem:[%s9218_s7 + $0x480] sm:$0xf]  ;;  %v349_v9 = vld [vmem:[%s9218_s7 + $0x490] sm:$0xf]  ;;  %346 = vst [vmem:[%s9222_s8 + $0x11c] sm:$0xf] %v345_v7 }
  0x42   : > { %348 = vst [vmem:[%s9222_s8 + $0x120] sm:$0xf] %v347_v8  ;;  %350 = vst [vmem:[%s9222_s8 + $0x124] sm:$0xf] %v349_v9  ;;  %v351_v10 = vld [vmem:[%s9218_s7 + $0x4a0] sm:$0xf] }
  0x43   : > { %v353_v11 = vld [vmem:[%s9218_s7 + $0x4b0] sm:$0xf]  ;;  %v355_v12 = vld [vmem:[%s9218_s7 + $0x4c0] sm:$0xf]  ;;  %352 = vst [vmem:[%s9222_s8 + $0x128] sm:$0xf] %v351_v10 }
  0x44   : > { %354 = vst [vmem:[%s9222_s8 + $0x12c] sm:$0xf] %v353_v11  ;;  %356 = vst [vmem:[%s9222_s8 + $0x130] sm:$0xf] %v355_v12  ;;  %v357_v13 = vld [vmem:[%s9218_s7 + $0x4d0] sm:$0xf] }
  0x45   : > { %v359_v14 = vld [vmem:[%s9218_s7 + $0x4e0] sm:$0xf]  ;;  %v361_v15 = vld [vmem:[%s9218_s7 + $0x4f0] sm:$0xf]  ;;  %358 = vst [vmem:[%s9222_s8 + $0x134] sm:$0xf] %v357_v13 }
  0x46   : > { %360 = vst [vmem:[%s9222_s8 + $0x138] sm:$0xf] %v359_v14  ;;  %362 = vst [vmem:[%s9222_s8 + $0x13c] sm:$0xf] %v361_v15  ;;  %v363_v16 = vld [vmem:[%s9218_s7 + $0x500] sm:$0xf] }
  0x47   : > { %v365_v17 = vld [vmem:[%s9218_s7 + $0x510] sm:$0xf]  ;;  %v367_v18 = vld [vmem:[%s9218_s7 + $0x520] sm:$0xf]  ;;  %364 = vst [vmem:[%s9222_s8 + $0x140] sm:$0xf] %v363_v16 }
  0x48   : > { %366 = vst [vmem:[%s9222_s8 + $0x144] sm:$0xf] %v365_v17  ;;  %368 = vst [vmem:[%s9222_s8 + $0x148] sm:$0xf] %v367_v18  ;;  %v369_v19 = vld [vmem:[%s9218_s7 + $0x530] sm:$0xf] }
  0x49   : > { %v371_v20 = vld [vmem:[%s9218_s7 + $0x540] sm:$0xf]  ;;  %v373_v21 = vld [vmem:[%s9218_s7 + $0x550] sm:$0xf]  ;;  %370 = vst [vmem:[%s9222_s8 + $0x14c] sm:$0xf] %v369_v19 }
  0x4a   : > { %372 = vst [vmem:[%s9222_s8 + $0x150] sm:$0xf] %v371_v20  ;;  %374 = vst [vmem:[%s9222_s8 + $0x154] sm:$0xf] %v373_v21  ;;  %v375_v22 = vld [vmem:[%s9218_s7 + $0x560] sm:$0xf] }
  0x4b   : > { %v377_v23 = vld [vmem:[%s9218_s7 + $0x570] sm:$0xf]  ;;  %v379_v24 = vld [vmem:[%s9218_s7 + $0x580] sm:$0xf]  ;;  %376 = vst [vmem:[%s9222_s8 + $0x158] sm:$0xf] %v375_v22 }
  0x4c   : > { %378 = vst [vmem:[%s9222_s8 + $0x15c] sm:$0xf] %v377_v23  ;;  %380 = vst [vmem:[%s9222_s8 + $0x160] sm:$0xf] %v379_v24  ;;  %v381_v25 = vld [vmem:[%s9218_s7 + $0x590] sm:$0xf] }
  0x4d   : > { %v383_v26 = vld [vmem:[%s9218_s7 + $0x5a0] sm:$0xf]  ;;  %v385_v27 = vld [vmem:[%s9218_s7 + $0x5b0] sm:$0xf]  ;;  %382 = vst [vmem:[%s9222_s8 + $0x164] sm:$0xf] %v381_v25 }
  0x4e   : > { %384 = vst [vmem:[%s9222_s8 + $0x168] sm:$0xf] %v383_v26  ;;  %386 = vst [vmem:[%s9222_s8 + $0x16c] sm:$0xf] %v385_v27  ;;  %v387_v28 = vld [vmem:[%s9218_s7 + $0x5c0] sm:$0xf] }
  0x4f   : > { %v389_v29 = vld [vmem:[%s9218_s7 + $0x5d0] sm:$0xf]  ;;  %v391_v30 = vld [vmem:[%s9218_s7 + $0x5e0] sm:$0xf]  ;;  %388 = vst [vmem:[%s9222_s8 + $0x170] sm:$0xf] %v387_v28 }
  0x50   : > { %390 = vst [vmem:[%s9222_s8 + $0x174] sm:$0xf] %v389_v29  ;;  %392 = vst [vmem:[%s9222_s8 + $0x178] sm:$0xf] %v391_v30  ;;  %v393_v31 = vld [vmem:[%s9218_s7 + $0x5f0] sm:$0xf] }
  0x51   : > { %v395_v32 = vld [vmem:[%s9218_s7 + $0x600] sm:$0xf]  ;;  %v397_v33 = vld [vmem:[%s9218_s7 + $0x610] sm:$0xf]  ;;  %394 = vst [vmem:[%s9222_s8 + $0x17c] sm:$0xf] %v393_v31 }
  0x52   : > { %396 = vst [vmem:[%s9222_s8 + $0x180] sm:$0xf] %v395_v32  ;;  %398 = vst [vmem:[%s9222_s8 + $0x184] sm:$0xf] %v397_v33  ;;  %v399_v34 = vld [vmem:[%s9218_s7 + $0x620] sm:$0xf] }
  0x53   : > { %v401_v35 = vld [vmem:[%s9218_s7 + $0x630] sm:$0xf]  ;;  %v403_v36 = vld [vmem:[%s9218_s7 + $0x640] sm:$0xf]  ;;  %400 = vst [vmem:[%s9222_s8 + $0x188] sm:$0xf] %v399_v34 }
  0x54   : > { %402 = vst [vmem:[%s9222_s8 + $0x18c] sm:$0xf] %v401_v35  ;;  %404 = vst [vmem:[%s9222_s8 + $0x190] sm:$0xf] %v403_v36  ;;  %v405_v37 = vld [vmem:[%s9218_s7 + $0x650] sm:$0xf] }
  0x55   : > { %v407_v38 = vld [vmem:[%s9218_s7 + $0x660] sm:$0xf]  ;;  %v409_v39 = vld [vmem:[%s9218_s7 + $0x670] sm:$0xf]  ;;  %406 = vst [vmem:[%s9222_s8 + $0x194] sm:$0xf] %v405_v37 }
  0x56   : > { %408 = vst [vmem:[%s9222_s8 + $0x198] sm:$0xf] %v407_v38  ;;  %410 = vst [vmem:[%s9222_s8 + $0x19c] sm:$0xf] %v409_v39  ;;  %v411_v40 = vld [vmem:[%s9218_s7 + $0x680] sm:$0xf] }
  0x57   : > { %v413_v41 = vld [vmem:[%s9218_s7 + $0x690] sm:$0xf]  ;;  %v415_v42 = vld [vmem:[%s9218_s7 + $0x6a0] sm:$0xf]  ;;  %412 = vst [vmem:[%s9222_s8 + $0x1a0] sm:$0xf] %v411_v40 }
  0x58   : > { %414 = vst [vmem:[%s9222_s8 + $0x1a4] sm:$0xf] %v413_v41  ;;  %416 = vst [vmem:[%s9222_s8 + $0x1a8] sm:$0xf] %v415_v42  ;;  %v417_v43 = vld [vmem:[%s9218_s7 + $0x6b0] sm:$0xf] }
  0x59   : > { %v419_v44 = vld [vmem:[%s9218_s7 + $0x6c0] sm:$0xf]  ;;  %v421_v45 = vld [vmem:[%s9218_s7 + $0x6d0] sm:$0xf]  ;;  %418 = vst [vmem:[%s9222_s8 + $0x1ac] sm:$0xf] %v417_v43 }
  0x5a   : > { %420 = vst [vmem:[%s9222_s8 + $0x1b0] sm:$0xf] %v419_v44  ;;  %422 = vst [vmem:[%s9222_s8 + $0x1b4] sm:$0xf] %v421_v45  ;;  %v423_v46 = vld [vmem:[%s9218_s7 + $0x6e0] sm:$0xf] }
  0x5b   : > { %v425_v47 = vld [vmem:[%s9218_s7 + $0x6f0] sm:$0xf]  ;;  %v427_v48 = vld [vmem:[%s9218_s7 + $0x700] sm:$0xf]  ;;  %424 = vst [vmem:[%s9222_s8 + $0x1b8] sm:$0xf] %v423_v46 }
  0x5c   : > { %426 = vst [vmem:[%s9222_s8 + $0x1bc] sm:$0xf] %v425_v47  ;;  %428 = vst [vmem:[%s9222_s8 + $0x1c0] sm:$0xf] %v427_v48  ;;  %v429_v49 = vld [vmem:[%s9218_s7 + $0x710] sm:$0xf] }
  0x5d   : > { %v431_v50 = vld [vmem:[%s9218_s7 + $0x720] sm:$0xf]  ;;  %v433_v51 = vld [vmem:[%s9218_s7 + $0x730] sm:$0xf]  ;;  %430 = vst [vmem:[%s9222_s8 + $0x1c4] sm:$0xf] %v429_v49 }
  0x5e   : > { %432 = vst [vmem:[%s9222_s8 + $0x1c8] sm:$0xf] %v431_v50  ;;  %434 = vst [vmem:[%s9222_s8 + $0x1cc] sm:$0xf] %v433_v51  ;;  %v435_v52 = vld [vmem:[%s9218_s7 + $0x740] sm:$0xf] }
  0x5f   : > { %v437_v53 = vld [vmem:[%s9218_s7 + $0x750] sm:$0xf]  ;;  %v439_v54 = vld [vmem:[%s9218_s7 + $0x760] sm:$0xf]  ;;  %436 = vst [vmem:[%s9222_s8 + $0x1d0] sm:$0xf] %v435_v52 }
  0x60   : > { %438 = vst [vmem:[%s9222_s8 + $0x1d4] sm:$0xf] %v437_v53  ;;  %440 = vst [vmem:[%s9222_s8 + $0x1d8] sm:$0xf] %v439_v54  ;;  %v441_v55 = vld [vmem:[%s9218_s7 + $0x770] sm:$0xf] }
  0x61   : > { %v443_v56 = vld [vmem:[%s9218_s7 + $0x780] sm:$0xf]  ;;  %v445_v57 = vld [vmem:[%s9218_s7 + $0x790] sm:$0xf]  ;;  %442 = vst [vmem:[%s9222_s8 + $0x1dc] sm:$0xf] %v441_v55 }
  0x62   : > { %444 = vst [vmem:[%s9222_s8 + $0x1e0] sm:$0xf] %v443_v56  ;;  %446 = vst [vmem:[%s9222_s8 + $0x1e4] sm:$0xf] %v445_v57  ;;  %v447_v58 = vld [vmem:[%s9218_s7 + $0x7a0] sm:$0xf] }
  0x63   : > { %v449_v59 = vld [vmem:[%s9218_s7 + $0x7b0] sm:$0xf]  ;;  %v451_v60 = vld [vmem:[%s9218_s7 + $0x7c0] sm:$0xf]  ;;  %448 = vst [vmem:[%s9222_s8 + $0x1e8] sm:$0xf] %v447_v58 }
  0x64   : > { %450 = vst [vmem:[%s9222_s8 + $0x1ec] sm:$0xf] %v449_v59  ;;  %452 = vst [vmem:[%s9222_s8 + $0x1f0] sm:$0xf] %v451_v60  ;;  %v453_v61 = vld [vmem:[%s9218_s7 + $0x7d0] sm:$0xf] }
  0x65   : > { %v455_v62 = vld [vmem:[%s9218_s7 + $0x7e0] sm:$0xf]  ;;  %v457_v63 = vld [vmem:[%s9218_s7 + $0x7f0] sm:$0xf]  ;;  %454 = vst [vmem:[%s9222_s8 + $0x1f4] sm:$0xf] %v453_v61 }
  0x66   : > { %456 = vst [vmem:[%s9222_s8 + $0x1f8] sm:$0xf] %v455_v62  ;;  %458 = vst [vmem:[%s9222_s8 + $0x1fc] sm:$0xf] %v457_v63  ;;  %v459_v0 = vld [vmem:[%s9218_s7 + $0x800] sm:$0xf] }
  0x67   : > { %v461_v1 = vld [vmem:[%s9218_s7 + $0x810] sm:$0xf]  ;;  %v463_v2 = vld [vmem:[%s9218_s7 + $0x820] sm:$0xf]  ;;  %460 = vst [vmem:[%s9222_s8 + $0x200] sm:$0xf] %v459_v0 }
  0x68   : > { %462 = vst [vmem:[%s9222_s8 + $0x204] sm:$0xf] %v461_v1  ;;  %464 = vst [vmem:[%s9222_s8 + $0x208] sm:$0xf] %v463_v2  ;;  %v465_v3 = vld [vmem:[%s9218_s7 + $0x830] sm:$0xf] }
  0x69   : > { %v467_v4 = vld [vmem:[%s9218_s7 + $0x840] sm:$0xf]  ;;  %v469_v5 = vld [vmem:[%s9218_s7 + $0x850] sm:$0xf]  ;;  %466 = vst [vmem:[%s9222_s8 + $0x20c] sm:$0xf] %v465_v3 }
  0x6a   : > { %468 = vst [vmem:[%s9222_s8 + $0x210] sm:$0xf] %v467_v4  ;;  %470 = vst [vmem:[%s9222_s8 + $0x214] sm:$0xf] %v469_v5  ;;  %v471_v6 = vld [vmem:[%s9218_s7 + $0x860] sm:$0xf] }
  0x6b   : > { %v473_v7 = vld [vmem:[%s9218_s7 + $0x870] sm:$0xf]  ;;  %v475_v8 = vld [vmem:[%s9218_s7 + $0x880] sm:$0xf]  ;;  %472 = vst [vmem:[%s9222_s8 + $0x218] sm:$0xf] %v471_v6 }
  0x6c   : > { %474 = vst [vmem:[%s9222_s8 + $0x21c] sm:$0xf] %v473_v7  ;;  %476 = vst [vmem:[%s9222_s8 + $0x220] sm:$0xf] %v475_v8  ;;  %v477_v9 = vld [vmem:[%s9218_s7 + $0x890] sm:$0xf] }
  0x6d   : > { %v479_v10 = vld [vmem:[%s9218_s7 + $0x8a0] sm:$0xf]  ;;  %v481_v11 = vld [vmem:[%s9218_s7 + $0x8b0] sm:$0xf]  ;;  %478 = vst [vmem:[%s9222_s8 + $0x224] sm:$0xf] %v477_v9 }
  0x6e   : > { %480 = vst [vmem:[%s9222_s8 + $0x228] sm:$0xf] %v479_v10  ;;  %482 = vst [vmem:[%s9222_s8 + $0x22c] sm:$0xf] %v481_v11  ;;  %v483_v12 = vld [vmem:[%s9218_s7 + $0x8c0] sm:$0xf] }
  0x6f   : > { %v485_v13 = vld [vmem:[%s9218_s7 + $0x8d0] sm:$0xf]  ;;  %v487_v14 = vld [vmem:[%s9218_s7 + $0x8e0] sm:$0xf]  ;;  %484 = vst [vmem:[%s9222_s8 + $0x230] sm:$0xf] %v483_v12 }
  0x70   : > { %486 = vst [vmem:[%s9222_s8 + $0x234] sm:$0xf] %v485_v13  ;;  %488 = vst [vmem:[%s9222_s8 + $0x238] sm:$0xf] %v487_v14  ;;  %v489_v15 = vld [vmem:[%s9218_s7 + $0x8f0] sm:$0xf] }
  0x71   : > { %v491_v16 = vld [vmem:[%s9218_s7 + $0x900] sm:$0xf]  ;;  %v493_v17 = vld [vmem:[%s9218_s7 + $0x910] sm:$0xf]  ;;  %490 = vst [vmem:[%s9222_s8 + $0x23c] sm:$0xf] %v489_v15 }
  0x72   : > { %492 = vst [vmem:[%s9222_s8 + $0x240] sm:$0xf] %v491_v16  ;;  %494 = vst [vmem:[%s9222_s8 + $0x244] sm:$0xf] %v493_v17  ;;  %v495_v18 = vld [vmem:[%s9218_s7 + $0x920] sm:$0xf] }
  0x73   : > { %v497_v19 = vld [vmem:[%s9218_s7 + $0x930] sm:$0xf]  ;;  %v499_v20 = vld [vmem:[%s9218_s7 + $0x940] sm:$0xf]  ;;  %496 = vst [vmem:[%s9222_s8 + $0x248] sm:$0xf] %v495_v18 }
  0x74   : > { %498 = vst [vmem:[%s9222_s8 + $0x24c] sm:$0xf] %v497_v19  ;;  %500 = vst [vmem:[%s9222_s8 + $0x250] sm:$0xf] %v499_v20  ;;  %v501_v21 = vld [vmem:[%s9218_s7 + $0x950] sm:$0xf] }
  0x75   : > { %v503_v22 = vld [vmem:[%s9218_s7 + $0x960] sm:$0xf]  ;;  %v505_v23 = vld [vmem:[%s9218_s7 + $0x970] sm:$0xf]  ;;  %502 = vst [vmem:[%s9222_s8 + $0x254] sm:$0xf] %v501_v21 }
  0x76   : > { %504 = vst [vmem:[%s9222_s8 + $0x258] sm:$0xf] %v503_v22  ;;  %506 = vst [vmem:[%s9222_s8 + $0x25c] sm:$0xf] %v505_v23  ;;  %v507_v24 = vld [vmem:[%s9218_s7 + $0x980] sm:$0xf] }
  0x77   : > { %v509_v25 = vld [vmem:[%s9218_s7 + $0x990] sm:$0xf]  ;;  %v511_v26 = vld [vmem:[%s9218_s7 + $0x9a0] sm:$0xf]  ;;  %508 = vst [vmem:[%s9222_s8 + $0x260] sm:$0xf] %v507_v24 }
  0x78   : > { %510 = vst [vmem:[%s9222_s8 + $0x264] sm:$0xf] %v509_v25  ;;  %512 = vst [vmem:[%s9222_s8 + $0x268] sm:$0xf] %v511_v26  ;;  %v513_v27 = vld [vmem:[%s9218_s7 + $0x9b0] sm:$0xf] }
  0x79   : > { %v515_v28 = vld [vmem:[%s9218_s7 + $0x9c0] sm:$0xf]  ;;  %v517_v29 = vld [vmem:[%s9218_s7 + $0x9d0] sm:$0xf]  ;;  %514 = vst [vmem:[%s9222_s8 + $0x26c] sm:$0xf] %v513_v27 }
  0x7a   : > { %516 = vst [vmem:[%s9222_s8 + $0x270] sm:$0xf] %v515_v28  ;;  %518 = vst [vmem:[%s9222_s8 + $0x274] sm:$0xf] %v517_v29  ;;  %v519_v30 = vld [vmem:[%s9218_s7 + $0x9e0] sm:$0xf] }
  0x7b   : > { %v521_v31 = vld [vmem:[%s9218_s7 + $0x9f0] sm:$0xf]  ;;  %v523_v32 = vld [vmem:[%s9218_s7 + $0xa00] sm:$0xf]  ;;  %520 = vst [vmem:[%s9222_s8 + $0x278] sm:$0xf] %v519_v30 }
  0x7c   : > { %522 = vst [vmem:[%s9222_s8 + $0x27c] sm:$0xf] %v521_v31  ;;  %524 = vst [vmem:[%s9222_s8 + $0x280] sm:$0xf] %v523_v32  ;;  %v525_v33 = vld [vmem:[%s9218_s7 + $0xa10] sm:$0xf] }
  0x7d   : > { %v527_v34 = vld [vmem:[%s9218_s7 + $0xa20] sm:$0xf]  ;;  %v529_v35 = vld [vmem:[%s9218_s7 + $0xa30] sm:$0xf]  ;;  %526 = vst [vmem:[%s9222_s8 + $0x284] sm:$0xf] %v525_v33 }
  0x7e   : > { %528 = vst [vmem:[%s9222_s8 + $0x288] sm:$0xf] %v527_v34  ;;  %530 = vst [vmem:[%s9222_s8 + $0x28c] sm:$0xf] %v529_v35  ;;  %v531_v36 = vld [vmem:[%s9218_s7 + $0xa40] sm:$0xf] }
  0x7f   : > { %v533_v37 = vld [vmem:[%s9218_s7 + $0xa50] sm:$0xf]  ;;  %v535_v38 = vld [vmem:[%s9218_s7 + $0xa60] sm:$0xf]  ;;  %532 = vst [vmem:[%s9222_s8 + $0x290] sm:$0xf] %v531_v36 }
  0x80   : > { %534 = vst [vmem:[%s9222_s8 + $0x294] sm:$0xf] %v533_v37  ;;  %536 = vst [vmem:[%s9222_s8 + $0x298] sm:$0xf] %v535_v38  ;;  %v537_v39 = vld [vmem:[%s9218_s7 + $0xa70] sm:$0xf] }
  0x81   : > { %v539_v40 = vld [vmem:[%s9218_s7 + $0xa80] sm:$0xf]  ;;  %v541_v41 = vld [vmem:[%s9218_s7 + $0xa90] sm:$0xf]  ;;  %538 = vst [vmem:[%s9222_s8 + $0x29c] sm:$0xf] %v537_v39 }
  0x82   : > { %540 = vst [vmem:[%s9222_s8 + $0x2a0] sm:$0xf] %v539_v40  ;;  %542 = vst [vmem:[%s9222_s8 + $0x2a4] sm:$0xf] %v541_v41  ;;  %v543_v42 = vld [vmem:[%s9218_s7 + $0xaa0] sm:$0xf] }
  0x83   : > { %v545_v43 = vld [vmem:[%s9218_s7 + $0xab0] sm:$0xf]  ;;  %v547_v44 = vld [vmem:[%s9218_s7 + $0xac0] sm:$0xf]  ;;  %544 = vst [vmem:[%s9222_s8 + $0x2a8] sm:$0xf] %v543_v42 }
  0x84   : > { %546 = vst [vmem:[%s9222_s8 + $0x2ac] sm:$0xf] %v545_v43  ;;  %548 = vst [vmem:[%s9222_s8 + $0x2b0] sm:$0xf] %v547_v44  ;;  %v549_v45 = vld [vmem:[%s9218_s7 + $0xad0] sm:$0xf] }
  0x85   : > { %v551_v46 = vld [vmem:[%s9218_s7 + $0xae0] sm:$0xf]  ;;  %v553_v47 = vld [vmem:[%s9218_s7 + $0xaf0] sm:$0xf]  ;;  %550 = vst [vmem:[%s9222_s8 + $0x2b4] sm:$0xf] %v549_v45 }
  0x86   : > { %552 = vst [vmem:[%s9222_s8 + $0x2b8] sm:$0xf] %v551_v46  ;;  %554 = vst [vmem:[%s9222_s8 + $0x2bc] sm:$0xf] %v553_v47  ;;  %v555_v48 = vld [vmem:[%s9218_s7 + $0xb00] sm:$0xf] }
  0x87   : > { %v557_v49 = vld [vmem:[%s9218_s7 + $0xb10] sm:$0xf]  ;;  %v559_v50 = vld [vmem:[%s9218_s7 + $0xb20] sm:$0xf]  ;;  %556 = vst [vmem:[%s9222_s8 + $0x2c0] sm:$0xf] %v555_v48 }
  0x88   : > { %558 = vst [vmem:[%s9222_s8 + $0x2c4] sm:$0xf] %v557_v49  ;;  %560 = vst [vmem:[%s9222_s8 + $0x2c8] sm:$0xf] %v559_v50  ;;  %v561_v51 = vld [vmem:[%s9218_s7 + $0xb30] sm:$0xf] }
  0x89   : > { %v563_v52 = vld [vmem:[%s9218_s7 + $0xb40] sm:$0xf]  ;;  %v565_v53 = vld [vmem:[%s9218_s7 + $0xb50] sm:$0xf]  ;;  %562 = vst [vmem:[%s9222_s8 + $0x2cc] sm:$0xf] %v561_v51 }
  0x8a   : > { %564 = vst [vmem:[%s9222_s8 + $0x2d0] sm:$0xf] %v563_v52  ;;  %566 = vst [vmem:[%s9222_s8 + $0x2d4] sm:$0xf] %v565_v53  ;;  %v567_v54 = vld [vmem:[%s9218_s7 + $0xb60] sm:$0xf] }
  0x8b   : > { %v569_v55 = vld [vmem:[%s9218_s7 + $0xb70] sm:$0xf]  ;;  %v571_v56 = vld [vmem:[%s9218_s7 + $0xb80] sm:$0xf]  ;;  %568 = vst [vmem:[%s9222_s8 + $0x2d8] sm:$0xf] %v567_v54 }
  0x8c   : > { %570 = vst [vmem:[%s9222_s8 + $0x2dc] sm:$0xf] %v569_v55  ;;  %572 = vst [vmem:[%s9222_s8 + $0x2e0] sm:$0xf] %v571_v56  ;;  %v573_v57 = vld [vmem:[%s9218_s7 + $0xb90] sm:$0xf] }
  0x8d   : > { %v575_v58 = vld [vmem:[%s9218_s7 + $0xba0] sm:$0xf]  ;;  %v577_v59 = vld [vmem:[%s9218_s7 + $0xbb0] sm:$0xf]  ;;  %574 = vst [vmem:[%s9222_s8 + $0x2e4] sm:$0xf] %v573_v57 }
  0x8e   : > { %576 = vst [vmem:[%s9222_s8 + $0x2e8] sm:$0xf] %v575_v58  ;;  %578 = vst [vmem:[%s9222_s8 + $0x2ec] sm:$0xf] %v577_v59  ;;  %v579_v60 = vld [vmem:[%s9218_s7 + $0xbc0] sm:$0xf] }
  0x8f   : > { %v581_v61 = vld [vmem:[%s9218_s7 + $0xbd0] sm:$0xf]  ;;  %v583_v62 = vld [vmem:[%s9218_s7 + $0xbe0] sm:$0xf]  ;;  %580 = vst [vmem:[%s9222_s8 + $0x2f0] sm:$0xf] %v579_v60 }
  0x90   : > { %582 = vst [vmem:[%s9222_s8 + $0x2f4] sm:$0xf] %v581_v61  ;;  %584 = vst [vmem:[%s9222_s8 + $0x2f8] sm:$0xf] %v583_v62  ;;  %v585_v63 = vld [vmem:[%s9218_s7 + $0xbf0] sm:$0xf] }
  0x91   : > { %v587_v0 = vld [vmem:[%s9218_s7 + $0xc00] sm:$0xf]  ;;  %v589_v1 = vld [vmem:[%s9218_s7 + $0xc10] sm:$0xf]  ;;  %586 = vst [vmem:[%s9222_s8 + $0x2fc] sm:$0xf] %v585_v63 }
  0x92   : > { %588 = vst [vmem:[%s9222_s8 + $0x300] sm:$0xf] %v587_v0  ;;  %590 = vst [vmem:[%s9222_s8 + $0x304] sm:$0xf] %v589_v1  ;;  %v591_v2 = vld [vmem:[%s9218_s7 + $0xc20] sm:$0xf] }
  0x93   : > { %v593_v3 = vld [vmem:[%s9218_s7 + $0xc30] sm:$0xf]  ;;  %v595_v4 = vld [vmem:[%s9218_s7 + $0xc40] sm:$0xf]  ;;  %592 = vst [vmem:[%s9222_s8 + $0x308] sm:$0xf] %v591_v2 }
  0x94   : > { %594 = vst [vmem:[%s9222_s8 + $0x30c] sm:$0xf] %v593_v3  ;;  %596 = vst [vmem:[%s9222_s8 + $0x310] sm:$0xf] %v595_v4  ;;  %v597_v5 = vld [vmem:[%s9218_s7 + $0xc50] sm:$0xf] }
  0x95   : > { %v599_v6 = vld [vmem:[%s9218_s7 + $0xc60] sm:$0xf]  ;;  %v601_v7 = vld [vmem:[%s9218_s7 + $0xc70] sm:$0xf]  ;;  %598 = vst [vmem:[%s9222_s8 + $0x314] sm:$0xf] %v597_v5 }
  0x96   : > { %600 = vst [vmem:[%s9222_s8 + $0x318] sm:$0xf] %v599_v6  ;;  %602 = vst [vmem:[%s9222_s8 + $0x31c] sm:$0xf] %v601_v7  ;;  %v603_v8 = vld [vmem:[%s9218_s7 + $0xc80] sm:$0xf] }
  0x97   : > { %v605_v9 = vld [vmem:[%s9218_s7 + $0xc90] sm:$0xf]  ;;  %v607_v10 = vld [vmem:[%s9218_s7 + $0xca0] sm:$0xf]  ;;  %604 = vst [vmem:[%s9222_s8 + $0x320] sm:$0xf] %v603_v8 }
  0x98   : > { %606 = vst [vmem:[%s9222_s8 + $0x324] sm:$0xf] %v605_v9  ;;  %608 = vst [vmem:[%s9222_s8 + $0x328] sm:$0xf] %v607_v10  ;;  %v609_v11 = vld [vmem:[%s9218_s7 + $0xcb0] sm:$0xf] }
  0x99   : > { %v611_v12 = vld [vmem:[%s9218_s7 + $0xcc0] sm:$0xf]  ;;  %v613_v13 = vld [vmem:[%s9218_s7 + $0xcd0] sm:$0xf]  ;;  %610 = vst [vmem:[%s9222_s8 + $0x32c] sm:$0xf] %v609_v11 }
  0x9a   : > { %612 = vst [vmem:[%s9222_s8 + $0x330] sm:$0xf] %v611_v12  ;;  %614 = vst [vmem:[%s9222_s8 + $0x334] sm:$0xf] %v613_v13  ;;  %v615_v14 = vld [vmem:[%s9218_s7 + $0xce0] sm:$0xf] }
  0x9b   : > { %v617_v15 = vld [vmem:[%s9218_s7 + $0xcf0] sm:$0xf]  ;;  %v619_v16 = vld [vmem:[%s9218_s7 + $0xd00] sm:$0xf]  ;;  %616 = vst [vmem:[%s9222_s8 + $0x338] sm:$0xf] %v615_v14 }
  0x9c   : > { %618 = vst [vmem:[%s9222_s8 + $0x33c] sm:$0xf] %v617_v15  ;;  %620 = vst [vmem:[%s9222_s8 + $0x340] sm:$0xf] %v619_v16  ;;  %v621_v17 = vld [vmem:[%s9218_s7 + $0xd10] sm:$0xf] }
  0x9d   : > { %v623_v18 = vld [vmem:[%s9218_s7 + $0xd20] sm:$0xf]  ;;  %v625_v19 = vld [vmem:[%s9218_s7 + $0xd30] sm:$0xf]  ;;  %622 = vst [vmem:[%s9222_s8 + $0x344] sm:$0xf] %v621_v17 }
  0x9e   : > { %624 = vst [vmem:[%s9222_s8 + $0x348] sm:$0xf] %v623_v18  ;;  %626 = vst [vmem:[%s9222_s8 + $0x34c] sm:$0xf] %v625_v19  ;;  %v627_v20 = vld [vmem:[%s9218_s7 + $0xd40] sm:$0xf] }
  0x9f   : > { %v629_v21 = vld [vmem:[%s9218_s7 + $0xd50] sm:$0xf]  ;;  %v631_v22 = vld [vmem:[%s9218_s7 + $0xd60] sm:$0xf]  ;;  %628 = vst [vmem:[%s9222_s8 + $0x350] sm:$0xf] %v627_v20 }
  0xa0   : > { %630 = vst [vmem:[%s9222_s8 + $0x354] sm:$0xf] %v629_v21  ;;  %632 = vst [vmem:[%s9222_s8 + $0x358] sm:$0xf] %v631_v22  ;;  %v633_v23 = vld [vmem:[%s9218_s7 + $0xd70] sm:$0xf] }
  0xa1   : > { %v635_v24 = vld [vmem:[%s9218_s7 + $0xd80] sm:$0xf]  ;;  %v637_v25 = vld [vmem:[%s9218_s7 + $0xd90] sm:$0xf]  ;;  %634 = vst [vmem:[%s9222_s8 + $0x35c] sm:$0xf] %v633_v23 }
  0xa2   : > { %636 = vst [vmem:[%s9222_s8 + $0x360] sm:$0xf] %v635_v24  ;;  %638 = vst [vmem:[%s9222_s8 + $0x364] sm:$0xf] %v637_v25  ;;  %v639_v26 = vld [vmem:[%s9218_s7 + $0xda0] sm:$0xf] }
  0xa3   : > { %v641_v27 = vld [vmem:[%s9218_s7 + $0xdb0] sm:$0xf]  ;;  %v643_v28 = vld [vmem:[%s9218_s7 + $0xdc0] sm:$0xf]  ;;  %640 = vst [vmem:[%s9222_s8 + $0x368] sm:$0xf] %v639_v26 }
  0xa4   : > { %642 = vst [vmem:[%s9222_s8 + $0x36c] sm:$0xf] %v641_v27  ;;  %644 = vst [vmem:[%s9222_s8 + $0x370] sm:$0xf] %v643_v28  ;;  %v645_v29 = vld [vmem:[%s9218_s7 + $0xdd0] sm:$0xf] }
  0xa5   : > { %v647_v30 = vld [vmem:[%s9218_s7 + $0xde0] sm:$0xf]  ;;  %v649_v31 = vld [vmem:[%s9218_s7 + $0xdf0] sm:$0xf]  ;;  %646 = vst [vmem:[%s9222_s8 + $0x374] sm:$0xf] %v645_v29 }
  0xa6   : > { %648 = vst [vmem:[%s9222_s8 + $0x378] sm:$0xf] %v647_v30  ;;  %650 = vst [vmem:[%s9222_s8 + $0x37c] sm:$0xf] %v649_v31  ;;  %v651_v32 = vld [vmem:[%s9218_s7 + $0xe00] sm:$0xf] }
  0xa7   : > { %v653_v33 = vld [vmem:[%s9218_s7 + $0xe10] sm:$0xf]  ;;  %v655_v34 = vld [vmem:[%s9218_s7 + $0xe20] sm:$0xf]  ;;  %652 = vst [vmem:[%s9222_s8 + $0x380] sm:$0xf] %v651_v32 }
  0xa8   : > { %654 = vst [vmem:[%s9222_s8 + $0x384] sm:$0xf] %v653_v33  ;;  %656 = vst [vmem:[%s9222_s8 + $0x388] sm:$0xf] %v655_v34  ;;  %v657_v35 = vld [vmem:[%s9218_s7 + $0xe30] sm:$0xf] }
  0xa9   : > { %v659_v36 = vld [vmem:[%s9218_s7 + $0xe40] sm:$0xf]  ;;  %v661_v37 = vld [vmem:[%s9218_s7 + $0xe50] sm:$0xf]  ;;  %658 = vst [vmem:[%s9222_s8 + $0x38c] sm:$0xf] %v657_v35 }
  0xaa   : > { %660 = vst [vmem:[%s9222_s8 + $0x390] sm:$0xf] %v659_v36  ;;  %662 = vst [vmem:[%s9222_s8 + $0x394] sm:$0xf] %v661_v37  ;;  %v663_v38 = vld [vmem:[%s9218_s7 + $0xe60] sm:$0xf] }
  0xab   : > { %v665_v39 = vld [vmem:[%s9218_s7 + $0xe70] sm:$0xf]  ;;  %v667_v40 = vld [vmem:[%s9218_s7 + $0xe80] sm:$0xf]  ;;  %664 = vst [vmem:[%s9222_s8 + $0x398] sm:$0xf] %v663_v38 }
  0xac   : > { %666 = vst [vmem:[%s9222_s8 + $0x39c] sm:$0xf] %v665_v39  ;;  %668 = vst [vmem:[%s9222_s8 + $0x3a0] sm:$0xf] %v667_v40  ;;  %v669_v41 = vld [vmem:[%s9218_s7 + $0xe90] sm:$0xf] }
  0xad   : > { %v671_v42 = vld [vmem:[%s9218_s7 + $0xea0] sm:$0xf]  ;;  %v673_v43 = vld [vmem:[%s9218_s7 + $0xeb0] sm:$0xf]  ;;  %670 = vst [vmem:[%s9222_s8 + $0x3a4] sm:$0xf] %v669_v41 }
  0xae   : > { %672 = vst [vmem:[%s9222_s8 + $0x3a8] sm:$0xf] %v671_v42  ;;  %674 = vst [vmem:[%s9222_s8 + $0x3ac] sm:$0xf] %v673_v43  ;;  %v675_v44 = vld [vmem:[%s9218_s7 + $0xec0] sm:$0xf] }
  0xaf   : > { %v677_v45 = vld [vmem:[%s9218_s7 + $0xed0] sm:$0xf]  ;;  %v679_v46 = vld [vmem:[%s9218_s7 + $0xee0] sm:$0xf]  ;;  %676 = vst [vmem:[%s9222_s8 + $0x3b0] sm:$0xf] %v675_v44 }
  0xb0   : > { %678 = vst [vmem:[%s9222_s8 + $0x3b4] sm:$0xf] %v677_v45  ;;  %680 = vst [vmem:[%s9222_s8 + $0x3b8] sm:$0xf] %v679_v46  ;;  %v681_v47 = vld [vmem:[%s9218_s7 + $0xef0] sm:$0xf] }
  0xb1   : > { %v683_v48 = vld [vmem:[%s9218_s7 + $0xf00] sm:$0xf]  ;;  %v685_v49 = vld [vmem:[%s9218_s7 + $0xf10] sm:$0xf]  ;;  %682 = vst [vmem:[%s9222_s8 + $0x3bc] sm:$0xf] %v681_v47 }
  0xb2   : > { %684 = vst [vmem:[%s9222_s8 + $0x3c0] sm:$0xf] %v683_v48  ;;  %686 = vst [vmem:[%s9222_s8 + $0x3c4] sm:$0xf] %v685_v49  ;;  %v687_v50 = vld [vmem:[%s9218_s7 + $0xf20] sm:$0xf] }
  0xb3   : > { %v689_v51 = vld [vmem:[%s9218_s7 + $0xf30] sm:$0xf]  ;;  %v691_v52 = vld [vmem:[%s9218_s7 + $0xf40] sm:$0xf]  ;;  %688 = vst [vmem:[%s9222_s8 + $0x3c8] sm:$0xf] %v687_v50 }
  0xb4   : > { %690 = vst [vmem:[%s9222_s8 + $0x3cc] sm:$0xf] %v689_v51  ;;  %692 = vst [vmem:[%s9222_s8 + $0x3d0] sm:$0xf] %v691_v52  ;;  %v693_v53 = vld [vmem:[%s9218_s7 + $0xf50] sm:$0xf] }
  0xb5   : > { %v695_v54 = vld [vmem:[%s9218_s7 + $0xf60] sm:$0xf]  ;;  %v697_v55 = vld [vmem:[%s9218_s7 + $0xf70] sm:$0xf]  ;;  %694 = vst [vmem:[%s9222_s8 + $0x3d4] sm:$0xf] %v693_v53 }
  0xb6   : > { %696 = vst [vmem:[%s9222_s8 + $0x3d8] sm:$0xf] %v695_v54  ;;  %698 = vst [vmem:[%s9222_s8 + $0x3dc] sm:$0xf] %v697_v55  ;;  %v699_v56 = vld [vmem:[%s9218_s7 + $0xf80] sm:$0xf] }
  0xb7   : > { %v701_v57 = vld [vmem:[%s9218_s7 + $0xf90] sm:$0xf]  ;;  %v703_v58 = vld [vmem:[%s9218_s7 + $0xfa0] sm:$0xf]  ;;  %700 = vst [vmem:[%s9222_s8 + $0x3e0] sm:$0xf] %v699_v56 }
  0xb8   : > { %702 = vst [vmem:[%s9222_s8 + $0x3e4] sm:$0xf] %v701_v57  ;;  %704 = vst [vmem:[%s9222_s8 + $0x3e8] sm:$0xf] %v703_v58  ;;  %v705_v59 = vld [vmem:[%s9218_s7 + $0xfb0] sm:$0xf] }
  0xb9   : > { %v707_v60 = vld [vmem:[%s9218_s7 + $0xfc0] sm:$0xf]  ;;  %v709_v61 = vld [vmem:[%s9218_s7 + $0xfd0] sm:$0xf]  ;;  %706 = vst [vmem:[%s9222_s8 + $0x3ec] sm:$0xf] %v705_v59 }
  0xba   : > { %708 = vst [vmem:[%s9222_s8 + $0x3f0] sm:$0xf] %v707_v60  ;;  %710 = vst [vmem:[%s9222_s8 + $0x3f4] sm:$0xf] %v709_v61  ;;  %v711_v62 = vld [vmem:[%s9218_s7 + $0xfe0] sm:$0xf] }
  0xbb   : > { %v713_v63 = vld [vmem:[%s9218_s7 + $0xff0] sm:$0xf]  ;;  %v715_v0 = vld [vmem:[%s9218_s7 + $0x1000] sm:$0xf]  ;;  %712 = vst [vmem:[%s9222_s8 + $0x3f8] sm:$0xf] %v711_v62 }
  0xbc   : > { %714 = vst [vmem:[%s9222_s8 + $0x3fc] sm:$0xf] %v713_v63  ;;  %716 = vst [vmem:[%s9222_s8 + $0x400] sm:$0xf] %v715_v0  ;;  %v717_v1 = vld [vmem:[%s9218_s7 + $0x1010] sm:$0xf] }
  0xbd   : > { %v719_v2 = vld [vmem:[%s9218_s7 + $0x1020] sm:$0xf]  ;;  %v721_v3 = vld [vmem:[%s9218_s7 + $0x1030] sm:$0xf]  ;;  %718 = vst [vmem:[%s9222_s8 + $0x404] sm:$0xf] %v717_v1 }
  0xbe   : > { %720 = vst [vmem:[%s9222_s8 + $0x408] sm:$0xf] %v719_v2  ;;  %722 = vst [vmem:[%s9222_s8 + $0x40c] sm:$0xf] %v721_v3  ;;  %v723_v4 = vld [vmem:[%s9218_s7 + $0x1040] sm:$0xf] }
  0xbf   : > { %v725_v5 = vld [vmem:[%s9218_s7 + $0x1050] sm:$0xf]  ;;  %v727_v6 = vld [vmem:[%s9218_s7 + $0x1060] sm:$0xf]  ;;  %724 = vst [vmem:[%s9222_s8 + $0x410] sm:$0xf] %v723_v4 }
  0xc0   : > { %726 = vst [vmem:[%s9222_s8 + $0x414] sm:$0xf] %v725_v5  ;;  %728 = vst [vmem:[%s9222_s8 + $0x418] sm:$0xf] %v727_v6  ;;  %v729_v7 = vld [vmem:[%s9218_s7 + $0x1070] sm:$0xf] }
  0xc1   : > { %v731_v8 = vld [vmem:[%s9218_s7 + $0x1080] sm:$0xf]  ;;  %v733_v9 = vld [vmem:[%s9218_s7 + $0x1090] sm:$0xf]  ;;  %730 = vst [vmem:[%s9222_s8 + $0x41c] sm:$0xf] %v729_v7 }
  0xc2   : > { %732 = vst [vmem:[%s9222_s8 + $0x420] sm:$0xf] %v731_v8  ;;  %734 = vst [vmem:[%s9222_s8 + $0x424] sm:$0xf] %v733_v9  ;;  %v735_v10 = vld [vmem:[%s9218_s7 + $0x10a0] sm:$0xf] }
  0xc3   : > { %v737_v11 = vld [vmem:[%s9218_s7 + $0x10b0] sm:$0xf]  ;;  %v739_v12 = vld [vmem:[%s9218_s7 + $0x10c0] sm:$0xf]  ;;  %736 = vst [vmem:[%s9222_s8 + $0x428] sm:$0xf] %v735_v10 }
  0xc4   : > { %738 = vst [vmem:[%s9222_s8 + $0x42c] sm:$0xf] %v737_v11  ;;  %740 = vst [vmem:[%s9222_s8 + $0x430] sm:$0xf] %v739_v12  ;;  %v741_v13 = vld [vmem:[%s9218_s7 + $0x10d0] sm:$0xf] }
  0xc5   : > { %v743_v14 = vld [vmem:[%s9218_s7 + $0x10e0] sm:$0xf]  ;;  %v745_v15 = vld [vmem:[%s9218_s7 + $0x10f0] sm:$0xf]  ;;  %742 = vst [vmem:[%s9222_s8 + $0x434] sm:$0xf] %v741_v13 }
  0xc6   : > { %744 = vst [vmem:[%s9222_s8 + $0x438] sm:$0xf] %v743_v14  ;;  %746 = vst [vmem:[%s9222_s8 + $0x43c] sm:$0xf] %v745_v15  ;;  %v747_v16 = vld [vmem:[%s9218_s7 + $0x1100] sm:$0xf] }
  0xc7   : > { %v749_v17 = vld [vmem:[%s9218_s7 + $0x1110] sm:$0xf]  ;;  %v751_v18 = vld [vmem:[%s9218_s7 + $0x1120] sm:$0xf]  ;;  %748 = vst [vmem:[%s9222_s8 + $0x440] sm:$0xf] %v747_v16 }
  0xc8   : > { %750 = vst [vmem:[%s9222_s8 + $0x444] sm:$0xf] %v749_v17  ;;  %752 = vst [vmem:[%s9222_s8 + $0x448] sm:$0xf] %v751_v18  ;;  %v753_v19 = vld [vmem:[%s9218_s7 + $0x1130] sm:$0xf] }
  0xc9   : > { %v755_v20 = vld [vmem:[%s9218_s7 + $0x1140] sm:$0xf]  ;;  %v757_v21 = vld [vmem:[%s9218_s7 + $0x1150] sm:$0xf]  ;;  %754 = vst [vmem:[%s9222_s8 + $0x44c] sm:$0xf] %v753_v19 }
  0xca   : > { %756 = vst [vmem:[%s9222_s8 + $0x450] sm:$0xf] %v755_v20  ;;  %758 = vst [vmem:[%s9222_s8 + $0x454] sm:$0xf] %v757_v21  ;;  %v759_v22 = vld [vmem:[%s9218_s7 + $0x1160] sm:$0xf] }
  0xcb   : > { %v761_v23 = vld [vmem:[%s9218_s7 + $0x1170] sm:$0xf]  ;;  %v763_v24 = vld [vmem:[%s9218_s7 + $0x1180] sm:$0xf]  ;;  %760 = vst [vmem:[%s9222_s8 + $0x458] sm:$0xf] %v759_v22 }
  0xcc   : > { %762 = vst [vmem:[%s9222_s8 + $0x45c] sm:$0xf] %v761_v23  ;;  %764 = vst [vmem:[%s9222_s8 + $0x460] sm:$0xf] %v763_v24  ;;  %v765_v25 = vld [vmem:[%s9218_s7 + $0x1190] sm:$0xf] }
  0xcd   : > { %v767_v26 = vld [vmem:[%s9218_s7 + $0x11a0] sm:$0xf]  ;;  %v769_v27 = vld [vmem:[%s9218_s7 + $0x11b0] sm:$0xf]  ;;  %766 = vst [vmem:[%s9222_s8 + $0x464] sm:$0xf] %v765_v25 }
  0xce   : > { %768 = vst [vmem:[%s9222_s8 + $0x468] sm:$0xf] %v767_v26  ;;  %770 = vst [vmem:[%s9222_s8 + $0x46c] sm:$0xf] %v769_v27  ;;  %v771_v28 = vld [vmem:[%s9218_s7 + $0x11c0] sm:$0xf] }
  0xcf   : > { %v773_v29 = vld [vmem:[%s9218_s7 + $0x11d0] sm:$0xf]  ;;  %v775_v30 = vld [vmem:[%s9218_s7 + $0x11e0] sm:$0xf]  ;;  %772 = vst [vmem:[%s9222_s8 + $0x470] sm:$0xf] %v771_v28 }
  0xd0   : > { %774 = vst [vmem:[%s9222_s8 + $0x474] sm:$0xf] %v773_v29  ;;  %776 = vst [vmem:[%s9222_s8 + $0x478] sm:$0xf] %v775_v30  ;;  %v777_v31 = vld [vmem:[%s9218_s7 + $0x11f0] sm:$0xf] }
  0xd1   : > { %v779_v32 = vld [vmem:[%s9218_s7 + $0x1200] sm:$0xf]  ;;  %v781_v33 = vld [vmem:[%s9218_s7 + $0x1210] sm:$0xf]  ;;  %778 = vst [vmem:[%s9222_s8 + $0x47c] sm:$0xf] %v777_v31 }
  0xd2   : > { %780 = vst [vmem:[%s9222_s8 + $0x480] sm:$0xf] %v779_v32  ;;  %782 = vst [vmem:[%s9222_s8 + $0x484] sm:$0xf] %v781_v33  ;;  %v783_v34 = vld [vmem:[%s9218_s7 + $0x1220] sm:$0xf] }
  0xd3   : > { %v785_v35 = vld [vmem:[%s9218_s7 + $0x1230] sm:$0xf]  ;;  %v787_v36 = vld [vmem:[%s9218_s7 + $0x1240] sm:$0xf]  ;;  %784 = vst [vmem:[%s9222_s8 + $0x488] sm:$0xf] %v783_v34 }
  0xd4   : > { %786 = vst [vmem:[%s9222_s8 + $0x48c] sm:$0xf] %v785_v35  ;;  %788 = vst [vmem:[%s9222_s8 + $0x490] sm:$0xf] %v787_v36  ;;  %v789_v37 = vld [vmem:[%s9218_s7 + $0x1250] sm:$0xf] }
  0xd5   : > { %v791_v38 = vld [vmem:[%s9218_s7 + $0x1260] sm:$0xf]  ;;  %v793_v39 = vld [vmem:[%s9218_s7 + $0x1270] sm:$0xf]  ;;  %790 = vst [vmem:[%s9222_s8 + $0x494] sm:$0xf] %v789_v37 }
  0xd6   : > { %792 = vst [vmem:[%s9222_s8 + $0x498] sm:$0xf] %v791_v38  ;;  %794 = vst [vmem:[%s9222_s8 + $0x49c] sm:$0xf] %v793_v39  ;;  %v795_v40 = vld [vmem:[%s9218_s7 + $0x1280] sm:$0xf] }
  0xd7   : > { %v797_v41 = vld [vmem:[%s9218_s7 + $0x1290] sm:$0xf]  ;;  %v799_v42 = vld [vmem:[%s9218_s7 + $0x12a0] sm:$0xf]  ;;  %796 = vst [vmem:[%s9222_s8 + $0x4a0] sm:$0xf] %v795_v40 }
  0xd8   : > { %798 = vst [vmem:[%s9222_s8 + $0x4a4] sm:$0xf] %v797_v41  ;;  %800 = vst [vmem:[%s9222_s8 + $0x4a8] sm:$0xf] %v799_v42  ;;  %v801_v43 = vld [vmem:[%s9218_s7 + $0x12b0] sm:$0xf] }
  0xd9   : > { %v803_v44 = vld [vmem:[%s9218_s7 + $0x12c0] sm:$0xf]  ;;  %v805_v45 = vld [vmem:[%s9218_s7 + $0x12d0] sm:$0xf]  ;;  %802 = vst [vmem:[%s9222_s8 + $0x4ac] sm:$0xf] %v801_v43 }
  0xda   : > { %804 = vst [vmem:[%s9222_s8 + $0x4b0] sm:$0xf] %v803_v44  ;;  %806 = vst [vmem:[%s9222_s8 + $0x4b4] sm:$0xf] %v805_v45  ;;  %v807_v46 = vld [vmem:[%s9218_s7 + $0x12e0] sm:$0xf] }
  0xdb   : > { %v809_v47 = vld [vmem:[%s9218_s7 + $0x12f0] sm:$0xf]  ;;  %v811_v48 = vld [vmem:[%s9218_s7 + $0x1300] sm:$0xf]  ;;  %808 = vst [vmem:[%s9222_s8 + $0x4b8] sm:$0xf] %v807_v46 }
  0xdc   : > { %810 = vst [vmem:[%s9222_s8 + $0x4bc] sm:$0xf] %v809_v47  ;;  %812 = vst [vmem:[%s9222_s8 + $0x4c0] sm:$0xf] %v811_v48  ;;  %v813_v49 = vld [vmem:[%s9218_s7 + $0x1310] sm:$0xf] }
  0xdd   : > { %v815_v50 = vld [vmem:[%s9218_s7 + $0x1320] sm:$0xf]  ;;  %v817_v51 = vld [vmem:[%s9218_s7 + $0x1330] sm:$0xf]  ;;  %814 = vst [vmem:[%s9222_s8 + $0x4c4] sm:$0xf] %v813_v49 }
  0xde   : > { %816 = vst [vmem:[%s9222_s8 + $0x4c8] sm:$0xf] %v815_v50  ;;  %818 = vst [vmem:[%s9222_s8 + $0x4cc] sm:$0xf] %v817_v51  ;;  %v819_v52 = vld [vmem:[%s9218_s7 + $0x1340] sm:$0xf] }
  0xdf   : > { %v821_v53 = vld [vmem:[%s9218_s7 + $0x1350] sm:$0xf]  ;;  %v823_v54 = vld [vmem:[%s9218_s7 + $0x1360] sm:$0xf]  ;;  %820 = vst [vmem:[%s9222_s8 + $0x4d0] sm:$0xf] %v819_v52 }
  0xe0   : > { %822 = vst [vmem:[%s9222_s8 + $0x4d4] sm:$0xf] %v821_v53  ;;  %824 = vst [vmem:[%s9222_s8 + $0x4d8] sm:$0xf] %v823_v54  ;;  %v825_v55 = vld [vmem:[%s9218_s7 + $0x1370] sm:$0xf] }
  0xe1   : > { %v827_v56 = vld [vmem:[%s9218_s7 + $0x1380] sm:$0xf]  ;;  %v829_v57 = vld [vmem:[%s9218_s7 + $0x1390] sm:$0xf]  ;;  %826 = vst [vmem:[%s9222_s8 + $0x4dc] sm:$0xf] %v825_v55 }
  0xe2   : > { %828 = vst [vmem:[%s9222_s8 + $0x4e0] sm:$0xf] %v827_v56  ;;  %830 = vst [vmem:[%s9222_s8 + $0x4e4] sm:$0xf] %v829_v57  ;;  %v831_v58 = vld [vmem:[%s9218_s7 + $0x13a0] sm:$0xf] }
  0xe3   : > { %v833_v59 = vld [vmem:[%s9218_s7 + $0x13b0] sm:$0xf]  ;;  %v835_v60 = vld [vmem:[%s9218_s7 + $0x13c0] sm:$0xf]  ;;  %832 = vst [vmem:[%s9222_s8 + $0x4e8] sm:$0xf] %v831_v58 }
  0xe4   : > { %834 = vst [vmem:[%s9222_s8 + $0x4ec] sm:$0xf] %v833_v59  ;;  %836 = vst [vmem:[%s9222_s8 + $0x4f0] sm:$0xf] %v835_v60  ;;  %v837_v61 = vld [vmem:[%s9218_s7 + $0x13d0] sm:$0xf] }
  0xe5   : > { %v839_v62 = vld [vmem:[%s9218_s7 + $0x13e0] sm:$0xf]  ;;  %v841_v63 = vld [vmem:[%s9218_s7 + $0x13f0] sm:$0xf]  ;;  %838 = vst [vmem:[%s9222_s8 + $0x4f4] sm:$0xf] %v837_v61 }
  0xe6   : > { %840 = vst [vmem:[%s9222_s8 + $0x4f8] sm:$0xf] %v839_v62  ;;  %842 = vst [vmem:[%s9222_s8 + $0x4fc] sm:$0xf] %v841_v63  ;;  %v843_v0 = vld [vmem:[%s9218_s7 + $0x1400] sm:$0xf] }
  0xe7   : > { %v845_v1 = vld [vmem:[%s9218_s7 + $0x1410] sm:$0xf]  ;;  %v847_v2 = vld [vmem:[%s9218_s7 + $0x1420] sm:$0xf]  ;;  %844 = vst [vmem:[%s9222_s8 + $0x500] sm:$0xf] %v843_v0 }
  0xe8   : > { %846 = vst [vmem:[%s9222_s8 + $0x504] sm:$0xf] %v845_v1  ;;  %848 = vst [vmem:[%s9222_s8 + $0x508] sm:$0xf] %v847_v2  ;;  %v849_v3 = vld [vmem:[%s9218_s7 + $0x1430] sm:$0xf] }
  0xe9   : > { %v851_v4 = vld [vmem:[%s9218_s7 + $0x1440] sm:$0xf]  ;;  %v853_v5 = vld [vmem:[%s9218_s7 + $0x1450] sm:$0xf]  ;;  %850 = vst [vmem:[%s9222_s8 + $0x50c] sm:$0xf] %v849_v3 }
  0xea   : > { %852 = vst [vmem:[%s9222_s8 + $0x510] sm:$0xf] %v851_v4  ;;  %854 = vst [vmem:[%s9222_s8 + $0x514] sm:$0xf] %v853_v5  ;;  %v855_v6 = vld [vmem:[%s9218_s7 + $0x1460] sm:$0xf] }
  0xeb   : > { %v857_v7 = vld [vmem:[%s9218_s7 + $0x1470] sm:$0xf]  ;;  %v859_v8 = vld [vmem:[%s9218_s7 + $0x1480] sm:$0xf]  ;;  %856 = vst [vmem:[%s9222_s8 + $0x518] sm:$0xf] %v855_v6 }
  0xec   : > { %858 = vst [vmem:[%s9222_s8 + $0x51c] sm:$0xf] %v857_v7  ;;  %860 = vst [vmem:[%s9222_s8 + $0x520] sm:$0xf] %v859_v8  ;;  %v861_v9 = vld [vmem:[%s9218_s7 + $0x1490] sm:$0xf] }
  0xed   : > { %v863_v10 = vld [vmem:[%s9218_s7 + $0x14a0] sm:$0xf]  ;;  %v865_v11 = vld [vmem:[%s9218_s7 + $0x14b0] sm:$0xf]  ;;  %862 = vst [vmem:[%s9222_s8 + $0x524] sm:$0xf] %v861_v9 }
  0xee   : > { %864 = vst [vmem:[%s9222_s8 + $0x528] sm:$0xf] %v863_v10  ;;  %866 = vst [vmem:[%s9222_s8 + $0x52c] sm:$0xf] %v865_v11  ;;  %v867_v12 = vld [vmem:[%s9218_s7 + $0x14c0] sm:$0xf] }
  0xef   : > { %v869_v13 = vld [vmem:[%s9218_s7 + $0x14d0] sm:$0xf]  ;;  %v871_v14 = vld [vmem:[%s9218_s7 + $0x14e0] sm:$0xf]  ;;  %868 = vst [vmem:[%s9222_s8 + $0x530] sm:$0xf] %v867_v12 }
  0xf0   : > { %870 = vst [vmem:[%s9222_s8 + $0x534] sm:$0xf] %v869_v13  ;;  %872 = vst [vmem:[%s9222_s8 + $0x538] sm:$0xf] %v871_v14  ;;  %v873_v15 = vld [vmem:[%s9218_s7 + $0x14f0] sm:$0xf] }
  0xf1   : > { %v875_v16 = vld [vmem:[%s9218_s7 + $0x1500] sm:$0xf]  ;;  %v877_v17 = vld [vmem:[%s9218_s7 + $0x1510] sm:$0xf]  ;;  %874 = vst [vmem:[%s9222_s8 + $0x53c] sm:$0xf] %v873_v15 }
  0xf2   : > { %876 = vst [vmem:[%s9222_s8 + $0x540] sm:$0xf] %v875_v16  ;;  %878 = vst [vmem:[%s9222_s8 + $0x544] sm:$0xf] %v877_v17  ;;  %v879_v18 = vld [vmem:[%s9218_s7 + $0x1520] sm:$0xf] }
  0xf3   : > { %v881_v19 = vld [vmem:[%s9218_s7 + $0x1530] sm:$0xf]  ;;  %v883_v20 = vld [vmem:[%s9218_s7 + $0x1540] sm:$0xf]  ;;  %880 = vst [vmem:[%s9222_s8 + $0x548] sm:$0xf] %v879_v18 }
  0xf4   : > { %882 = vst [vmem:[%s9222_s8 + $0x54c] sm:$0xf] %v881_v19  ;;  %884 = vst [vmem:[%s9222_s8 + $0x550] sm:$0xf] %v883_v20  ;;  %v885_v21 = vld [vmem:[%s9218_s7 + $0x1550] sm:$0xf] }
  0xf5   : > { %v887_v22 = vld [vmem:[%s9218_s7 + $0x1560] sm:$0xf]  ;;  %v889_v23 = vld [vmem:[%s9218_s7 + $0x1570] sm:$0xf]  ;;  %886 = vst [vmem:[%s9222_s8 + $0x554] sm:$0xf] %v885_v21 }
  0xf6   : > { %888 = vst [vmem:[%s9222_s8 + $0x558] sm:$0xf] %v887_v22  ;;  %890 = vst [vmem:[%s9222_s8 + $0x55c] sm:$0xf] %v889_v23  ;;  %v891_v24 = vld [vmem:[%s9218_s7 + $0x1580] sm:$0xf] }
  0xf7   : > { %v893_v25 = vld [vmem:[%s9218_s7 + $0x1590] sm:$0xf]  ;;  %v895_v26 = vld [vmem:[%s9218_s7 + $0x15a0] sm:$0xf]  ;;  %892 = vst [vmem:[%s9222_s8 + $0x560] sm:$0xf] %v891_v24 }
  0xf8   : > { %894 = vst [vmem:[%s9222_s8 + $0x564] sm:$0xf] %v893_v25  ;;  %896 = vst [vmem:[%s9222_s8 + $0x568] sm:$0xf] %v895_v26  ;;  %v897_v27 = vld [vmem:[%s9218_s7 + $0x15b0] sm:$0xf] }
  0xf9   : > { %v899_v28 = vld [vmem:[%s9218_s7 + $0x15c0] sm:$0xf]  ;;  %v901_v29 = vld [vmem:[%s9218_s7 + $0x15d0] sm:$0xf]  ;;  %898 = vst [vmem:[%s9222_s8 + $0x56c] sm:$0xf] %v897_v27 }
  0xfa   : > { %900 = vst [vmem:[%s9222_s8 + $0x570] sm:$0xf] %v899_v28  ;;  %902 = vst [vmem:[%s9222_s8 + $0x574] sm:$0xf] %v901_v29  ;;  %v903_v30 = vld [vmem:[%s9218_s7 + $0x15e0] sm:$0xf] }
  0xfb   : > { %v905_v31 = vld [vmem:[%s9218_s7 + $0x15f0] sm:$0xf]  ;;  %v907_v32 = vld [vmem:[%s9218_s7 + $0x1600] sm:$0xf]  ;;  %904 = vst [vmem:[%s9222_s8 + $0x578] sm:$0xf] %v903_v30 }
  0xfc   : > { %906 = vst [vmem:[%s9222_s8 + $0x57c] sm:$0xf] %v905_v31  ;;  %908 = vst [vmem:[%s9222_s8 + $0x580] sm:$0xf] %v907_v32  ;;  %v909_v33 = vld [vmem:[%s9218_s7 + $0x1610] sm:$0xf] }
  0xfd   : > { %v911_v34 = vld [vmem:[%s9218_s7 + $0x1620] sm:$0xf]  ;;  %v913_v35 = vld [vmem:[%s9218_s7 + $0x1630] sm:$0xf]  ;;  %910 = vst [vmem:[%s9222_s8 + $0x584] sm:$0xf] %v909_v33 }
  0xfe   : > { %912 = vst [vmem:[%s9222_s8 + $0x588] sm:$0xf] %v911_v34  ;;  %914 = vst [vmem:[%s9222_s8 + $0x58c] sm:$0xf] %v913_v35  ;;  %v915_v36 = vld [vmem:[%s9218_s7 + $0x1640] sm:$0xf] }
  0xff   : > { %v917_v37 = vld [vmem:[%s9218_s7 + $0x1650] sm:$0xf]  ;;  %v919_v38 = vld [vmem:[%s9218_s7 + $0x1660] sm:$0xf]  ;;  %916 = vst [vmem:[%s9222_s8 + $0x590] sm:$0xf] %v915_v36 }
 0x100   : > { %918 = vst [vmem:[%s9222_s8 + $0x594] sm:$0xf] %v917_v37  ;;  %920 = vst [vmem:[%s9222_s8 + $0x598] sm:$0xf] %v919_v38  ;;  %v921_v39 = vld [vmem:[%s9218_s7 + $0x1670] sm:$0xf] }
 0x101   : > { %v923_v40 = vld [vmem:[%s9218_s7 + $0x1680] sm:$0xf]  ;;  %v925_v41 = vld [vmem:[%s9218_s7 + $0x1690] sm:$0xf]  ;;  %922 = vst [vmem:[%s9222_s8 + $0x59c] sm:$0xf] %v921_v39 }
 0x102   : > { %924 = vst [vmem:[%s9222_s8 + $0x5a0] sm:$0xf] %v923_v40  ;;  %926 = vst [vmem:[%s9222_s8 + $0x5a4] sm:$0xf] %v925_v41  ;;  %v927_v42 = vld [vmem:[%s9218_s7 + $0x16a0] sm:$0xf] }
 0x103   : > { %v929_v43 = vld [vmem:[%s9218_s7 + $0x16b0] sm:$0xf]  ;;  %v931_v44 = vld [vmem:[%s9218_s7 + $0x16c0] sm:$0xf]  ;;  %928 = vst [vmem:[%s9222_s8 + $0x5a8] sm:$0xf] %v927_v42 }
 0x104   : > { %930 = vst [vmem:[%s9222_s8 + $0x5ac] sm:$0xf] %v929_v43  ;;  %932 = vst [vmem:[%s9222_s8 + $0x5b0] sm:$0xf] %v931_v44  ;;  %v933_v45 = vld [vmem:[%s9218_s7 + $0x16d0] sm:$0xf] }
 0x105   : > { %v935_v46 = vld [vmem:[%s9218_s7 + $0x16e0] sm:$0xf]  ;;  %v937_v47 = vld [vmem:[%s9218_s7 + $0x16f0] sm:$0xf]  ;;  %934 = vst [vmem:[%s9222_s8 + $0x5b4] sm:$0xf] %v933_v45 }
 0x106   : > { %936 = vst [vmem:[%s9222_s8 + $0x5b8] sm:$0xf] %v935_v46  ;;  %938 = vst [vmem:[%s9222_s8 + $0x5bc] sm:$0xf] %v937_v47  ;;  %v939_v48 = vld [vmem:[%s9218_s7 + $0x1700] sm:$0xf] }
 0x107   : > { %v941_v49 = vld [vmem:[%s9218_s7 + $0x1710] sm:$0xf]  ;;  %v943_v50 = vld [vmem:[%s9218_s7 + $0x1720] sm:$0xf]  ;;  %940 = vst [vmem:[%s9222_s8 + $0x5c0] sm:$0xf] %v939_v48 }
 0x108   : > { %942 = vst [vmem:[%s9222_s8 + $0x5c4] sm:$0xf] %v941_v49  ;;  %944 = vst [vmem:[%s9222_s8 + $0x5c8] sm:$0xf] %v943_v50  ;;  %v945_v51 = vld [vmem:[%s9218_s7 + $0x1730] sm:$0xf] }
 0x109   : > { %v947_v52 = vld [vmem:[%s9218_s7 + $0x1740] sm:$0xf]  ;;  %v949_v53 = vld [vmem:[%s9218_s7 + $0x1750] sm:$0xf]  ;;  %946 = vst [vmem:[%s9222_s8 + $0x5cc] sm:$0xf] %v945_v51 }
 0x10a   : > { %948 = vst [vmem:[%s9222_s8 + $0x5d0] sm:$0xf] %v947_v52  ;;  %950 = vst [vmem:[%s9222_s8 + $0x5d4] sm:$0xf] %v949_v53  ;;  %v951_v54 = vld [vmem:[%s9218_s7 + $0x1760] sm:$0xf] }
 0x10b   : > { %v953_v55 = vld [vmem:[%s9218_s7 + $0x1770] sm:$0xf]  ;;  %v955_v56 = vld [vmem:[%s9218_s7 + $0x1780] sm:$0xf]  ;;  %952 = vst [vmem:[%s9222_s8 + $0x5d8] sm:$0xf] %v951_v54 }
 0x10c   : > { %954 = vst [vmem:[%s9222_s8 + $0x5dc] sm:$0xf] %v953_v55  ;;  %956 = vst [vmem:[%s9222_s8 + $0x5e0] sm:$0xf] %v955_v56  ;;  %v957_v57 = vld [vmem:[%s9218_s7 + $0x1790] sm:$0xf] }
 0x10d   : > { %v959_v58 = vld [vmem:[%s9218_s7 + $0x17a0] sm:$0xf]  ;;  %v961_v59 = vld [vmem:[%s9218_s7 + $0x17b0] sm:$0xf]  ;;  %958 = vst [vmem:[%s9222_s8 + $0x5e4] sm:$0xf] %v957_v57 }
 0x10e   : > { %960 = vst [vmem:[%s9222_s8 + $0x5e8] sm:$0xf] %v959_v58  ;;  %962 = vst [vmem:[%s9222_s8 + $0x5ec] sm:$0xf] %v961_v59  ;;  %v963_v60 = vld [vmem:[%s9218_s7 + $0x17c0] sm:$0xf] }
 0x10f   : > { %v965_v61 = vld [vmem:[%s9218_s7 + $0x17d0] sm:$0xf]  ;;  %v967_v62 = vld [vmem:[%s9218_s7 + $0x17e0] sm:$0xf]  ;;  %964 = vst [vmem:[%s9222_s8 + $0x5f0] sm:$0xf] %v963_v60 }
 0x110   : > { %966 = vst [vmem:[%s9222_s8 + $0x5f4] sm:$0xf] %v965_v61  ;;  %968 = vst [vmem:[%s9222_s8 + $0x5f8] sm:$0xf] %v967_v62  ;;  %v969_v63 = vld [vmem:[%s9218_s7 + $0x17f0] sm:$0xf] }
 0x111   : > { %v971_v0 = vld [vmem:[%s9218_s7 + $0x1800] sm:$0xf]  ;;  %v973_v1 = vld [vmem:[%s9218_s7 + $0x1810] sm:$0xf]  ;;  %970 = vst [vmem:[%s9222_s8 + $0x5fc] sm:$0xf] %v969_v63 }
 0x112   : > { %972 = vst [vmem:[%s9222_s8 + $0x600] sm:$0xf] %v971_v0  ;;  %974 = vst [vmem:[%s9222_s8 + $0x604] sm:$0xf] %v973_v1  ;;  %v975_v2 = vld [vmem:[%s9218_s7 + $0x1820] sm:$0xf] }
 0x113   : > { %v977_v3 = vld [vmem:[%s9218_s7 + $0x1830] sm:$0xf]  ;;  %v979_v4 = vld [vmem:[%s9218_s7 + $0x1840] sm:$0xf]  ;;  %976 = vst [vmem:[%s9222_s8 + $0x608] sm:$0xf] %v975_v2 }
 0x114   : > { %978 = vst [vmem:[%s9222_s8 + $0x60c] sm:$0xf] %v977_v3  ;;  %980 = vst [vmem:[%s9222_s8 + $0x610] sm:$0xf] %v979_v4  ;;  %v981_v5 = vld [vmem:[%s9218_s7 + $0x1850] sm:$0xf] }
 0x115   : > { %v983_v6 = vld [vmem:[%s9218_s7 + $0x1860] sm:$0xf]  ;;  %v985_v7 = vld [vmem:[%s9218_s7 + $0x1870] sm:$0xf]  ;;  %982 = vst [vmem:[%s9222_s8 + $0x614] sm:$0xf] %v981_v5 }
 0x116   : > { %984 = vst [vmem:[%s9222_s8 + $0x618] sm:$0xf] %v983_v6  ;;  %986 = vst [vmem:[%s9222_s8 + $0x61c] sm:$0xf] %v985_v7  ;;  %v987_v8 = vld [vmem:[%s9218_s7 + $0x1880] sm:$0xf] }
 0x117   : > { %v989_v9 = vld [vmem:[%s9218_s7 + $0x1890] sm:$0xf]  ;;  %v991_v10 = vld [vmem:[%s9218_s7 + $0x18a0] sm:$0xf]  ;;  %988 = vst [vmem:[%s9222_s8 + $0x620] sm:$0xf] %v987_v8 }
 0x118   : > { %990 = vst [vmem:[%s9222_s8 + $0x624] sm:$0xf] %v989_v9  ;;  %992 = vst [vmem:[%s9222_s8 + $0x628] sm:$0xf] %v991_v10  ;;  %v993_v11 = vld [vmem:[%s9218_s7 + $0x18b0] sm:$0xf] }
 0x119   : > { %v995_v12 = vld [vmem:[%s9218_s7 + $0x18c0] sm:$0xf]  ;;  %v997_v13 = vld [vmem:[%s9218_s7 + $0x18d0] sm:$0xf]  ;;  %994 = vst [vmem:[%s9222_s8 + $0x62c] sm:$0xf] %v993_v11 }
 0x11a   : > { %996 = vst [vmem:[%s9222_s8 + $0x630] sm:$0xf] %v995_v12  ;;  %998 = vst [vmem:[%s9222_s8 + $0x634] sm:$0xf] %v997_v13  ;;  %v999_v14 = vld [vmem:[%s9218_s7 + $0x18e0] sm:$0xf] }
 0x11b   : > { %v1001_v15 = vld [vmem:[%s9218_s7 + $0x18f0] sm:$0xf]  ;;  %v1003_v16 = vld [vmem:[%s9218_s7 + $0x1900] sm:$0xf]  ;;  %1000 = vst [vmem:[%s9222_s8 + $0x638] sm:$0xf] %v999_v14 }
 0x11c   : > { %1002 = vst [vmem:[%s9222_s8 + $0x63c] sm:$0xf] %v1001_v15  ;;  %1004 = vst [vmem:[%s9222_s8 + $0x640] sm:$0xf] %v1003_v16  ;;  %v1005_v17 = vld [vmem:[%s9218_s7 + $0x1910] sm:$0xf] }
 0x11d   : > { %v1007_v18 = vld [vmem:[%s9218_s7 + $0x1920] sm:$0xf]  ;;  %v1009_v19 = vld [vmem:[%s9218_s7 + $0x1930] sm:$0xf]  ;;  %1006 = vst [vmem:[%s9222_s8 + $0x644] sm:$0xf] %v1005_v17 }
 0x11e   : > { %1008 = vst [vmem:[%s9222_s8 + $0x648] sm:$0xf] %v1007_v18  ;;  %1010 = vst [vmem:[%s9222_s8 + $0x64c] sm:$0xf] %v1009_v19  ;;  %v1011_v20 = vld [vmem:[%s9218_s7 + $0x1940] sm:$0xf] }
 0x11f   : > { %v1013_v21 = vld [vmem:[%s9218_s7 + $0x1950] sm:$0xf]  ;;  %v1015_v22 = vld [vmem:[%s9218_s7 + $0x1960] sm:$0xf]  ;;  %1012 = vst [vmem:[%s9222_s8 + $0x650] sm:$0xf] %v1011_v20 }
 0x120   : > { %1014 = vst [vmem:[%s9222_s8 + $0x654] sm:$0xf] %v1013_v21  ;;  %1016 = vst [vmem:[%s9222_s8 + $0x658] sm:$0xf] %v1015_v22  ;;  %v1017_v23 = vld [vmem:[%s9218_s7 + $0x1970] sm:$0xf] }
 0x121   : > { %v1019_v24 = vld [vmem:[%s9218_s7 + $0x1980] sm:$0xf]  ;;  %v1021_v25 = vld [vmem:[%s9218_s7 + $0x1990] sm:$0xf]  ;;  %1018 = vst [vmem:[%s9222_s8 + $0x65c] sm:$0xf] %v1017_v23 }
 0x122   : > { %1020 = vst [vmem:[%s9222_s8 + $0x660] sm:$0xf] %v1019_v24  ;;  %1022 = vst [vmem:[%s9222_s8 + $0x664] sm:$0xf] %v1021_v25  ;;  %v1023_v26 = vld [vmem:[%s9218_s7 + $0x19a0] sm:$0xf] }
 0x123   : > { %v1025_v27 = vld [vmem:[%s9218_s7 + $0x19b0] sm:$0xf]  ;;  %v1027_v28 = vld [vmem:[%s9218_s7 + $0x19c0] sm:$0xf]  ;;  %1024 = vst [vmem:[%s9222_s8 + $0x668] sm:$0xf] %v1023_v26 }
 0x124   : > { %1026 = vst [vmem:[%s9222_s8 + $0x66c] sm:$0xf] %v1025_v27  ;;  %1028 = vst [vmem:[%s9222_s8 + $0x670] sm:$0xf] %v1027_v28  ;;  %v1029_v29 = vld [vmem:[%s9218_s7 + $0x19d0] sm:$0xf] }
 0x125   : > { %v1031_v30 = vld [vmem:[%s9218_s7 + $0x19e0] sm:$0xf]  ;;  %v1033_v31 = vld [vmem:[%s9218_s7 + $0x19f0] sm:$0xf]  ;;  %1030 = vst [vmem:[%s9222_s8 + $0x674] sm:$0xf] %v1029_v29 }
 0x126   : > { %1032 = vst [vmem:[%s9222_s8 + $0x678] sm:$0xf] %v1031_v30  ;;  %1034 = vst [vmem:[%s9222_s8 + $0x67c] sm:$0xf] %v1033_v31  ;;  %v1035_v32 = vld [vmem:[%s9218_s7 + $0x1a00] sm:$0xf] }
 0x127   : > { %v1037_v33 = vld [vmem:[%s9218_s7 + $0x1a10] sm:$0xf]  ;;  %v1039_v34 = vld [vmem:[%s9218_s7 + $0x1a20] sm:$0xf]  ;;  %1036 = vst [vmem:[%s9222_s8 + $0x680] sm:$0xf] %v1035_v32 }
 0x128   : > { %1038 = vst [vmem:[%s9222_s8 + $0x684] sm:$0xf] %v1037_v33  ;;  %1040 = vst [vmem:[%s9222_s8 + $0x688] sm:$0xf] %v1039_v34  ;;  %v1041_v35 = vld [vmem:[%s9218_s7 + $0x1a30] sm:$0xf] }
 0x129   : > { %v1043_v36 = vld [vmem:[%s9218_s7 + $0x1a40] sm:$0xf]  ;;  %v1045_v37 = vld [vmem:[%s9218_s7 + $0x1a50] sm:$0xf]  ;;  %1042 = vst [vmem:[%s9222_s8 + $0x68c] sm:$0xf] %v1041_v35 }
 0x12a   : > { %1044 = vst [vmem:[%s9222_s8 + $0x690] sm:$0xf] %v1043_v36  ;;  %1046 = vst [vmem:[%s9222_s8 + $0x694] sm:$0xf] %v1045_v37  ;;  %v1047_v38 = vld [vmem:[%s9218_s7 + $0x1a60] sm:$0xf] }
 0x12b   : > { %v1049_v39 = vld [vmem:[%s9218_s7 + $0x1a70] sm:$0xf]  ;;  %v1051_v40 = vld [vmem:[%s9218_s7 + $0x1a80] sm:$0xf]  ;;  %1048 = vst [vmem:[%s9222_s8 + $0x698] sm:$0xf] %v1047_v38 }
 0x12c   : > { %1050 = vst [vmem:[%s9222_s8 + $0x69c] sm:$0xf] %v1049_v39  ;;  %1052 = vst [vmem:[%s9222_s8 + $0x6a0] sm:$0xf] %v1051_v40  ;;  %v1053_v41 = vld [vmem:[%s9218_s7 + $0x1a90] sm:$0xf] }
 0x12d   : > { %v1055_v42 = vld [vmem:[%s9218_s7 + $0x1aa0] sm:$0xf]  ;;  %v1057_v43 = vld [vmem:[%s9218_s7 + $0x1ab0] sm:$0xf]  ;;  %1054 = vst [vmem:[%s9222_s8 + $0x6a4] sm:$0xf] %v1053_v41 }
 0x12e   : > { %1056 = vst [vmem:[%s9222_s8 + $0x6a8] sm:$0xf] %v1055_v42  ;;  %1058 = vst [vmem:[%s9222_s8 + $0x6ac] sm:$0xf] %v1057_v43  ;;  %v1059_v44 = vld [vmem:[%s9218_s7 + $0x1ac0] sm:$0xf] }
 0x12f   : > { %v1061_v45 = vld [vmem:[%s9218_s7 + $0x1ad0] sm:$0xf]  ;;  %v1063_v46 = vld [vmem:[%s9218_s7 + $0x1ae0] sm:$0xf]  ;;  %1060 = vst [vmem:[%s9222_s8 + $0x6b0] sm:$0xf] %v1059_v44 }
 0x130   : > { %1062 = vst [vmem:[%s9222_s8 + $0x6b4] sm:$0xf] %v1061_v45  ;;  %1064 = vst [vmem:[%s9222_s8 + $0x6b8] sm:$0xf] %v1063_v46  ;;  %v1065_v47 = vld [vmem:[%s9218_s7 + $0x1af0] sm:$0xf] }
 0x131   : > { %v1067_v48 = vld [vmem:[%s9218_s7 + $0x1b00] sm:$0xf]  ;;  %v1069_v49 = vld [vmem:[%s9218_s7 + $0x1b10] sm:$0xf]  ;;  %1066 = vst [vmem:[%s9222_s8 + $0x6bc] sm:$0xf] %v1065_v47 }
 0x132   : > { %1068 = vst [vmem:[%s9222_s8 + $0x6c0] sm:$0xf] %v1067_v48  ;;  %1070 = vst [vmem:[%s9222_s8 + $0x6c4] sm:$0xf] %v1069_v49  ;;  %v1071_v50 = vld [vmem:[%s9218_s7 + $0x1b20] sm:$0xf] }
 0x133   : > { %v1073_v51 = vld [vmem:[%s9218_s7 + $0x1b30] sm:$0xf]  ;;  %v1075_v52 = vld [vmem:[%s9218_s7 + $0x1b40] sm:$0xf]  ;;  %1072 = vst [vmem:[%s9222_s8 + $0x6c8] sm:$0xf] %v1071_v50 }
 0x134   : > { %1074 = vst [vmem:[%s9222_s8 + $0x6cc] sm:$0xf] %v1073_v51  ;;  %1076 = vst [vmem:[%s9222_s8 + $0x6d0] sm:$0xf] %v1075_v52  ;;  %v1077_v53 = vld [vmem:[%s9218_s7 + $0x1b50] sm:$0xf] }
 0x135   : > { %v1079_v54 = vld [vmem:[%s9218_s7 + $0x1b60] sm:$0xf]  ;;  %v1081_v55 = vld [vmem:[%s9218_s7 + $0x1b70] sm:$0xf]  ;;  %1078 = vst [vmem:[%s9222_s8 + $0x6d4] sm:$0xf] %v1077_v53 }
 0x136   : > { %1080 = vst [vmem:[%s9222_s8 + $0x6d8] sm:$0xf] %v1079_v54  ;;  %1082 = vst [vmem:[%s9222_s8 + $0x6dc] sm:$0xf] %v1081_v55  ;;  %v1083_v56 = vld [vmem:[%s9218_s7 + $0x1b80] sm:$0xf] }
 0x137   : > { %v1085_v57 = vld [vmem:[%s9218_s7 + $0x1b90] sm:$0xf]  ;;  %v1087_v58 = vld [vmem:[%s9218_s7 + $0x1ba0] sm:$0xf]  ;;  %1084 = vst [vmem:[%s9222_s8 + $0x6e0] sm:$0xf] %v1083_v56 }
 0x138   : > { %1086 = vst [vmem:[%s9222_s8 + $0x6e4] sm:$0xf] %v1085_v57  ;;  %1088 = vst [vmem:[%s9222_s8 + $0x6e8] sm:$0xf] %v1087_v58  ;;  %v1089_v59 = vld [vmem:[%s9218_s7 + $0x1bb0] sm:$0xf] }
 0x139   : > { %v1091_v60 = vld [vmem:[%s9218_s7 + $0x1bc0] sm:$0xf]  ;;  %v1093_v61 = vld [vmem:[%s9218_s7 + $0x1bd0] sm:$0xf]  ;;  %1090 = vst [vmem:[%s9222_s8 + $0x6ec] sm:$0xf] %v1089_v59 }
 0x13a   : > { %1092 = vst [vmem:[%s9222_s8 + $0x6f0] sm:$0xf] %v1091_v60  ;;  %1094 = vst [vmem:[%s9222_s8 + $0x6f4] sm:$0xf] %v1093_v61  ;;  %v1095_v62 = vld [vmem:[%s9218_s7 + $0x1be0] sm:$0xf] }
 0x13b   : > { %v1097_v63 = vld [vmem:[%s9218_s7 + $0x1bf0] sm:$0xf]  ;;  %v1099_v0 = vld [vmem:[%s9218_s7 + $0x1c00] sm:$0xf]  ;;  %1096 = vst [vmem:[%s9222_s8 + $0x6f8] sm:$0xf] %v1095_v62 }
 0x13c   : > { %1098 = vst [vmem:[%s9222_s8 + $0x6fc] sm:$0xf] %v1097_v63  ;;  %1100 = vst [vmem:[%s9222_s8 + $0x700] sm:$0xf] %v1099_v0  ;;  %v1101_v1 = vld [vmem:[%s9218_s7 + $0x1c10] sm:$0xf] }
 0x13d   : > { %v1103_v2 = vld [vmem:[%s9218_s7 + $0x1c20] sm:$0xf]  ;;  %v1105_v3 = vld [vmem:[%s9218_s7 + $0x1c30] sm:$0xf]  ;;  %1102 = vst [vmem:[%s9222_s8 + $0x704] sm:$0xf] %v1101_v1 }
 0x13e   : > { %1104 = vst [vmem:[%s9222_s8 + $0x708] sm:$0xf] %v1103_v2  ;;  %1106 = vst [vmem:[%s9222_s8 + $0x70c] sm:$0xf] %v1105_v3  ;;  %v1107_v4 = vld [vmem:[%s9218_s7 + $0x1c40] sm:$0xf] }
 0x13f   : > { %v1109_v5 = vld [vmem:[%s9218_s7 + $0x1c50] sm:$0xf]  ;;  %v1111_v6 = vld [vmem:[%s9218_s7 + $0x1c60] sm:$0xf]  ;;  %1108 = vst [vmem:[%s9222_s8 + $0x710] sm:$0xf] %v1107_v4 }
 0x140   : > { %1110 = vst [vmem:[%s9222_s8 + $0x714] sm:$0xf] %v1109_v5  ;;  %1112 = vst [vmem:[%s9222_s8 + $0x718] sm:$0xf] %v1111_v6  ;;  %v1113_v7 = vld [vmem:[%s9218_s7 + $0x1c70] sm:$0xf] }
 0x141   : > { %v1115_v8 = vld [vmem:[%s9218_s7 + $0x1c80] sm:$0xf]  ;;  %v1117_v9 = vld [vmem:[%s9218_s7 + $0x1c90] sm:$0xf]  ;;  %1114 = vst [vmem:[%s9222_s8 + $0x71c] sm:$0xf] %v1113_v7 }
 0x142   : > { %1116 = vst [vmem:[%s9222_s8 + $0x720] sm:$0xf] %v1115_v8  ;;  %1118 = vst [vmem:[%s9222_s8 + $0x724] sm:$0xf] %v1117_v9  ;;  %v1119_v10 = vld [vmem:[%s9218_s7 + $0x1ca0] sm:$0xf] }
 0x143   : > { %v1121_v11 = vld [vmem:[%s9218_s7 + $0x1cb0] sm:$0xf]  ;;  %v1123_v12 = vld [vmem:[%s9218_s7 + $0x1cc0] sm:$0xf]  ;;  %1120 = vst [vmem:[%s9222_s8 + $0x728] sm:$0xf] %v1119_v10 }
 0x144   : > { %1122 = vst [vmem:[%s9222_s8 + $0x72c] sm:$0xf] %v1121_v11  ;;  %1124 = vst [vmem:[%s9222_s8 + $0x730] sm:$0xf] %v1123_v12  ;;  %v1125_v13 = vld [vmem:[%s9218_s7 + $0x1cd0] sm:$0xf] }
 0x145   : > { %v1127_v14 = vld [vmem:[%s9218_s7 + $0x1ce0] sm:$0xf]  ;;  %v1129_v15 = vld [vmem:[%s9218_s7 + $0x1cf0] sm:$0xf]  ;;  %1126 = vst [vmem:[%s9222_s8 + $0x734] sm:$0xf] %v1125_v13 }
 0x146   : > { %1128 = vst [vmem:[%s9222_s8 + $0x738] sm:$0xf] %v1127_v14  ;;  %1130 = vst [vmem:[%s9222_s8 + $0x73c] sm:$0xf] %v1129_v15  ;;  %v1131_v16 = vld [vmem:[%s9218_s7 + $0x1d00] sm:$0xf] }
 0x147   : > { %v1133_v17 = vld [vmem:[%s9218_s7 + $0x1d10] sm:$0xf]  ;;  %v1135_v18 = vld [vmem:[%s9218_s7 + $0x1d20] sm:$0xf]  ;;  %1132 = vst [vmem:[%s9222_s8 + $0x740] sm:$0xf] %v1131_v16 }
 0x148   : > { %1134 = vst [vmem:[%s9222_s8 + $0x744] sm:$0xf] %v1133_v17  ;;  %1136 = vst [vmem:[%s9222_s8 + $0x748] sm:$0xf] %v1135_v18  ;;  %v1137_v19 = vld [vmem:[%s9218_s7 + $0x1d30] sm:$0xf] }
 0x149   : > { %v1139_v20 = vld [vmem:[%s9218_s7 + $0x1d40] sm:$0xf]  ;;  %v1141_v21 = vld [vmem:[%s9218_s7 + $0x1d50] sm:$0xf]  ;;  %1138 = vst [vmem:[%s9222_s8 + $0x74c] sm:$0xf] %v1137_v19 }
 0x14a   : > { %1140 = vst [vmem:[%s9222_s8 + $0x750] sm:$0xf] %v1139_v20  ;;  %1142 = vst [vmem:[%s9222_s8 + $0x754] sm:$0xf] %v1141_v21  ;;  %v1143_v22 = vld [vmem:[%s9218_s7 + $0x1d60] sm:$0xf] }
 0x14b   : > { %v1145_v23 = vld [vmem:[%s9218_s7 + $0x1d70] sm:$0xf]  ;;  %v1147_v24 = vld [vmem:[%s9218_s7 + $0x1d80] sm:$0xf]  ;;  %1144 = vst [vmem:[%s9222_s8 + $0x758] sm:$0xf] %v1143_v22 }
 0x14c   : > { %1146 = vst [vmem:[%s9222_s8 + $0x75c] sm:$0xf] %v1145_v23  ;;  %1148 = vst [vmem:[%s9222_s8 + $0x760] sm:$0xf] %v1147_v24  ;;  %v1149_v25 = vld [vmem:[%s9218_s7 + $0x1d90] sm:$0xf] }
 0x14d   : > { %v1151_v26 = vld [vmem:[%s9218_s7 + $0x1da0] sm:$0xf]  ;;  %v1153_v27 = vld [vmem:[%s9218_s7 + $0x1db0] sm:$0xf]  ;;  %1150 = vst [vmem:[%s9222_s8 + $0x764] sm:$0xf] %v1149_v25 }
 0x14e   : > { %1152 = vst [vmem:[%s9222_s8 + $0x768] sm:$0xf] %v1151_v26  ;;  %1154 = vst [vmem:[%s9222_s8 + $0x76c] sm:$0xf] %v1153_v27  ;;  %v1155_v28 = vld [vmem:[%s9218_s7 + $0x1dc0] sm:$0xf] }
 0x14f   : > { %v1157_v29 = vld [vmem:[%s9218_s7 + $0x1dd0] sm:$0xf]  ;;  %v1159_v30 = vld [vmem:[%s9218_s7 + $0x1de0] sm:$0xf]  ;;  %1156 = vst [vmem:[%s9222_s8 + $0x770] sm:$0xf] %v1155_v28 }
 0x150   : > { %1158 = vst [vmem:[%s9222_s8 + $0x774] sm:$0xf] %v1157_v29  ;;  %1160 = vst [vmem:[%s9222_s8 + $0x778] sm:$0xf] %v1159_v30  ;;  %v1161_v31 = vld [vmem:[%s9218_s7 + $0x1df0] sm:$0xf] }
 0x151   : > { %v1163_v32 = vld [vmem:[%s9218_s7 + $0x1e00] sm:$0xf]  ;;  %v1165_v33 = vld [vmem:[%s9218_s7 + $0x1e10] sm:$0xf]  ;;  %1162 = vst [vmem:[%s9222_s8 + $0x77c] sm:$0xf] %v1161_v31 }
 0x152   : > { %1164 = vst [vmem:[%s9222_s8 + $0x780] sm:$0xf] %v1163_v32  ;;  %1166 = vst [vmem:[%s9222_s8 + $0x784] sm:$0xf] %v1165_v33  ;;  %v1167_v34 = vld [vmem:[%s9218_s7 + $0x1e20] sm:$0xf] }
 0x153   : > { %v1169_v35 = vld [vmem:[%s9218_s7 + $0x1e30] sm:$0xf]  ;;  %v1171_v36 = vld [vmem:[%s9218_s7 + $0x1e40] sm:$0xf]  ;;  %1168 = vst [vmem:[%s9222_s8 + $0x788] sm:$0xf] %v1167_v34 }
 0x154   : > { %1170 = vst [vmem:[%s9222_s8 + $0x78c] sm:$0xf] %v1169_v35  ;;  %1172 = vst [vmem:[%s9222_s8 + $0x790] sm:$0xf] %v1171_v36  ;;  %v1173_v37 = vld [vmem:[%s9218_s7 + $0x1e50] sm:$0xf] }
 0x155   : > { %v1175_v38 = vld [vmem:[%s9218_s7 + $0x1e60] sm:$0xf]  ;;  %v1177_v39 = vld [vmem:[%s9218_s7 + $0x1e70] sm:$0xf]  ;;  %1174 = vst [vmem:[%s9222_s8 + $0x794] sm:$0xf] %v1173_v37 }
 0x156   : > { %1176 = vst [vmem:[%s9222_s8 + $0x798] sm:$0xf] %v1175_v38  ;;  %1178 = vst [vmem:[%s9222_s8 + $0x79c] sm:$0xf] %v1177_v39  ;;  %v1179_v40 = vld [vmem:[%s9218_s7 + $0x1e80] sm:$0xf] }
 0x157   : > { %v1181_v41 = vld [vmem:[%s9218_s7 + $0x1e90] sm:$0xf]  ;;  %v1183_v42 = vld [vmem:[%s9218_s7 + $0x1ea0] sm:$0xf]  ;;  %1180 = vst [vmem:[%s9222_s8 + $0x7a0] sm:$0xf] %v1179_v40 }
 0x158   : > { %1182 = vst [vmem:[%s9222_s8 + $0x7a4] sm:$0xf] %v1181_v41  ;;  %1184 = vst [vmem:[%s9222_s8 + $0x7a8] sm:$0xf] %v1183_v42  ;;  %v1185_v43 = vld [vmem:[%s9218_s7 + $0x1eb0] sm:$0xf] }
 0x159   : > { %v1187_v44 = vld [vmem:[%s9218_s7 + $0x1ec0] sm:$0xf]  ;;  %v1189_v45 = vld [vmem:[%s9218_s7 + $0x1ed0] sm:$0xf]  ;;  %1186 = vst [vmem:[%s9222_s8 + $0x7ac] sm:$0xf] %v1185_v43 }
 0x15a   : > { %1188 = vst [vmem:[%s9222_s8 + $0x7b0] sm:$0xf] %v1187_v44  ;;  %1190 = vst [vmem:[%s9222_s8 + $0x7b4] sm:$0xf] %v1189_v45  ;;  %v1191_v46 = vld [vmem:[%s9218_s7 + $0x1ee0] sm:$0xf] }
 0x15b   : > { %v1193_v47 = vld [vmem:[%s9218_s7 + $0x1ef0] sm:$0xf]  ;;  %v1195_v48 = vld [vmem:[%s9218_s7 + $0x1f00] sm:$0xf]  ;;  %1192 = vst [vmem:[%s9222_s8 + $0x7b8] sm:$0xf] %v1191_v46 }
 0x15c   : > { %1194 = vst [vmem:[%s9222_s8 + $0x7bc] sm:$0xf] %v1193_v47  ;;  %1196 = vst [vmem:[%s9222_s8 + $0x7c0] sm:$0xf] %v1195_v48  ;;  %v1197_v49 = vld [vmem:[%s9218_s7 + $0x1f10] sm:$0xf] }
 0x15d   : > { %v1199_v50 = vld [vmem:[%s9218_s7 + $0x1f20] sm:$0xf]  ;;  %v1201_v51 = vld [vmem:[%s9218_s7 + $0x1f30] sm:$0xf]  ;;  %1198 = vst [vmem:[%s9222_s8 + $0x7c4] sm:$0xf] %v1197_v49 }
 0x15e   : > { %1200 = vst [vmem:[%s9222_s8 + $0x7c8] sm:$0xf] %v1199_v50  ;;  %1202 = vst [vmem:[%s9222_s8 + $0x7cc] sm:$0xf] %v1201_v51  ;;  %v1203_v52 = vld [vmem:[%s9218_s7 + $0x1f40] sm:$0xf] }
 0x15f   : > { %v1205_v53 = vld [vmem:[%s9218_s7 + $0x1f50] sm:$0xf]  ;;  %v1207_v54 = vld [vmem:[%s9218_s7 + $0x1f60] sm:$0xf]  ;;  %1204 = vst [vmem:[%s9222_s8 + $0x7d0] sm:$0xf] %v1203_v52 }
 0x160   : > { %1206 = vst [vmem:[%s9222_s8 + $0x7d4] sm:$0xf] %v1205_v53  ;;  %1208 = vst [vmem:[%s9222_s8 + $0x7d8] sm:$0xf] %v1207_v54  ;;  %v1209_v55 = vld [vmem:[%s9218_s7 + $0x1f70] sm:$0xf] }
 0x161   : > { %v1211_v56 = vld [vmem:[%s9218_s7 + $0x1f80] sm:$0xf]  ;;  %v1213_v57 = vld [vmem:[%s9218_s7 + $0x1f90] sm:$0xf]  ;;  %1210 = vst [vmem:[%s9222_s8 + $0x7dc] sm:$0xf] %v1209_v55 }
 0x162   : > { %1212 = vst [vmem:[%s9222_s8 + $0x7e0] sm:$0xf] %v1211_v56  ;;  %1214 = vst [vmem:[%s9222_s8 + $0x7e4] sm:$0xf] %v1213_v57  ;;  %v1215_v58 = vld [vmem:[%s9218_s7 + $0x1fa0] sm:$0xf] }
 0x163   : > { %v1217_v59 = vld [vmem:[%s9218_s7 + $0x1fb0] sm:$0xf]  ;;  %v1219_v60 = vld [vmem:[%s9218_s7 + $0x1fc0] sm:$0xf]  ;;  %1216 = vst [vmem:[%s9222_s8 + $0x7e8] sm:$0xf] %v1215_v58 }
 0x164   : > { %1218 = vst [vmem:[%s9222_s8 + $0x7ec] sm:$0xf] %v1217_v59  ;;  %1220 = vst [vmem:[%s9222_s8 + $0x7f0] sm:$0xf] %v1219_v60  ;;  %v1221_v61 = vld [vmem:[%s9218_s7 + $0x1fd0] sm:$0xf] }
 0x165   : > { %v1223_v62 = vld [vmem:[%s9218_s7 + $0x1fe0] sm:$0xf]  ;;  %v1225_v63 = vld [vmem:[%s9218_s7 + $0x1ff0] sm:$0xf]  ;;  %1222 = vst [vmem:[%s9222_s8 + $0x7f4] sm:$0xf] %v1221_v61 }
 0x166   : > { %1224 = vst [vmem:[%s9222_s8 + $0x7f8] sm:$0xf] %v1223_v62  ;;  %1226 = vst [vmem:[%s9222_s8 + $0x7fc] sm:$0xf] %v1225_v63 }
 0x167 PF: > { %4363 = sbr.rel (!%p9206_p3) target bundleno = 366 (0x16e), region = 84  ;;  %s4365_s9 = sand.u32 (%p9206_p3), 1, %s9135_s19  }
 0x168   : > { %s8002_s10 = sshll.u32 (%p9206_p3), %s9139_s20, 3  ;;  %s8001_s11 = sshll.u32 (%p9206_p3), %s4365_s9, 4 }
 0x169   : > { %s4369_s14 = scalar_lea.vmem (%p9206_p3), %s10766_s4, %s8002_s10  ;;  %s4367_s15 = scalar_lea.vmem (%p9206_p3), [#allocation4], %s8001_s11 }
 0x16a   : > { %v4399_v0 = vld [vmem:[%s4369_s14] sm:$0xff] (%p9206_p3) }
 0x16b   : > { %v4401_v1 = vld [vmem:[%s4369_s14 + $0x20] sm:$0xff] (%p9206_p3)  ;;  %4400 = vst [vmem:[%s4367_s15] sm:$0xff] (%p9206_p3), %v4399_v0 }
 0x16c   : > { %4402 = vst [vmem:[%s4367_s15 + $0x8] sm:$0xff] (%p9206_p3), %v4401_v1 }
 0x16e PF: > { %p8003_p5 = scmp.ge.s32.totalorder %s9139_s20, 1  ;;  %p4407_p6 = scmp.lt.s32.totalorder %s9139_s20, 5 }
 0x170   : > { %p4408_p7 = pnand %p8003_p5, %p4407_p6 }
 0x171   : > { %s4414_s16 = sand.u32 (!%p4408_p7), 1, %s9131_s18   ;;  %p4453_p8 = scmp.lt.s32.totalorder (!%p4408_p7), %s9192_s21, 3 }
 0x172   : > { %4411 = sbr.rel (%p4408_p7) target bundleno = 1544 (0x608), region = 122  ;;  %s8004_s17 = sshll.u32 (!%p4408_p7), %s4414_s16, 11 }
 0x173   : > { %s10257_s23 = sshll.u32 (!%p4408_p7), %s4414_s16, 4  ;;  %s10270_s6 = scalar_lea.vmem (!%p4408_p7), [#allocation3], %s8004_s17 }
 0x174   : > { %s4423_s18 = scalar_lea.vmem (!%p4408_p7), [#allocation4], %s10257_s23  ;;  %p8006_p9 = scmp.ne.s32.totalorder (!%p4408_p7), %s9192_s21, 0 }
 0x179   : > { %s10260_s24 = scalar_select %p4453_p8, %s9192_s21, 3 }
 0x17a   : > { %4463 = sbr.rel (%p8006_p9) target bundleno = 385 (0x181), region = 134  ;;  %v9141_v2 = vmov (!%p8006_p9), 0.0  }
 0x17b   : > { %s4455_s28 = scalar_lea.vmem %s10764_s2, %s10260_s24  ;;  %s4458_s30 = scalar_lea.vmem %s10765_s3, %s10260_s24  ;;  %4464 = vst [vmem:[#allocation2] sm:$0xff] (!%p8006_p9), %v9141_v2 }
 0x181 PF: > { %v8855_v3 = vld [vmem:[%s10270_s6 + $0x40] sm:$0xff]   ;;  %v8859_v7 = vld [vmem:[%s10270_s6 + $0x48] sm:$0xff]   ;;  %v8863_v11 = vld [vmem:[%s10270_s6 + $0x50] sm:$0xff]   ;;  %vm9143_vm0 = vmmov 0   ;;  %vm7681_vm1 = vcmask 261120   ;;  %vm7897_vm6 = vcmask 1040384  }
 0x182   : > { %v8856_v4 = vld [vmem:[%s10270_s6 + $0xc0] sm:$0xff]   ;;  %8334 = vmatprep.subr.bf16.mxu0 %v8855_v3  ;;  %v8860_v8 = vld [vmem:[%s10270_s6 + $0xc8] sm:$0xff]   ;;  %v8864_v12 = vld [vmem:[%s10270_s6 + $0xd0] sm:$0xff]   ;;  %vm7899_vm7 = vcmask 1041408   ;;  %p8330_p10 = scmp.ne.s32.totalorder %s9192_s21, 3 }
 0x183   : > { %v8857_v5 = vld [vmem:[%s10270_s6] sm:$0xff]   ;;  %8362 = vmatprep.subr.bf16.mxu1 %v8856_v4  ;;  %v8861_v9 = vld [vmem:[%s10270_s6 + $0x8] sm:$0xff]   ;;  %v8865_v13 = vld [vmem:[%s10270_s6 + $0x10] sm:$0xff]  }
 0x184   : > { %v8858_v6 = vld [vmem:[%s10270_s6 + $0x80] sm:$0xff]   ;;  %8335 = vmatpush3.bf16.msra.mxu0 %v8857_v5  ;;  %v8862_v10 = vld [vmem:[%s10270_s6 + $0x88] sm:$0xff]   ;;  %v8866_v14 = vld [vmem:[%s10270_s6 + $0x90] sm:$0xff]  }
 0x185   : > { %8363 = vmatpush3.bf16.msra.mxu1 %v8858_v6  ;;  %8336 = vmatprep.subr.bf16.mxu0 %v8859_v7  ;;  %v8867_v15 = vld [vmem:[%s10270_s6 + $0x58] sm:$0xff]   ;;  %v8871_v19 = vld [vmem:[%s10270_s6 + $0x60] sm:$0xff]   ;;  %v8875_v23 = vld [vmem:[%s10270_s6 + $0x68] sm:$0xff]  }
 0x186   : > { %8364 = vmatprep.subr.bf16.mxu1 %v8860_v8  ;;  %v8868_v16 = vld [vmem:[%s10270_s6 + $0xd8] sm:$0xff]   ;;  %v8872_v20 = vld [vmem:[%s10270_s6 + $0xe0] sm:$0xff]   ;;  %v8876_v24 = vld [vmem:[%s10270_s6 + $0xe8] sm:$0xff]  }
 0x187   : > { %v8869_v17 = vld [vmem:[%s10270_s6 + $0x18] sm:$0xff]   ;;  %v8873_v21 = vld [vmem:[%s10270_s6 + $0x20] sm:$0xff]   ;;  %v8877_v25 = vld [vmem:[%s10270_s6 + $0x28] sm:$0xff]  }
 0x188   : > { %8337 = vmatpush3.bf16.msra.mxu0 %v8861_v9  ;;  %v8870_v18 = vld [vmem:[%s10270_s6 + $0x98] sm:$0xff]   ;;  %v8874_v22 = vld [vmem:[%s10270_s6 + $0xa0] sm:$0xff]   ;;  %v8878_v26 = vld [vmem:[%s10270_s6 + $0xa8] sm:$0xff]  }
 0x189   : > { %8365 = vmatpush3.bf16.msra.mxu1 %v8862_v10  ;;  %8338 = vmatprep.subr.bf16.mxu0 %v8863_v11  ;;  %v8879_v27 = vld [vmem:[%s10270_s6 + $0x70] sm:$0xff]   ;;  %v8883_v31 = vld [vmem:[%s10270_s6 + $0x78] sm:$0xff]   ;;  %v4466_v37 = vld [vmem:[%s10762_s0 + $0x8] sm:$0xff] }
 0x18a   : > { %8366 = vmatprep.subr.bf16.mxu1 %v8864_v12  ;;  %v8880_v28 = vld [vmem:[%s10270_s6 + $0xf0] sm:$0xff]   ;;  %v8884_v32 = vld [vmem:[%s10270_s6 + $0xf8] sm:$0xff]   ;;  %v4482_v40 = vld [vmem:[%s10762_s0 + $0x88] sm:$0xff] }
 0x18b   : > { %v8881_v29 = vld [vmem:[%s10270_s6 + $0x30] sm:$0xff]   ;;  %v8885_v33 = vld [vmem:[%s10270_s6 + $0x38] sm:$0xff]   ;;  %v8009_v41 = vcombine.low %v4466_v37, %v4482_v40  ;;  %v8010_v42 = vcombine.high %v4466_v37, %v4482_v40  ;;  %v8887_v43 = vld [vmem:[%s10270_s6 + $0x140] sm:$0xff]  }
 0x18c   : > { %8339 = vmatpush3.bf16.msra.mxu0 %v8865_v13  ;;  %v8882_v30 = vld [vmem:[%s10270_s6 + $0xb0] sm:$0xff]   ;;  %v8886_v34 = vld [vmem:[%s10270_s6 + $0xb8] sm:$0xff]   ;;  %v8888_v44 = vld [vmem:[%s10270_s6 + $0x1c0] sm:$0xff]  }
 0x18d   : > { %8367 = vmatpush3.bf16.msra.mxu1 %v8866_v14  ;;  %8340 = vmatprep.subr.bf16.mxu0 %v8867_v15  ;;  %v4465_v35 = vld [vmem:[%s10762_s0] sm:$0xff]  ;;  %v8889_v45 = vld [vmem:[%s10270_s6 + $0x100] sm:$0xff]   ;;  %v8891_v47 = vld [vmem:[%s10270_s6 + $0x148] sm:$0xff]  }
 0x18e   : > { %8368 = vmatprep.subr.bf16.mxu1 %v8868_v16  ;;  %v4481_v36 = vld [vmem:[%s10762_s0 + $0x80] sm:$0xff]  ;;  %6978 = vmatprep.mubr.bf16.mxu1 %v8010_v42  ;;  %v8890_v46 = vld [vmem:[%s10270_s6 + $0x180] sm:$0xff]   ;;  %v8892_v48 = vld [vmem:[%s10270_s6 + $0x1c8] sm:$0xff]  }
 0x18f   : > { %v8007_v38 = vcombine.low %v4465_v35, %v4481_v36  ;;  %v8008_v39 = vcombine.high %v4465_v35, %v4481_v36  ;;  %v8893_v49 = vld [vmem:[%s10270_s6 + $0x108] sm:$0xff]   ;;  %v8895_v51 = vld [vmem:[%s10270_s6 + $0x150] sm:$0xff]   ;;  %v8899_v55 = vld [vmem:[%s10270_s6 + $0x158] sm:$0xff]  }
 0x190   : > { %8341 = vmatpush3.bf16.msra.mxu0 %v8869_v17  ;;  %v8894_v50 = vld [vmem:[%s10270_s6 + $0x188] sm:$0xff]   ;;  %v8896_v52 = vld [vmem:[%s10270_s6 + $0x1d0] sm:$0xff]   ;;  %v8900_v56 = vld [vmem:[%s10270_s6 + $0x1d8] sm:$0xff]  }
 0x191   : > { %8369 = vmatpush3.bf16.msra.mxu1 %v8870_v18  ;;  %8342 = vmatprep.subr.bf16.mxu0 %v8871_v19  ;;  %v8897_v53 = vld [vmem:[%s10270_s6 + $0x110] sm:$0xff]   ;;  %v8901_v57 = vld [vmem:[%s10270_s6 + $0x118] sm:$0xff]   ;;  %v8903_v59 = vld [vmem:[%s10270_s6 + $0x160] sm:$0xff]  }
 0x192   : > { %8370 = vmatprep.subr.bf16.mxu1 %v8872_v20  ;;  %6929 = vmatprep.mubr.bf16.mxu0 %v8008_v39  ;;  %v8898_v54 = vld [vmem:[%s10270_s6 + $0x190] sm:$0xff]   ;;  %v8902_v58 = vld [vmem:[%s10270_s6 + $0x198] sm:$0xff]   ;;  %v8904_v60 = vld [vmem:[%s10270_s6 + $0x1e0] sm:$0xff]  }
 0x193   : > { %v8905_v61 = vld [vmem:[%s10270_s6 + $0x120] sm:$0xff]   ;;  %v8907_v63 = vld [vmem:[%s10270_s6 + $0x168] sm:$0xff]   ;;  %v4497_v1 = vld [vmem:[%s10762_s0 + $0x100] sm:$0xff] }
 0x194   : > { %8343 = vmatpush3.bf16.msra.mxu0 %v8873_v21  ;;  %v8906_v62 = vld [vmem:[%s10270_s6 + $0x1a0] sm:$0xff]   ;;  %v8908_v0 = vld [vmem:[%s10270_s6 + $0x1e8] sm:$0xff]   ;;  %v4513_v2 = vld [vmem:[%s10762_s0 + $0x180] sm:$0xff] }
 0x195   : > { %8371 = vmatpush3.bf16.msra.mxu1 %v8874_v22  ;;  %8344 = vmatprep.subr.bf16.mxu0 %v8875_v23  ;;  %v8040_v3 = vcombine.high %v4497_v1, %v4513_v2  ;;  %v4498_v4 = vld [vmem:[%s10762_s0 + $0x108] sm:$0xff]  ;;  %v8039_v6 = vcombine.low %v4497_v1, %v4513_v2  ;;  %v8909_v8 = vld [vmem:[%s10270_s6 + $0x128] sm:$0xff]   ;;  %v8911_v11 = vld [vmem:[%s10270_s6 + $0x170] sm:$0xff]  }
 0x196   : > { %8372 = vmatprep.subr.bf16.mxu1 %v8876_v24  ;;  %v4514_v5 = vld [vmem:[%s10762_s0 + $0x188] sm:$0xff]  ;;  %v8910_v10 = vld [vmem:[%s10270_s6 + $0x1a8] sm:$0xff]   ;;  %v8912_v12 = vld [vmem:[%s10270_s6 + $0x1f0] sm:$0xff]  }
 0x197   : > { %v8042_v7 = vcombine.high %v4498_v4, %v4514_v5  ;;  %v8041_v9 = vcombine.low %v4498_v4, %v4514_v5  ;;  %v8913_v13 = vld [vmem:[%s10270_s6 + $0x130] sm:$0xff]   ;;  %v8915_v15 = vld [vmem:[%s10270_s6 + $0x178] sm:$0xff]   ;;  %v4467_v19 = vld [vmem:[%s10762_s0 + $0x10] sm:$0xff] }
 0x198   : > { %8345 = vmatpush3.bf16.msra.mxu0 %v8877_v25  ;;  %v8914_v14 = vld [vmem:[%s10270_s6 + $0x1b0] sm:$0xff]   ;;  %v8916_v16 = vld [vmem:[%s10270_s6 + $0x1f8] sm:$0xff]   ;;  %v4483_v20 = vld [vmem:[%s10762_s0 + $0x90] sm:$0xff] }
 0x199   : > { %8373 = vmatpush3.bf16.msra.mxu1 %v8878_v26  ;;  %8346 = vmatprep.subr.bf16.mxu0 %v8879_v27  ;;  %v8917_v17 = vld [vmem:[%s10270_s6 + $0x138] sm:$0xff]   ;;  %v4468_v21 = vld [vmem:[%s10762_s0 + $0x18] sm:$0xff]  ;;  %v8011_v23 = vcombine.low %v4467_v19, %v4483_v20  ;;  %v8012_v24 = vcombine.high %v4467_v19, %v4483_v20  ;;  %v8919_v27 = vld [vmem:[%s10270_s6 + $0x240] sm:$0xff]  }
 0x19a   : > { %8374 = vmatprep.subr.bf16.mxu1 %v8880_v28  ;;  %v8918_v18 = vld [vmem:[%s10270_s6 + $0x1b8] sm:$0xff]   ;;  %v4484_v22 = vld [vmem:[%s10762_s0 + $0x98] sm:$0xff]  ;;  %v8920_v28 = vld [vmem:[%s10270_s6 + $0x2c0] sm:$0xff]  }
 0x19b   : > { %v8013_v25 = vcombine.low %v4468_v21, %v4484_v22  ;;  %v8014_v26 = vcombine.high %v4468_v21, %v4484_v22  ;;  %v4499_v35 = vld [vmem:[%s10762_s0 + $0x110] sm:$0xff]  ;;  %v8927_v39 = vld [vmem:[%s10270_s6 + $0x250] sm:$0xff]   ;;  %v8949_v1 = vld [vmem:[%s10270_s6 + $0x238] sm:$0xff]  }
 0x19c   : > { %8347 = vmatpush3.bf16.msra.mxu0 %v8881_v29  ;;  %v8921_v29 = vld [vmem:[%s10270_s6 + $0x200] sm:$0xff]   ;;  %v4515_v36 = vld [vmem:[%s10762_s0 + $0x190] sm:$0xff]  ;;  %v8928_v40 = vld [vmem:[%s10270_s6 + $0x2d0] sm:$0xff]  }
 0x19d   : > { %8375 = vmatpush3.bf16.msra.mxu1 %v8882_v30  ;;  %8348 = vmatprep.subr.bf16.mxu0 %v8883_v31  ;;  %v8922_v30 = vld [vmem:[%s10270_s6 + $0x280] sm:$0xff]   ;;  %v8923_v31 = vld [vmem:[%s10270_s6 + $0x248] sm:$0xff]   ;;  %v8044_v37 = vcombine.high %v4499_v35, %v4515_v36  ;;  %v4516_v42 = vld [vmem:[%s10762_s0 + $0x198] sm:$0xff] }
 0x19e   : > { %8376 = vmatprep.subr.bf16.mxu1 %v8884_v32  ;;  %v8924_v32 = vld [vmem:[%s10270_s6 + $0x2c8] sm:$0xff]   ;;  %v8950_v2 = vld [vmem:[%s10270_s6 + $0x2b8] sm:$0xff]  }
 0x19f   : > { %v4485_v4 = vld [vmem:[%s10762_s0 + $0xa0] sm:$0xff] }
 0x1a0   : > { %8349 = vmatpush3.bf16.msra.mxu0 %v8885_v33  ;;  %v8925_v33 = vld [vmem:[%s10270_s6 + $0x208] sm:$0xff]   ;;  %v4501_v19 = vld [vmem:[%s10762_s0 + $0x120] sm:$0xff] }
 0x1a1   : > { %8377 = vmatpush3.bf16.msra.mxu1 %v8886_v34  ;;  %8390 = vmatprep.subr.bf16.mxu0 %v8887_v43  ;;  %v8926_v34 = vld [vmem:[%s10270_s6 + $0x288] sm:$0xff]   ;;  %v4517_v20 = vld [vmem:[%s10762_s0 + $0x1a0] sm:$0xff] }
 0x1a2   : > { %8418 = vmatprep.subr.bf16.mxu1 %v8888_v44  ;;  %v8929_v44 = vld [vmem:[%s10270_s6 + $0x210] sm:$0xff]   ;;  %v8048_v21 = vcombine.high %v4501_v19, %v4517_v20  ;;  %v8047_v22 = vcombine.low %v4501_v19, %v4517_v20  ;;  %v8999_v19 = vld [vmem:[%s10270_s6 + $0x460] sm:$0xff]  }
 0x1a3   : > { %6930 = vmatmul.mubr.bf16.vlgmr.msra.gmra.mrb[0].mxu0 %v8007_v38  ;;  %v8043_v38 = vcombine.low %v4499_v35, %v4515_v36  ;;  %v8967_v35 = vld [vmem:[%s10270_s6 + $0x360] sm:$0xff]  }
 0x1a4   : > { %6979 = vmatmul.mubr.bf16.vlgmr.msra.gmra.mrb[0].mxu1 %v8009_v41  ;;  %8391 = vmatpush3.bf16.msra.mxu0 %v8889_v45  ;;  %v4500_v41 = vld [vmem:[%s10762_s0 + $0x118] sm:$0xff]  ;;  %v8968_v36 = vld [vmem:[%s10270_s6 + $0x3e0] sm:$0xff]  }
 0x1a5   : > { %8419 = vmatpush3.bf16.msra.mxu1 %v8890_v46  ;;  %8392 = vmatprep.subr.bf16.mxu0 %v8891_v47  ;;  %v8046_v43 = vcombine.high %v4500_v41, %v4516_v42  ;;  %v8045_v45 = vcombine.low %v4500_v41, %v4516_v42  ;;  %v8930_v46 = vld [vmem:[%s10270_s6 + $0x290] sm:$0xff]   ;;  %v8931_v47 = vld [vmem:[%s10270_s6 + $0x258] sm:$0xff]   ;;  %v8973_v41 = vld [vmem:[%s10270_s6 + $0x328] sm:$0xff]  }
 0x1a6   : > { %8420 = vmatprep.subr.bf16.mxu1 %v8892_v48  ;;  %6937 = vmatprep.mubr.bf16.mxu0 %v8040_v3  ;;  %v8932_v48 = vld [vmem:[%s10270_s6 + $0x2d8] sm:$0xff]   ;;  %v8974_v42 = vld [vmem:[%s10270_s6 + $0x3a8] sm:$0xff]   ;;  %v9000_v20 = vld [vmem:[%s10270_s6 + $0x4e0] sm:$0xff]  }
 0x1a7   : > { %6986 = vmatprep.mubr.bf16.mxu1 %v8042_v7  ;;  %v4469_v3 = vld [vmem:[%s10762_s0 + $0x20] sm:$0xff]  ;;  %v4470_v7 = vld [vmem:[%s10762_s0 + $0x28] sm:$0xff] }
 0x1a8   : > { %8393 = vmatpush3.bf16.msra.mxu0 %v8893_v49  ;;  %v8933_v49 = vld [vmem:[%s10270_s6 + $0x218] sm:$0xff]   ;;  %v8015_v5 = vcombine.low %v4469_v3, %v4485_v4 }
 0x1a9   : > { %8421 = vmatpush3.bf16.msra.mxu1 %v8894_v50  ;;  %8394 = vmatprep.subr.bf16.mxu0 %v8895_v51  ;;  %v8934_v50 = vld [vmem:[%s10270_s6 + $0x298] sm:$0xff]   ;;  %v8935_v51 = vld [vmem:[%s10270_s6 + $0x260] sm:$0xff]  }
 0x1aa   : > { %8422 = vmatprep.subr.bf16.mxu1 %v8896_v52  ;;  %v8936_v52 = vld [vmem:[%s10270_s6 + $0x2e0] sm:$0xff]  }
 0x1ab   : > { %6938 = vmatmul.mubr.bf16.gmra.mrb[4].mxu0 %v8039_v6  ;;  %v8016_v6 = vcombine.high %v4469_v3, %v4485_v4  ;;  %v4503_v3 = vld [vmem:[%s10762_s0 + $0x130] sm:$0xff] }
 0x1ac   : > { %8395 = vmatpush3.bf16.msra.mxu0 %v8897_v53  ;;  %6987 = vmatmul.mubr.bf16.gmra.mrb[4].mxu1 %v8041_v9  ;;  %v8937_v53 = vld [vmem:[%s10270_s6 + $0x220] sm:$0xff]   ;;  %v4519_v4 = vld [vmem:[%s10762_s0 + $0x1b0] sm:$0xff] }
 0x1ad   : > { %8423 = vmatpush3.bf16.msra.mxu1 %v8898_v54  ;;  %8396 = vmatprep.subr.bf16.mxu0 %v8899_v55  ;;  %v8938_v54 = vld [vmem:[%s10270_s6 + $0x2a0] sm:$0xff]   ;;  %v8939_v55 = vld [vmem:[%s10270_s6 + $0x268] sm:$0xff]  }
 0x1ae   : > { %8424 = vmatprep.subr.bf16.mxu1 %v8900_v56  ;;  %7027 = vmatprep.mubr.bf16.mxu0 %v8012_v24  ;;  %v8940_v56 = vld [vmem:[%s10270_s6 + $0x2e8] sm:$0xff]   ;;  %v8960_v24 = vld [vmem:[%s10270_s6 + $0x3d0] sm:$0xff]  }
 0x1af   : > { %7076 = vmatprep.mubr.bf16.mxu1 %v8014_v26  ;;  %v4518_v26 = vld [vmem:[%s10762_s0 + $0x1a8] sm:$0xff] }
 0x1b0   : > { %8397 = vmatpush3.bf16.msra.mxu0 %v8901_v57  ;;  %v8941_v57 = vld [vmem:[%s10270_s6 + $0x228] sm:$0xff]  }
 0x1b1   : > { %8425 = vmatpush3.bf16.msra.mxu1 %v8902_v58  ;;  %8398 = vmatprep.subr.bf16.mxu0 %v8903_v59  ;;  %v8942_v58 = vld [vmem:[%s10270_s6 + $0x2a8] sm:$0xff]   ;;  %v8943_v59 = vld [vmem:[%s10270_s6 + $0x270] sm:$0xff]  }
 0x1b2   : > { %8426 = vmatprep.subr.bf16.mxu1 %v8904_v60  ;;  %v8944_v60 = vld [vmem:[%s10270_s6 + $0x2f0] sm:$0xff]  }
 0x1b4   : > { %8399 = vmatpush3.bf16.msra.mxu0 %v8905_v61  ;;  %v8945_v61 = vld [vmem:[%s10270_s6 + $0x230] sm:$0xff]  }
 0x1b5   : > { %8427 = vmatpush3.bf16.msra.mxu1 %v8906_v62  ;;  %8400 = vmatprep.subr.bf16.mxu0 %v8907_v63  ;;  %v8946_v62 = vld [vmem:[%s10270_s6 + $0x2b0] sm:$0xff]   ;;  %v8947_v63 = vld [vmem:[%s10270_s6 + $0x278] sm:$0xff]  }
 0x1b6   : > { %8428 = vmatprep.subr.bf16.mxu1 %v8908_v0  ;;  %v8948_v0 = vld [vmem:[%s10270_s6 + $0x2f8] sm:$0xff]  }
 0x1b8   : > { %8401 = vmatpush3.bf16.msra.mxu0 %v8909_v8  ;;  %v4486_v8 = vld [vmem:[%s10762_s0 + $0xa8] sm:$0xff] }
 0x1b9   : > { %8429 = vmatpush3.bf16.msra.mxu1 %v8910_v10  ;;  %8402 = vmatprep.subr.bf16.mxu0 %v8911_v11  ;;  %v8017_v9 = vcombine.low %v4470_v7, %v4486_v8  ;;  %v8018_v10 = vcombine.high %v4470_v7, %v4486_v8  ;;  %v8951_v11 = vld [vmem:[%s10270_s6 + $0x340] sm:$0xff]   ;;  %v8991_v7 = vld [vmem:[%s10270_s6 + $0x450] sm:$0xff]  }
 0x1ba   : > { %8430 = vmatprep.subr.bf16.mxu1 %v8912_v12  ;;  %v8952_v12 = vld [vmem:[%s10270_s6 + $0x3c0] sm:$0xff]   ;;  %v8992_v8 = vld [vmem:[%s10270_s6 + $0x4d0] sm:$0xff]  }
 0x1bc   : > { %8403 = vmatpush3.bf16.msra.mxu0 %v8913_v13  ;;  %v8953_v13 = vld [vmem:[%s10270_s6 + $0x300] sm:$0xff]  }
 0x1bd   : > { %8431 = vmatpush3.bf16.msra.mxu1 %v8914_v14  ;;  %8404 = vmatprep.subr.bf16.mxu0 %v8915_v15  ;;  %v8954_v14 = vld [vmem:[%s10270_s6 + $0x380] sm:$0xff]   ;;  %v8955_v15 = vld [vmem:[%s10270_s6 + $0x348] sm:$0xff]  }
 0x1be   : > { %8432 = vmatprep.subr.bf16.mxu1 %v8916_v16  ;;  %v8956_v16 = vld [vmem:[%s10270_s6 + $0x3c8] sm:$0xff]  }
 0x1c0   : > { %8405 = vmatpush3.bf16.msra.mxu0 %v8917_v17  ;;  %v8957_v17 = vld [vmem:[%s10270_s6 + $0x308] sm:$0xff]  }
 0x1c1   : > { %8433 = vmatpush3.bf16.msra.mxu1 %v8918_v18  ;;  %8446 = vmatprep.subr.bf16.mxu0 %v8919_v27  ;;  %v8958_v18 = vld [vmem:[%s10270_s6 + $0x388] sm:$0xff]  }
 0x1c2   : > { %8474 = vmatprep.subr.bf16.mxu1 %v8920_v28  ;;  %v8961_v28 = vld [vmem:[%s10270_s6 + $0x310] sm:$0xff]  }
 0x1c3   : > { %7028 = vmatmul.mubr.bf16.vlgmr.msra.gmra.mrb[8].mxu0 %v8011_v23  ;;  %v8959_v23 = vld [vmem:[%s10270_s6 + $0x350] sm:$0xff]  }
 0x1c4   : > { %7077 = vmatmul.mubr.bf16.vlgmr.msra.gmra.mrb[8].mxu1 %v8013_v25  ;;  %8447 = vmatpush3.bf16.msra.mxu0 %v8921_v29  ;;  %v4502_v25 = vld [vmem:[%s10762_s0 + $0x128] sm:$0xff] }
 0x1c5   : > { %8475 = vmatpush3.bf16.msra.mxu1 %v8922_v30  ;;  %8448 = vmatprep.subr.bf16.mxu0 %v8923_v31  ;;  %v8050_v27 = vcombine.high %v4502_v25, %v4518_v26  ;;  %v8049_v29 = vcombine.low %v4502_v25, %v4518_v26  ;;  %v8962_v30 = vld [vmem:[%s10270_s6 + $0x390] sm:$0xff]   ;;  %v8963_v31 = vld [vmem:[%s10270_s6 + $0x358] sm:$0xff]   ;;  %v9005_v25 = vld [vmem:[%s10270_s6 + $0x428] sm:$0xff]  }
 0x1c6   : > { %8476 = vmatprep.subr.bf16.mxu1 %v8924_v32  ;;  %7035 = vmatprep.mubr.bf16.mxu0 %v8044_v37  ;;  %v8964_v32 = vld [vmem:[%s10270_s6 + $0x3d8] sm:$0xff]   ;;  %v8969_v37 = vld [vmem:[%s10270_s6 + $0x320] sm:$0xff]   ;;  %v9006_v26 = vld [vmem:[%s10270_s6 + $0x4a8] sm:$0xff]  }
 0x1c7   : > { %7084 = vmatprep.mubr.bf16.mxu1 %v8046_v43  ;;  %v8975_v43 = vld [vmem:[%s10270_s6 + $0x370] sm:$0xff]  }
 0x1c8   : > { %8449 = vmatpush3.bf16.msra.mxu0 %v8925_v33  ;;  %v8965_v33 = vld [vmem:[%s10270_s6 + $0x318] sm:$0xff]  }
 0x1c9   : > { %8477 = vmatpush3.bf16.msra.mxu1 %v8926_v34  ;;  %8450 = vmatprep.subr.bf16.mxu0 %v8927_v39  ;;  %v8966_v34 = vld [vmem:[%s10270_s6 + $0x398] sm:$0xff]   ;;  %v8971_v39 = vld [vmem:[%s10270_s6 + $0x368] sm:$0xff]  }
 0x1ca   : > { %8478 = vmatprep.subr.bf16.mxu1 %v8928_v40  ;;  %v8972_v40 = vld [vmem:[%s10270_s6 + $0x3e8] sm:$0xff]  }
 0x1cb   : > { %7036 = vmatmul.mubr.bf16.gmra.mrb[12].mxu0 %v8043_v38  ;;  %v8970_v38 = vld [vmem:[%s10270_s6 + $0x3a0] sm:$0xff]  }
 0x1cc   : > { %8451 = vmatpush3.bf16.msra.mxu0 %v8929_v44  ;;  %7085 = vmatmul.mubr.bf16.gmra.mrb[12].mxu1 %v8045_v45  ;;  %v8976_v44 = vld [vmem:[%s10270_s6 + $0x3f0] sm:$0xff]  }
 0x1cd   : > { %8479 = vmatpush3.bf16.msra.mxu1 %v8930_v46  ;;  %8452 = vmatprep.subr.bf16.mxu0 %v8931_v47  ;;  %v8977_v45 = vld [vmem:[%s10270_s6 + $0x330] sm:$0xff]   ;;  %v8979_v47 = vld [vmem:[%s10270_s6 + $0x378] sm:$0xff]  }
 0x1ce   : > { %8480 = vmatprep.subr.bf16.mxu1 %v8932_v48  ;;  %7125 = vmatprep.mubr.bf16.mxu0 %v8016_v6  ;;  %v8978_v46 = vld [vmem:[%s10270_s6 + $0x3b0] sm:$0xff]   ;;  %v8980_v48 = vld [vmem:[%s10270_s6 + $0x3f8] sm:$0xff]   ;;  %v8051_v6 = vcombine.low %v4503_v3, %v4519_v4 }
 0x1cf   : > { %7174 = vmatprep.mubr.bf16.mxu1 %v8018_v10  ;;  %v4520_v10 = vld [vmem:[%s10762_s0 + $0x1b8] sm:$0xff] }
 0x1d0   : > { %8453 = vmatpush3.bf16.msra.mxu0 %v8933_v49  ;;  %v8981_v49 = vld [vmem:[%s10270_s6 + $0x338] sm:$0xff]  }
 0x1d1   : > { %8481 = vmatpush3.bf16.msra.mxu1 %v8934_v50  ;;  %8454 = vmatprep.subr.bf16.mxu0 %v8935_v51  ;;  %v8982_v50 = vld [vmem:[%s10270_s6 + $0x3b8] sm:$0xff]   ;;  %v4471_v51 = vld [vmem:[%s10762_s0 + $0x30] sm:$0xff] }
 0x1d2   : > { %8482 = vmatprep.subr.bf16.mxu1 %v8936_v52  ;;  %v4487_v52 = vld [vmem:[%s10762_s0 + $0xb0] sm:$0xff] }
 0x1d4   : > { %8455 = vmatpush3.bf16.msra.mxu0 %v8937_v53  ;;  %v4472_v53 = vld [vmem:[%s10762_s0 + $0x38] sm:$0xff] }
 0x1d5   : > { %8483 = vmatpush3.bf16.msra.mxu1 %v8938_v54  ;;  %8456 = vmatprep.subr.bf16.mxu0 %v8939_v55  ;;  %v8019_v54 = vcombine.low %v4471_v51, %v4487_v52  ;;  %v8020_v55 = vcombine.high %v4471_v51, %v4487_v52  ;;  %v4505_v51 = vld [vmem:[%s10762_s0 + $0x140] sm:$0xff] }
 0x1d6   : > { %8484 = vmatprep.subr.bf16.mxu1 %v8940_v56  ;;  %v4488_v56 = vld [vmem:[%s10762_s0 + $0xb8] sm:$0xff]  ;;  %v4521_v52 = vld [vmem:[%s10762_s0 + $0x1c0] sm:$0xff] }
 0x1d8   : > { %8457 = vmatpush3.bf16.msra.mxu0 %v8941_v57  ;;  %v8021_v57 = vcombine.low %v4472_v53, %v4488_v56 }
 0x1d9   : > { %8485 = vmatpush3.bf16.msra.mxu1 %v8942_v58  ;;  %8458 = vmatprep.subr.bf16.mxu0 %v8943_v59  ;;  %v8022_v58 = vcombine.high %v4472_v53, %v4488_v56  ;;  %v8983_v59 = vld [vmem:[%s10270_s6 + $0x440] sm:$0xff]   ;;  %v8056_v53 = vcombine.high %v4505_v51, %v4521_v52  ;;  %v9024_v56 = vld [vmem:[%s10270_s6 + $0x5d0] sm:$0xff]  }
 0x1da   : > { %8486 = vmatprep.subr.bf16.mxu1 %v8944_v60  ;;  %v8984_v60 = vld [vmem:[%s10270_s6 + $0x4c0] sm:$0xff]  }
 0x1dc   : > { %8459 = vmatpush3.bf16.msra.mxu0 %v8945_v61  ;;  %v8985_v61 = vld [vmem:[%s10270_s6 + $0x400] sm:$0xff]  }
 0x1dd   : > { %8487 = vmatpush3.bf16.msra.mxu1 %v8946_v62  ;;  %8460 = vmatprep.subr.bf16.mxu0 %v8947_v63  ;;  %v8986_v62 = vld [vmem:[%s10270_s6 + $0x480] sm:$0xff]   ;;  %v8987_v63 = vld [vmem:[%s10270_s6 + $0x448] sm:$0xff]  }
 0x1de   : > { %8488 = vmatprep.subr.bf16.mxu1 %v8948_v0  ;;  %v8988_v0 = vld [vmem:[%s10270_s6 + $0x4c8] sm:$0xff]  }
 0x1e0   : > { %8461 = vmatpush3.bf16.msra.mxu0 %v8949_v1  ;;  %v8989_v1 = vld [vmem:[%s10270_s6 + $0x408] sm:$0xff]  }
 0x1e1   : > { %8489 = vmatpush3.bf16.msra.mxu1 %v8950_v2  ;;  %8502 = vmatprep.subr.bf16.mxu0 %v8951_v11  ;;  %v8990_v2 = vld [vmem:[%s10270_s6 + $0x488] sm:$0xff]  }
 0x1e2   : > { %8530 = vmatprep.subr.bf16.mxu1 %v8952_v12  ;;  %v8993_v12 = vld [vmem:[%s10270_s6 + $0x410] sm:$0xff]  }
 0x1e3   : > { %7126 = vmatmul.mubr.bf16.vlgmr.msra.gmra.mrb[16].mxu0 %v8015_v5  ;;  %v8052_v5 = vcombine.high %v4503_v3, %v4519_v4  ;;  %v9031_v3 = vld [vmem:[%s10270_s6 + $0x560] sm:$0xff]  }
 0x1e4   : > { %7175 = vmatmul.mubr.bf16.vlgmr.msra.gmra.mrb[16].mxu1 %v8017_v9  ;;  %8503 = vmatpush3.bf16.msra.mxu0 %v8953_v13  ;;  %v4504_v9 = vld [vmem:[%s10762_s0 + $0x138] sm:$0xff]  ;;  %v9032_v4 = vld [vmem:[%s10270_s6 + $0x5e0] sm:$0xff]  }
 0x1e5   : > { %8531 = vmatpush3.bf16.msra.mxu1 %v8954_v14  ;;  %8504 = vmatprep.subr.bf16.mxu0 %v8955_v15  ;;  %v8054_v11 = vcombine.high %v4504_v9, %v4520_v10  ;;  %v8053_v13 = vcombine.low %v4504_v9, %v4520_v10  ;;  %v8994_v14 = vld [vmem:[%s10270_s6 + $0x490] sm:$0xff]   ;;  %v8995_v15 = vld [vmem:[%s10270_s6 + $0x458] sm:$0xff]   ;;  %v9037_v9 = vld [vmem:[%s10270_s6 + $0x528] sm:$0xff]  }
 0x1e6   : > { %8532 = vmatprep.subr.bf16.mxu1 %v8956_v16  ;;  %7133 = vmatprep.mubr.bf16.mxu0 %v8048_v21  ;;  %v8996_v16 = vld [vmem:[%s10270_s6 + $0x4d8] sm:$0xff]   ;;  %v9001_v21 = vld [vmem:[%s10270_s6 + $0x420] sm:$0xff]   ;;  %v9038_v10 = vld [vmem:[%s10270_s6 + $0x5a8] sm:$0xff]  }
 0x1e7   : > { %7182 = vmatprep.mubr.bf16.mxu1 %v8050_v27  ;;  %v9007_v27 = vld [vmem:[%s10270_s6 + $0x470] sm:$0xff]  }
 0x1e8   : > { %8505 = vmatpush3.bf16.msra.mxu0 %v8957_v17  ;;  %v8997_v17 = vld [vmem:[%s10270_s6 + $0x418] sm:$0xff]  }
 0x1e9   : > { %8533 = vmatpush3.bf16.msra.mxu1 %v8958_v18  ;;  %8506 = vmatprep.subr.bf16.mxu0 %v8959_v23  ;;  %v8998_v18 = vld [vmem:[%s10270_s6 + $0x498] sm:$0xff]   ;;  %v9003_v23 = vld [vmem:[%s10270_s6 + $0x468] sm:$0xff]  }
 0x1ea   : > { %8534 = vmatprep.subr.bf16.mxu1 %v8960_v24  ;;  %v9004_v24 = vld [vmem:[%s10270_s6 + $0x4e8] sm:$0xff]  }
 0x1eb   : > { %7134 = vmatmul.mubr.bf16.gmra.mrb[20].mxu0 %v8047_v22  ;;  %v9002_v22 = vld [vmem:[%s10270_s6 + $0x4a0] sm:$0xff]  }
 0x1ec   : > { %8507 = vmatpush3.bf16.msra.mxu0 %v8961_v28  ;;  %7183 = vmatmul.mubr.bf16.gmra.mrb[20].mxu1 %v8049_v29  ;;  %v9008_v28 = vld [vmem:[%s10270_s6 + $0x4f0] sm:$0xff]  }
 0x1ed   : > { %8535 = vmatpush3.bf16.msra.mxu1 %v8962_v30  ;;  %8508 = vmatprep.subr.bf16.mxu0 %v8963_v31  ;;  %v9009_v29 = vld [vmem:[%s10270_s6 + $0x430] sm:$0xff]   ;;  %v9011_v31 = vld [vmem:[%s10270_s6 + $0x478] sm:$0xff]  }
 0x1ee   : > { %8536 = vmatprep.subr.bf16.mxu1 %v8964_v32  ;;  %7223 = vmatprep.mubr.bf16.mxu0 %v8020_v55  ;;  %v9010_v30 = vld [vmem:[%s10270_s6 + $0x4b0] sm:$0xff]   ;;  %v9012_v32 = vld [vmem:[%s10270_s6 + $0x4f8] sm:$0xff]  }
 0x1ef   : > { %7272 = vmatprep.mubr.bf16.mxu1 %v8022_v58  ;;  %v9023_v55 = vld [vmem:[%s10270_s6 + $0x550] sm:$0xff]   ;;  %v4522_v58 = vld [vmem:[%s10762_s0 + $0x1c8] sm:$0xff] }
 0x1f0   : > { %8509 = vmatpush3.bf16.msra.mxu0 %v8965_v33  ;;  %v9013_v33 = vld [vmem:[%s10270_s6 + $0x438] sm:$0xff]  }
 0x1f1   : > { %8537 = vmatpush3.bf16.msra.mxu1 %v8966_v34  ;;  %8510 = vmatprep.subr.bf16.mxu0 %v8967_v35  ;;  %v9014_v34 = vld [vmem:[%s10270_s6 + $0x4b8] sm:$0xff]  }
 0x1f2   : > { %8538 = vmatprep.subr.bf16.mxu1 %v8968_v36  ;;  %v4473_v35 = vld [vmem:[%s10762_s0 + $0x40] sm:$0xff] }
 0x1f3   : > { %v4489_v36 = vld [vmem:[%s10762_s0 + $0xc0] sm:$0xff] }
 0x1f4   : > { %8511 = vmatpush3.bf16.msra.mxu0 %v8969_v37  ;;  %v4474_v37 = vld [vmem:[%s10762_s0 + $0x48] sm:$0xff] }
 0x1f5   : > { %8539 = vmatpush3.bf16.msra.mxu1 %v8970_v38  ;;  %8512 = vmatprep.subr.bf16.mxu0 %v8971_v39  ;;  %v4490_v38 = vld [vmem:[%s10762_s0 + $0xc8] sm:$0xff]  ;;  %v8023_v39 = vcombine.low %v4473_v35, %v4489_v36 }
 0x1f6   : > { %8540 = vmatprep.subr.bf16.mxu1 %v8972_v40  ;;  %v8024_v40 = vcombine.high %v4473_v35, %v4489_v36  ;;  %v4507_v35 = vld [vmem:[%s10762_s0 + $0x150] sm:$0xff] }
 0x1f7   : > { %v4523_v36 = vld [vmem:[%s10762_s0 + $0x1d0] sm:$0xff] }
 0x1f8   : > { %8513 = vmatpush3.bf16.msra.mxu0 %v8973_v41  ;;  %v8025_v41 = vcombine.low %v4474_v37, %v4490_v38 }
 0x1f9   : > { %8541 = vmatpush3.bf16.msra.mxu1 %v8974_v42  ;;  %8514 = vmatprep.subr.bf16.mxu0 %v8975_v43  ;;  %v8026_v42 = vcombine.high %v4474_v37, %v4490_v38  ;;  %v9015_v43 = vld [vmem:[%s10270_s6 + $0x540] sm:$0xff]   ;;  %v8060_v37 = vcombine.high %v4507_v35, %v4523_v36  ;;  %v8059_v38 = vcombine.low %v4507_v35, %v4523_v36 }
 0x1fa   : > { %8542 = vmatprep.subr.bf16.mxu1 %v8976_v44  ;;  %v9016_v44 = vld [vmem:[%s10270_s6 + $0x5c0] sm:$0xff]  }
 0x1fc   : > { %8515 = vmatpush3.bf16.msra.mxu0 %v8977_v45  ;;  %v9017_v45 = vld [vmem:[%s10270_s6 + $0x500] sm:$0xff]  }
 0x1fd   : > { %8543 = vmatpush3.bf16.msra.mxu1 %v8978_v46  ;;  %8516 = vmatprep.subr.bf16.mxu0 %v8979_v47  ;;  %v9018_v46 = vld [vmem:[%s10270_s6 + $0x580] sm:$0xff]   ;;  %v9019_v47 = vld [vmem:[%s10270_s6 + $0x548] sm:$0xff]  }
 0x1fe   : > { %8544 = vmatprep.subr.bf16.mxu1 %v8980_v48  ;;  %v9020_v48 = vld [vmem:[%s10270_s6 + $0x5c8] sm:$0xff]  }
 0x200   : > { %8517 = vmatpush3.bf16.msra.mxu0 %v8981_v49  ;;  %v9021_v49 = vld [vmem:[%s10270_s6 + $0x508] sm:$0xff]  }
 0x201   : > { %8545 = vmatpush3.bf16.msra.mxu1 %v8982_v50  ;;  %8558 = vmatprep.subr.bf16.mxu0 %v8983_v59  ;;  %v9022_v50 = vld [vmem:[%s10270_s6 + $0x588] sm:$0xff]  }
 0x202   : > { %8586 = vmatprep.subr.bf16.mxu1 %v8984_v60  ;;  %v9025_v60 = vld [vmem:[%s10270_s6 + $0x510] sm:$0xff]  }
 0x203   : > { %7224 = vmatmul.mubr.bf16.vlgmr.msra.gmra.mrb[24].mxu0 %v8019_v54  ;;  %v8055_v54 = vcombine.low %v4505_v51, %v4521_v52  ;;  %v9063_v51 = vld [vmem:[%s10270_s6 + $0x660] sm:$0xff]  }
 0x204   : > { %7273 = vmatmul.mubr.bf16.vlgmr.msra.gmra.mrb[24].mxu1 %v8021_v57  ;;  %8559 = vmatpush3.bf16.msra.mxu0 %v8985_v61  ;;  %v4506_v57 = vld [vmem:[%s10762_s0 + $0x148] sm:$0xff] }
 0x205   : > { %8587 = vmatpush3.bf16.msra.mxu1 %v8986_v62  ;;  %8560 = vmatprep.subr.bf16.mxu0 %v8987_v63  ;;  %v8058_v59 = vcombine.high %v4506_v57, %v4522_v58  ;;  %v8057_v61 = vcombine.low %v4506_v57, %v4522_v58  ;;  %v9026_v62 = vld [vmem:[%s10270_s6 + $0x590] sm:$0xff]   ;;  %v9027_v63 = vld [vmem:[%s10270_s6 + $0x558] sm:$0xff]   ;;  %v9064_v52 = vld [vmem:[%s10270_s6 + $0x6e0] sm:$0xff]  }
 0x206   : > { %8588 = vmatprep.subr.bf16.mxu1 %v8988_v0  ;;  %7231 = vmatprep.mubr.bf16.mxu0 %v8052_v5  ;;  %v9028_v0 = vld [vmem:[%s10270_s6 + $0x5d8] sm:$0xff]   ;;  %v9033_v5 = vld [vmem:[%s10270_s6 + $0x520] sm:$0xff]   ;;  %v9069_v57 = vld [vmem:[%s10270_s6 + $0x628] sm:$0xff]  }
 0x207   : > { %7280 = vmatprep.mubr.bf16.mxu1 %v8054_v11  ;;  %v9039_v11 = vld [vmem:[%s10270_s6 + $0x570] sm:$0xff]   ;;  %v9070_v58 = vld [vmem:[%s10270_s6 + $0x6a8] sm:$0xff]  }
 0x208   : > { %8561 = vmatpush3.bf16.msra.mxu0 %v8989_v1  ;;  %v9029_v1 = vld [vmem:[%s10270_s6 + $0x518] sm:$0xff]  }
 0x209   : > { %8589 = vmatpush3.bf16.msra.mxu1 %v8990_v2  ;;  %8562 = vmatprep.subr.bf16.mxu0 %v8991_v7  ;;  %v9030_v2 = vld [vmem:[%s10270_s6 + $0x598] sm:$0xff]   ;;  %v9035_v7 = vld [vmem:[%s10270_s6 + $0x568] sm:$0xff]  }
 0x20a   : > { %8590 = vmatprep.subr.bf16.mxu1 %v8992_v8  ;;  %v9036_v8 = vld [vmem:[%s10270_s6 + $0x5e8] sm:$0xff]  }
 0x20b   : > { %7232 = vmatmul.mubr.bf16.gmra.mrb[28].mxu0 %v8051_v6  ;;  %v9034_v6 = vld [vmem:[%s10270_s6 + $0x5a0] sm:$0xff]  }
 0x20c   : > { %8563 = vmatpush3.bf16.msra.mxu0 %v8993_v12  ;;  %7281 = vmatmul.mubr.bf16.gmra.mrb[28].mxu1 %v8053_v13  ;;  %v9040_v12 = vld [vmem:[%s10270_s6 + $0x5f0] sm:$0xff]  }
 0x20d   : > { %8591 = vmatpush3.bf16.msra.mxu1 %v8994_v14  ;;  %8564 = vmatprep.subr.bf16.mxu0 %v8995_v15  ;;  %v9041_v13 = vld [vmem:[%s10270_s6 + $0x530] sm:$0xff]   ;;  %v9043_v15 = vld [vmem:[%s10270_s6 + $0x578] sm:$0xff]  }
 0x20e   : > { %8592 = vmatprep.subr.bf16.mxu1 %v8996_v16  ;;  %7321 = vmatprep.mubr.bf16.mxu0 %v8024_v40  ;;  %v9042_v14 = vld [vmem:[%s10270_s6 + $0x5b0] sm:$0xff]   ;;  %v9044_v16 = vld [vmem:[%s10270_s6 + $0x5f8] sm:$0xff]  }
 0x20f   : > { %7370 = vmatprep.mubr.bf16.mxu1 %v8026_v42  ;;  %v9056_v40 = vld [vmem:[%s10270_s6 + $0x6d0] sm:$0xff]  }
 0x210   : > { %8565 = vmatpush3.bf16.msra.mxu0 %v8997_v17  ;;  %v9045_v17 = vld [vmem:[%s10270_s6 + $0x538] sm:$0xff]   ;;  %v4524_v42 = vld [vmem:[%s10762_s0 + $0x1d8] sm:$0xff] }
 0x211   : > { %8593 = vmatpush3.bf16.msra.mxu1 %v8998_v18  ;;  %8566 = vmatprep.subr.bf16.mxu0 %v8999_v19  ;;  %v9046_v18 = vld [vmem:[%s10270_s6 + $0x5b8] sm:$0xff]   ;;  %v4475_v19 = vld [vmem:[%s10762_s0 + $0x50] sm:$0xff] }
 0x212   : > { %8594 = vmatprep.subr.bf16.mxu1 %v9000_v20  ;;  %v4491_v20 = vld [vmem:[%s10762_s0 + $0xd0] sm:$0xff] }
 0x214   : > { %8567 = vmatpush3.bf16.msra.mxu0 %v9001_v21  ;;  %v8027_v21 = vcombine.low %v4475_v19, %v4491_v20 }
 0x215   : > { %8595 = vmatpush3.bf16.msra.mxu1 %v9002_v22  ;;  %8568 = vmatprep.subr.bf16.mxu0 %v9003_v23  ;;  %v8028_v22 = vcombine.high %v4475_v19, %v4491_v20  ;;  %v4476_v23 = vld [vmem:[%s10762_s0 + $0x58] sm:$0xff]  ;;  %v9086_v20 = vld [vmem:[%s10270_s6 + $0x788] sm:$0xff]  }
 0x216   : > { %8596 = vmatprep.subr.bf16.mxu1 %v9004_v24  ;;  %v4492_v24 = vld [vmem:[%s10762_s0 + $0xd8] sm:$0xff] }
 0x218   : > { %8569 = vmatpush3.bf16.msra.mxu0 %v9005_v25  ;;  %v8029_v25 = vcombine.low %v4476_v23, %v4492_v24 }
 0x219   : > { %8597 = vmatpush3.bf16.msra.mxu1 %v9006_v26  ;;  %8570 = vmatprep.subr.bf16.mxu0 %v9007_v27  ;;  %v8030_v26 = vcombine.high %v4476_v23, %v4492_v24  ;;  %v9047_v27 = vld [vmem:[%s10270_s6 + $0x640] sm:$0xff]  }
 0x21a   : > { %8598 = vmatprep.subr.bf16.mxu1 %v9008_v28  ;;  %v9048_v28 = vld [vmem:[%s10270_s6 + $0x6c0] sm:$0xff]  }
 0x21c   : > { %8571 = vmatpush3.bf16.msra.mxu0 %v9009_v29  ;;  %v9049_v29 = vld [vmem:[%s10270_s6 + $0x600] sm:$0xff]  }
 0x21d   : > { %8599 = vmatpush3.bf16.msra.mxu1 %v9010_v30  ;;  %8572 = vmatprep.subr.bf16.mxu0 %v9011_v31  ;;  %v9050_v30 = vld [vmem:[%s10270_s6 + $0x680] sm:$0xff]   ;;  %v9051_v31 = vld [vmem:[%s10270_s6 + $0x648] sm:$0xff]  }
 0x21e   : > { %8600 = vmatprep.subr.bf16.mxu1 %v9012_v32  ;;  %v9052_v32 = vld [vmem:[%s10270_s6 + $0x6c8] sm:$0xff]  }
 0x220   : > { %8573 = vmatpush3.bf16.msra.mxu0 %v9013_v33  ;;  %v9053_v33 = vld [vmem:[%s10270_s6 + $0x608] sm:$0xff]  }
 0x221   : > { %8601 = vmatpush3.bf16.msra.mxu1 %v9014_v34  ;;  %8614 = vmatprep.subr.bf16.mxu0 %v9015_v43  ;;  %v9054_v34 = vld [vmem:[%s10270_s6 + $0x688] sm:$0xff]  }
 0x222   : > { %8642 = vmatprep.subr.bf16.mxu1 %v9016_v44  ;;  %v9057_v44 = vld [vmem:[%s10270_s6 + $0x610] sm:$0xff]  }
 0x223   : > { %7322 = vmatmul.mubr.bf16.vlgmr.msra.gmra.mrb[32].mxu0 %v8023_v39  ;;  %v9055_v39 = vld [vmem:[%s10270_s6 + $0x650] sm:$0xff]  }
 0x224   : > { %7371 = vmatmul.mubr.bf16.vlgmr.msra.gmra.mrb[32].mxu1 %v8025_v41  ;;  %8615 = vmatpush3.bf16.msra.mxu0 %v9017_v45  ;;  %v4508_v41 = vld [vmem:[%s10762_s0 + $0x158] sm:$0xff] }
 0x225   : > { %8643 = vmatpush3.bf16.msra.mxu1 %v9018_v46  ;;  %8616 = vmatprep.subr.bf16.mxu0 %v9019_v47  ;;  %v8062_v43 = vcombine.high %v4508_v41, %v4524_v42  ;;  %v8061_v45 = vcombine.low %v4508_v41, %v4524_v42  ;;  %v9058_v46 = vld [vmem:[%s10270_s6 + $0x690] sm:$0xff]   ;;  %v9059_v47 = vld [vmem:[%s10270_s6 + $0x658] sm:$0xff]  }
 0x226   : > { %8644 = vmatprep.subr.bf16.mxu1 %v9020_v48  ;;  %7329 = vmatprep.mubr.bf16.mxu0 %v8056_v53  ;;  %v9060_v48 = vld [vmem:[%s10270_s6 + $0x6d8] sm:$0xff]   ;;  %v9065_v53 = vld [vmem:[%s10270_s6 + $0x620] sm:$0xff]   ;;  %v9090_v42 = vld [vmem:[%s10270_s6 + $0x790] sm:$0xff]  }
 0x227   : > { %7378 = vmatprep.mubr.bf16.mxu1 %v8058_v59  ;;  %v9071_v59 = vld [vmem:[%s10270_s6 + $0x670] sm:$0xff]  }
 0x228   : > { %8617 = vmatpush3.bf16.msra.mxu0 %v9021_v49  ;;  %v9061_v49 = vld [vmem:[%s10270_s6 + $0x618] sm:$0xff]  }
 0x229   : > { %8645 = vmatpush3.bf16.msra.mxu1 %v9022_v50  ;;  %8618 = vmatprep.subr.bf16.mxu0 %v9023_v55  ;;  %v9062_v50 = vld [vmem:[%s10270_s6 + $0x698] sm:$0xff]   ;;  %v9067_v55 = vld [vmem:[%s10270_s6 + $0x668] sm:$0xff]  }
 0x22a   : > { %8646 = vmatprep.subr.bf16.mxu1 %v9024_v56  ;;  %v9068_v56 = vld [vmem:[%s10270_s6 + $0x6e8] sm:$0xff]  }
 0x22b   : > { %7330 = vmatmul.mubr.bf16.gmra.mrb[36].mxu0 %v8055_v54  ;;  %v9066_v54 = vld [vmem:[%s10270_s6 + $0x6a0] sm:$0xff]  }
 0x22c   : > { %8619 = vmatpush3.bf16.msra.mxu0 %v9025_v60  ;;  %7379 = vmatmul.mubr.bf16.gmra.mrb[36].mxu1 %v8057_v61  ;;  %v9072_v60 = vld [vmem:[%s10270_s6 + $0x6f0] sm:$0xff]  }
 0x22d   : > { %8647 = vmatpush3.bf16.msra.mxu1 %v9026_v62  ;;  %8620 = vmatprep.subr.bf16.mxu0 %v9027_v63  ;;  %v9073_v61 = vld [vmem:[%s10270_s6 + $0x630] sm:$0xff]   ;;  %v9075_v63 = vld [vmem:[%s10270_s6 + $0x678] sm:$0xff]  }
 0x22e   : > { %8648 = vmatprep.subr.bf16.mxu1 %v9028_v0  ;;  %7419 = vmatprep.mubr.bf16.mxu0 %v8028_v22  ;;  %v9074_v62 = vld [vmem:[%s10270_s6 + $0x6b0] sm:$0xff]   ;;  %v9076_v0 = vld [vmem:[%s10270_s6 + $0x6f8] sm:$0xff]  }
 0x22f   : > { %7468 = vmatprep.mubr.bf16.mxu1 %v8030_v26  ;;  %v4525_v22 = vld [vmem:[%s10762_s0 + $0x1e0] sm:$0xff] }
 0x230   : > { %8621 = vmatpush3.bf16.msra.mxu0 %v9029_v1  ;;  %v9077_v1 = vld [vmem:[%s10270_s6 + $0x638] sm:$0xff]  }
 0x231   : > { %8649 = vmatpush3.bf16.msra.mxu1 %v9030_v2  ;;  %8622 = vmatprep.subr.bf16.mxu0 %v9031_v3  ;;  %v9078_v2 = vld [vmem:[%s10270_s6 + $0x6b8] sm:$0xff]  }
 0x232   : > { %8650 = vmatprep.subr.bf16.mxu1 %v9032_v4  ;;  %v4477_v3 = vld [vmem:[%s10762_s0 + $0x60] sm:$0xff] }
 0x233   : > { %v4493_v4 = vld [vmem:[%s10762_s0 + $0xe0] sm:$0xff] }
 0x234   : > { %8623 = vmatpush3.bf16.msra.mxu0 %v9033_v5  ;;  %v4478_v5 = vld [vmem:[%s10762_s0 + $0x68] sm:$0xff] }
 0x235   : > { %8651 = vmatpush3.bf16.msra.mxu1 %v9034_v6  ;;  %8624 = vmatprep.subr.bf16.mxu0 %v9035_v7  ;;  %v8031_v6 = vcombine.low %v4477_v3, %v4493_v4  ;;  %v8032_v7 = vcombine.high %v4477_v3, %v4493_v4  ;;  %v9110_v3 = vld [vmem:[%s10270_s6 + $0x7b8] sm:$0xff]   ;;  %v4479_v4 = vld [vmem:[%s10762_s0 + $0x70] sm:$0xff] }
 0x236   : > { %8652 = vmatprep.subr.bf16.mxu1 %v9036_v8  ;;  %v4494_v8 = vld [vmem:[%s10762_s0 + $0xe8] sm:$0xff] }
 0x238   : > { %8625 = vmatpush3.bf16.msra.mxu0 %v9037_v9  ;;  %v8033_v9 = vcombine.low %v4478_v5, %v4494_v8 }
 0x239   : > { %8653 = vmatpush3.bf16.msra.mxu1 %v9038_v10  ;;  %8626 = vmatprep.subr.bf16.mxu0 %v9039_v11  ;;  %v8034_v10 = vcombine.high %v4478_v5, %v4494_v8  ;;  %v9079_v11 = vld [vmem:[%s10270_s6 + $0x740] sm:$0xff]   ;;  %v4495_v8 = vld [vmem:[%s10762_s0 + $0xf0] sm:$0xff] }
 0x23a   : > { %8654 = vmatprep.subr.bf16.mxu1 %v9040_v12  ;;  %v9080_v12 = vld [vmem:[%s10270_s6 + $0x7c0] sm:$0xff]  }
 0x23c   : > { %8627 = vmatpush3.bf16.msra.mxu0 %v9041_v13  ;;  %v9081_v13 = vld [vmem:[%s10270_s6 + $0x700] sm:$0xff]  }
 0x23d   : > { %8655 = vmatpush3.bf16.msra.mxu1 %v9042_v14  ;;  %8628 = vmatprep.subr.bf16.mxu0 %v9043_v15  ;;  %v9082_v14 = vld [vmem:[%s10270_s6 + $0x780] sm:$0xff]   ;;  %v9083_v15 = vld [vmem:[%s10270_s6 + $0x748] sm:$0xff]  }
 0x23e   : > { %8656 = vmatprep.subr.bf16.mxu1 %v9044_v16  ;;  %v9084_v16 = vld [vmem:[%s10270_s6 + $0x7c8] sm:$0xff]  }
 0x240   : > { %8629 = vmatpush3.bf16.msra.mxu0 %v9045_v17 }
 0x241   : > { %8657 = vmatpush3.bf16.msra.mxu1 %v9046_v18  ;;  %8670 = vmatprep.subr.bf16.mxu0 %v9047_v27  ;;  %v9085_v18 = vld [vmem:[%s10270_s6 + $0x708] sm:$0xff]   ;;  %v9087_v27 = vld [vmem:[%s10270_s6 + $0x750] sm:$0xff]  }
 0x242   : > { %8698 = vmatprep.subr.bf16.mxu1 %v9048_v28 }
 0x243   : > { %7420 = vmatmul.mubr.bf16.vlgmr.msra.gmra.mrb[40].mxu0 %v8027_v21  ;;  %v4509_v21 = vld [vmem:[%s10762_s0 + $0x160] sm:$0xff] }
 0x244   : > { %7469 = vmatmul.mubr.bf16.vlgmr.msra.gmra.mrb[40].mxu1 %v8029_v25  ;;  %8671 = vmatpush3.bf16.msra.mxu0 %v9049_v29  ;;  %v8064_v25 = vcombine.high %v4509_v21, %v4525_v22  ;;  %v8063_v26 = vcombine.low %v4509_v21, %v4525_v22 }
 0x245   : > { %8699 = vmatpush3.bf16.msra.mxu1 %v9050_v30  ;;  %8672 = vmatprep.subr.bf16.mxu0 %v9051_v31  ;;  %v9088_v31 = vld [vmem:[%s10270_s6 + $0x7d0] sm:$0xff]  }
 0x246   : > { %8700 = vmatprep.subr.bf16.mxu1 %v9052_v32  ;;  %7427 = vmatprep.mubr.bf16.mxu0 %v8060_v37 }
 0x247   : > { %7476 = vmatprep.mubr.bf16.mxu1 %v8062_v43 }
 0x248   : > { %8673 = vmatpush3.bf16.msra.mxu0 %v9053_v33  ;;  %v4510_v33 = vld [vmem:[%s10762_s0 + $0x168] sm:$0xff] }
 0x249   : > { %8701 = vmatpush3.bf16.msra.mxu1 %v9054_v34  ;;  %8674 = vmatprep.subr.bf16.mxu0 %v9055_v39  ;;  %v4526_v34 = vld [vmem:[%s10762_s0 + $0x1e8] sm:$0xff]  ;;  %v9089_v39 = vld [vmem:[%s10270_s6 + $0x710] sm:$0xff]  }
 0x24a   : > { %8702 = vmatprep.subr.bf16.mxu1 %v9056_v40  ;;  %v8065_v40 = vcombine.low %v4510_v33, %v4526_v34 }
 0x24b   : > { %7428 = vmatmul.mubr.bf16.gmra.mrb[44].mxu0 %v8059_v38  ;;  %v8066_v38 = vcombine.high %v4510_v33, %v4526_v34 }
 0x24c   : > { %8675 = vmatpush3.bf16.msra.mxu0 %v9057_v44  ;;  %7477 = vmatmul.mubr.bf16.gmra.mrb[44].mxu1 %v8061_v45  ;;  %v9091_v44 = vld [vmem:[%s10270_s6 + $0x758] sm:$0xff]  }
 0x24d   : > { %8703 = vmatpush3.bf16.msra.mxu1 %v9058_v46  ;;  %8676 = vmatprep.subr.bf16.mxu0 %v9059_v47  ;;  %v9092_v45 = vld [vmem:[%s10270_s6 + $0x7d8] sm:$0xff]  }
 0x24e   : > { %8704 = vmatprep.subr.bf16.mxu1 %v9060_v48  ;;  %7517 = vmatprep.mubr.bf16.mxu0 %v8032_v7  ;;  %v9093_v47 = vld [vmem:[%s10270_s6 + $0x718] sm:$0xff]  }
 0x24f   : > { %7566 = vmatprep.mubr.bf16.mxu1 %v8034_v10  ;;  %v9094_v48 = vld [vmem:[%s10270_s6 + $0x798] sm:$0xff]   ;;  %v4496_v10 = vld [vmem:[%s10762_s0 + $0xf8] sm:$0xff] }
 0x250   : > { %8677 = vmatpush3.bf16.msra.mxu0 %v9061_v49  ;;  %v9095_v49 = vld [vmem:[%s10270_s6 + $0x760] sm:$0xff]  }
 0x251   : > { %8705 = vmatpush3.bf16.msra.mxu1 %v9062_v50  ;;  %8678 = vmatprep.subr.bf16.mxu0 %v9063_v51  ;;  %v9096_v50 = vld [vmem:[%s10270_s6 + $0x7e0] sm:$0xff]  }
 0x252   : > { %8706 = vmatprep.subr.bf16.mxu1 %v9064_v52  ;;  %v9097_v51 = vld [vmem:[%s10270_s6 + $0x720] sm:$0xff]  }
 0x253   : > { %v9098_v52 = vld [vmem:[%s10270_s6 + $0x7a0] sm:$0xff]  }
 0x254   : > { %8679 = vmatpush3.bf16.msra.mxu0 %v9065_v53  ;;  %v9099_v53 = vld [vmem:[%s10270_s6 + $0x768] sm:$0xff]  }
 0x255   : > { %8707 = vmatpush3.bf16.msra.mxu1 %v9066_v54  ;;  %8680 = vmatprep.subr.bf16.mxu0 %v9067_v55  ;;  %v9100_v54 = vld [vmem:[%s10270_s6 + $0x7e8] sm:$0xff]  }
 0x256   : > { %8708 = vmatprep.subr.bf16.mxu1 %v9068_v56  ;;  %v9101_v55 = vld [vmem:[%s10270_s6 + $0x728] sm:$0xff]  }
 0x257   : > { %v9102_v56 = vld [vmem:[%s10270_s6 + $0x7a8] sm:$0xff]  }
 0x258   : > { %8681 = vmatpush3.bf16.msra.mxu0 %v9069_v57  ;;  %v9103_v57 = vld [vmem:[%s10270_s6 + $0x770] sm:$0xff]  }
 0x259   : > { %8709 = vmatpush3.bf16.msra.mxu1 %v9070_v58  ;;  %8682 = vmatprep.subr.bf16.mxu0 %v9071_v59  ;;  %v9104_v58 = vld [vmem:[%s10270_s6 + $0x7f0] sm:$0xff]  }
 0x25a   : > { %8710 = vmatprep.subr.bf16.mxu1 %v9072_v60  ;;  %v9105_v59 = vld [vmem:[%s10270_s6 + $0x730] sm:$0xff]  }
 0x25b   : > { %v9106_v60 = vld [vmem:[%s10270_s6 + $0x7b0] sm:$0xff]  }
 0x25c   : > { %8683 = vmatpush3.bf16.msra.mxu0 %v9073_v61  ;;  %v9107_v61 = vld [vmem:[%s10270_s6 + $0x778] sm:$0xff]  }
 0x25d   : > { %8711 = vmatpush3.bf16.msra.mxu1 %v9074_v62  ;;  %8684 = vmatprep.subr.bf16.mxu0 %v9075_v63  ;;  %v9108_v63 = vld [vmem:[%s10270_s6 + $0x7f8] sm:$0xff]  }
 0x25e   : > { %8712 = vmatprep.subr.bf16.mxu1 %v9076_v0 }
 0x260   : > { %8685 = vmatpush3.bf16.msra.mxu0 %v9077_v1  ;;  %v9109_v1 = vld [vmem:[%s10270_s6 + $0x738] sm:$0xff]  }
 0x261   : > { %8713 = vmatpush3.bf16.msra.mxu1 %v9078_v2  ;;  %8726 = vmatprep.subr.bf16.mxu0 %v9079_v11 }
 0x262   : > { %8754 = vmatprep.subr.bf16.mxu1 %v9080_v12 }
 0x263   : > { %7518 = vmatmul.mubr.bf16.vlgmr.msra.gmra.mrb[48].mxu0 %v8031_v6 }
 0x264   : > { %7567 = vmatmul.mubr.bf16.vlgmr.msra.gmra.mrb[48].mxu1 %v8033_v9  ;;  %8727 = vmatpush3.bf16.msra.mxu0 %v9081_v13  ;;  %v4480_v9 = vld [vmem:[%s10762_s0 + $0x78] sm:$0xff] }
 0x265   : > { %8755 = vmatpush3.bf16.msra.mxu1 %v9082_v14  ;;  %8728 = vmatprep.subr.bf16.mxu0 %v9083_v15  ;;  %v8035_v14 = vcombine.low %v4479_v4, %v4495_v8  ;;  %v8036_v15 = vcombine.high %v4479_v4, %v4495_v8 }
 0x266   : > { %8756 = vmatprep.subr.bf16.mxu1 %v9084_v16  ;;  %7525 = vmatprep.mubr.bf16.mxu0 %v8064_v25  ;;  %v8037_v16 = vcombine.low %v4480_v9, %v4496_v10 }
 0x267   : > { %7574 = vmatprep.mubr.bf16.mxu1 %v8066_v38 }
 0x268   : > { %8729 = vmatpush3.bf16.msra.mxu0 %v9085_v18  ;;  %v4511_v18 = vld [vmem:[%s10762_s0 + $0x170] sm:$0xff] }
 0x269   : > { %8757 = vmatpush3.bf16.msra.mxu1 %v9086_v20  ;;  %8730 = vmatprep.subr.bf16.mxu0 %v9087_v27  ;;  %v4512_v20 = vld [vmem:[%s10762_s0 + $0x178] sm:$0xff] }
 0x26a   : > { %8758 = vmatprep.subr.bf16.mxu1 %v9088_v31 }
 0x26b   : > { %7526 = vmatmul.mubr.bf16.gmra.mrb[52].mxu0 %v8063_v26 }
 0x26c   : > { %8731 = vmatpush3.bf16.msra.mxu0 %v9089_v39  ;;  %7575 = vmatmul.mubr.bf16.gmra.mrb[52].mxu1 %v8065_v40 }
 0x26d   : > { %8759 = vmatpush3.bf16.msra.mxu1 %v9090_v42  ;;  %8732 = vmatprep.subr.bf16.mxu0 %v9091_v44 }
 0x26e   : > { %8760 = vmatprep.subr.bf16.mxu1 %v9092_v45  ;;  %7615 = vmatprep.mubr.bf16.mxu0 %v8036_v15 }
 0x270   : > { %8733 = vmatpush3.bf16.msra.mxu0 %v9093_v47 }
 0x271   : > { %8761 = vmatpush3.bf16.msra.mxu1 %v9094_v48  ;;  %8734 = vmatprep.subr.bf16.mxu0 %v9095_v49 }
 0x272   : > { %8762 = vmatprep.subr.bf16.mxu1 %v9096_v50 }
 0x274   : > { %8735 = vmatpush3.bf16.msra.mxu0 %v9097_v51 }
 0x275   : > { %8763 = vmatpush3.bf16.msra.mxu1 %v9098_v52  ;;  %8736 = vmatprep.subr.bf16.mxu0 %v9099_v53 }
 0x276   : > { %v8350_v17 = vpop.f32.mrb[0].mxu0  ;;  %8764 = vmatprep.subr.bf16.mxu1 %v9100_v54 }
 0x277   : > { %v8378_v19 = vpop.f32.mrb[0].mxu1  ;;  %v8351_v23 = vpop.f32.mrb[1].mxu0 }
 0x278   : > { %v8379_v24 = vpop.f32.mrb[1].mxu1  ;;  %v8352_v28 = vadd.f32 %v8351_v23, %v8350_v17  ;;  %v8353_v30 = vpop.f32.mrb[2].mxu0  ;;  %8737 = vmatpush3.bf16.msra.mxu0 %v9101_v55  ;;  %v8038_v17 = vcombine.high %v4480_v9, %v4496_v10  ;;  %v4528_v23 = vld [vmem:[%s10762_s0 + $0x1f8] sm:$0xff] }
 0x279   : > { %v8380_v29 = vadd.f32 %v8379_v24, %v8378_v19  ;;  %v8381_v32 = vpop.f32.mrb[2].mxu1  ;;  %v8354_v36 = vpop.f32.mrb[3].mxu0  ;;  %8765 = vmatpush3.bf16.msra.mxu1 %v9102_v56  ;;  %8738 = vmatprep.subr.bf16.mxu0 %v9103_v57  ;;  %v4527_v19 = vld [vmem:[%s10762_s0 + $0x1f0] sm:$0xff]  ;;  %v8070_v26 = vcombine.high %v4512_v20, %v4528_v23 }
 0x27a   : > { %v8382_v37 = vpop.f32.mrb[3].mxu1  ;;  %v8355_v41 = vadd.f32 %v8354_v36, %v8353_v30  ;;  %8766 = vmatprep.subr.bf16.mxu1 %v9104_v58  ;;  %v8068_v22 = vcombine.high %v4511_v18, %v4527_v19  ;;  %7664 = vmatprep.mubr.bf16.mxu1 %v8038_v17  ;;  %v8067_v31 = vcombine.low %v4511_v18, %v4527_v19 }
 0x27b   : > { %v10676_v35 = vadd.f32 %v8380_v29, %v8352_v28  ;;  %v8383_v43 = vadd.f32 %v8382_v37, %v8381_v32  ;;  %v8069_v32 = vcombine.low %v4512_v20, %v4528_v23 }
 0x27c   : > { %8739 = vmatpush3.bf16.msra.mxu0 %v9105_v59 }
 0x27d   : > { %v10682_v46 = vadd.f32 %v8383_v43, %v8355_v41  ;;  %8767 = vmatpush3.bf16.msra.mxu1 %v9106_v60  ;;  %8740 = vmatprep.subr.bf16.mxu0 %v9107_v61 }
 0x27e   : > { %v8356_v62 = vpop.f32.mrb[4].mxu0  ;;  %8768 = vmatprep.subr.bf16.mxu1 %v9108_v63 }
 0x27f   : > { %v8384_v0 = vpop.f32.mrb[4].mxu1  ;;  %v8357_v2 = vpop.f32.mrb[5].mxu0 }
 0x280   : > { %v8358_v5 = vadd.f32 %v8357_v2, %v8356_v62  ;;  %v8385_v6 = vpop.f32.mrb[5].mxu1  ;;  %v8359_v7 = vpop.f32.mrb[6].mxu0  ;;  %8741 = vmatpush3.bf16.msra.mxu0 %v9109_v1 }
 0x281   : > { %v8386_v11 = vadd.f32 %v8385_v6, %v8384_v0  ;;  %v8387_v12 = vpop.f32.mrb[6].mxu1  ;;  %v8360_v13 = vpop.f32.mrb[7].mxu0  ;;  %8769 = vmatpush3.bf16.msra.mxu1 %v9110_v3 }
 0x282   : > { %v8388_v21 = vpop.f32.mrb[7].mxu1  ;;  %v8361_v25 = vadd.f32 %v8360_v13, %v8359_v7 }
 0x283   : > { %v6989_v24 = vadd.f32 %v8386_v11, %v8358_v5  ;;  %v8389_v27 = vadd.f32 %v8388_v21, %v8387_v12  ;;  %7616 = vmatmul.mubr.bf16.vlgmr.msra.gmra.mrb[56].mxu0 %v8035_v14 }
 0x284   : > { %7665 = vmatmul.mubr.bf16.vlgmr.msra.gmra.mrb[56].mxu1 %v8037_v16  ;;  %7623 = vmatprep.mubr.bf16.mxu0 %v8068_v22 }
 0x285   : > { %7672 = vmatprep.mubr.bf16.mxu1 %v8070_v26  ;;  %v6992_v28 = vadd.f32 %v8389_v27, %v8361_v25 }
 0x28b   : > { %7624 = vmatmul.mubr.bf16.gmra.mrb[60].mxu0 %v8067_v31 }
 0x28c   : > { %7673 = vmatmul.mubr.bf16.gmra.mrb[60].mxu1 %v8069_v32 }
 0x296   : > { %v8406_v29 = vpop.f32.mrb[8].mxu0 }
 0x297   : > { %v8434_v30 = vpop.f32.mrb[8].mxu1  ;;  %v8407_v33 = vpop.f32.mrb[9].mxu0 }
 0x298   : > { %v8435_v34 = vpop.f32.mrb[9].mxu1  ;;  %v8408_v36 = vadd.f32 %v8407_v33, %v8406_v29  ;;  %v8409_v38 = vpop.f32.mrb[10].mxu0 }
 0x299   : > { %v8436_v37 = vadd.f32 %v8435_v34, %v8434_v30  ;;  %v8437_v39 = vpop.f32.mrb[10].mxu1  ;;  %v8410_v40 = vpop.f32.mrb[11].mxu0 }
 0x29a   : > { %v8438_v41 = vpop.f32.mrb[11].mxu1  ;;  %v7030_v42 = vadd.f32 %v8408_v36, %v10676_v35  ;;  %v8411_v43 = vadd.f32 %v8410_v40, %v8409_v38 }
 0x29b   : > { %v8439_v44 = vadd.f32 %v8438_v41, %v8437_v39 }
 0x29c   : > { %v7079_v45 = vadd.f32 %v8436_v37, %v7030_v42  ;;  %v7033_v47 = vadd.f32 %v8411_v43, %v10682_v46 }
 0x29e   : > { %v7082_v48 = vadd.f32 %v8439_v44, %v7033_v47  ;;  %v8412_v49 = vpop.f32.mrb[12].mxu0 }
 0x29f   : > { %v8413_v50 = vpop.f32.mrb[13].mxu0  ;;  %v8440_v55 = vpop.f32.mrb[12].mxu1 }
 0x2a0   : > { %v8414_v51 = vadd.f32 %v8413_v50, %v8412_v49  ;;  %v8415_v52 = vpop.f32.mrb[14].mxu0  ;;  %v8441_v57 = vpop.f32.mrb[13].mxu1 }
 0x2a1   : > { %v8416_v53 = vpop.f32.mrb[15].mxu0  ;;  %v8442_v59 = vadd.f32 %v8441_v57, %v8440_v55  ;;  %v8443_v35 = vpop.f32.mrb[14].mxu1 }
 0x2a2   : > { %v7038_v54 = vadd.f32 %v8414_v51, %v6989_v24  ;;  %v8417_v56 = vadd.f32 %v8416_v53, %v8415_v52  ;;  %v8444_v60 = vpop.f32.mrb[15].mxu1 }
 0x2a3   : > { %v8445_v62 = vadd.f32 %v8444_v60, %v8443_v35 }
 0x2a4   : > { %v7041_v58 = vadd.f32 %v8417_v56, %v6992_v28  ;;  %v7087_v61 = vadd.f32 %v8442_v59, %v7038_v54 }
 0x2a6   : > { %v7090_v63 = vadd.f32 %v8445_v62, %v7041_v58 }
 0x2b6   : > { %v8462_v0 = vpop.f32.mrb[16].mxu0 }
 0x2b7   : > { %v8490_v1 = vpop.f32.mrb[16].mxu1  ;;  %v8463_v46 = vpop.f32.mrb[17].mxu0 }
 0x2b8   : > { %v8464_v2 = vadd.f32 %v8463_v46, %v8462_v0  ;;  %v8491_v3 = vpop.f32.mrb[17].mxu1  ;;  %v8465_v4 = vpop.f32.mrb[18].mxu0  ;;  %v9142_v0 = vmov 0.0|0.0  }
 0x2b9   : > { %v8492_v5 = vadd.f32 %v8491_v3, %v8490_v1  ;;  %v8493_v6 = vpop.f32.mrb[18].mxu1  ;;  %v8466_v7 = vpop.f32.mrb[19].mxu0  ;;  %8814 = vmatprep.subr.bf16.mxu0 %v9142_v0  ;;  %8820 = vmatprep.subr.bf16.mxu1 %v9142_v0  ;;  %v9144_v1 = vmov 0.0  }
 0x2ba   : > { %v7128_v8 = vadd.f32 %v8464_v2, %v7079_v45  ;;  %v8467_v9 = vadd.f32 %v8466_v7, %v8465_v4  ;;  %v8494_v10 = vpop.f32.mrb[19].mxu1  ;;  %8800 = vmatprep.mubr.msk.f32.mxu0 %vm9143_vm0, %v9144_v1  ;;  %8811 = vmatprep.mubr.msk.f32.mxu1 %vm9143_vm0, %v9144_v1 }
 0x2bb   : > { %v8495_v11 = vadd.f32 %v8494_v10, %v8493_v6 }
 0x2bc   : > { %v7177_v12 = vadd.f32 %v8492_v5, %v7128_v8  ;;  %v7131_v13 = vadd.f32 %v8467_v9, %v7082_v48 }
 0x2be   : > { %v7180_v14 = vadd.f32 %v8495_v11, %v7131_v13  ;;  %v8468_v15 = vpop.f32.mrb[20].mxu0 }
 0x2bf   : > { %v8469_v16 = vpop.f32.mrb[21].mxu0  ;;  %v8496_v19 = vpop.f32.mrb[20].mxu1 }
 0x2c0   : > { %v8470_v17 = vadd.f32 %v8469_v16, %v8468_v15  ;;  %v8471_v18 = vpop.f32.mrb[22].mxu0  ;;  %v8497_v23 = vpop.f32.mrb[21].mxu1 }
 0x2c1   : > { %v8472_v20 = vpop.f32.mrb[23].mxu0  ;;  %v8498_v24 = vadd.f32 %v8497_v23, %v8496_v19  ;;  %v8499_v25 = vpop.f32.mrb[22].mxu1 }
 0x2c2   : > { %v7136_v21 = vadd.f32 %v8470_v17, %v7087_v61  ;;  %v8473_v22 = vadd.f32 %v8472_v20, %v8471_v18  ;;  %v8500_v27 = vpop.f32.mrb[23].mxu1 }
 0x2c3   : > { %v8501_v29 = vadd.f32 %v8500_v27, %v8499_v25 }
 0x2c4   : > { %v7139_v26 = vadd.f32 %v8473_v22, %v7090_v63  ;;  %v7185_v28 = vadd.f32 %v8498_v24, %v7136_v21 }
 0x2c6   : > { %v7188_v30 = vadd.f32 %v8501_v29, %v7139_v26 }
 0x2d6   : > { %v8518_v31 = vpop.f32.mrb[24].mxu0 }
 0x2d7   : > { %v8546_v32 = vpop.f32.mrb[24].mxu1  ;;  %v8519_v33 = vpop.f32.mrb[25].mxu0 }
 0x2d8   : > { %v8520_v34 = vadd.f32 %v8519_v33, %v8518_v31  ;;  %v8547_v36 = vpop.f32.mrb[25].mxu1  ;;  %v8521_v37 = vpop.f32.mrb[26].mxu0 }
 0x2d9   : > { %v8548_v38 = vadd.f32 %v8547_v36, %v8546_v32  ;;  %v8549_v39 = vpop.f32.mrb[26].mxu1  ;;  %v8522_v40 = vpop.f32.mrb[27].mxu0 }
 0x2da   : > { %v7226_v41 = vadd.f32 %v8520_v34, %v7177_v12  ;;  %v8523_v42 = vadd.f32 %v8522_v40, %v8521_v37  ;;  %v8550_v43 = vpop.f32.mrb[27].mxu1 }
 0x2db   : > { %v8551_v44 = vadd.f32 %v8550_v43, %v8549_v39 }
 0x2dc   : > { %v7275_v45 = vadd.f32 %v8548_v38, %v7226_v41  ;;  %v7229_v47 = vadd.f32 %v8523_v42, %v7180_v14 }
 0x2de   : > { %v7278_v48 = vadd.f32 %v8551_v44, %v7229_v47  ;;  %v8524_v49 = vpop.f32.mrb[28].mxu0 }
 0x2df   : > { %v8525_v50 = vpop.f32.mrb[29].mxu0  ;;  %v8552_v55 = vpop.f32.mrb[28].mxu1 }
 0x2e0   : > { %v8526_v51 = vadd.f32 %v8525_v50, %v8524_v49  ;;  %v8527_v52 = vpop.f32.mrb[30].mxu0  ;;  %v8553_v57 = vpop.f32.mrb[29].mxu1 }
 0x2e1   : > { %v8528_v53 = vpop.f32.mrb[31].mxu0  ;;  %v8554_v59 = vadd.f32 %v8553_v57, %v8552_v55  ;;  %v8555_v35 = vpop.f32.mrb[30].mxu1 }
 0x2e2   : > { %v7234_v54 = vadd.f32 %v8526_v51, %v7185_v28  ;;  %v8529_v56 = vadd.f32 %v8528_v53, %v8527_v52  ;;  %v8556_v60 = vpop.f32.mrb[31].mxu1 }
 0x2e3   : > { %v8557_v62 = vadd.f32 %v8556_v60, %v8555_v35 }
 0x2e4   : > { %v7237_v58 = vadd.f32 %v8529_v56, %v7188_v30  ;;  %v7283_v61 = vadd.f32 %v8554_v59, %v7234_v54 }
 0x2e6   : > { %v7286_v63 = vadd.f32 %v8557_v62, %v7237_v58 }
 0x2f6   : > { %v8574_v46 = vpop.f32.mrb[32].mxu0 }
 0x2f7   : > { %v8602_v2 = vpop.f32.mrb[32].mxu1  ;;  %v8575_v3 = vpop.f32.mrb[33].mxu0 }
 0x2f8   : > { %v8603_v4 = vpop.f32.mrb[33].mxu1  ;;  %v8576_v5 = vadd.f32 %v8575_v3, %v8574_v46  ;;  %v8577_v7 = vpop.f32.mrb[34].mxu0 }
 0x2f9   : > { %v8604_v6 = vadd.f32 %v8603_v4, %v8602_v2  ;;  %v8605_v8 = vpop.f32.mrb[34].mxu1  ;;  %v8578_v9 = vpop.f32.mrb[35].mxu0 }
 0x2fa   : > { %v8606_v10 = vpop.f32.mrb[35].mxu1  ;;  %v7324_v11 = vadd.f32 %v8576_v5, %v7275_v45  ;;  %v8579_v12 = vadd.f32 %v8578_v9, %v8577_v7 }
 0x2fb   : > { %v8607_v13 = vadd.f32 %v8606_v10, %v8605_v8 }
 0x2fc   : > { %v7373_v14 = vadd.f32 %v8604_v6, %v7324_v11  ;;  %v7327_v15 = vadd.f32 %v8579_v12, %v7278_v48 }
 0x2fe   : > { %v7376_v16 = vadd.f32 %v8607_v13, %v7327_v15  ;;  %v8580_v17 = vpop.f32.mrb[36].mxu0 }
 0x2ff   : > { %v8581_v18 = vpop.f32.mrb[37].mxu0  ;;  %v8608_v23 = vpop.f32.mrb[36].mxu1 }
 0x300   : > { %v8582_v19 = vadd.f32 %v8581_v18, %v8580_v17  ;;  %v8583_v20 = vpop.f32.mrb[38].mxu0  ;;  %v8609_v25 = vpop.f32.mrb[37].mxu1 }
 0x301   : > { %v8584_v21 = vpop.f32.mrb[39].mxu0  ;;  %v8610_v27 = vadd.f32 %v8609_v25, %v8608_v23  ;;  %v8611_v28 = vpop.f32.mrb[38].mxu1 }
 0x302   : > { %v7332_v22 = vadd.f32 %v8582_v19, %v7283_v61  ;;  %v8585_v24 = vadd.f32 %v8584_v21, %v8583_v20  ;;  %v8612_v29 = vpop.f32.mrb[39].mxu1 }
 0x303   : > { %v8613_v31 = vadd.f32 %v8612_v29, %v8611_v28 }
 0x304   : > { %v7335_v26 = vadd.f32 %v8585_v24, %v7286_v63  ;;  %v7381_v30 = vadd.f32 %v8610_v27, %v7332_v22 }
 0x306   : > { %v7384_v32 = vadd.f32 %v8613_v31, %v7335_v26 }
 0x316   : > { %v8630_v33 = vpop.f32.mrb[40].mxu0 }
 0x317   : > { %v8658_v34 = vpop.f32.mrb[40].mxu1  ;;  %v8631_v36 = vpop.f32.mrb[41].mxu0 }
 0x318   : > { %v8632_v37 = vadd.f32 %v8631_v36, %v8630_v33  ;;  %v8659_v38 = vpop.f32.mrb[41].mxu1  ;;  %v8633_v39 = vpop.f32.mrb[42].mxu0 }
 0x319   : > { %v8660_v40 = vadd.f32 %v8659_v38, %v8658_v34  ;;  %v8661_v41 = vpop.f32.mrb[42].mxu1  ;;  %v8634_v42 = vpop.f32.mrb[43].mxu0 }
 0x31a   : > { %v7422_v43 = vadd.f32 %v8632_v37, %v7373_v14  ;;  %v8635_v44 = vadd.f32 %v8634_v42, %v8633_v39  ;;  %v8662_v45 = vpop.f32.mrb[43].mxu1 }
 0x31b   : > { %v8663_v47 = vadd.f32 %v8662_v45, %v8661_v41 }
 0x31c   : > { %v7471_v48 = vadd.f32 %v8660_v40, %v7422_v43  ;;  %v7425_v49 = vadd.f32 %v8635_v44, %v7376_v16 }
 0x31e   : > { %v7474_v50 = vadd.f32 %v8663_v47, %v7425_v49  ;;  %v8636_v51 = vpop.f32.mrb[44].mxu0 }
 0x31f   : > { %v8637_v52 = vpop.f32.mrb[45].mxu0  ;;  %v8664_v55 = vpop.f32.mrb[44].mxu1 }
 0x320   : > { %v8638_v53 = vadd.f32 %v8637_v52, %v8636_v51  ;;  %v8639_v54 = vpop.f32.mrb[46].mxu0  ;;  %v8665_v59 = vpop.f32.mrb[45].mxu1 }
 0x321   : > { %v8640_v56 = vpop.f32.mrb[47].mxu0  ;;  %v8666_v35 = vadd.f32 %v8665_v59, %v8664_v55  ;;  %v8667_v60 = vpop.f32.mrb[46].mxu1 }
 0x322   : > { %v7430_v57 = vadd.f32 %v8638_v53, %v7381_v30  ;;  %v8641_v58 = vadd.f32 %v8640_v56, %v8639_v54  ;;  %v8668_v62 = vpop.f32.mrb[47].mxu1 }
 0x323   : > { %v8669_v1 = vadd.f32 %v8668_v62, %v8667_v60 }
 0x324   : > { %v7433_v61 = vadd.f32 %v8641_v58, %v7384_v32  ;;  %v7479_v63 = vadd.f32 %v8666_v35, %v7430_v57 }
 0x326   : > { %v7482_v46 = vadd.f32 %v8669_v1, %v7433_v61 }
 0x336   : > { %v8686_v2 = vpop.f32.mrb[48].mxu0 }
 0x337   : > { %v8714_v3 = vpop.f32.mrb[48].mxu1  ;;  %v8687_v4 = vpop.f32.mrb[49].mxu0 }
 0x338   : > { %v8688_v5 = vadd.f32 %v8687_v4, %v8686_v2  ;;  %v8715_v6 = vpop.f32.mrb[49].mxu1  ;;  %v8689_v7 = vpop.f32.mrb[50].mxu0 }
 0x339   : > { %v8716_v8 = vadd.f32 %v8715_v6, %v8714_v3  ;;  %v8717_v9 = vpop.f32.mrb[50].mxu1  ;;  %v8690_v10 = vpop.f32.mrb[51].mxu0  ;;  %v7756_v6 = vlaneseq }
 0x33a   : > { %v7520_v11 = vadd.f32 %v8688_v5, %v7471_v48  ;;  %v8691_v12 = vadd.f32 %v8690_v10, %v8689_v7  ;;  %v8718_v13 = vpop.f32.mrb[51].mxu1  ;;  %v9145_v5 = vmov 1.0  }
 0x33b   : > { %v8719_v14 = vadd.f32 %v8718_v13, %v8717_v9  ;;  %v7757_v7 = vshrl.u32 %v7756_v6, 7 }
 0x33c   : > { %v7569_v15 = vadd.f32 %v8716_v8, %v7520_v11  ;;  %v7523_v16 = vadd.f32 %v8691_v12, %v7474_v50 }
 0x33d   : > { %v7758_v8 = vsub.s32 0, %v7757_v7 }
 0x33e   : > { %v7572_v17 = vadd.f32 %v8719_v14, %v7523_v16  ;;  %v8692_v18 = vpop.f32.mrb[52].mxu0 }
 0x33f   : > { %v8693_v19 = vpop.f32.mrb[53].mxu0  ;;  %v8720_v24 = vpop.f32.mrb[52].mxu1 }
 0x340   : > { %v8694_v20 = vadd.f32 %v8693_v19, %v8692_v18  ;;  %v8695_v21 = vpop.f32.mrb[54].mxu0  ;;  %v8721_v26 = vpop.f32.mrb[53].mxu1 }
 0x341   : > { %v8696_v22 = vpop.f32.mrb[55].mxu0  ;;  %v8722_v28 = vadd.f32 %v8721_v26, %v8720_v24  ;;  %v8723_v29 = vpop.f32.mrb[54].mxu1 }
 0x342   : > { %v7528_v23 = vadd.f32 %v8694_v20, %v7479_v63  ;;  %v8697_v25 = vadd.f32 %v8696_v22, %v8695_v21  ;;  %v8724_v30 = vpop.f32.mrb[55].mxu1 }
 0x343   : > { %v8725_v32 = vadd.f32 %v8724_v30, %v8723_v29 }
 0x344   : > { %v7531_v27 = vadd.f32 %v8697_v25, %v7482_v46  ;;  %v7577_v31 = vadd.f32 %v8722_v28, %v7528_v23 }
 0x346   : > { %v7580_v33 = vadd.f32 %v8725_v32, %v7531_v27  ;;  %v7839_v27 = vld [vmem:[%s4455_s28] sm:$0x1] }
 0x356   : > { %v8742_v34 = vpop.f32.mrb[56].mxu0 }
 0x357   : > { %v8770_v36 = vpop.f32.mrb[56].mxu1  ;;  %v8743_v37 = vpop.f32.mrb[57].mxu0 }
 0x358   : > { %v8771_v38 = vpop.f32.mrb[57].mxu1  ;;  %v8744_v39 = vadd.f32 %v8743_v37, %v8742_v34  ;;  %v8745_v41 = vpop.f32.mrb[58].mxu0 }
 0x359   : > { %v8772_v40 = vadd.f32 %v8771_v38, %v8770_v36  ;;  %v8773_v42 = vpop.f32.mrb[58].mxu1  ;;  %v8746_v43 = vpop.f32.mrb[59].mxu0 }
 0x35a   : > { %v8774_v44 = vpop.f32.mrb[59].mxu1  ;;  %v7618_v45 = vadd.f32 %v8744_v39, %v7569_v15  ;;  %v8747_v47 = vadd.f32 %v8746_v43, %v8745_v41  ;;  %v7877_v41 = vld [vmem:[%s4423_s18 + $0x8] sm:$0xff] }
 0x35b   : > { %v8775_v48 = vadd.f32 %v8774_v44, %v8773_v42 }
 0x35c   : > { %v7667_v49 = vadd.f32 %v8772_v40, %v7618_v45  ;;  %v7621_v50 = vadd.f32 %v8747_v47, %v7572_v17  ;;  %v7876_v40 = vld [vmem:[%s4423_s18] sm:$0xff] }
 0x35e   : > { %v7670_v51 = vadd.f32 %v8775_v48, %v7621_v50  ;;  %v8748_v52 = vpop.f32.mrb[60].mxu0 }
 0x35f   : > { %v8776_v53 = vpop.f32.mrb[60].mxu1  ;;  %v8749_v54 = vpop.f32.mrb[61].mxu0 }
 0x360   : > { %v8777_v55 = vpop.f32.mrb[61].mxu1  ;;  %v8815_v56 = vpack.c.bf16 %v7670_v51, %v7667_v49  ;;  %v8750_v57 = vadd.f32 %v8749_v54, %v8748_v52  ;;  %v8751_v59 = vpop.f32.mrb[62].mxu0 }
 0x361   : > { %v8778_v58 = vadd.f32 %v8777_v55, %v8776_v53  ;;  %v8779_v35 = vpop.f32.mrb[62].mxu1  ;;  %v8752_v60 = vpop.f32.mrb[63].mxu0 }
 0x362   : > { %v8780_v61 = vpop.f32.mrb[63].mxu1  ;;  %v7626_v62 = vadd.f32 %v8750_v57, %v7577_v31  ;;  %v8753_v63 = vadd.f32 %v8752_v60, %v8751_v59  ;;  %8816 = vmatpush3.bf16.msra.mxu0 %v8815_v56 }
 0x363   : > { %v8781_v1 = vadd.f32 %v8780_v61, %v8779_v35  ;;  %8817 = vmatprep.subr.bf16.mxu0 %v9142_v0 }
 0x364   : > { %v7675_v46 = vadd.f32 %v8778_v58, %v7626_v62  ;;  %v7629_v2 = vadd.f32 %v8753_v63, %v7580_v33 }
 0x366   : > { %v7678_v3 = vadd.f32 %v8781_v1, %v7629_v2 }
 0x368   : > { %v8818_v4 = vpack.c.bf16 %v7678_v3, %v7675_v46 }
 0x36a   : > { %8819 = vmatpush3.bf16.msra.mxu0 %v8818_v4  ;;  %v7896_v4 = vld [vmem:[#allocation2] sm:$0xff] }
 0x36d   : > { %8801 = vmatmul.mubr.msk.f32.vlgmr.msra.gmra.mrb[64].mxu0 %vm7681_vm1, %v9145_v5 }
 0x440   : > { %v7751_v9 = vpop.f32.mrb[64].mxu0 }
 0x441   : > { %v7755_v10 = vmul.f32 0.03125, %v7751_v9  ;;  %v8802_v11 = vpop.f32.mrb[65].mxu0 }
 0x443   : > { %v7759_v12 = vrot.slane %v7755_v10, %v7758_v8 }
 0x445   : > { %v7760_v13 = vsub.f32 %v7667_v49, %v7759_v12  ;;  %v7761_v14 = vsub.f32 %v7670_v51, %v7759_v12  ;;  %v7762_v15 = vsub.f32 %v7675_v46, %v7759_v12  ;;  %v7763_v16 = vsub.f32 %v7678_v3, %v7759_v12 }
 0x447   : > { %v7764_v17 = vmul.f32 %v7760_v13, %v7760_v13  ;;  %v7765_v18 = vmul.f32 %v7761_v14, %v7761_v14  ;;  %v7766_v20 = vmul.f32 %v7762_v15, %v7762_v15  ;;  %v7767_v21 = vmul.f32 %v7763_v16, %v7763_v16 }
 0x449   : > { %v8821_v19 = vpack.c.bf16 %v7765_v18, %v7764_v17  ;;  %v8824_v22 = vpack.c.bf16 %v7767_v21, %v7766_v20 }
 0x44b   : > { %8822 = vmatpush3.bf16.msra.mxu1 %v8821_v19 }
 0x44c   : > { %8823 = vmatprep.subr.bf16.mxu1 %v9142_v0  ;;  %v8329_v0 = vld [vmem:[%s4458_s30] ss:$0 sm:$0xff] }
 0x44f   : > { %8825 = vmatpush3.bf16.msra.mxu1 %v8824_v22 }
 0x452   : > { %8812 = vmatmul.mubr.msk.f32.vlgmr.msra.gmra.mrb[64].mxu1 %vm7681_vm1, %v9145_v5 }
 0x525   : > { %v7834_v23 = vpop.f32.mrb[64].mxu1 }
 0x526   : > { %v7838_v24 = vmul.f32 0.03125, %v7834_v23  ;;  %v8813_v25 = vpop.f32.mrb[65].mxu1 }
 0x528   : > { %v7840_v26 = vadd.f32 1e-05, %v7838_v24 }
 0x52a   : > { %9111 = vrsqrt.f32 %v7840_v26 }
 0x534   : > { %v9112_v28 = vpop.eup %9111 }
 0x535   : > { %v7842_v29 = vmul.f32 %v9112_v28, %v7839_v27 }
 0x537   : > { %v7847_v30 = vrot.slane %v7842_v29, %v7758_v8 }
 0x539   : > { %v7849_v31 = vmul.f32 %v7847_v30, %v7760_v13  ;;  %v7850_v32 = vmul.f32 %v7847_v30, %v7761_v14  ;;  %v7851_v33 = vmul.f32 %v7847_v30, %v7762_v15  ;;  %v7852_v34 = vmul.f32 %v7847_v30, %v7763_v16 }
 0x53b   : > { %v7860_v36 = vadd.f32 %v8329_v0, %v7849_v31  ;;  %v7861_v37 = vadd.f32 %v8329_v0, %v7850_v32  ;;  %v7862_v38 = vadd.f32 %v8329_v0, %v7851_v33  ;;  %v7863_v39 = vadd.f32 %v8329_v0, %v7852_v34 }
 0x53d   : > { %vm7864_vm2 = vcmp.gt.f32.partialorder %v7860_v36, 0.0  ;;  %vm7865_vm3 = vcmp.gt.f32.partialorder %v7861_v37, 0.0  ;;  %vm7866_vm4 = vcmp.gt.f32.partialorder %v7862_v38, 0.0  ;;  %vm7867_vm5 = vcmp.gt.f32.partialorder %v7863_v39, 0.0 }
 0x53e   : > { %v7868_v42 = vmul.f32 0.2, %v7860_v36  ;;  %v7869_v43 = vmul.f32 0.2, %v7861_v37  ;;  %v7870_v44 = vmul.f32 0.2, %v7862_v38 }
 0x53f   : > { %v7871_v45 = vmul.f32 0.2, %v7863_v39 }
 0x540   : > { %v7872_v47 = vsel %vm7864_vm2, %v7860_v36, %v7868_v42  ;;  %v7873_v48 = vsel %vm7865_vm3, %v7861_v37, %v7869_v43  ;;  %v7874_v49 = vsel %vm7866_vm4, %v7862_v38, %v7870_v44 }
 0x541   : > { %v7875_v50 = vsel %vm7867_vm5, %v7863_v39, %v7871_v45  ;;  %v7878_v51 = vmul.f32 %v7876_v40, %v7872_v47  ;;  %v7879_v52 = vmul.f32 %v7877_v41, %v7873_v48  ;;  %v7887_v53 = vmul.f32 %v7876_v40, %v7874_v49 }
 0x542   : > { %v7888_v54 = vmul.f32 %v7877_v41, %v7875_v50 }
 0x543   : > { %v7880_v55 = vadd.f32 %v7879_v52, %v7878_v51 }
 0x544   : > { %v7889_v56 = vadd.f32 %v7888_v54, %v7887_v53 }
 0x545   : > { %v7881_v57 = vrot.slane %v7880_v55, 4 }
 0x546   : > { %v7890_v58 = vrot.slane %v7889_v56, 4 }
 0x547   : > { %v7882_v59 = vadd.f32 %v7881_v57, %v7880_v55 }
 0x548   : > { %v7891_v35 = vadd.f32 %v7890_v58, %v7889_v56 }
 0x549   : > { %v7883_v60 = vrot.slane %v7882_v59, 2 }
 0x54a   : > { %v7892_v61 = vrot.slane %v7891_v35, 2 }
 0x54b   : > { %v7884_v62 = vadd.f32 %v7883_v60, %v7882_v59 }
 0x54c   : > { %v7893_v63 = vadd.f32 %v7892_v61, %v7891_v35 }
 0x54d   : > { %v7885_v1 = vrot.slane %v7884_v62, 1 }
 0x54e   : > { %v7894_v46 = vrot.slane %v7893_v63, 1 }
 0x54f   : > { %v7886_v2 = vadd.f32 %v7885_v1, %v7884_v62 }
 0x550   : > { %v7895_v3 = vadd.f32 %v7894_v46, %v7893_v63  ;;  %7906 = sbr.rel (%p8330_p10) target bundleno = 1544 (0x608), region = 138 }
 0x552   : > { %v7898_v5 = vsel %vm7897_vm6, %v7886_v2, %v7895_v3 }
 0x553   : > { %v7900_v6 = vsel %vm7899_vm7, %v7898_v5, 0.0 }
 0x554   : > { %v7901_v7 = vadd.f32 %v7900_v6, %v7896_v4 }
 0x556   : > { %7902 = vst [vmem:[#allocation2] sm:$0xff] %v7901_v7 }
 0x55d   : > { %v7907_v8 = vld [vmem:[#allocation2] sm:$0x3] }
 0x55e   : > { %v7908_v9 = vsel %vm7899_vm7, %v7907_v8, 0.0 }
 0x55f   : > { %7909 = vadd.xlane.f32.xlu0 %v7908_v9 }
 0x5ec   : > { %v7910_v10 = vpop.xlane.xlu0 %7909 }
 0x5ed   : > { %v8331_v11 = vmul.f32 -1.442695, %v7910_v10 }
 0x5ef   : > { %9113 = vpow2.f32 %v8331_v11 }
 0x5f9   : > { %v9114_v12 = vpop.eup %9113 }
 0x5fa   : > { %v7914_v13 = vadd.f32 1.0, %v9114_v12 }
 0x5fc   : > { %9115 = vrcp.f32 %v7914_v13 }
 0x606   : > { %v9116_v14 = vpop.eup %9115 }
 0x607   : > { %7917 = vst [vmem:[%s10767_s5] sm:$0x3] %v9116_v14 }
 0x608 PF: > { %p12_p11 = scmp.ge.s32.totalorder %s9195_s22, 6   ;;  %s10769_s18 = smov %s9135_s19 }
 0x609   : > { %s10770_s19 = smov %s9204_s25  ;;  %s10771_s20 = smov %s9195_s22 }
 0x60a   :  { %14 = sbr.rel (!%p12_p11) target bundleno = 2 (0x2), region = 187 }

</bundles_post_ra>
